<compile_context>
chip_gen: v6e
topology: v6e:2x2x1
jax: 0.10.0
libtpu: 0.0.40
codegen_flags: <defaults>
</compile_context>

<pallas_src>
import math

import jax
import jax.numpy as jnp
from jax.experimental import pallas as pl
from jax.experimental.pallas import tpu as pltpu

HIDDEN = 256          # LSTM hidden size fixed by the module
HEAD_LANES = 128      # actor + critic packed and padded to one lane tile
VMEM_LIMIT = 24 * 1024 * 1024


def _vmem():
    return pl.BlockSpec(memory_space=pltpu.MemorySpace.VMEM)


# --------------------------------------------------------------------------
# Kernel 1: conv1 as a channel-major matmul  o = relu(W @ cols + b)
# --------------------------------------------------------------------------
def _conv1_kernel(w_ref, cols_ref, b_ref, o_ref):
    """W: (16, K) bf16, cols: (K, B*OH*OW) bf16, b: (16, 1) f32 -> bf16 out."""
    y = jnp.dot(w_ref[...], cols_ref[...], preferred_element_type=jnp.float32)
    o_ref[...] = jnp.maximum(y + b_ref[...], 0.0).astype(o_ref.dtype)


def conv1(w, cols, b):
    co, k = w.shape
    k2, p = cols.shape
    assert k == k2
    return pl.pallas_call(
        _conv1_kernel,
        out_shape=jax.ShapeDtypeStruct((co, p), jnp.bfloat16),
        in_specs=[_vmem(), _vmem(), _vmem()],
        out_specs=_vmem(),
        compiler_params=pltpu.CompilerParams(vmem_limit_bytes=VMEM_LIMIT),
    )(w, cols, b)


# --------------------------------------------------------------------------
# Kernel 2 (fused): conv2 + flatten + LSTMCell + merged actor/critic head.
# Output is one lane-dense (B, 2*HIDDEN + HEAD_LANES) f32 slab:
#   [:, 0:256]   = h_new
#   [:, 256:512] = c_new
#   [:, 512:640] = heads (cols [0:A] actor, col [A] critic, rest zero)
# --------------------------------------------------------------------------
def _fused_tail_kernel(cols2_ref, hx_ref, cx_ref, w2_ref, b2_ref,
                       wih_ref, whh_ref, bg_ref, whead_ref, bhead_ref,
                       out_ref, xflat_ref):
    f32 = jnp.float32
    batch = out_ref.shape[0]
    cout2 = w2_ref.shape[0]                    # 32
    p = cols2_ref.shape[1] // batch            # 81 output pixels per image

    # ---- conv2 (channel-major matmul) + bias + ReLU; stays in VMEM --------
    y2 = jnp.dot(w2_ref[...], cols2_ref[...], preferred_element_type=f32)
    y2 = jnp.maximum(y2 + b2_ref[...], 0.0)    # (32, B*81) f32
    # conv2_drop is identity (p = 0.0)

    # ---- flatten to torch x.view(B, -1) order: x[b, c*81+q] = y2[c, b*81+q].
    # 64 tiny static-slice stores into a VMEM scratch; hidden under the
    # 5.3 MB w_ih stream.
    for c in range(cout2):
        for b in range(batch):
            xflat_ref[b:b + 1, c * p:(c + 1) * p] = (
                y2[c:c + 1, b * p:(b + 1) * p])

    # ---- LSTMCell (bf16 streamed operands, f32 accumulation & gate math) --
    x_bf = xflat_ref[...].astype(jnp.bfloat16)
    h_bf = hx_ref[...].astype(jnp.bfloat16)
    gates = (
        jnp.dot(x_bf, wih_ref[...], preferred_element_type=f32)
        + jnp.dot(h_bf, whh_ref[...], preferred_element_type=f32)
        + bg_ref[...]
    )
    # PyTorch LSTMCell gate order: i, f, g, o
    i = jax.nn.sigmoid(gates[:, 0 * HIDDEN:1 * HIDDEN])
    f = jax.nn.sigmoid(gates[:, 1 * HIDDEN:2 * HIDDEN])
    g = jnp.tanh(gates[:, 2 * HIDDEN:3 * HIDDEN])
    o = jax.nn.sigmoid(gates[:, 3 * HIDDEN:4 * HIDDEN])

    c_new = f * cx_ref[...] + i * g
    h_new = o * jnp.tanh(c_new)

    # ---- merged actor+critic head: ONE bf16 matmul on [h_new | c_new].
    # Note: per the module spec, actor_linear(hx_new) and critic_linear(cx_new).
    hc = jnp.concatenate([h_new, c_new], axis=1)           # (B, 512) f32
    heads = (jnp.dot(hc.astype(jnp.bfloat16), whead_ref[...],
                     preferred_element_type=f32) + bhead_ref[...])

    out_ref[:, 0:2 * HIDDEN] = hc
    out_ref[:, 2 * HIDDEN:2 * HIDDEN + HEAD_LANES] = heads


def fused_tail(cols2, hx, cx, prep):
    batch = hx.shape[0]
    p = cols2.shape[1] // batch
    xdim = prep["w2"].shape[0] * p             # 32 * 81 = 2592
    return pl.pallas_call(
        _fused_tail_kernel,
        out_shape=jax.ShapeDtypeStruct((batch, 2 * HIDDEN + HEAD_LANES),
                                       jnp.float32),
        in_specs=[_vmem()] * 10,
        out_specs=_vmem(),
        scratch_shapes=[pltpu.VMEM((batch, xdim), jnp.float32)],
        compiler_params=pltpu.CompilerParams(vmem_limit_bytes=VMEM_LIMIT),
    )(cols2, hx, cx,
      prep["w2"], prep["b2"],
      prep["w_ih"], prep["w_hh"], prep["b_g"],
      prep["w_head"], prep["b_head"])


# --------------------------------------------------------------------------
# Wrapper-side im2col (cheap strided slices + one concat; fuses in XLA)
# --------------------------------------------------------------------------
def _im2col_t(x_cbhw, ksize, stride):
    """x_cbhw: (C, B, H, W) -> cols: (C*K*K, B*OH*OW).

    Row (feature) order is (kh, kw, c); column order is (b, oh, ow) --
    matching the (Cout, KH, KW, Cin)-reordered conv weights from
    prepare_params().
    """
    c, b, h, w = x_cbhw.shape
    oh = (h - ksize) // stride + 1
    ow = (w - ksize) // stride + 1
    pieces = []
    for kh in range(ksize):
        for kw in range(ksize):
            pieces.append(
                x_cbhw[:, :,
                       kh:kh + stride * (oh - 1) + 1:stride,
                       kw:kw + stride * (ow - 1) + 1:stride]
                .reshape(c, b * oh * ow))
    return jnp.concatenate(pieces, axis=0), oh, ow


# --------------------------------------------------------------------------
# Parameters: torch-layout init + ONE-TIME kernel-layout preparation
# --------------------------------------------------------------------------
def xavier_uniform(key, shape, fan_in, fan_out):
    bound = math.sqrt(6.0 / (fan_in + fan_out))
    return jax.random.uniform(key, shape, jnp.float32, -bound, bound)


def init_params(key, num_inputs, num_actions):
    keys = jax.random.split(key, 8)
    lstm_in = 32 * 9 * 9
    k_lstm = 1.0 / math.sqrt(HIDDEN)
    return {
        "conv1_w": xavier_uniform(keys[0], (16, num_inputs, 8, 8),
                                  num_inputs * 64, 16 * 64),
        "conv1_b": jnp.zeros((16,), jnp.float32),
        "conv2_w": xavier_uniform(keys[1], (32, 16, 4, 4), 16 * 16, 32 * 16),
        "conv2_b": jnp.zeros((32,), jnp.float32),
        # torch LSTMCell default weight init U(-1/sqrt(H), 1/sqrt(H)); biases 0
        "lstm_w_ih": jax.random.uniform(keys[2], (4 * HIDDEN, lstm_in),
                                        jnp.float32, -k_lstm, k_lstm),
        "lstm_w_hh": jax.random.uniform(keys[3], (4 * HIDDEN, HIDDEN),
                                        jnp.float32, -k_lstm, k_lstm),
        "lstm_b_ih": jnp.zeros((4 * HIDDEN,), jnp.float32),
        "lstm_b_hh": jnp.zeros((4 * HIDDEN,), jnp.float32),
        "actor_w": xavier_uniform(keys[4], (num_actions, HIDDEN),
                                  HIDDEN, num_actions),
        "actor_b": jnp.zeros((num_actions,), jnp.float32),
        "critic_w": xavier_uniform(keys[5], (1, HIDDEN), HIDDEN, 1),
        "critic_b": jnp.zeros((1,), jnp.float32),
    }


def prepare_params(params, num_actions):
    """One-time re-layout of torch-style parameters into kernel layouts."""
    bf16, f32 = jnp.bfloat16, jnp.float32
    prep = {
        # conv weights in (Cout, KH*KW*Cin) order (matches _im2col_t rows)
        "w1": jnp.transpose(params["conv1_w"], (0, 2, 3, 1))
                 .reshape(16, -1).astype(bf16),
        "b1": params["conv1_b"].reshape(16, 1).astype(f32),
        "w2": jnp.transpose(params["conv2_w"], (0, 2, 3, 1))
                 .reshape(32, -1).astype(bf16),
        "b2": params["conv2_b"].reshape(32, 1).astype(f32),
        # LSTM weights pre-transposed to (K, 4H); b_ih + b_hh fused once.
        "w_ih": params["lstm_w_ih"].T.astype(bf16),          # (2592, 1024)
        "w_hh": params["lstm_w_hh"].T.astype(bf16),          # (256, 1024)
        "b_g": (params["lstm_b_ih"] + params["lstm_b_hh"])
                  .reshape(1, 4 * HIDDEN).astype(f32),
    }
    # actor + critic merged into ONE padded 128-lane head matmul on [h | c]:
    #   heads = [h_new | c_new] @ w_head + b_head
    wh = jnp.zeros((2 * HIDDEN, HEAD_LANES), f32)
    wh = wh.at[:HIDDEN, :num_actions].set(params["actor_w"].T)
    wh = wh.at[HIDDEN:, num_actions].set(params["critic_w"][0, :])
    bh = jnp.zeros((1, HEAD_LANES), f32)
    bh = bh.at[0, :num_actions].set(params["actor_b"])
    bh = bh.at[0, num_actions].set(params["critic_b"][0])
    prep["w_head"] = wh.astype(bf16)
    prep["b_head"] = bh
    return prep


# --------------------------------------------------------------------------
# Forward pass (matches the PyTorch module; dropout p=0 -> identity)
# --------------------------------------------------------------------------
def make_forward(num_actions):
    @jax.jit
    def forward(prep, x, hx, cx):
        batch = x.shape[0]
        # (C, B, H, W) channel-major bf16 view; the cast + transpose fuse into
        # the im2col slicing fusion below (no separate dispatches).
        xb = jnp.transpose(x.astype(jnp.bfloat16), (1, 0, 2, 3))

        # conv1 (8x8, stride 4) + ReLU    [conv1_drop p=0 -> identity]
        cols1, oh1, ow1 = _im2col_t(xb, 8, 4)          # (Cin*64, B*400)
        y1 = conv1(prep["w1"], cols1, prep["b1"])      # (16, B*400) bf16

        # conv2 im2col on the tiny conv1 output (one XLA fusion), then the
        # fused conv2 + flatten + LSTMCell + heads kernel.
        cols2, oh2, ow2 = _im2col_t(y1.reshape(16, batch, oh1, ow1), 4, 2)
        assert oh2 * ow2 == 81                         # LSTM in = 32*9*9
        out = fused_tail(cols2, hx, cx, prep)          # (B, 640) f32

        h_new = out[:, :HIDDEN]
        c_new = out[:, HIDDEN:2 * HIDDEN]
        actor = out[:, 2 * HIDDEN:2 * HIDDEN + num_actions]
        critic = out[:, 2 * HIDDEN + num_actions:2 * HIDDEN + num_actions + 1]
        # actor_drop / critic_drop are identity (p = 0.0)
        return actor, critic, h_new, c_new

    return forward


# --------------------------------------------------------------------------
# Pure-JAX reference. Operands are rounded to bf16 at the same points the
# kernels do (math in f32), so it tracks the kernel path to ~1e-4 while
# keeping the exact module semantics.
# --------------------------------------------------------------------------
def reference_forward(params, x, hx, cx):
    f32 = jnp.float32
    q = lambda a: a.astype(jnp.bfloat16).astype(f32)

    y = jax.lax.conv_general_dilated(
        q(x), q(params["conv1_w"]), (4, 4), "VALID",
        dimension_numbers=("NCHW", "OIHW", "NCHW"))
    y = q(jax.nn.relu(y + params["conv1_b"].reshape(1, -1, 1, 1)))
    y = jax.lax.conv_general_dilated(
        y, q(params["conv2_w"]), (2, 2), "VALID",
        dimension_numbers=("NCHW", "OIHW", "NCHW"))
    y = jax.nn.relu(y + params["conv2_b"].reshape(1, -1, 1, 1))   # f32
    xf = y.reshape(x.shape[0], -1)

    gates = (q(xf) @ q(params["lstm_w_ih"]).T + params["lstm_b_ih"]
             + q(hx) @ q(params["lstm_w_hh"]).T + params["lstm_b_hh"])
    i, f, g, o = jnp.split(gates, 4, axis=1)
    i, f, o = jax.nn.sigmoid(i), jax.nn.sigmoid(f), jax.nn.sigmoid(o)
    g = jnp.tanh(g)
    c_new = f * cx + i * g
    h_new = o * jnp.tanh(c_new)
    actor = q(h_new) @ q(params["actor_w"]).T + params["actor_b"]
    critic = q(c_new) @ q(params["critic_w"]).T + params["critic_b"]
    return actor, critic, h_new, c_new


if __name__ == "__main__":
    BATCH = 2
    NUM_INPUTS = 4      # input channels
    NUM_ACTIONS = 6
    # spatial must be 84: 84 -conv1(8,s4)-> 20 -conv2(4,s2)-> 9, LSTM in = 32*9*9
    H = W = 84

    key = jax.random.PRNGKey(0)
    k_par, k_x, k_h, k_c = jax.random.split(key, 4)
    params = init_params(k_par, NUM_INPUTS, NUM_ACTIONS)
    prep = prepare_params(params, NUM_ACTIONS)   # one-time weight re-layout
    forward = make_forward(NUM_ACTIONS)

    x = jax.random.normal(k_x, (BATCH, NUM_INPUTS, H, W), jnp.float32)
    hx = jax.random.normal(k_h, (BATCH, HIDDEN), jnp.float32)
    cx = jax.random.normal(k_c, (BATCH, HIDDEN), jnp.float32)

    actor, critic, h_new, c_new = forward(prep, x, hx, cx)
    jax.block_until_ready((actor, critic, h_new, c_new))

    # correctness check
    ra, rc, rh, rcn = reference_forward(params, x, hx, cx)
    assert actor.shape == (BATCH, NUM_ACTIONS) and critic.shape == (BATCH, 1)
    assert h_new.shape == (BATCH, HIDDEN) and c_new.shape == (BATCH, HIDDEN)
    for got, ref in ((actor, ra), (critic, rc), (h_new, rh), (c_new, rcn)):
        assert jnp.allclose(got, ref, atol=5e-3, rtol=5e-3), "mismatch vs reference"

    print("KERNEL_OK")
</pallas_src>

<mosaic_0001>
module attributes {stable_mosaic.version = 11 : i64} {
  func.func @_conv1_kernel(%arg0: memref<16x256xbf16, #tpu.memory_space<vmem>>, %arg1: memref<256x800xbf16, #tpu.memory_space<vmem>>, %arg2: memref<16x1xf32, #tpu.memory_space<vmem>>, %arg3: memref<16x800xbf16, #tpu.memory_space<vmem>>) attributes {dimension_semantics = [], scalar_prefetch = 0 : i64, scratch_operands = 0 : i64, tpu.core_type = #tpu.core_type<tc>} {
    %c0 = arith.constant 0 : index
    %c0_0 = arith.constant 0 : index
    %0 = vector.load %arg0[%c0, %c0_0] : memref<16x256xbf16, #tpu.memory_space<vmem>>, vector<16x256xbf16>
    %c0_1 = arith.constant 0 : index
    %c0_2 = arith.constant 0 : index
    %1 = vector.load %arg1[%c0_1, %c0_2] : memref<256x800xbf16, #tpu.memory_space<vmem>>, vector<256x800xbf16>
    %cst = arith.constant dense<0.000000e+00> : vector<16x800xf32>
    %2 = tpu.matmul %0, %1, %cst {dimension_numbers = #tpu.dot_dimension_numbers<[1], [0], [0], [1], [0, 0, 1, 1], [], []>} : vector<16x256xbf16>, vector<256x800xbf16>, vector<16x800xf32> -> vector<16x800xf32>
    %c0_3 = arith.constant 0 : index
    %c0_4 = arith.constant 0 : index
    %3 = vector.load %arg2[%c0_3, %c0_4] : memref<16x1xf32, #tpu.memory_space<vmem>>, vector<16x1xf32>
    %4 = vector.broadcast %3 : vector<16x1xf32> to vector<16x800xf32>
    %5 = arith.addf %2, %4 : vector<16x800xf32>
    %cst_5 = arith.constant 0.000000e+00 : f32
    %6 = vector.broadcast %cst_5 : f32 to vector<16x800xf32>
    %7 = arith.maximumf %5, %6 : vector<16x800xf32>
    %8 = arith.truncf %7 : vector<16x800xf32> to vector<16x800xbf16>
    %c0_6 = arith.constant 0 : index
    %c0_7 = arith.constant 0 : index
    %9 = vector.load %arg3[%c0_6, %c0_7] : memref<16x800xbf16, #tpu.memory_space<vmem>>, vector<16x800xbf16>
    tpu.vector_store %arg3[%c0_6, %c0_7], %8 {strides = array<i32>} : memref<16x800xbf16, #tpu.memory_space<vmem>>, vector<16x800xbf16>,
    return
  }
}

module attributes {stable_mosaic.version = 11 : i64} {
  func.func @_fused_tail_kernel(%arg0: memref<256x162xbf16, #tpu.memory_space<vmem>>, %arg1: memref<2x256xf32, #tpu.memory_space<vmem>>, %arg2: memref<2x256xf32, #tpu.memory_space<vmem>>, %arg3: memref<32x256xbf16, #tpu.memory_space<vmem>>, %arg4: memref<32x1xf32, #tpu.memory_space<vmem>>, %arg5: memref<2592x1024xbf16, #tpu.memory_space<vmem>>, %arg6: memref<256x1024xbf16, #tpu.memory_space<vmem>>, %arg7: memref<1x1024xf32, #tpu.memory_space<vmem>>, %arg8: memref<512x128xbf16, #tpu.memory_space<vmem>>, %arg9: memref<1x128xf32, #tpu.memory_space<vmem>>, %arg10: memref<2x640xf32, #tpu.memory_space<vmem>>, %arg11: memref<2x2592xf32, #tpu.memory_space<vmem>>) attributes {dimension_semantics = [], scalar_prefetch = 0 : i64, scratch_operands = 1 : i64, tpu.core_type = #tpu.core_type<tc>} {
    %c0 = arith.constant 0 : index
    %c0_0 = arith.constant 0 : index
    %0 = vector.load %arg3[%c0, %c0_0] : memref<32x256xbf16, #tpu.memory_space<vmem>>, vector<32x256xbf16>
    %c0_1 = arith.constant 0 : index
    %c0_2 = arith.constant 0 : index
    %1 = vector.load %arg0[%c0_1, %c0_2] : memref<256x162xbf16, #tpu.memory_space<vmem>>, vector<256x162xbf16>
    %cst = arith.constant dense<0.000000e+00> : vector<32x162xf32>
    %2 = tpu.matmul %0, %1, %cst {dimension_numbers = #tpu.dot_dimension_numbers<[1], [0], [0], [1], [0, 0, 1, 1], [], []>} : vector<32x256xbf16>, vector<256x162xbf16>, vector<32x162xf32> -> vector<32x162xf32>
    %c0_3 = arith.constant 0 : index
    %c0_4 = arith.constant 0 : index
    %3 = vector.load %arg4[%c0_3, %c0_4] : memref<32x1xf32, #tpu.memory_space<vmem>>, vector<32x1xf32>
    %4 = vector.broadcast %3 : vector<32x1xf32> to vector<32x162xf32>
    %5 = arith.addf %2, %4 : vector<32x162xf32>
    %cst_5 = arith.constant 0.000000e+00 : f32
    %6 = vector.broadcast %cst_5 : f32 to vector<32x162xf32>
    %7 = arith.maximumf %5, %6 : vector<32x162xf32>
    %8 = vector.extract_strided_slice %7 {offsets = [0, 0], sizes = [1, 81], strides = [1, 1]} : vector<32x162xf32> to vector<1x81xf32>
    %c0_6 = arith.constant 0 : index
    %c0_7 = arith.constant 0 : index
    %9 = vector.load %arg11[%c0_6, %c0_7] : memref<2x2592xf32, #tpu.memory_space<vmem>>, vector<1x81xf32>
    tpu.vector_store %arg11[%c0_6, %c0_7], %8 {strides = array<i32>} : memref<2x2592xf32, #tpu.memory_space<vmem>>, vector<1x81xf32>,
    %10 = vector.extract_strided_slice %7 {offsets = [0, 81], sizes = [1, 81], strides = [1, 1]} : vector<32x162xf32> to vector<1x81xf32>
    %c1 = arith.constant 1 : index
    %c0_8 = arith.constant 0 : index
    %11 = vector.load %arg11[%c1, %c0_8] : memref<2x2592xf32, #tpu.memory_space<vmem>>, vector<1x81xf32>
    tpu.vector_store %arg11[%c1, %c0_8], %10 {strides = array<i32>} : memref<2x2592xf32, #tpu.memory_space<vmem>>, vector<1x81xf32>,
    %12 = vector.extract_strided_slice %7 {offsets = [1, 0], sizes = [1, 81], strides = [1, 1]} : vector<32x162xf32> to vector<1x81xf32>
    %c0_9 = arith.constant 0 : index
    %c81 = arith.constant 81 : index
    %13 = vector.load %arg11[%c0_9, %c81] : memref<2x2592xf32, #tpu.memory_space<vmem>>, vector<1x81xf32>
    tpu.vector_store %arg11[%c0_9, %c81], %12 {strides = array<i32>} : memref<2x2592xf32, #tpu.memory_space<vmem>>, vector<1x81xf32>,
    %14 = vector.extract_strided_slice %7 {offsets = [1, 81], sizes = [1, 81], strides = [1, 1]} : vector<32x162xf32> to vector<1x81xf32>
    %c1_10 = arith.constant 1 : index
    %c81_11 = arith.constant 81 : index
    %15 = vector.load %arg11[%c1_10, %c81_11] : memref<2x2592xf32, #tpu.memory_space<vmem>>, vector<1x81xf32>
    tpu.vector_store %arg11[%c1_10, %c81_11], %14 {strides = array<i32>} : memref<2x2592xf32, #tpu.memory_space<vmem>>, vector<1x81xf32>,
    %16 = vector.extract_strided_slice %7 {offsets = [2, 0], sizes = [1, 81], strides = [1, 1]} : vector<32x162xf32> to vector<1x81xf32>
    %c0_12 = arith.constant 0 : index
    %c162 = arith.constant 162 : index
    %17 = vector.load %arg11[%c0_12, %c162] : memref<2x2592xf32, #tpu.memory_space<vmem>>, vector<1x81xf32>
    tpu.vector_store %arg11[%c0_12, %c162], %16 {strides = array<i32>} : memref<2x2592xf32, #tpu.memory_space<vmem>>, vector<1x81xf32>,
    %18 = vector.extract_strided_slice %7 {offsets = [2, 81], sizes = [1, 81], strides = [1, 1]} : vector<32x162xf32> to vector<1x81xf32>
    %c1_13 = arith.constant 1 : index
    %c162_14 = arith.constant 162 : index
    %19 = vector.load %arg11[%c1_13, %c162_14] : memref<2x2592xf32, #tpu.memory_space<vmem>>, vector<1x81xf32>
    tpu.vector_store %arg11[%c1_13, %c162_14], %18 {strides = array<i32>} : memref<2x2592xf32, #tpu.memory_space<vmem>>, vector<1x81xf32>,
    %20 = vector.extract_strided_slice %7 {offsets = [3, 0], sizes = [1, 81], strides = [1, 1]} : vector<32x162xf32> to vector<1x81xf32>
    %c0_15 = arith.constant 0 : index
    %c243 = arith.constant 243 : index
    %21 = vector.load %arg11[%c0_15, %c243] : memref<2x2592xf32, #tpu.memory_space<vmem>>, vector<1x81xf32>
    tpu.vector_store %arg11[%c0_15, %c243], %20 {strides = array<i32>} : memref<2x2592xf32, #tpu.memory_space<vmem>>, vector<1x81xf32>,
    %22 = vector.extract_strided_slice %7 {offsets = [3, 81], sizes = [1, 81], strides = [1, 1]} : vector<32x162xf32> to vector<1x81xf32>
    %c1_16 = arith.constant 1 : index
    %c243_17 = arith.constant 243 : index
    %23 = vector.load %arg11[%c1_16, %c243_17] : memref<2x2592xf32, #tpu.memory_space<vmem>>, vector<1x81xf32>
    tpu.vector_store %arg11[%c1_16, %c243_17], %22 {strides = array<i32>} : memref<2x2592xf32, #tpu.memory_space<vmem>>, vector<1x81xf32>,
    %24 = vector.extract_strided_slice %7 {offsets = [4, 0], sizes = [1, 81], strides = [1, 1]} : vector<32x162xf32> to vector<1x81xf32>
    %c0_18 = arith.constant 0 : index
    %c324 = arith.constant 324 : index
    %25 = vector.load %arg11[%c0_18, %c324] : memref<2x2592xf32, #tpu.memory_space<vmem>>, vector<1x81xf32>
    tpu.vector_store %arg11[%c0_18, %c324], %24 {strides = array<i32>} : memref<2x2592xf32, #tpu.memory_space<vmem>>, vector<1x81xf32>,
    %26 = vector.extract_strided_slice %7 {offsets = [4, 81], sizes = [1, 81], strides = [1, 1]} : vector<32x162xf32> to vector<1x81xf32>
    %c1_19 = arith.constant 1 : index
    %c324_20 = arith.constant 324 : index
    %27 = vector.load %arg11[%c1_19, %c324_20] : memref<2x2592xf32, #tpu.memory_space<vmem>>, vector<1x81xf32>
    tpu.vector_store %arg11[%c1_19, %c324_20], %26 {strides = array<i32>} : memref<2x2592xf32, #tpu.memory_space<vmem>>, vector<1x81xf32>,
    %28 = vector.extract_strided_slice %7 {offsets = [5, 0], sizes = [1, 81], strides = [1, 1]} : vector<32x162xf32> to vector<1x81xf32>
    %c0_21 = arith.constant 0 : index
    %c405 = arith.constant 405 : index
    %29 = vector.load %arg11[%c0_21, %c405] : memref<2x2592xf32, #tpu.memory_space<vmem>>, vector<1x81xf32>
    tpu.vector_store %arg11[%c0_21, %c405], %28 {strides = array<i32>} : memref<2x2592xf32, #tpu.memory_space<vmem>>, vector<1x81xf32>,
    %30 = vector.extract_strided_slice %7 {offsets = [5, 81], sizes = [1, 81], strides = [1, 1]} : vector<32x162xf32> to vector<1x81xf32>
    %c1_22 = arith.constant 1 : index
    %c405_23 = arith.constant 405 : index
    %31 = vector.load %arg11[%c1_22, %c405_23] : memref<2x2592xf32, #tpu.memory_space<vmem>>, vector<1x81xf32>
    tpu.vector_store %arg11[%c1_22, %c405_23], %30 {strides = array<i32>} : memref<2x2592xf32, #tpu.memory_space<vmem>>, vector<1x81xf32>,
    %32 = vector.extract_strided_slice %7 {offsets = [6, 0], sizes = [1, 81], strides = [1, 1]} : vector<32x162xf32> to vector<1x81xf32>
    %c0_24 = arith.constant 0 : index
    %c486 = arith.constant 486 : index
    %33 = vector.load %arg11[%c0_24, %c486] : memref<2x2592xf32, #tpu.memory_space<vmem>>, vector<1x81xf32>
    tpu.vector_store %arg11[%c0_24, %c486], %32 {strides = array<i32>} : memref<2x2592xf32, #tpu.memory_space<vmem>>, vector<1x81xf32>,
    %34 = vector.extract_strided_slice %7 {offsets = [6, 81], sizes = [1, 81], strides = [1, 1]} : vector<32x162xf32> to vector<1x81xf32>
    %c1_25 = arith.constant 1 : index
    %c486_26 = arith.constant 486 : index
    %35 = vector.load %arg11[%c1_25, %c486_26] : memref<2x2592xf32, #tpu.memory_space<vmem>>, vector<1x81xf32>
    tpu.vector_store %arg11[%c1_25, %c486_26], %34 {strides = array<i32>} : memref<2x2592xf32, #tpu.memory_space<vmem>>, vector<1x81xf32>,
    %36 = vector.extract_strided_slice %7 {offsets = [7, 0], sizes = [1, 81], strides = [1, 1]} : vector<32x162xf32> to vector<1x81xf32>
    %c0_27 = arith.constant 0 : index
    %c567 = arith.constant 567 : index
    %37 = vector.load %arg11[%c0_27, %c567] : memref<2x2592xf32, #tpu.memory_space<vmem>>, vector<1x81xf32>
    tpu.vector_store %arg11[%c0_27, %c567], %36 {strides = array<i32>} : memref<2x2592xf32, #tpu.memory_space<vmem>>, vector<1x81xf32>,
    %38 = vector.extract_strided_slice %7 {offsets = [7, 81], sizes = [1, 81], strides = [1, 1]} : vector<32x162xf32> to vector<1x81xf32>
    %c1_28 = arith.constant 1 : index
    %c567_29 = arith.constant 567 : index
    %39 = vector.load %arg11[%c1_28, %c567_29] : memref<2x2592xf32, #tpu.memory_space<vmem>>, vector<1x81xf32>
    tpu.vector_store %arg11[%c1_28, %c567_29], %38 {strides = array<i32>} : memref<2x2592xf32, #tpu.memory_space<vmem>>, vector<1x81xf32>,
    %40 = vector.extract_strided_slice %7 {offsets = [8, 0], sizes = [1, 81], strides = [1, 1]} : vector<32x162xf32> to vector<1x81xf32>
    %c0_30 = arith.constant 0 : index
    %c648 = arith.constant 648 : index
    %41 = vector.load %arg11[%c0_30, %c648] : memref<2x2592xf32, #tpu.memory_space<vmem>>, vector<1x81xf32>
    tpu.vector_store %arg11[%c0_30, %c648], %40 {strides = array<i32>} : memref<2x2592xf32, #tpu.memory_space<vmem>>, vector<1x81xf32>,
    %42 = vector.extract_strided_slice %7 {offsets = [8, 81], sizes = [1, 81], strides = [1, 1]} : vector<32x162xf32> to vector<1x81xf32>
    %c1_31 = arith.constant 1 : index
    %c648_32 = arith.constant 648 : index
    %43 = vector.load %arg11[%c1_31, %c648_32] : memref<2x2592xf32, #tpu.memory_space<vmem>>, vector<1x81xf32>
    tpu.vector_store %arg11[%c1_31, %c648_32], %42 {strides = array<i32>} : memref<2x2592xf32, #tpu.memory_space<vmem>>, vector<1x81xf32>,
    %44 = vector.extract_strided_slice %7 {offsets = [9, 0], sizes = [1, 81], strides = [1, 1]} : vector<32x162xf32> to vector<1x81xf32>
    %c0_33 = arith.constant 0 : index
    %c729 = arith.constant 729 : index
    %45 = vector.load %arg11[%c0_33, %c729] : memref<2x2592xf32, #tpu.memory_space<vmem>>, vector<1x81xf32>
    tpu.vector_store %arg11[%c0_33, %c729], %44 {strides = array<i32>} : memref<2x2592xf32, #tpu.memory_space<vmem>>, vector<1x81xf32>,
    %46 = vector.extract_strided_slice %7 {offsets = [9, 81], sizes = [1, 81], strides = [1, 1]} : vector<32x162xf32> to vector<1x81xf32>
    %c1_34 = arith.constant 1 : index
    %c729_35 = arith.constant 729 : index
    %47 = vector.load %arg11[%c1_34, %c729_35] : memref<2x2592xf32, #tpu.memory_space<vmem>>, vector<1x81xf32>
    tpu.vector_store %arg11[%c1_34, %c729_35], %46 {strides = array<i32>} : memref<2x2592xf32, #tpu.memory_space<vmem>>, vector<1x81xf32>,
    %48 = vector.extract_strided_slice %7 {offsets = [10, 0], sizes = [1, 81], strides = [1, 1]} : vector<32x162xf32> to vector<1x81xf32>
    %c0_36 = arith.constant 0 : index
    %c810 = arith.constant 810 : index
    %49 = vector.load %arg11[%c0_36, %c810] : memref<2x2592xf32, #tpu.memory_space<vmem>>, vector<1x81xf32>
    tpu.vector_store %arg11[%c0_36, %c810], %48 {strides = array<i32>} : memref<2x2592xf32, #tpu.memory_space<vmem>>, vector<1x81xf32>,
    %50 = vector.extract_strided_slice %7 {offsets = [10, 81], sizes = [1, 81], strides = [1, 1]} : vector<32x162xf32> to vector<1x81xf32>
    %c1_37 = arith.constant 1 : index
    %c810_38 = arith.constant 810 : index
    %51 = vector.load %arg11[%c1_37, %c810_38] : memref<2x2592xf32, #tpu.memory_space<vmem>>, vector<1x81xf32>
    tpu.vector_store %arg11[%c1_37, %c810_38], %50 {strides = array<i32>} : memref<2x2592xf32, #tpu.memory_space<vmem>>, vector<1x81xf32>,
    %52 = vector.extract_strided_slice %7 {offsets = [11, 0], sizes = [1, 81], strides = [1, 1]} : vector<32x162xf32> to vector<1x81xf32>
    %c0_39 = arith.constant 0 : index
    %c891 = arith.constant 891 : index
    %53 = vector.load %arg11[%c0_39, %c891] : memref<2x2592xf32, #tpu.memory_space<vmem>>, vector<1x81xf32>
    tpu.vector_store %arg11[%c0_39, %c891], %52 {strides = array<i32>} : memref<2x2592xf32, #tpu.memory_space<vmem>>, vector<1x81xf32>,
    %54 = vector.extract_strided_slice %7 {offsets = [11, 81], sizes = [1, 81], strides = [1, 1]} : vector<32x162xf32> to vector<1x81xf32>
    %c1_40 = arith.constant 1 : index
    %c891_41 = arith.constant 891 : index
    %55 = vector.load %arg11[%c1_40, %c891_41] : memref<2x2592xf32, #tpu.memory_space<vmem>>, vector<1x81xf32>
    tpu.vector_store %arg11[%c1_40, %c891_41], %54 {strides = array<i32>} : memref<2x2592xf32, #tpu.memory_space<vmem>>, vector<1x81xf32>,
    %56 = vector.extract_strided_slice %7 {offsets = [12, 0], sizes = [1, 81], strides = [1, 1]} : vector<32x162xf32> to vector<1x81xf32>
    %c0_42 = arith.constant 0 : index
    %c972 = arith.constant 972 : index
    %57 = vector.load %arg11[%c0_42, %c972] : memref<2x2592xf32, #tpu.memory_space<vmem>>, vector<1x81xf32>
    tpu.vector_store %arg11[%c0_42, %c972], %56 {strides = array<i32>} : memref<2x2592xf32, #tpu.memory_space<vmem>>, vector<1x81xf32>,
    %58 = vector.extract_strided_slice %7 {offsets = [12, 81], sizes = [1, 81], strides = [1, 1]} : vector<32x162xf32> to vector<1x81xf32>
    %c1_43 = arith.constant 1 : index
    %c972_44 = arith.constant 972 : index
    %59 = vector.load %arg11[%c1_43, %c972_44] : memref<2x2592xf32, #tpu.memory_space<vmem>>, vector<1x81xf32>
    tpu.vector_store %arg11[%c1_43, %c972_44], %58 {strides = array<i32>} : memref<2x2592xf32, #tpu.memory_space<vmem>>, vector<1x81xf32>,
    %60 = vector.extract_strided_slice %7 {offsets = [13, 0], sizes = [1, 81], strides = [1, 1]} : vector<32x162xf32> to vector<1x81xf32>
    %c0_45 = arith.constant 0 : index
    %c1053 = arith.constant 1053 : index
    %61 = vector.load %arg11[%c0_45, %c1053] : memref<2x2592xf32, #tpu.memory_space<vmem>>, vector<1x81xf32>
    tpu.vector_store %arg11[%c0_45, %c1053], %60 {strides = array<i32>} : memref<2x2592xf32, #tpu.memory_space<vmem>>, vector<1x81xf32>,
    %62 = vector.extract_strided_slice %7 {offsets = [13, 81], sizes = [1, 81], strides = [1, 1]} : vector<32x162xf32> to vector<1x81xf32>
    %c1_46 = arith.constant 1 : index
    %c1053_47 = arith.constant 1053 : index
    %63 = vector.load %arg11[%c1_46, %c1053_47] : memref<2x2592xf32, #tpu.memory_space<vmem>>, vector<1x81xf32>
    tpu.vector_store %arg11[%c1_46, %c1053_47], %62 {strides = array<i32>} : memref<2x2592xf32, #tpu.memory_space<vmem>>, vector<1x81xf32>,
    %64 = vector.extract_strided_slice %7 {offsets = [14, 0], sizes = [1, 81], strides = [1, 1]} : vector<32x162xf32> to vector<1x81xf32>
    %c0_48 = arith.constant 0 : index
    %c1134 = arith.constant 1134 : index
    %65 = vector.load %arg11[%c0_48, %c1134] : memref<2x2592xf32, #tpu.memory_space<vmem>>, vector<1x81xf32>
    tpu.vector_store %arg11[%c0_48, %c1134], %64 {strides = array<i32>} : memref<2x2592xf32, #tpu.memory_space<vmem>>, vector<1x81xf32>,
    %66 = vector.extract_strided_slice %7 {offsets = [14, 81], sizes = [1, 81], strides = [1, 1]} : vector<32x162xf32> to vector<1x81xf32>
    %c1_49 = arith.constant 1 : index
    %c1134_50 = arith.constant 1134 : index
    %67 = vector.load %arg11[%c1_49, %c1134_50] : memref<2x2592xf32, #tpu.memory_space<vmem>>, vector<1x81xf32>
    tpu.vector_store %arg11[%c1_49, %c1134_50], %66 {strides = array<i32>} : memref<2x2592xf32, #tpu.memory_space<vmem>>, vector<1x81xf32>,
    %68 = vector.extract_strided_slice %7 {offsets = [15, 0], sizes = [1, 81], strides = [1, 1]} : vector<32x162xf32> to vector<1x81xf32>
    %c0_51 = arith.constant 0 : index
    %c1215 = arith.constant 1215 : index
    %69 = vector.load %arg11[%c0_51, %c1215] : memref<2x2592xf32, #tpu.memory_space<vmem>>, vector<1x81xf32>
    tpu.vector_store %arg11[%c0_51, %c1215], %68 {strides = array<i32>} : memref<2x2592xf32, #tpu.memory_space<vmem>>, vector<1x81xf32>,
    %70 = vector.extract_strided_slice %7 {offsets = [15, 81], sizes = [1, 81], strides = [1, 1]} : vector<32x162xf32> to vector<1x81xf32>
    %c1_52 = arith.constant 1 : index
    %c1215_53 = arith.constant 1215 : index
    %71 = vector.load %arg11[%c1_52, %c1215_53] : memref<2x2592xf32, #tpu.memory_space<vmem>>, vector<1x81xf32>
    tpu.vector_store %arg11[%c1_52, %c1215_53], %70 {strides = array<i32>} : memref<2x2592xf32, #tpu.memory_space<vmem>>, vector<1x81xf32>,
    %72 = vector.extract_strided_slice %7 {offsets = [16, 0], sizes = [1, 81], strides = [1, 1]} : vector<32x162xf32> to vector<1x81xf32>
    %c0_54 = arith.constant 0 : index
    %c1296 = arith.constant 1296 : index
    %73 = vector.load %arg11[%c0_54, %c1296] : memref<2x2592xf32, #tpu.memory_space<vmem>>, vector<1x81xf32>
    tpu.vector_store %arg11[%c0_54, %c1296], %72 {strides = array<i32>} : memref<2x2592xf32, #tpu.memory_space<vmem>>, vector<1x81xf32>,
    %74 = vector.extract_strided_slice %7 {offsets = [16, 81], sizes = [1, 81], strides = [1, 1]} : vector<32x162xf32> to vector<1x81xf32>
    %c1_55 = arith.constant 1 : index
    %c1296_56 = arith.constant 1296 : index
    %75 = vector.load %arg11[%c1_55, %c1296_56] : memref<2x2592xf32, #tpu.memory_space<vmem>>, vector<1x81xf32>
    tpu.vector_store %arg11[%c1_55, %c1296_56], %74 {strides = array<i32>} : memref<2x2592xf32, #tpu.memory_space<vmem>>, vector<1x81xf32>,
    %76 = vector.extract_strided_slice %7 {offsets = [17, 0], sizes = [1, 81], strides = [1, 1]} : vector<32x162xf32> to vector<1x81xf32>
    %c0_57 = arith.constant 0 : index
    %c1377 = arith.constant 1377 : index
    %77 = vector.load %arg11[%c0_57, %c1377] : memref<2x2592xf32, #tpu.memory_space<vmem>>, vector<1x81xf32>
    tpu.vector_store %arg11[%c0_57, %c1377], %76 {strides = array<i32>} : memref<2x2592xf32, #tpu.memory_space<vmem>>, vector<1x81xf32>,
    %78 = vector.extract_strided_slice %7 {offsets = [17, 81], sizes = [1, 81], strides = [1, 1]} : vector<32x162xf32> to vector<1x81xf32>
    %c1_58 = arith.constant 1 : index
    %c1377_59 = arith.constant 1377 : index
    %79 = vector.load %arg11[%c1_58, %c1377_59] : memref<2x2592xf32, #tpu.memory_space<vmem>>, vector<1x81xf32>
    tpu.vector_store %arg11[%c1_58, %c1377_59], %78 {strides = array<i32>} : memref<2x2592xf32, #tpu.memory_space<vmem>>, vector<1x81xf32>,
    %80 = vector.extract_strided_slice %7 {offsets = [18, 0], sizes = [1, 81], strides = [1, 1]} : vector<32x162xf32> to vector<1x81xf32>
    %c0_60 = arith.constant 0 : index
    %c1458 = arith.constant 1458 : index
    %81 = vector.load %arg11[%c0_60, %c1458] : memref<2x2592xf32, #tpu.memory_space<vmem>>, vector<1x81xf32>
    tpu.vector_store %arg11[%c0_60, %c1458], %80 {strides = array<i32>} : memref<2x2592xf32, #tpu.memory_space<vmem>>, vector<1x81xf32>,
    %82 = vector.extract_strided_slice %7 {offsets = [18, 81], sizes = [1, 81], strides = [1, 1]} : vector<32x162xf32> to vector<1x81xf32>
    %c1_61 = arith.constant 1 : index
    %c1458_62 = arith.constant 1458 : index
    %83 = vector.load %arg11[%c1_61, %c1458_62] : memref<2x2592xf32, #tpu.memory_space<vmem>>, vector<1x81xf32>
    tpu.vector_store %arg11[%c1_61, %c1458_62], %82 {strides = array<i32>} : memref<2x2592xf32, #tpu.memory_space<vmem>>, vector<1x81xf32>,
    %84 = vector.extract_strided_slice %7 {offsets = [19, 0], sizes = [1, 81], strides = [1, 1]} : vector<32x162xf32> to vector<1x81xf32>
    %c0_63 = arith.constant 0 : index
    %c1539 = arith.constant 1539 : index
    %85 = vector.load %arg11[%c0_63, %c1539] : memref<2x2592xf32, #tpu.memory_space<vmem>>, vector<1x81xf32>
    tpu.vector_store %arg11[%c0_63, %c1539], %84 {strides = array<i32>} : memref<2x2592xf32, #tpu.memory_space<vmem>>, vector<1x81xf32>,
    %86 = vector.extract_strided_slice %7 {offsets = [19, 81], sizes = [1, 81], strides = [1, 1]} : vector<32x162xf32> to vector<1x81xf32>
    %c1_64 = arith.constant 1 : index
    %c1539_65 = arith.constant 1539 : index
    %87 = vector.load %arg11[%c1_64, %c1539_65] : memref<2x2592xf32, #tpu.memory_space<vmem>>, vector<1x81xf32>
    tpu.vector_store %arg11[%c1_64, %c1539_65], %86 {strides = array<i32>} : memref<2x2592xf32, #tpu.memory_space<vmem>>, vector<1x81xf32>,
    %88 = vector.extract_strided_slice %7 {offsets = [20, 0], sizes = [1, 81], strides = [1, 1]} : vector<32x162xf32> to vector<1x81xf32>
    %c0_66 = arith.constant 0 : index
    %c1620 = arith.constant 1620 : index
    %89 = vector.load %arg11[%c0_66, %c1620] : memref<2x2592xf32, #tpu.memory_space<vmem>>, vector<1x81xf32>
    tpu.vector_store %arg11[%c0_66, %c1620], %88 {strides = array<i32>} : memref<2x2592xf32, #tpu.memory_space<vmem>>, vector<1x81xf32>,
    %90 = vector.extract_strided_slice %7 {offsets = [20, 81], sizes = [1, 81], strides = [1, 1]} : vector<32x162xf32> to vector<1x81xf32>
    %c1_67 = arith.constant 1 : index
    %c1620_68 = arith.constant 1620 : index
    %91 = vector.load %arg11[%c1_67, %c1620_68] : memref<2x2592xf32, #tpu.memory_space<vmem>>, vector<1x81xf32>
    tpu.vector_store %arg11[%c1_67, %c1620_68], %90 {strides = array<i32>} : memref<2x2592xf32, #tpu.memory_space<vmem>>, vector<1x81xf32>,
    %92 = vector.extract_strided_slice %7 {offsets = [21, 0], sizes = [1, 81], strides = [1, 1]} : vector<32x162xf32> to vector<1x81xf32>
    %c0_69 = arith.constant 0 : index
    %c1701 = arith.constant 1701 : index
    %93 = vector.load %arg11[%c0_69, %c1701] : memref<2x2592xf32, #tpu.memory_space<vmem>>, vector<1x81xf32>
    tpu.vector_store %arg11[%c0_69, %c1701], %92 {strides = array<i32>} : memref<2x2592xf32, #tpu.memory_space<vmem>>, vector<1x81xf32>,
    %94 = vector.extract_strided_slice %7 {offsets = [21, 81], sizes = [1, 81], strides = [1, 1]} : vector<32x162xf32> to vector<1x81xf32>
    %c1_70 = arith.constant 1 : index
    %c1701_71 = arith.constant 1701 : index
    %95 = vector.load %arg11[%c1_70, %c1701_71] : memref<2x2592xf32, #tpu.memory_space<vmem>>, vector<1x81xf32>
    tpu.vector_store %arg11[%c1_70, %c1701_71], %94 {strides = array<i32>} : memref<2x2592xf32, #tpu.memory_space<vmem>>, vector<1x81xf32>,
    %96 = vector.extract_strided_slice %7 {offsets = [22, 0], sizes = [1, 81], strides = [1, 1]} : vector<32x162xf32> to vector<1x81xf32>
    %c0_72 = arith.constant 0 : index
    %c1782 = arith.constant 1782 : index
    %97 = vector.load %arg11[%c0_72, %c1782] : memref<2x2592xf32, #tpu.memory_space<vmem>>, vector<1x81xf32>
    tpu.vector_store %arg11[%c0_72, %c1782], %96 {strides = array<i32>} : memref<2x2592xf32, #tpu.memory_space<vmem>>, vector<1x81xf32>,
    %98 = vector.extract_strided_slice %7 {offsets = [22, 81], sizes = [1, 81], strides = [1, 1]} : vector<32x162xf32> to vector<1x81xf32>
    %c1_73 = arith.constant 1 : index
    %c1782_74 = arith.constant 1782 : index
    %99 = vector.load %arg11[%c1_73, %c1782_74] : memref<2x2592xf32, #tpu.memory_space<vmem>>, vector<1x81xf32>
    tpu.vector_store %arg11[%c1_73, %c1782_74], %98 {strides = array<i32>} : memref<2x2592xf32, #tpu.memory_space<vmem>>, vector<1x81xf32>,
    %100 = vector.extract_strided_slice %7 {offsets = [23, 0], sizes = [1, 81], strides = [1, 1]} : vector<32x162xf32> to vector<1x81xf32>
    %c0_75 = arith.constant 0 : index
    %c1863 = arith.constant 1863 : index
    %101 = vector.load %arg11[%c0_75, %c1863] : memref<2x2592xf32, #tpu.memory_space<vmem>>, vector<1x81xf32>
    tpu.vector_store %arg11[%c0_75, %c1863], %100 {strides = array<i32>} : memref<2x2592xf32, #tpu.memory_space<vmem>>, vector<1x81xf32>,
    %102 = vector.extract_strided_slice %7 {offsets = [23, 81], sizes = [1, 81], strides = [1, 1]} : vector<32x162xf32> to vector<1x81xf32>
    %c1_76 = arith.constant 1 : index
    %c1863_77 = arith.constant 1863 : index
    %103 = vector.load %arg11[%c1_76, %c1863_77] : memref<2x2592xf32, #tpu.memory_space<vmem>>, vector<1x81xf32>
    tpu.vector_store %arg11[%c1_76, %c1863_77], %102 {strides = array<i32>} : memref<2x2592xf32, #tpu.memory_space<vmem>>, vector<1x81xf32>,
    %104 = vector.extract_strided_slice %7 {offsets = [24, 0], sizes = [1, 81], strides = [1, 1]} : vector<32x162xf32> to vector<1x81xf32>
    %c0_78 = arith.constant 0 : index
    %c1944 = arith.constant 1944 : index
    %105 = vector.load %arg11[%c0_78, %c1944] : memref<2x2592xf32, #tpu.memory_space<vmem>>, vector<1x81xf32>
    tpu.vector_store %arg11[%c0_78, %c1944], %104 {strides = array<i32>} : memref<2x2592xf32, #tpu.memory_space<vmem>>, vector<1x81xf32>,
    %106 = vector.extract_strided_slice %7 {offsets = [24, 81], sizes = [1, 81], strides = [1, 1]} : vector<32x162xf32> to vector<1x81xf32>
    %c1_79 = arith.constant 1 : index
    %c1944_80 = arith.constant 1944 : index
    %107 = vector.load %arg11[%c1_79, %c1944_80] : memref<2x2592xf32, #tpu.memory_space<vmem>>, vector<1x81xf32>
    tpu.vector_store %arg11[%c1_79, %c1944_80], %106 {strides = array<i32>} : memref<2x2592xf32, #tpu.memory_space<vmem>>, vector<1x81xf32>,
    %108 = vector.extract_strided_slice %7 {offsets = [25, 0], sizes = [1, 81], strides = [1, 1]} : vector<32x162xf32> to vector<1x81xf32>
    %c0_81 = arith.constant 0 : index
    %c2025 = arith.constant 2025 : index
    %109 = vector.load %arg11[%c0_81, %c2025] : memref<2x2592xf32, #tpu.memory_space<vmem>>, vector<1x81xf32>
    tpu.vector_store %arg11[%c0_81, %c2025], %108 {strides = array<i32>} : memref<2x2592xf32, #tpu.memory_space<vmem>>, vector<1x81xf32>,
    %110 = vector.extract_strided_slice %7 {offsets = [25, 81], sizes = [1, 81], strides = [1, 1]} : vector<32x162xf32> to vector<1x81xf32>
    %c1_82 = arith.constant 1 : index
    %c2025_83 = arith.constant 2025 : index
    %111 = vector.load %arg11[%c1_82, %c2025_83] : memref<2x2592xf32, #tpu.memory_space<vmem>>, vector<1x81xf32>
    tpu.vector_store %arg11[%c1_82, %c2025_83], %110 {strides = array<i32>} : memref<2x2592xf32, #tpu.memory_space<vmem>>, vector<1x81xf32>,
    %112 = vector.extract_strided_slice %7 {offsets = [26, 0], sizes = [1, 81], strides = [1, 1]} : vector<32x162xf32> to vector<1x81xf32>
    %c0_84 = arith.constant 0 : index
    %c2106 = arith.constant 2106 : index
    %113 = vector.load %arg11[%c0_84, %c2106] : memref<2x2592xf32, #tpu.memory_space<vmem>>, vector<1x81xf32>
    tpu.vector_store %arg11[%c0_84, %c2106], %112 {strides = array<i32>} : memref<2x2592xf32, #tpu.memory_space<vmem>>, vector<1x81xf32>,
    %114 = vector.extract_strided_slice %7 {offsets = [26, 81], sizes = [1, 81], strides = [1, 1]} : vector<32x162xf32> to vector<1x81xf32>
    %c1_85 = arith.constant 1 : index
    %c2106_86 = arith.constant 2106 : index
    %115 = vector.load %arg11[%c1_85, %c2106_86] : memref<2x2592xf32, #tpu.memory_space<vmem>>, vector<1x81xf32>
    tpu.vector_store %arg11[%c1_85, %c2106_86], %114 {strides = array<i32>} : memref<2x2592xf32, #tpu.memory_space<vmem>>, vector<1x81xf32>,
    %116 = vector.extract_strided_slice %7 {offsets = [27, 0], sizes = [1, 81], strides = [1, 1]} : vector<32x162xf32> to vector<1x81xf32>
    %c0_87 = arith.constant 0 : index
    %c2187 = arith.constant 2187 : index
    %117 = vector.load %arg11[%c0_87, %c2187] : memref<2x2592xf32, #tpu.memory_space<vmem>>, vector<1x81xf32>
    tpu.vector_store %arg11[%c0_87, %c2187], %116 {strides = array<i32>} : memref<2x2592xf32, #tpu.memory_space<vmem>>, vector<1x81xf32>,
    %118 = vector.extract_strided_slice %7 {offsets = [27, 81], sizes = [1, 81], strides = [1, 1]} : vector<32x162xf32> to vector<1x81xf32>
    %c1_88 = arith.constant 1 : index
    %c2187_89 = arith.constant 2187 : index
    %119 = vector.load %arg11[%c1_88, %c2187_89] : memref<2x2592xf32, #tpu.memory_space<vmem>>, vector<1x81xf32>
    tpu.vector_store %arg11[%c1_88, %c2187_89], %118 {strides = array<i32>} : memref<2x2592xf32, #tpu.memory_space<vmem>>, vector<1x81xf32>,
    %120 = vector.extract_strided_slice %7 {offsets = [28, 0], sizes = [1, 81], strides = [1, 1]} : vector<32x162xf32> to vector<1x81xf32>
    %c0_90 = arith.constant 0 : index
    %c2268 = arith.constant 2268 : index
    %121 = vector.load %arg11[%c0_90, %c2268] : memref<2x2592xf32, #tpu.memory_space<vmem>>, vector<1x81xf32>
    tpu.vector_store %arg11[%c0_90, %c2268], %120 {strides = array<i32>} : memref<2x2592xf32, #tpu.memory_space<vmem>>, vector<1x81xf32>,
    %122 = vector.extract_strided_slice %7 {offsets = [28, 81], sizes = [1, 81], strides = [1, 1]} : vector<32x162xf32> to vector<1x81xf32>
    %c1_91 = arith.constant 1 : index
    %c2268_92 = arith.constant 2268 : index
    %123 = vector.load %arg11[%c1_91, %c2268_92] : memref<2x2592xf32, #tpu.memory_space<vmem>>, vector<1x81xf32>
    tpu.vector_store %arg11[%c1_91, %c2268_92], %122 {strides = array<i32>} : memref<2x2592xf32, #tpu.memory_space<vmem>>, vector<1x81xf32>,
    %124 = vector.extract_strided_slice %7 {offsets = [29, 0], sizes = [1, 81], strides = [1, 1]} : vector<32x162xf32> to vector<1x81xf32>
    %c0_93 = arith.constant 0 : index
    %c2349 = arith.constant 2349 : index
    %125 = vector.load %arg11[%c0_93, %c2349] : memref<2x2592xf32, #tpu.memory_space<vmem>>, vector<1x81xf32>
    tpu.vector_store %arg11[%c0_93, %c2349], %124 {strides = array<i32>} : memref<2x2592xf32, #tpu.memory_space<vmem>>, vector<1x81xf32>,
    %126 = vector.extract_strided_slice %7 {offsets = [29, 81], sizes = [1, 81], strides = [1, 1]} : vector<32x162xf32> to vector<1x81xf32>
    %c1_94 = arith.constant 1 : index
    %c2349_95 = arith.constant 2349 : index
    %127 = vector.load %arg11[%c1_94, %c2349_95] : memref<2x2592xf32, #tpu.memory_space<vmem>>, vector<1x81xf32>
    tpu.vector_store %arg11[%c1_94, %c2349_95], %126 {strides = array<i32>} : memref<2x2592xf32, #tpu.memory_space<vmem>>, vector<1x81xf32>,
    %128 = vector.extract_strided_slice %7 {offsets = [30, 0], sizes = [1, 81], strides = [1, 1]} : vector<32x162xf32> to vector<1x81xf32>
    %c0_96 = arith.constant 0 : index
    %c2430 = arith.constant 2430 : index
    %129 = vector.load %arg11[%c0_96, %c2430] : memref<2x2592xf32, #tpu.memory_space<vmem>>, vector<1x81xf32>
    tpu.vector_store %arg11[%c0_96, %c2430], %128 {strides = array<i32>} : memref<2x2592xf32, #tpu.memory_space<vmem>>, vector<1x81xf32>,
    %130 = vector.extract_strided_slice %7 {offsets = [30, 81], sizes = [1, 81], strides = [1, 1]} : vector<32x162xf32> to vector<1x81xf32>
    %c1_97 = arith.constant 1 : index
    %c2430_98 = arith.constant 2430 : index
    %131 = vector.load %arg11[%c1_97, %c2430_98] : memref<2x2592xf32, #tpu.memory_space<vmem>>, vector<1x81xf32>
    tpu.vector_store %arg11[%c1_97, %c2430_98], %130 {strides = array<i32>} : memref<2x2592xf32, #tpu.memory_space<vmem>>, vector<1x81xf32>,
    %132 = vector.extract_strided_slice %7 {offsets = [31, 0], sizes = [1, 81], strides = [1, 1]} : vector<32x162xf32> to vector<1x81xf32>
    %c0_99 = arith.constant 0 : index
    %c2511 = arith.constant 2511 : index
    %133 = vector.load %arg11[%c0_99, %c2511] : memref<2x2592xf32, #tpu.memory_space<vmem>>, vector<1x81xf32>
    tpu.vector_store %arg11[%c0_99, %c2511], %132 {strides = array<i32>} : memref<2x2592xf32, #tpu.memory_space<vmem>>, vector<1x81xf32>,
    %134 = vector.extract_strided_slice %7 {offsets = [31, 81], sizes = [1, 81], strides = [1, 1]} : vector<32x162xf32> to vector<1x81xf32>
    %c1_100 = arith.constant 1 : index
    %c2511_101 = arith.constant 2511 : index
    %135 = vector.load %arg11[%c1_100, %c2511_101] : memref<2x2592xf32, #tpu.memory_space<vmem>>, vector<1x81xf32>
    tpu.vector_store %arg11[%c1_100, %c2511_101], %134 {strides = array<i32>} : memref<2x2592xf32, #tpu.memory_space<vmem>>, vector<1x81xf32>,
    %c0_102 = arith.constant 0 : index
    %c0_103 = arith.constant 0 : index
    %136 = vector.load %arg11[%c0_102, %c0_103] : memref<2x2592xf32, #tpu.memory_space<vmem>>, vector<2x2592xf32>
    %137 = arith.truncf %136 : vector<2x2592xf32> to vector<2x2592xbf16>
    %c0_104 = arith.constant 0 : index
    %c0_105 = arith.constant 0 : index
    %138 = vector.load %arg1[%c0_104, %c0_105] : memref<2x256xf32, #tpu.memory_space<vmem>>, vector<2x256xf32>
    %139 = arith.truncf %138 : vector<2x256xf32> to vector<2x256xbf16>
    %c0_106 = arith.constant 0 : index
    %c0_107 = arith.constant 0 : index
    %140 = vector.load %arg5[%c0_106, %c0_107] : memref<2592x1024xbf16, #tpu.memory_space<vmem>>, vector<2592x1024xbf16>
    %cst_108 = arith.constant dense<0.000000e+00> : vector<2x1024xf32>
    %141 = tpu.matmul %137, %140, %cst_108 {dimension_numbers = #tpu.dot_dimension_numbers<[1], [0], [0], [1], [0, 0, 1, 1], [], []>} : vector<2x2592xbf16>, vector<2592x1024xbf16>, vector<2x1024xf32> -> vector<2x1024xf32>
    %c0_109 = arith.constant 0 : index
    %c0_110 = arith.constant 0 : index
    %142 = vector.load %arg6[%c0_109, %c0_110] : memref<256x1024xbf16, #tpu.memory_space<vmem>>, vector<256x1024xbf16>
    %cst_111 = arith.constant dense<0.000000e+00> : vector<2x1024xf32>
    %143 = tpu.matmul %139, %142, %cst_111 {dimension_numbers = #tpu.dot_dimension_numbers<[1], [0], [0], [1], [0, 0, 1, 1], [], []>} : vector<2x256xbf16>, vector<256x1024xbf16>, vector<2x1024xf32> -> vector<2x1024xf32>
    %144 = arith.addf %141, %143 : vector<2x1024xf32>
    %c0_112 = arith.constant 0 : index
    %c0_113 = arith.constant 0 : index
    %145 = vector.load %arg7[%c0_112, %c0_113] : memref<1x1024xf32, #tpu.memory_space<vmem>>, vector<1x1024xf32>
    %146 = vector.broadcast %145 : vector<1x1024xf32> to vector<2x1024xf32>
    %147 = arith.addf %144, %146 : vector<2x1024xf32>
    %148 = vector.extract_strided_slice %147 {offsets = [0, 0], sizes = [2, 256], strides = [1, 1]} : vector<2x1024xf32> to vector<2x256xf32>
    %149 = arith.negf %148 : vector<2x256xf32>
    %150 = math.exp %149 : vector<2x256xf32>
    %cst_114 = arith.constant 1.000000e+00 : f32
    %151 = vector.broadcast %cst_114 : f32 to vector<2x256xf32>
    %152 = arith.addf %151, %150 : vector<2x256xf32>
    %153 = arith.divf %151, %152 : vector<2x256xf32>
    %154 = vector.extract_strided_slice %147 {offsets = [0, 256], sizes = [2, 256], strides = [1, 1]} : vector<2x1024xf32> to vector<2x256xf32>
    %155 = arith.negf %154 : vector<2x256xf32>
    %156 = math.exp %155 : vector<2x256xf32>
    %cst_115 = arith.constant 1.000000e+00 : f32
    %157 = vector.broadcast %cst_115 : f32 to vector<2x256xf32>
    %158 = arith.addf %157, %156 : vector<2x256xf32>
    %159 = arith.divf %157, %158 : vector<2x256xf32>
    %160 = vector.extract_strided_slice %147 {offsets = [0, 512], sizes = [2, 256], strides = [1, 1]} : vector<2x1024xf32> to vector<2x256xf32>
    %161 = math.tanh %160 : vector<2x256xf32>
    %162 = vector.extract_strided_slice %147 {offsets = [0, 768], sizes = [2, 256], strides = [1, 1]} : vector<2x1024xf32> to vector<2x256xf32>
    %163 = arith.negf %162 : vector<2x256xf32>
    %164 = math.exp %163 : vector<2x256xf32>
    %cst_116 = arith.constant 1.000000e+00 : f32
    %165 = vector.broadcast %cst_116 : f32 to vector<2x256xf32>
    %166 = arith.addf %165, %164 : vector<2x256xf32>
    %167 = arith.divf %165, %166 : vector<2x256xf32>
    %c0_117 = arith.constant 0 : index
    %c0_118 = arith.constant 0 : index
    %168 = vector.load %arg2[%c0_117, %c0_118] : memref<2x256xf32, #tpu.memory_space<vmem>>, vector<2x256xf32>
    %169 = arith.mulf %159, %168 : vector<2x256xf32>
    %170 = arith.mulf %153, %161 : vector<2x256xf32>
    %171 = arith.addf %169, %170 : vector<2x256xf32>
    %172 = math.tanh %171 : vector<2x256xf32>
    %173 = arith.mulf %167, %172 : vector<2x256xf32>
    %174 = tpu.concatenate %173, %171 in 1 : vector<2x256xf32>, vector<2x256xf32> -> vector<2x512xf32>
    %175 = arith.truncf %174 : vector<2x512xf32> to vector<2x512xbf16>
    %c0_119 = arith.constant 0 : index
    %c0_120 = arith.constant 0 : index
    %176 = vector.load %arg8[%c0_119, %c0_120] : memref<512x128xbf16, #tpu.memory_space<vmem>>, vector<512x128xbf16>
    %cst_121 = arith.constant dense<0.000000e+00> : vector<2x128xf32>
    %177 = tpu.matmul %175, %176, %cst_121 {dimension_numbers = #tpu.dot_dimension_numbers<[1], [0], [0], [1], [0, 0, 1, 1], [], []>} : vector<2x512xbf16>, vector<512x128xbf16>, vector<2x128xf32> -> vector<2x128xf32>
    %c0_122 = arith.constant 0 : index
    %c0_123 = arith.constant 0 : index
    %178 = vector.load %arg9[%c0_122, %c0_123] : memref<1x128xf32, #tpu.memory_space<vmem>>, vector<1x128xf32>
    %179 = vector.broadcast %178 : vector<1x128xf32> to vector<2x128xf32>
    %180 = arith.addf %177, %179 : vector<2x128xf32>
    %c0_124 = arith.constant 0 : index
    %c0_125 = arith.constant 0 : index
    %181 = vector.load %arg10[%c0_124, %c0_125] : memref<2x640xf32, #tpu.memory_space<vmem>>, vector<2x512xf32>
    tpu.vector_store %arg10[%c0_124, %c0_125], %174 {strides = array<i32>} : memref<2x640xf32, #tpu.memory_space<vmem>>, vector<2x512xf32>,
    %c0_126 = arith.constant 0 : index
    %c512 = arith.constant 512 : index
    %182 = vector.load %arg10[%c0_126, %c512] : memref<2x640xf32, #tpu.memory_space<vmem>>, vector<2x128xf32>
    tpu.vector_store %arg10[%c0_126, %c512], %180 {strides = array<i32>} : memref<2x640xf32, #tpu.memory_space<vmem>>, vector<2x128xf32>,
    return
  }
}

</mosaic_0001>

<bundles_post_ra>
// kernel: forward.2
= control target key start
LH: loop header
LB: loop body
LE: loop exit
PB: predicated region body
PF: predicated region fallthrough
CT: control target
= control target key end

     0   :  { %v1301_v4 = vmov 0   ;;  %vm974_vm0 = vcmask 257024   ;;  %s1706_s1 = inlined_call_operand.vmem [shape: bf16[256,800], index: 1, kind: input, shape index: {}]   ;;  %s1707_s0 = inlined_call_operand.vmem [shape: bf16[16,256], index: 0, kind: input, shape index: {}]   ;;  %s1708_s2 = inlined_call_operand.vmem [shape: f32[16,1], index: 2, kind: input, shape index: {}]   ;;  %s1709_s3 = inlined_call_operand.vmem [shape: bf16[16,800], index: 3, kind: output, shape index: {}]  }
   0x1   :  { %v1138_v0 = vld [vmem:[%s1706_s1 + $0x18c] ss:$28 sps:$4 sm:$0xff]   ;;  %v1141_v2 = vld [vmem:[%s1706_s1 + $0x154] ss:$28 sps:$4 sm:$0xff]   ;;  %1137 = vset.pattern.permute.xlu0 %v1301_v4  ;;  %v1144_v5 = vld [vmem:[%s1706_s1 + $0x11c] ss:$28 sps:$4 sm:$0xff]  }
   0x2   :  { %v1140_v1 = vld [vmem:[%s1706_s1 + $0x188] ss:$28 sps:$4 sm:$0xff]   ;;  %743 = vmatprep.subr.bf16.mxu0 %v1138_v0  ;;  %v1143_v3 = vld [vmem:[%s1706_s1 + $0x150] ss:$28 sps:$4 sm:$0xff]   ;;  %v1146_v6 = vld [vmem:[%s1706_s1 + $0x118] ss:$28 sps:$4 sm:$0xff]  }
   0x3   :  { %744 = vmatpush1.bf16.msra.mxu0 %v1140_v1  ;;  %v1147_v7 = vld [vmem:[%s1706_s1 + $0xe4] ss:$28 sps:$4 sm:$0xff]   ;;  %v1158_v8 = vld [vmem:[%s1706_s1 + $0x194] ss:$28 sps:$4 sm:$0xff]   ;;  %v1150_v11 = vld [vmem:[%s1706_s1 + $0xac] ss:$28 sps:$4 sm:$0xff]  }
   0x4   :  { %745 = vmatprep.subr.bf16.mxu0 %v1141_v2  ;;  %v1161_v9 = vld [vmem:[%s1706_s1 + $0x190] ss:$28 sps:$4 sm:$0xff]   ;;  %v1149_v10 = vld [vmem:[%s1706_s1 + $0xe0] ss:$28 sps:$4 sm:$0xff]   ;;  %786 = vmatprep.subr.bf16.mxu1 %v1158_v8  ;;  %v1167_v13 = vld [vmem:[%s1706_s1 + $0x158] ss:$28 sps:$4 sm:$0xff]  }
   0x5   :  { %787 = vmatpush1.bf16.msra.mxu1 %v1161_v9  ;;  %v1164_v12 = vld [vmem:[%s1706_s1 + $0x15c] ss:$28 sps:$4 sm:$0xff]   ;;  %v1152_v14 = vld [vmem:[%s1706_s1 + $0xa8] ss:$28 sps:$4 sm:$0xff]   ;;  %v1153_v15 = vld [vmem:[%s1706_s1 + $0x74] ss:$28 sps:$4 sm:$0xff]  }
   0x6   :  { %788 = vmatprep.subr.bf16.mxu1 %v1164_v12  ;;  %v1170_v16 = vld [vmem:[%s1706_s1 + $0x124] ss:$28 sps:$4 sm:$0xff]   ;;  %v1176_v18 = vld [vmem:[%s1706_s1 + $0xec] ss:$28 sps:$4 sm:$0xff]   ;;  %v1156_v20 = vld [vmem:[%s1706_s1 + $0x3c] ss:$28 sps:$4 sm:$0xff]  }
   0x7   :  { %746 = vmatpush1.bf16.msra.mxu0 %v1143_v3  ;;  %v1173_v17 = vld [vmem:[%s1706_s1 + $0x120] ss:$28 sps:$4 sm:$0xff]   ;;  %v1155_v19 = vld [vmem:[%s1706_s1 + $0x70] ss:$28 sps:$4 sm:$0xff]   ;;  %v1179_v21 = vld [vmem:[%s1706_s1 + $0xe8] ss:$28 sps:$4 sm:$0xff]  }
   0x8   :  { %747 = vmatprep.subr.bf16.mxu0 %v1144_v5  ;;  %v1182_v22 = vld [vmem:[%s1706_s1 + $0xb4] ss:$28 sps:$4 sm:$0xff]   ;;  %v1162_v24 = vld [vmem:[%s1706_s1 + $0x4] ss:$28 sps:$4 sm:$0xff]   ;;  %v1188_v26 = vld [vmem:[%s1706_s1 + $0x7c] ss:$28 sps:$4 sm:$0xff]  }
   0x9   :  { %789 = vmatpush1.bf16.msra.mxu1 %v1167_v13  ;;  %v1160_v23 = vld [vmem:[%s1706_s1 + $0x38] ss:$28 sps:$4 sm:$0xff]   ;;  %v1185_v25 = vld [vmem:[%s1706_s1 + $0xb0] ss:$28 sps:$4 sm:$0xff]   ;;  %v1166_v27 = vld [vmem:[%s1706_s1] ss:$28 sps:$4 sm:$0xff]  }
   0xa   :  { %790 = vmatprep.subr.bf16.mxu1 %v1170_v16  ;;  %v1168_v28 = vld [vmem:[%s1706_s1 + $0x34c] ss:$28 sps:$4 sm:$0xff]   ;;  %v1191_v29 = vld [vmem:[%s1706_s1 + $0x78] ss:$28 sps:$4 sm:$0xff]   ;;  %v1194_v30 = vld [vmem:[%s1706_s1 + $0x44] ss:$28 sps:$4 sm:$0xff]  }
   0xb   :  { %748 = vmatpush1.bf16.msra.mxu0 %v1146_v6  ;;  %v1172_v31 = vld [vmem:[%s1706_s1 + $0x348] ss:$28 sps:$4 sm:$0xff]   ;;  %v1174_v32 = vld [vmem:[%s1706_s1 + $0x314] ss:$28 sps:$4 sm:$0xff]   ;;  %v1197_v33 = vld [vmem:[%s1706_s1 + $0x40] ss:$28 sps:$4 sm:$0xff]  }
   0xc   :  { %749 = vmatprep.subr.bf16.mxu0 %v1147_v7  ;;  %v1200_v34 = vld [vmem:[%s1706_s1 + $0xc] ss:$28 sps:$4 sm:$0xff]   ;;  %v1180_v36 = vld [vmem:[%s1706_s1 + $0x2dc] ss:$28 sps:$4 sm:$0xff]   ;;  %v1206_v39 = vld [vmem:[%s1706_s1 + $0x354] ss:$28 sps:$4 sm:$0xff]  }
   0xd   :  { %791 = vmatpush1.bf16.msra.mxu1 %v1173_v17  ;;  %v1178_v35 = vld [vmem:[%s1706_s1 + $0x310] ss:$28 sps:$4 sm:$0xff]   ;;  %v1203_v38 = vld [vmem:[%s1706_s1 + $0x8] ss:$28 sps:$4 sm:$0xff]   ;;  %v1184_v40 = vld [vmem:[%s1706_s1 + $0x2d8] ss:$28 sps:$4 sm:$0xff]  }
   0xe   :  { %792 = vmatprep.subr.bf16.mxu1 %v1176_v18  ;;  %v1433_v37 = vld [vmem:[%s1707_s0 + $0x4] ss:$8 sps:$4 sm:$0xff]   ;;  %v1212_v43 = vld [vmem:[%s1706_s1 + $0x31c] ss:$28 sps:$4 sm:$0xff]   ;;  %v1198_v49 = vld [vmem:[%s1706_s1 + $0x234] ss:$28 sps:$4 sm:$0xff]  }
   0xf   :  { %750 = vmatpush1.bf16.msra.mxu0 %v1149_v10  ;;  %775 = vmatprep.mubr.bf16.mxu0 %v1433_v37  ;;  %v1186_v41 = vld [vmem:[%s1706_s1 + $0x2a4] ss:$28 sps:$4 sm:$0xff]   ;;  %v1209_v42 = vld [vmem:[%s1706_s1 + $0x350] ss:$28 sps:$4 sm:$0xff]   ;;  %v1215_v46 = vld [vmem:[%s1706_s1 + $0x318] ss:$28 sps:$4 sm:$0xff]  }
  0x10   :  { %751 = vmatprep.subr.bf16.mxu0 %v1150_v11  ;;  %818 = vmatprep.mubr.bf16.mxu1 %v1433_v37  ;;  %v1190_v44 = vld [vmem:[%s1706_s1 + $0x2a0] ss:$28 sps:$4 sm:$0xff]   ;;  %v1192_v45 = vld [vmem:[%s1706_s1 + $0x26c] ss:$28 sps:$4 sm:$0xff]   ;;  %v1231_v55 = vld [vmem:[%s1706_s1 + $0x274] ss:$28 sps:$4 sm:$0xff]  }
  0x11   :  { %793 = vmatpush1.bf16.msra.mxu1 %v1179_v21  ;;  %v1219_v47 = vld [vmem:[%s1706_s1 + $0x2e4] ss:$28 sps:$4 sm:$0xff]   ;;  %v1225_v51 = vld [vmem:[%s1706_s1 + $0x2ac] ss:$28 sps:$4 sm:$0xff]   ;;  %v1204_v53 = vld [vmem:[%s1706_s1 + $0x1fc] ss:$28 sps:$4 sm:$0xff]  }
  0x12   :  { %794 = vmatprep.subr.bf16.mxu1 %v1182_v22  ;;  %v1196_v48 = vld [vmem:[%s1706_s1 + $0x268] ss:$28 sps:$4 sm:$0xff]   ;;  %v1224_v50 = vld [vmem:[%s1706_s1 + $0x2e0] ss:$28 sps:$4 sm:$0xff]   ;;  %v1202_v52 = vld [vmem:[%s1706_s1 + $0x230] ss:$28 sps:$4 sm:$0xff]  }
  0x13   :  { %752 = vmatpush1.bf16.msra.mxu0 %v1152_v14  ;;  %v1230_v54 = vld [vmem:[%s1706_s1 + $0x2a8] ss:$28 sps:$4 sm:$0xff]   ;;  %v1208_v56 = vld [vmem:[%s1706_s1 + $0x1f8] ss:$28 sps:$4 sm:$0xff]   ;;  %v1236_v58 = vld [vmem:[%s1706_s1 + $0x270] ss:$28 sps:$4 sm:$0xff]  }
  0x14   :  { %753 = vmatprep.subr.bf16.mxu0 %v1153_v15  ;;  %v1210_v57 = vld [vmem:[%s1706_s1 + $0x1c4] ss:$28 sps:$4 sm:$0xff]   ;;  %v1237_v59 = vld [vmem:[%s1706_s1 + $0x23c] ss:$28 sps:$4 sm:$0xff]   ;;  %v1249_v4 = vld [vmem:[%s1706_s1 + $0x1cc] ss:$28 sps:$4 sm:$0xff]  }
  0x15   :  { %795 = vmatpush1.bf16.msra.mxu1 %v1185_v25  ;;  %v1214_v60 = vld [vmem:[%s1706_s1 + $0x1c0] ss:$28 sps:$4 sm:$0xff]   ;;  %v1242_v63 = vld [vmem:[%s1706_s1 + $0x238] ss:$28 sps:$4 sm:$0xff]   ;;  %v1235_v6 = vld [vmem:[%s1706_s1 + $0x12c] ss:$28 sps:$4 sm:$0xff]  }
  0x16   :  { %796 = vmatprep.subr.bf16.mxu1 %v1188_v26  ;;  %v1223_v61 = vld [vmem:[%s1706_s1 + $0x19c] ss:$28 sps:$4 sm:$0xff]   ;;  %v1512_v62 = vld [vmem:[%s1707_s0] ss:$8 sps:$4 sm:$0xff]   ;;  %v1241_v10 = vld [vmem:[%s1706_s1 + $0xf4] ss:$28 sps:$4 sm:$0xff]  }
  0x17   :  { %754 = vmatpush1.bf16.msra.mxu0 %v1155_v19  ;;  %v1243_v0 = vld [vmem:[%s1706_s1 + $0x204] ss:$28 sps:$4 sm:$0xff]   ;;  %v1221_v1 = vld [vmem:[%s1706_s1 + $0x198] ss:$28 sps:$4 sm:$0xff]   ;;  %v1239_v13 = vld [vmem:[%s1706_s1 + $0xf0] ss:$28 sps:$4 sm:$0xff]  }
  0x18   :  { %755 = vmatprep.subr.bf16.mxu0 %v1156_v20  ;;  %v1229_v2 = vld [vmem:[%s1706_s1 + $0x164] ss:$28 sps:$4 sm:$0xff]   ;;  %v1247_v14 = vld [vmem:[%s1706_s1 + $0xbc] ss:$28 sps:$4 sm:$0xff]   ;;  %v1268_v16 = vld [vmem:[%s1706_s1 + $0x2f0] ss:$28 sps:$4 sm:$0xff]  }
  0x19   :  { %797 = vmatpush1.bf16.msra.mxu1 %v1191_v29  ;;  %v1248_v3 = vld [vmem:[%s1706_s1 + $0x200] ss:$28 sps:$4 sm:$0xff]   ;;  %v1254_v7 = vld [vmem:[%s1706_s1 + $0x1c8] ss:$28 sps:$4 sm:$0xff]   ;;  %v1245_v17 = vld [vmem:[%s1706_s1 + $0xb8] ss:$28 sps:$4 sm:$0xff]  }
  0x1a   :  { %798 = vmatprep.subr.bf16.mxu1 %v1194_v30  ;;  %v1227_v5 = vld [vmem:[%s1706_s1 + $0x160] ss:$28 sps:$4 sm:$0xff]   ;;  %v1233_v9 = vld [vmem:[%s1706_s1 + $0x128] ss:$28 sps:$4 sm:$0xff]   ;;  %v1269_v19 = vld [vmem:[%s1706_s1 + $0x130] ss:$28 sps:$4 sm:$0xff]  }
  0x1b   :  { %756 = vmatpush1.bf16.msra.mxu0 %v1160_v23  ;;  %v1258_v8 = vld [vmem:[%s1706_s1 + $0x360] ss:$28 sps:$4 sm:$0xff]   ;;  %v1263_v12 = vld [vmem:[%s1706_s1 + $0x328] ss:$28 sps:$4 sm:$0xff]   ;;  %v1273_v20 = vld [vmem:[%s1706_s1 + $0x2b8] ss:$28 sps:$4 sm:$0xff]  }
  0x1c   :  { %757 = vmatprep.subr.bf16.mxu0 %v1162_v24  ;;  %v1259_v11 = vld [vmem:[%s1706_s1 + $0x1a0] ss:$28 sps:$4 sm:$0xff]   ;;  %v1264_v15 = vld [vmem:[%s1706_s1 + $0x168] ss:$28 sps:$4 sm:$0xff]   ;;  %v1274_v25 = vld [vmem:[%s1706_s1 + $0xf8] ss:$28 sps:$4 sm:$0xff]  }
  0x1d   :  { %799 = vmatpush1.bf16.msra.mxu1 %v1197_v33  ;;  %v1253_v18 = vld [vmem:[%s1706_s1 + $0x84] ss:$28 sps:$4 sm:$0xff]   ;;  %v146_v23 = vld [vmem:[%s1708_s2 + $0x8] sm:$0xff] }
  0x1e   :  { %800 = vmatprep.subr.bf16.mxu1 %v1200_v34  ;;  %v145_v21 = vld [vmem:[%s1708_s2] sm:$0xff]  ;;  %v1257_v24 = vld [vmem:[%s1706_s1 + $0x4c] ss:$28 sps:$4 sm:$0xff]  }
  0x1f   :  { %758 = vmatpush1.bf16.msra.mxu0 %v1166_v27  ;;  %149 = vperm.xlu0 %1137, %v145_v21   ;;  %v1251_v22 = vld [vmem:[%s1706_s1 + $0x80] ss:$28 sps:$4 sm:$0xff]   ;;  %v1255_v27 = vld [vmem:[%s1706_s1 + $0x48] ss:$28 sps:$4 sm:$0xff]   ;;  %v1288_v34 = vld [vmem:[%s1706_s1 + $0x210] ss:$28 sps:$4 sm:$0xff]  }
  0x20   :  { %759 = vmatprep.subr.bf16.mxu0 %v1168_v28  ;;  %v1278_v26 = vld [vmem:[%s1706_s1 + $0x280] ss:$28 sps:$4 sm:$0xff]   ;;  %v1262_v28 = vld [vmem:[%s1706_s1 + $0x14] ss:$28 sps:$4 sm:$0xff]   ;;  %v1283_v30 = vld [vmem:[%s1706_s1 + $0x248] ss:$28 sps:$4 sm:$0xff]  }
  0x21   :  { %801 = vmatpush1.bf16.msra.mxu1 %v1203_v38  ;;  %v1279_v29 = vld [vmem:[%s1706_s1 + $0xc0] ss:$28 sps:$4 sm:$0xff]   ;;  %v1284_v33 = vld [vmem:[%s1706_s1 + $0x88] ss:$28 sps:$4 sm:$0xff]   ;;  %v1293_v38 = vld [vmem:[%s1706_s1 + $0x1d8] ss:$28 sps:$4 sm:$0xff]  }
  0x22   :  { %802 = vmatprep.subr.bf16.mxu1 %v1206_v39  ;;  %v1270_v39 = vld [vmem:[%s1706_s1 + $0x320] ss:$28 sps:$4 sm:$0xff]  }
  0x23   :  { %760 = vmatpush2.bf16.msra.mxu0 %v1172_v31  ;;  %154 = vperm.xlu0 %1137, %v146_v23   ;;  %v1260_v31 = vld [vmem:[%s1706_s1 + $0x10] ss:$28 sps:$4 sm:$0xff]  }
  0x24   :  { %761 = vmatprep.subr.bf16.mxu0 %v1174_v32  ;;  %v1267_v32 = vld [vmem:[%s1706_s1 + $0x35c] ss:$28 sps:$4 sm:$0xff]  }
  0x25   :  { %803 = vmatpush2.bf16.msra.mxu1 %v1209_v42  ;;  %v1275_v42 = vld [vmem:[%s1706_s1 + $0x2e8] ss:$28 sps:$4 sm:$0xff]  }
  0x26   :  { %804 = vmatprep.subr.bf16.mxu1 %v1212_v43  ;;  %v1282_v43 = vld [vmem:[%s1706_s1 + $0x2b4] ss:$28 sps:$4 sm:$0xff]  }
  0x27   :  { %762 = vmatpush2.bf16.msra.mxu0 %v1178_v35  ;;  %v1265_v35 = vld [vmem:[%s1706_s1 + $0x358] ss:$28 sps:$4 sm:$0xff]  }
  0x28   :  { %763 = vmatprep.subr.bf16.mxu0 %v1180_v36  ;;  %v1272_v36 = vld [vmem:[%s1706_s1 + $0x324] ss:$28 sps:$4 sm:$0xff]  }
  0x29   :  { %805 = vmatpush2.bf16.msra.mxu1 %v1215_v46  ;;  %v1285_v46 = vld [vmem:[%s1706_s1 + $0x278] ss:$28 sps:$4 sm:$0xff]  }
  0x2a   :  { %806 = vmatprep.subr.bf16.mxu1 %v1219_v47  ;;  %v1292_v47 = vld [vmem:[%s1706_s1 + $0x244] ss:$28 sps:$4 sm:$0xff]  }
  0x2b   :  { %764 = vmatpush2.bf16.msra.mxu0 %v1184_v40  ;;  %v1277_v40 = vld [vmem:[%s1706_s1 + $0x2ec] ss:$28 sps:$4 sm:$0xff]  }
  0x2c   :  { %765 = vmatprep.subr.bf16.mxu0 %v1186_v41  ;;  %v1294_v41 = vld [vmem:[%s1706_s1 + $0x18] ss:$28 sps:$4 sm:$0xff]  }
  0x2d   :  { %807 = vmatpush2.bf16.msra.mxu1 %v1224_v50  ;;  %v1295_v50 = vld [vmem:[%s1706_s1 + $0x208] ss:$28 sps:$4 sm:$0xff]  }
  0x2e   :  { %808 = vmatprep.subr.bf16.mxu1 %v1225_v51  ;;  %v1300_v51 = vld [vmem:[%s1706_s1 + $0x1d4] ss:$28 sps:$4 sm:$0xff]  }
  0x2f   :  { %766 = vmatpush2.bf16.msra.mxu0 %v1190_v44  ;;  %v1280_v44 = vld [vmem:[%s1706_s1 + $0x2b0] ss:$28 sps:$4 sm:$0xff]  }
  0x30   :  { %767 = vmatprep.subr.bf16.mxu0 %v1192_v45  ;;  %v1287_v45 = vld [vmem:[%s1706_s1 + $0x27c] ss:$28 sps:$4 sm:$0xff]  }
  0x31   :  { %809 = vmatpush2.bf16.msra.mxu1 %v1230_v54 }
  0x32   :  { %810 = vmatprep.subr.bf16.mxu1 %v1231_v55 }
  0x33   :  { %768 = vmatpush2.bf16.msra.mxu0 %v1196_v48  ;;  %v1290_v48 = vld [vmem:[%s1706_s1 + $0x240] ss:$28 sps:$4 sm:$0xff]  }
  0x34   :  { %769 = vmatprep.subr.bf16.mxu0 %v1198_v49  ;;  %v1297_v49 = vld [vmem:[%s1706_s1 + $0x20c] ss:$28 sps:$4 sm:$0xff]  }
  0x35   :  { %811 = vmatpush2.bf16.msra.mxu1 %v1236_v58 }
  0x36   :  { %812 = vmatprep.subr.bf16.mxu1 %v1237_v59 }
  0x37   :  { %770 = vmatpush2.bf16.msra.mxu0 %v1202_v52  ;;  %v1298_v52 = vld [vmem:[%s1706_s1 + $0x1d0] ss:$28 sps:$4 sm:$0xff]  }
  0x38   :  { %771 = vmatprep.subr.bf16.mxu0 %v1204_v53 }
  0x39   :  { %813 = vmatpush2.bf16.msra.mxu1 %v1242_v63 }
  0x3a   :  { %814 = vmatprep.subr.bf16.mxu1 %v1243_v0 }
  0x3b   :  { %772 = vmatpush2.bf16.msra.mxu0 %v1208_v56 }
  0x3c   :  { %773 = vmatprep.subr.bf16.mxu0 %v1210_v57 }
  0x3d   :  { %815 = vmatpush2.bf16.msra.mxu1 %v1248_v3 }
  0x3e   :  { %816 = vmatprep.subr.bf16.mxu1 %v1249_v4 }
  0x3f   :  { %774 = vmatpush2.bf16.msra.mxu0 %v1214_v60 }
  0x40   :  { %829 = vmatprep.subr.bf16.mxu0 %v1223_v61 }
  0x41   :  { %817 = vmatpush2.bf16.msra.mxu1 %v1254_v7 }
  0x42   :  { %776 = vmatmul.mubr.bf16.vlgmr.msra.gmra.mxu0 %v1512_v62  ;;  %1114 = vmatprep.subr.bf16.mxu1 %v1258_v8 }
  0x43   :  { %830 = vmatpush1.bf16.msra.mxu0 %v1221_v1  ;;  %861 = vmatprep.mubr.bf16.mxu0 %v1433_v37 }
  0x44   :  { %831 = vmatprep.subr.bf16.mxu0 %v1229_v2  ;;  %819 = vmatmul.mubr.bf16.vlgmr.msra.gmra.mxu1 %v1512_v62 }
  0x45   :  { %1115 = vmatpush3.bf16.msra.mxu1 %v1259_v11  ;;  %904 = vmatprep.mubr.bf16.mxu1 %v1433_v37  ;;  %v1289_v37 = vld [vmem:[%s1706_s1 + $0x50] ss:$28 sps:$4 sm:$0xff]  }
  0x46   :  { %1116 = vmatprep.subr.bf16.mxu1 %v1263_v12 }
  0x47   :  { %832 = vmatpush1.bf16.msra.mxu0 %v1227_v5 }
  0x48   :  { %833 = vmatprep.subr.bf16.mxu0 %v1235_v6 }
  0x49   :  { %1117 = vmatpush3.bf16.msra.mxu1 %v1264_v15 }
  0x4a   :  { %1118 = vmatprep.subr.bf16.mxu1 %v1268_v16 }
  0x4b   :  { %834 = vmatpush1.bf16.msra.mxu0 %v1233_v9 }
  0x4c   :  { %835 = vmatprep.subr.bf16.mxu0 %v1241_v10 }
  0x4d   :  { %1119 = vmatpush3.bf16.msra.mxu1 %v1269_v19 }
  0x4e   :  { %1120 = vmatprep.subr.bf16.mxu1 %v1273_v20 }
  0x4f   :  { %836 = vmatpush1.bf16.msra.mxu0 %v1239_v13 }
  0x50   :  { %837 = vmatprep.subr.bf16.mxu0 %v1247_v14 }
  0x51   :  { %1121 = vmatpush3.bf16.msra.mxu1 %v1274_v25 }
  0x52   :  { %1122 = vmatprep.subr.bf16.mxu1 %v1278_v26 }
  0x53   :  { %838 = vmatpush1.bf16.msra.mxu0 %v1245_v17 }
  0x54   :  { %839 = vmatprep.subr.bf16.mxu0 %v1253_v18 }
  0x55   :  { %1123 = vmatpush3.bf16.msra.mxu1 %v1279_v29 }
  0x56   :  { %1124 = vmatprep.subr.bf16.mxu1 %v1283_v30 }
  0x57   :  { %840 = vmatpush1.bf16.msra.mxu0 %v1251_v22 }
  0x58   :  { %841 = vmatprep.subr.bf16.mxu0 %v1257_v24 }
  0x59   :  { %1125 = vmatpush3.bf16.msra.mxu1 %v1284_v33 }
  0x5a   :  { %1126 = vmatprep.subr.bf16.mxu1 %v1288_v34 }
  0x5b   :  { %842 = vmatpush1.bf16.msra.mxu0 %v1255_v27 }
  0x5c   :  { %843 = vmatprep.subr.bf16.mxu0 %v1262_v28 }
  0x5d   :  { %1127 = vmatpush3.bf16.msra.mxu1 %v1289_v37 }
  0x5e   :  { %1128 = vmatprep.subr.bf16.mxu1 %v1293_v38 }
  0x5f   :  { %844 = vmatpush1.bf16.msra.mxu0 %v1260_v31 }
  0x60   :  { %845 = vmatprep.subr.bf16.mxu0 %v1267_v32 }
  0x61   :  { %1129 = vmatpush3.bf16.msra.mxu1 %v1294_v41 }
  0x63   :  { %846 = vmatpush2.bf16.msra.mxu0 %v1265_v35 }
  0x64   :  { %847 = vmatprep.subr.bf16.mxu0 %v1272_v36  ;;  %905 = vmatmul.mubr.bf16.vlgmr.msra.gmra.mxu1 %v1512_v62 }
  0x67   :  { %848 = vmatpush2.bf16.msra.mxu0 %v1270_v39 }
  0x68   :  { %849 = vmatprep.subr.bf16.mxu0 %v1277_v40 }
  0x6b   :  { %850 = vmatpush2.bf16.msra.mxu0 %v1275_v42 }
  0x6c   :  { %851 = vmatprep.subr.bf16.mxu0 %v1282_v43 }
  0x6f   :  { %852 = vmatpush2.bf16.msra.mxu0 %v1280_v44 }
  0x70   :  { %853 = vmatprep.subr.bf16.mxu0 %v1287_v45 }
  0x73   :  { %854 = vmatpush2.bf16.msra.mxu0 %v1285_v46 }
  0x74   :  { %855 = vmatprep.subr.bf16.mxu0 %v1292_v47 }
  0x77   :  { %856 = vmatpush2.bf16.msra.mxu0 %v1290_v48 }
  0x78   :  { %857 = vmatprep.subr.bf16.mxu0 %v1297_v49 }
  0x7b   :  { %858 = vmatpush2.bf16.msra.mxu0 %v1295_v50 }
  0x7c   :  { %859 = vmatprep.subr.bf16.mxu0 %v1300_v51 }
  0x7f   :  { %860 = vmatpush2.bf16.msra.mxu0 %v1298_v52 }
  0x82   :  { %862 = vmatmul.mubr.bf16.vlgmr.msra.gmra.mxu0 %v1512_v62 }
  0x9a   :  { %v150_v53 = vpop.permute.xlu0 %149 }
  0x9e   :  { %v155_v57 = vpop.permute.xlu0 %154 }
 0x102   :  { %v777_v54 = vpop.f32.mrf.mxu0 }
 0x103   :  { %v778_v55 = vadd.f32 %v777_v54, %v150_v53 }
 0x104   :  { %v779_v56 = vpop.f32.mrf.mxu0  ;;  %v820_v62 = vpop.f32.mrf.mxu1 }
 0x105   :  { %v913_v58 = vmax.f32 %v778_v55, 0.0  ;;  %v780_v59 = vadd.f32 %v779_v56, %v150_v53  ;;  %v821_v5 = vadd.f32 %v820_v62, %v150_v53 }
 0x106   :  { %v781_v60 = vpop.f32.mrf.mxu0  ;;  %v822_v7 = vpop.f32.mrf.mxu1 }
 0x107   :  { %v914_v61 = vmax.f32 %v780_v59, 0.0  ;;  %v782_v63 = vadd.f32 %v781_v60, %v155_v57  ;;  %v915_v8 = vmax.f32 %v821_v5, 0.0  ;;  %v823_v9 = vadd.f32 %v822_v7, %v150_v53 }
 0x108   :  { %v783_v0 = vpop.f32.mrf.mxu0  ;;  %v824_v10 = vpop.f32.mrf.mxu1 }
 0x109   :  { %v1106_v1 = vpack.c.bf16 %v914_v61, %v913_v58  ;;  %v784_v2 = vadd.f32 %v783_v0, %v155_v57  ;;  %v920_v3 = vmax.f32 %v782_v63, 0.0  ;;  %v916_v11 = vmax.f32 %v823_v9, 0.0 }
 0x10a   :  { %v825_v12 = vadd.f32 %v824_v10, %v155_v57  ;;  %v826_v13 = vpop.f32.mrf.mxu1 }
 0x10b   :  { %971 = vst [vmem:[%s1709_s3] sm:$0xff] %v1106_v1  ;;  %v921_v4 = vmax.f32 %v784_v2, 0.0  ;;  %v1107_v14 = vpack.c.bf16 %v916_v11, %v915_v8  ;;  %v827_v16 = vadd.f32 %v826_v13, %v155_v57 }
 0x10c   :  { %v922_v15 = vmax.f32 %v825_v12, 0.0 }
 0x10d   :  { %v1110_v6 = vpack.c.bf16 %v921_v4, %v920_v3  ;;  %972 = vst [vmem:[%s1709_s3 + $0x8] sm:$0xff] %v1107_v14  ;;  %v923_v17 = vmax.f32 %v827_v16, 0.0 }
 0x10f   :  { %976 = vst [vmem:[%s1709_s3 + $0x1c] sm:$0xff] %v1110_v6  ;;  %v1111_v18 = vpack.c.bf16 %v923_v17, %v922_v15 }
 0x111   :  { %977 = vst [vmem:[%s1709_s3 + $0x24] sm:$0xff] %v1111_v18 }
 0x124   :  { %v1130_v19 = vpop.f32.mrf.mxu1 }
 0x126   :  { %v1131_v20 = vpop.f32.mrf.mxu1 }
 0x127   :  { %v1132_v21 = vadd.f32 %v1131_v20, %v1130_v19 }
 0x128   :  { %v1133_v22 = vpop.f32.mrf.mxu1 }
 0x129   :  { %v907_v23 = vadd.f32 %v1132_v21, %v150_v53 }
 0x12a   :  { %v1134_v24 = vpop.f32.mrf.mxu1 }
 0x12b   :  { %v919_v25 = vmax.f32 %v907_v23, 0.0  ;;  %v1135_v26 = vadd.f32 %v1134_v24, %v1133_v22 }
 0x12d   :  { %v1109_v27 = vpack.c.bf16 %v919_v25, %v919_v25  ;;  %v910_v28 = vadd.f32 %v1135_v26, %v155_v57 }
 0x12f   :  { %975 = vst.msk [vmem:[%s1709_s3 + $0x18] sm:$0xf] %vm974_vm0, %v1109_v27  ;;  %v926_v29 = vmax.f32 %v910_v28, 0.0 }
 0x131   :  { %v1113_v30 = vpack.c.bf16 %v926_v29, %v926_v29 }
 0x133   :  { %979 = vst.msk [vmem:[%s1709_s3 + $0x34] sm:$0xf] %vm974_vm0, %v1113_v30 }
 0x142   :  { %v863_v31 = vpop.f32.mrf.mxu0 }
 0x143   :  { %v864_v32 = vadd.f32 %v863_v31, %v150_v53 }
 0x144   :  { %v865_v33 = vpop.f32.mrf.mxu0 }
 0x145   :  { %v866_v34 = vadd.f32 %v865_v33, %v150_v53  ;;  %v917_v36 = vmax.f32 %v864_v32, 0.0 }
 0x146   :  { %v867_v35 = vpop.f32.mrf.mxu0 }
 0x147   :  { %v918_v37 = vmax.f32 %v866_v34, 0.0  ;;  %v868_v38 = vadd.f32 %v867_v35, %v155_v57 }
 0x148   :  { %v869_v39 = vpop.f32.mrf.mxu0 }
 0x149   :  { %v1108_v40 = vpack.c.bf16 %v918_v37, %v917_v36  ;;  %v870_v41 = vadd.f32 %v869_v39, %v155_v57  ;;  %v924_v42 = vmax.f32 %v868_v38, 0.0 }
 0x14b   :  { %973 = vst [vmem:[%s1709_s3 + $0x10] sm:$0xff] %v1108_v40  ;;  %v925_v43 = vmax.f32 %v870_v41, 0.0 }
 0x14d   :  { %v1112_v44 = vpack.c.bf16 %v925_v43, %v924_v42 }
 0x14f   :  { %978 = vst [vmem:[%s1709_s3 + $0x2c] sm:$0xff] %v1112_v44 }

// kernel: forward.3
= control target key start
LH: loop header
LB: loop body
LE: loop exit
PB: predicated region body
PF: predicated region fallthrough
CT: control target
= control target key end

     0   :  { %v13906_v1 = vmov 0   ;;  %vm337_vm0 = vcmask 655360   ;;  %s13909_s26 = smov 115   ;;  %s13911_s17 = smov 34   ;;  %vm371_vm1 = vcmask 1041032   ;;  %vm372_vm2 = vcmask 272386   ;;  %s19511_s0 = inlined_call_operand.vmem [shape: bf16[256,162], index: 0, kind: input, shape index: {}]   ;;  %s19512_s3 = inlined_call_operand.vmem [shape: bf16[32,256], index: 3, kind: input, shape index: {}]   ;;  %s19513_s4 = inlined_call_operand.vmem [shape: f32[32,1], index: 4, kind: input, shape index: {}]   ;;  %s19514_s6 = inlined_call_operand.vmem [shape: bf16[256,1024], index: 6, kind: input, shape index: {}]   ;;  %s19515_s1 = inlined_call_operand.vmem [shape: f32[2,256], index: 1, kind: input, shape index: {}]   ;;  %s19516_s5 = inlined_call_operand.vmem [shape: bf16[2592,1024], index: 5, kind: input, shape index: {}]   ;;  %s19517_s7 = inlined_call_operand.vmem [shape: f32[1,1024], index: 7, kind: input, shape index: {}]   ;;  %s19518_s8 = inlined_call_operand.vmem [shape: bf16[512,128], index: 8, kind: input, shape index: {}]   ;;  %s19519_s2 = inlined_call_operand.vmem [shape: f32[2,256], index: 2, kind: input, shape index: {}]   ;;  %s19520_s10 = inlined_call_operand.vmem [shape: f32[2,640], index: 10, kind: output, shape index: {}]   ;;  %s19521_s9 = inlined_call_operand.vmem [shape: f32[1,128], index: 9, kind: input, shape index: {}]  }
   0x1   :  { %v13785_v0 = vld [vmem:[%s19511_s0 + $0x74] ss:$8 sps:$4 sm:$0xff]   ;;  %13783 = vset.pattern.permute.xlu0 %v13906_v1  ;;  %13784 = vset.pattern.permute.xlu1 %v13906_v1  ;;  %v13787_v2 = vld [vmem:[%s19511_s0 + $0x70] ss:$8 sps:$4 sm:$0xff]   ;;  %v13788_v3 = vld [vmem:[%s19511_s0 + $0x64] ss:$8 sps:$4 sm:$0xff]  }
   0x2   :  { %276 = vmatprep.subr.bf16.mxu0 %v13785_v0  ;;  %v13790_v4 = vld [vmem:[%s19511_s0 + $0x60] ss:$8 sps:$4 sm:$0xff]   ;;  %v13791_v5 = vld [vmem:[%s19511_s0 + $0x54] ss:$8 sps:$4 sm:$0xff]   ;;  %v13793_v6 = vld [vmem:[%s19511_s0 + $0x50] ss:$8 sps:$4 sm:$0xff]  }
   0x3   :  { %277 = vmatpush1.bf16.msra.mxu0 %v13787_v2  ;;  %v13794_v7 = vld [vmem:[%s19511_s0 + $0x44] ss:$8 sps:$4 sm:$0xff]   ;;  %v13796_v8 = vld [vmem:[%s19511_s0 + $0x40] ss:$8 sps:$4 sm:$0xff]   ;;  %v13797_v9 = vld [vmem:[%s19511_s0 + $0x34] ss:$8 sps:$4 sm:$0xff]  }
   0x4   :  { %278 = vmatprep.subr.bf16.mxu0 %v13788_v3  ;;  %v13799_v10 = vld [vmem:[%s19511_s0 + $0x30] ss:$8 sps:$4 sm:$0xff]   ;;  %v13800_v11 = vld [vmem:[%s19511_s0 + $0x24] ss:$8 sps:$4 sm:$0xff]   ;;  %v13802_v12 = vld [vmem:[%s19511_s0 + $0x20] ss:$8 sps:$4 sm:$0xff]  }
   0x5   :  { %v13803_v13 = vld [vmem:[%s19511_s0 + $0x14] ss:$8 sps:$4 sm:$0xff]   ;;  %v13835_v14 = vld [vmem:[%s19512_s3 + $0x4] ss:$8 sps:$4 sm:$0xff]   ;;  %v13805_v16 = vld [vmem:[%s19511_s0 + $0x10] ss:$8 sps:$4 sm:$0xff]  }
   0x6   :  { %v72_v15 = vld [vmem:[%s19513_s4] sm:$0xff]  ;;  %308 = vmatprep.mubr.bf16.mxu0 %v13835_v14  ;;  %v73_v18 = vld [vmem:[%s19513_s4 + $0x8] sm:$0xff]  ;;  %v13809_v29 = vld [vmem:[%s19511_s0 + $0xf4] ss:$8 sps:$4 sm:$0xff]   ;;  %s13912_s28 = smov 47   ;;  %s13913_s16 = smov 21  }
   0x7   :  { %279 = vmatpush1.bf16.msra.mxu0 %v13790_v4  ;;  %78 = vperm.xlu0 %13783, %v72_v15   ;;  %v13806_v17 = vld [vmem:[%s19511_s0 + $0x4] ss:$8 sps:$4 sm:$0xff]   ;;  %v13808_v25 = vld [vmem:[%s19511_s0] ss:$8 sps:$4 sm:$0xff]   ;;  %v13811_v32 = vld [vmem:[%s19511_s0 + $0xf0] ss:$8 sps:$4 sm:$0xff]  }
   0x8   :  { %280 = vmatprep.subr.bf16.mxu0 %v13791_v5  ;;  %v2518_v19 = vld [vmem:[%s19514_s6 + $0x1c0] sm:$0xff]  ;;  %v13815_v41 = vld [vmem:[%s19511_s0 + $0xd4] ss:$8 sps:$4 sm:$0xff]   ;;  %v13817_v44 = vld [vmem:[%s19511_s0 + $0xd0] ss:$8 sps:$4 sm:$0xff]   ;;  %s13914_s25 = smov 102  }
   0x9   :  { %v2522_v20 = vld [vmem:[%s19514_s6 + $0x1e0] sm:$0xff]  ;;  %v13821_v53 = vld [vmem:[%s19511_s0 + $0xb4] ss:$8 sps:$4 sm:$0xff]   ;;  %v13823_v56 = vld [vmem:[%s19511_s0 + $0xb0] ss:$8 sps:$4 sm:$0xff]   ;;  %s13915_s13 = smov 89  }
   0xa   :  { %v12294_v21 = vcombine.high %v2518_v19, %v2522_v20  ;;  %v12293_v22 = vcombine.low %v2518_v19, %v2522_v20  ;;  %v2510_v23 = vld [vmem:[%s19514_s6 + $0x180] sm:$0xff]  ;;  %v13827_v63 = vld [vmem:[%s19511_s0 + $0x94] ss:$8 sps:$4 sm:$0xff]   ;;  %v13829_v0 = vld [vmem:[%s19511_s0 + $0x90] ss:$8 sps:$4 sm:$0xff]   ;;  %s13917_s21 = smov 76  }
   0xb   :  { %281 = vmatpush1.bf16.msra.mxu0 %v13793_v6  ;;  %v2514_v24 = vld [vmem:[%s19514_s6 + $0x1a0] sm:$0xff]  ;;  %83 = vperm.xlu0 %13783, %v73_v18   ;;  %v2519_v3 = vld [vmem:[%s19514_s6 + $0x1c8] sm:$0xff]  ;;  %v13838_v19 = vld [vmem:[%s19512_s3 + $0x10] ss:$8 sps:$4 sm:$0xff]   ;;  %s13921_s29 = smov 29   ;;  %s13922_s30 = smov 110  }
   0xc   :  { %282 = vmatprep.subr.bf16.mxu0 %v13794_v7  ;;  %v12286_v26 = vcombine.high %v2510_v23, %v2514_v24  ;;  %v2502_v27 = vld [vmem:[%s19514_s6 + $0x140] sm:$0xff]  ;;  %3230 = vmatprep.subr.bf16.mxu1 %v12294_v21  ;;  %v12285_v30 = vcombine.low %v2510_v23, %v2514_v24  ;;  %v2523_v4 = vld [vmem:[%s19514_s6 + $0x1e8] sm:$0xff]  ;;  %s13923_s11 = smov 63   ;;  %vm368_vm3 = vcmask 662528   ;;  %vm14809_vm4 = vmor %vm372_vm2, %vm371_vm1  ;;  %vm383_vm5 = vcmask 934160   ;;  %s13924_s18 = smov 97  }
   0xd   :  { %v2506_v28 = vld [vmem:[%s19514_s6 + $0x160] sm:$0xff]  ;;  %3231 = vmatpush1.bf16.msra.mxu1 %v12293_v22  ;;  %v12296_v6 = vcombine.high %v2519_v3, %v2523_v4  ;;  %v2511_v7 = vld [vmem:[%s19514_s6 + $0x188] sm:$0xff]  ;;  %vm352_vm6 = vcmask 384000   ;;  %vm400_vm7 = vcmask 1041304   ;;  %vm401_vm8 = vcmask 550914   ;;  %s13927_s20 = smov 3  }
   0xe   :  { %3232 = vmatprep.subr.bf16.mxu1 %v12286_v26  ;;  %v12278_v31 = vcombine.high %v2502_v27, %v2506_v28  ;;  %v2494_v33 = vld [vmem:[%s19514_s6 + $0x100] sm:$0xff]  ;;  %v12277_v36 = vcombine.low %v2502_v27, %v2506_v28  ;;  %v2507_v14 = vld [vmem:[%s19514_s6 + $0x168] sm:$0xff]  ;;  %vm409_vm9 = vcmask 277504   ;;  %vm397_vm10 = vcmask 941056   ;;  %vm14824_vm14 = vmor %vm401_vm8, %vm400_vm7  ;;  %s13930_s15 = smov 37   ;;  %s13933_s23 = smov 24  }
   0xf   :  { %283 = vmatpush1.bf16.msra.mxu0 %v13796_v8  ;;  %v2498_v34 = vld [vmem:[%s19514_s6 + $0x120] sm:$0xff]  ;;  %v2515_v8 = vld [vmem:[%s19514_s6 + $0x1a8] sm:$0xff]  ;;  %vm427_vm11 = vcmask 1040928   ;;  %vm428_vm12 = vcmask 165890   ;;  %vm467_vm13 = vcmask 1041200   ;;  %vm468_vm15 = vcmask 444418  }
  0x10   :  { %284 = vmatprep.subr.bf16.mxu0 %v13797_v9  ;;  %v13812_v35 = vld [vmem:[%s19511_s0 + $0xe4] ss:$8 sps:$4 sm:$0xff]   ;;  %v12270_v37 = vcombine.high %v2494_v33, %v2498_v34  ;;  %v13814_v38 = vld [vmem:[%s19511_s0 + $0xe0] ss:$8 sps:$4 sm:$0xff]   ;;  %v12269_v42 = vcombine.low %v2494_v33, %v2498_v34  ;;  %v12287_v15 = vcombine.low %v2511_v7, %v2515_v8  ;;  %vm424_vm1 = vcmask 556032   ;;  %vm14833_vm2 = vmor %vm428_vm12, %vm427_vm11  ;;  %s13938_s14 = smov 45  }
  0x11   :  { %3233 = vmatpush1.bf16.msra.mxu1 %v12285_v30  ;;  %v2486_v39 = vld [vmem:[%s19514_s6 + $0xc0] sm:$0xff]  ;;  %v2499_v18 = vld [vmem:[%s19514_s6 + $0x128] sm:$0xff]  ;;  %vm488_vm7 = vcmask 59394   ;;  %vm484_vm8 = vcmask 449536   ;;  %vm535_vm11 = vcmask 1041096   ;;  %vm536_vm12 = vcmask 337922  }
  0x12   :  { %3234 = vmatprep.subr.bf16.mxu1 %v12278_v31  ;;  %v2490_v40 = vld [vmem:[%s19514_s6 + $0xe0] sm:$0xff]  ;;  %v2487_v22 = vld [vmem:[%s19514_s6 + $0xc8] sm:$0xff] }
  0x13   :  { %285 = vmatpush1.bf16.msra.mxu0 %v13799_v10  ;;  %v12262_v43 = vcombine.high %v2486_v39, %v2490_v40  ;;  %v2478_v45 = vld [vmem:[%s19514_s6 + $0x80] sm:$0xff]  ;;  %v12261_v48 = vcombine.low %v2486_v39, %v2490_v40  ;;  %v13836_v10 = vld [vmem:[%s19512_s3 + $0x14] ss:$8 sps:$4 sm:$0xff]   ;;  %v2491_v23 = vld [vmem:[%s19514_s6 + $0xe8] sm:$0xff] }
  0x14   :  { %286 = vmatprep.subr.bf16.mxu0 %v13800_v11  ;;  %v2482_v46 = vld [vmem:[%s19514_s6 + $0xa0] sm:$0xff]  ;;  %v12295_v11 = vcombine.low %v2519_v3, %v2523_v4  ;;  %v2479_v26 = vld [vmem:[%s19514_s6 + $0x88] sm:$0xff]  ;;  %v12263_v28 = vcombine.low %v2487_v22, %v2491_v23 }
  0x15   :  { %3235 = vmatpush1.bf16.msra.mxu1 %v12277_v36  ;;  %v13818_v47 = vld [vmem:[%s19511_s0 + $0xc4] ss:$8 sps:$4 sm:$0xff]   ;;  %v12254_v49 = vcombine.high %v2478_v45, %v2482_v46  ;;  %v13820_v50 = vld [vmem:[%s19511_s0 + $0xc0] ss:$8 sps:$4 sm:$0xff]   ;;  %v12253_v54 = vcombine.low %v2478_v45, %v2482_v46 }
  0x16   :  { %3236 = vmatprep.subr.bf16.mxu1 %v12270_v37  ;;  %v2470_v51 = vld [vmem:[%s19514_s6 + $0x40] sm:$0xff]  ;;  %v2483_v27 = vld [vmem:[%s19514_s6 + $0xa8] sm:$0xff] }
  0x17   :  { %287 = vmatpush1.bf16.msra.mxu0 %v13802_v12  ;;  %v2474_v52 = vld [vmem:[%s19514_s6 + $0x60] sm:$0xff]  ;;  %v12288_v12 = vcombine.high %v2511_v7, %v2515_v8  ;;  %v2471_v30 = vld [vmem:[%s19514_s6 + $0x48] sm:$0xff] }
  0x18   :  { %288 = vmatprep.subr.bf16.mxu0 %v13803_v13  ;;  %v12246_v55 = vcombine.high %v2470_v51, %v2474_v52  ;;  %v14129_v57 = vld [vmem:[%s19514_s6] sm:$0xff]  ;;  %v12245_v60 = vcombine.low %v2470_v51, %v2474_v52  ;;  %v2503_v13 = vld [vmem:[%s19514_s6 + $0x148] sm:$0xff] }
  0x19   :  { %3237 = vmatpush1.bf16.msra.mxu1 %v12269_v42  ;;  %v14134_v58 = vld [vmem:[%s19514_s6 + $0x20] sm:$0xff]  ;;  %v12279_v20 = vcombine.low %v2503_v13, %v2507_v14  ;;  %v2475_v31 = vld [vmem:[%s19514_s6 + $0x68] sm:$0xff] }
  0x1a   :  { %3238 = vmatprep.subr.bf16.mxu1 %v12262_v43  ;;  %v13824_v59 = vld [vmem:[%s19511_s0 + $0xa4] ss:$8 sps:$4 sm:$0xff]   ;;  %v12238_v61 = vcombine.high %v14129_v57, %v14134_v58  ;;  %v13826_v62 = vld [vmem:[%s19511_s0 + $0xa0] ss:$8 sps:$4 sm:$0xff]   ;;  %v12248_v33 = vcombine.high %v2471_v30, %v2475_v31  ;;  %v12247_v34 = vcombine.low %v2471_v30, %v2475_v31 }
  0x1b   :  { %289 = vmatpush1.bf16.msra.mxu0 %v13805_v16  ;;  %v13830_v2 = vld [vmem:[%s19511_s0 + $0x84] ss:$8 sps:$4 sm:$0xff]   ;;  %v13832_v5 = vld [vmem:[%s19511_s0 + $0x80] ss:$8 sps:$4 sm:$0xff]   ;;  %v12280_v16 = vcombine.high %v2503_v13, %v2507_v14  ;;  %s13918_s0 = smov 8  }
  0x1c   :  { %290 = vmatprep.subr.bf16.mxu0 %v13806_v17  ;;  %v13833_v9 = vld [vmem:[%s19512_s3] ss:$8 sps:$4 sm:$0xff]   ;;  %s13908_s3 = smov 81  }
  0x1d   :  { %3239 = vmatpush1.bf16.msra.mxu1 %v12261_v48  ;;  %v2495_v17 = vld [vmem:[%s19514_s6 + $0x108] sm:$0xff]  ;;  %v2582_v40 = vld [vmem:[%s19514_s6 + $0x3c0] sm:$0xff] }
  0x1e   :  { %3240 = vmatprep.subr.bf16.mxu1 %v12254_v49  ;;  %v12272_v21 = vcombine.high %v2495_v17, %v2499_v18  ;;  %v12271_v24 = vcombine.low %v2495_v17, %v2499_v18  ;;  %v2463_v36 = vld [vmem:[%s19514_s6 + $0x8] sm:$0xff]  ;;  %v2574_v48 = vld [vmem:[%s19514_s6 + $0x380] sm:$0xff] }
  0x1f   :  { %291 = vmatpush1.bf16.msra.mxu0 %v13808_v25  ;;  %v12264_v25 = vcombine.high %v2487_v22, %v2491_v23  ;;  %v2467_v37 = vld [vmem:[%s19514_s6 + $0x28] sm:$0xff]  ;;  %v2578_v49 = vld [vmem:[%s19514_s6 + $0x3a0] sm:$0xff] }
  0x20   :  { %292 = vmatprep.subr.bf16.mxu0 %v13809_v29  ;;  %v12256_v29 = vcombine.high %v2479_v26, %v2483_v27  ;;  %v12239_v39 = vcombine.low %v2463_v36, %v2467_v37  ;;  %v2587_v45 = vld [vmem:[%s19514_s6 + $0x3e8] sm:$0xff]  ;;  %v12349_v51 = vcombine.low %v2574_v48, %v2578_v49  ;;  %v2542_v17 = vld [vmem:[%s19514_s6 + $0x280] sm:$0xff] }
  0x21   :  { %3241 = vmatpush1.bf16.msra.mxu1 %v12253_v54  ;;  %v2575_v52 = vld [vmem:[%s19514_s6 + $0x388] sm:$0xff]  ;;  %v2546_v18 = vld [vmem:[%s19514_s6 + $0x2a0] sm:$0xff] }
  0x22   :  { %3242 = vmatprep.subr.bf16.mxu1 %v12246_v55  ;;  %v2551_v13 = vld [vmem:[%s19514_s6 + $0x2c8] sm:$0xff] }
  0x23   :  { %293 = vmatpush2.bf16.msra.mxu0 %v13811_v32  ;;  %v12255_v32 = vcombine.low %v2479_v26, %v2483_v27  ;;  %v2555_v14 = vld [vmem:[%s19514_s6 + $0x2e8] sm:$0xff]  ;;  %v2538_v26 = vld [vmem:[%s19514_s6 + $0x260] sm:$0xff] }
  0x24   :  { %294 = vmatprep.subr.bf16.mxu0 %v13812_v35  ;;  %v12237_v35 = vcombine.low %v14129_v57, %v14134_v58  ;;  %v2570_v57 = vld [vmem:[%s19514_s6 + $0x360] sm:$0xff]  ;;  %v2547_v22 = vld [vmem:[%s19514_s6 + $0x2a8] sm:$0xff] }
  0x25   :  { %3243 = vmatpush1.bf16.msra.mxu1 %v12245_v60  ;;  %v2567_v60 = vld [vmem:[%s19514_s6 + $0x348] sm:$0xff] }
  0x26   :  { %3244 = vmatprep.subr.bf16.mxu1 %v12238_v61  ;;  %v2571_v61 = vld [vmem:[%s19514_s6 + $0x368] sm:$0xff] }
  0x27   :  { %295 = vmatpush2.bf16.msra.mxu0 %v13814_v38  ;;  %v12240_v38 = vcombine.high %v2463_v36, %v2467_v37  ;;  %v2539_v30 = vld [vmem:[%s19514_s6 + $0x268] sm:$0xff] }
  0x28   :  { %296 = vmatprep.subr.bf16.mxu0 %v13815_v41  ;;  %v2586_v41 = vld [vmem:[%s19514_s6 + $0x3e0] sm:$0xff]  ;;  %v2527_v37 = vld [vmem:[%s19514_s6 + $0x208] sm:$0xff] }
  0x29   :  { %3245 = vmatpush1.bf16.msra.mxu1 %v12237_v35  ;;  %v12358_v42 = vcombine.high %v2582_v40, %v2586_v41  ;;  %v12357_v43 = vcombine.low %v2582_v40, %v2586_v41 }
  0x2b   :  { %297 = vmatpush2.bf16.msra.mxu0 %v13817_v44  ;;  %v2583_v44 = vld [vmem:[%s19514_s6 + $0x3c8] sm:$0xff]  ;;  %3246 = vmatprep.subr.bf16.mxu1 %v12358_v42 }
  0x2c   :  { %298 = vmatprep.subr.bf16.mxu0 %v13818_v47  ;;  %v12360_v46 = vcombine.high %v2583_v44, %v2587_v45  ;;  %v12359_v47 = vcombine.low %v2583_v44, %v2587_v45  ;;  %v2524_v44 = vld [vmem:[%s19514_s6 + $0x1f0] sm:$0xff] }
  0x2d   :  { %3247 = vmatpush2.bf16.msra.mxu1 %v12357_v43  ;;  %v2520_v43 = vld [vmem:[%s19514_s6 + $0x1d0] sm:$0xff] }
  0x2f   :  { %299 = vmatpush2.bf16.msra.mxu0 %v13820_v50  ;;  %v12350_v50 = vcombine.high %v2574_v48, %v2578_v49  ;;  %v2521_v49 = vld [vmem:[%s19514_s6 + $0x1d8] sm:$0xff] }
  0x30   :  { %300 = vmatprep.subr.bf16.mxu0 %v13821_v53  ;;  %v2579_v53 = vld [vmem:[%s19514_s6 + $0x3a8] sm:$0xff] }
  0x31   :  { %3248 = vmatprep.subr.bf16.mxu1 %v12350_v50  ;;  %v12352_v54 = vcombine.high %v2575_v52, %v2579_v53  ;;  %v12351_v55 = vcombine.low %v2575_v52, %v2579_v53  ;;  %v2525_v50 = vld [vmem:[%s19514_s6 + $0x1f8] sm:$0xff]  ;;  %v2512_v53 = vld [vmem:[%s19514_s6 + $0x190] sm:$0xff] }
  0x32   :  { %3249 = vmatpush2.bf16.msra.mxu1 %v12349_v51  ;;  %v12299_v51 = vcombine.low %v2521_v49, %v2525_v50  ;;  %v12300_v52 = vcombine.high %v2521_v49, %v2525_v50 }
  0x33   :  { %301 = vmatpush2.bf16.msra.mxu0 %v13823_v56  ;;  %v2566_v56 = vld [vmem:[%s19514_s6 + $0x340] sm:$0xff] }
  0x34   :  { %302 = vmatprep.subr.bf16.mxu0 %v13824_v59  ;;  %v12342_v58 = vcombine.high %v2566_v56, %v2570_v57  ;;  %v12341_v59 = vcombine.low %v2566_v56, %v2570_v57  ;;  %v2513_v57 = vld [vmem:[%s19514_s6 + $0x198] sm:$0xff] }
  0x36   :  { %3250 = vmatprep.subr.bf16.mxu1 %v12342_v58  ;;  %v2517_v58 = vld [vmem:[%s19514_s6 + $0x1b8] sm:$0xff] }
  0x37   :  { %303 = vmatpush2.bf16.msra.mxu0 %v13826_v62  ;;  %v12343_v62 = vcombine.low %v2567_v60, %v2571_v61  ;;  %3251 = vmatpush2.bf16.msra.mxu1 %v12341_v59  ;;  %v12291_v59 = vcombine.low %v2513_v57, %v2517_v58 }
  0x38   :  { %304 = vmatprep.subr.bf16.mxu0 %v13827_v63  ;;  %v12344_v63 = vcombine.high %v2567_v60, %v2571_v61  ;;  %v12292_v60 = vcombine.high %v2513_v57, %v2517_v58  ;;  %v2504_v61 = vld [vmem:[%s19514_s6 + $0x150] sm:$0xff]  ;;  %v2577_v57 = vld [vmem:[%s19514_s6 + $0x398] sm:$0xff] }
  0x3b   :  { %305 = vmatpush2.bf16.msra.mxu0 %v13829_v0  ;;  %v2558_v0 = vld [vmem:[%s19514_s6 + $0x300] sm:$0xff] }
  0x3c   :  { %306 = vmatprep.subr.bf16.mxu0 %v13830_v2  ;;  %v2562_v2 = vld [vmem:[%s19514_s6 + $0x320] sm:$0xff] }
  0x3d   :  { %v12334_v3 = vcombine.high %v2558_v0, %v2562_v2  ;;  %v12333_v4 = vcombine.low %v2558_v0, %v2562_v2  ;;  %v2505_v2 = vld [vmem:[%s19514_s6 + $0x158] sm:$0xff] }
  0x3f   :  { %307 = vmatpush2.bf16.msra.mxu0 %v13832_v5  ;;  %v2559_v5 = vld [vmem:[%s19514_s6 + $0x308] sm:$0xff]  ;;  %3252 = vmatprep.subr.bf16.mxu1 %v12334_v3  ;;  %v2509_v3 = vld [vmem:[%s19514_s6 + $0x178] sm:$0xff] }
  0x40   :  { %3271 = vmatprep.subr.bf16.mxu0 %v12296_v6  ;;  %v2563_v6 = vld [vmem:[%s19514_s6 + $0x328] sm:$0xff]  ;;  %3253 = vmatpush2.bf16.msra.mxu1 %v12333_v4  ;;  %v12283_v4 = vcombine.low %v2505_v2, %v2509_v3 }
  0x41   :  { %v12335_v7 = vcombine.low %v2559_v5, %v2563_v6  ;;  %v12336_v8 = vcombine.high %v2559_v5, %v2563_v6  ;;  %v12284_v5 = vcombine.high %v2505_v2, %v2509_v3  ;;  %v2496_v6 = vld [vmem:[%s19514_s6 + $0x110] sm:$0xff]  ;;  %v2569_v2 = vld [vmem:[%s19514_s6 + $0x358] sm:$0xff] }
  0x42   :  { %309 = vmatmul.mubr.bf16.vlgmr.msra.gmra.mxu0 %v13833_v9  ;;  %v2550_v9 = vld [vmem:[%s19514_s6 + $0x2c0] sm:$0xff] }
  0x43   :  { %318 = vmatprep.mubr.bf16.mxu0 %v13836_v10  ;;  %3272 = vmatpush1.bf16.msra.mxu0 %v12295_v11  ;;  %v2554_v10 = vld [vmem:[%s19514_s6 + $0x2e0] sm:$0xff] }
  0x44   :  { %3273 = vmatprep.subr.bf16.mxu0 %v12288_v12  ;;  %v12326_v11 = vcombine.high %v2550_v9, %v2554_v10  ;;  %v12325_v12 = vcombine.low %v2550_v9, %v2554_v10  ;;  %v2497_v10 = vld [vmem:[%s19514_s6 + $0x118] sm:$0xff] }
  0x46   :  { %3254 = vmatprep.subr.bf16.mxu1 %v12326_v11  ;;  %v2501_v11 = vld [vmem:[%s19514_s6 + $0x138] sm:$0xff] }
  0x47   :  { %3274 = vmatpush1.bf16.msra.mxu0 %v12287_v15  ;;  %v12327_v15 = vcombine.low %v2551_v13, %v2555_v14  ;;  %3255 = vmatpush2.bf16.msra.mxu1 %v12325_v12  ;;  %v12275_v12 = vcombine.low %v2497_v10, %v2501_v11 }
  0x48   :  { %3275 = vmatprep.subr.bf16.mxu0 %v12280_v16  ;;  %v12328_v16 = vcombine.high %v2551_v13, %v2555_v14  ;;  %v12276_v13 = vcombine.high %v2497_v10, %v2501_v11  ;;  %v2488_v14 = vld [vmem:[%s19514_s6 + $0xd0] sm:$0xff]  ;;  %v2561_v11 = vld [vmem:[%s19514_s6 + $0x318] sm:$0xff] }
  0x4a   :  { %319 = vmatmul.mubr.bf16.gmra.mxu0 %v13838_v19  ;;  %v12318_v19 = vcombine.high %v2542_v17, %v2546_v18 }
  0x4b   :  { %3276 = vmatpush1.bf16.msra.mxu0 %v12279_v20  ;;  %v12317_v20 = vcombine.low %v2542_v17, %v2546_v18  ;;  %v2489_v18 = vld [vmem:[%s19514_s6 + $0xd8] sm:$0xff] }
  0x4c   :  { %3277 = vmatprep.subr.bf16.mxu0 %v12272_v21  ;;  %v2543_v21 = vld [vmem:[%s19514_s6 + $0x288] sm:$0xff]  ;;  %3256 = vmatprep.subr.bf16.mxu1 %v12318_v19  ;;  %v2493_v19 = vld [vmem:[%s19514_s6 + $0xf8] sm:$0xff] }
  0x4d   :  { %v12319_v23 = vcombine.low %v2543_v21, %v2547_v22  ;;  %3257 = vmatpush2.bf16.msra.mxu1 %v12317_v20  ;;  %v12267_v20 = vcombine.low %v2489_v18, %v2493_v19 }
  0x4f   :  { %3278 = vmatpush1.bf16.msra.mxu0 %v12271_v24  ;;  %v12320_v24 = vcombine.high %v2543_v21, %v2547_v22  ;;  %v12268_v21 = vcombine.high %v2489_v18, %v2493_v19  ;;  %v2480_v22 = vld [vmem:[%s19514_s6 + $0x90] sm:$0xff]  ;;  %v2557_v18 = vld [vmem:[%s19514_s6 + $0x2f8] sm:$0xff] }
  0x50   :  { %3279 = vmatprep.subr.bf16.mxu0 %v12264_v25  ;;  %v2534_v25 = vld [vmem:[%s19514_s6 + $0x240] sm:$0xff] }
  0x51   :  { %v12310_v27 = vcombine.high %v2534_v25, %v2538_v26 }
  0x53   :  { %3280 = vmatpush1.bf16.msra.mxu0 %v12263_v28  ;;  %v12309_v28 = vcombine.low %v2534_v25, %v2538_v26  ;;  %3258 = vmatprep.subr.bf16.mxu1 %v12310_v27  ;;  %v2481_v26 = vld [vmem:[%s19514_s6 + $0x98] sm:$0xff] }
  0x54   :  { %3281 = vmatprep.subr.bf16.mxu0 %v12256_v29  ;;  %v2535_v29 = vld [vmem:[%s19514_s6 + $0x248] sm:$0xff]  ;;  %v2485_v27 = vld [vmem:[%s19514_s6 + $0xb8] sm:$0xff] }
  0x55   :  { %v12311_v31 = vcombine.low %v2535_v29, %v2539_v30  ;;  %3259 = vmatpush2.bf16.msra.mxu1 %v12309_v28  ;;  %v12259_v28 = vcombine.low %v2481_v26, %v2485_v27 }
  0x57   :  { %3282 = vmatpush1.bf16.msra.mxu0 %v12255_v32  ;;  %v12312_v32 = vcombine.high %v2535_v29, %v2539_v30  ;;  %v12260_v29 = vcombine.high %v2481_v26, %v2485_v27  ;;  %v2472_v30 = vld [vmem:[%s19514_s6 + $0x50] sm:$0xff]  ;;  %v2549_v26 = vld [vmem:[%s19514_s6 + $0x2b8] sm:$0xff] }
  0x58   :  { %3283 = vmatprep.subr.bf16.mxu0 %v12248_v33  ;;  %v2526_v33 = vld [vmem:[%s19514_s6 + $0x200] sm:$0xff] }
  0x5b   :  { %3284 = vmatpush1.bf16.msra.mxu0 %v12247_v34  ;;  %v2530_v34 = vld [vmem:[%s19514_s6 + $0x220] sm:$0xff] }
  0x5c   :  { %3285 = vmatprep.subr.bf16.mxu0 %v12240_v38  ;;  %v12302_v35 = vcombine.high %v2526_v33, %v2530_v34  ;;  %v12301_v36 = vcombine.low %v2526_v33, %v2530_v34  ;;  %v2531_v38 = vld [vmem:[%s19514_s6 + $0x228] sm:$0xff]  ;;  %v2473_v34 = vld [vmem:[%s19514_s6 + $0x58] sm:$0xff] }
  0x5d   :  { %v12303_v40 = vcombine.low %v2527_v37, %v2531_v38  ;;  %v12304_v41 = vcombine.high %v2527_v37, %v2531_v38  ;;  %v2464_v38 = vld [vmem:[%s19514_s6 + $0x10] sm:$0xff] }
  0x5e   :  { %3260 = vmatprep.subr.bf16.mxu1 %v12302_v35  ;;  %v2477_v35 = vld [vmem:[%s19514_s6 + $0x78] sm:$0xff] }
  0x5f   :  { %3286 = vmatpush1.bf16.msra.mxu0 %v12239_v39  ;;  %v12236_v39 = vld.sshfl [vmem:[%s19515_s1] sm:$0x33 pattern:$0x76325410]  ;;  %3261 = vmatpush2.bf16.msra.mxu1 %v12301_v36  ;;  %v12251_v36 = vcombine.low %v2473_v34, %v2477_v35  ;;  %v12252_v37 = vcombine.high %v2473_v34, %v2477_v35  ;;  %v2541_v34 = vld [vmem:[%s19514_s6 + $0x278] sm:$0xff] }
  0x60   :  { %3287 = vmatprep.subr.bf16.mxu0 %v12360_v46  ;;  %v1161_v42 = vcombine.high %v12236_v39, %v12236_v39  ;;  %v12297_v46 = vcombine.low %v2520_v43, %v2524_v44  ;;  %v14320_v48 = vpack.c.bf16 %v12236_v39, %v12236_v39  ;;  %v2468_v39 = vld [vmem:[%s19514_s6 + $0x30] sm:$0xff] }
  0x62   :  { %v1165_v45 = vpack.c.bf16 %v1161_v42, %v1161_v42  ;;  %v2465_v42 = vld [vmem:[%s19514_s6 + $0x18] sm:$0xff] }
  0x63   :  { %3288 = vmatpush2.bf16.msra.mxu0 %v12359_v47  ;;  %v12298_v47 = vcombine.high %v2520_v43, %v2524_v44  ;;  %v2469_v43 = vld [vmem:[%s19514_s6 + $0x38] sm:$0xff] }
  0x64   :  { %3289 = vmatprep.subr.bf16.mxu0 %v12352_v54  ;;  %3262 = vmatprep.mubr.bf16.mxu1 %v1165_v45  ;;  %v2516_v54 = vld [vmem:[%s19514_s6 + $0x1b0] sm:$0xff]  ;;  %v12243_v44 = vcombine.low %v2465_v42, %v2469_v43 }
  0x65   :  { %3312 = vmatprep.subr.bf16.mxu1 %v12298_v47  ;;  %3263 = vmatmul.mubr.bf16.vlgmr.msra.gmra.mxu1 %v14320_v48  ;;  %v12290_v56 = vcombine.high %v2512_v53, %v2516_v54  ;;  %v2588_v47 = vld [vmem:[%s19514_s6 + $0x3f0] sm:$0xff] }
  0x66   :  { %3303 = vmatprep.mubr.bf16.mxu0 %v1165_v45  ;;  %3313 = vmatpush1.bf16.msra.mxu1 %v12297_v46  ;;  %v2584_v46 = vld [vmem:[%s19514_s6 + $0x3d0] sm:$0xff] }
  0x67   :  { %3290 = vmatpush2.bf16.msra.mxu0 %v12351_v55  ;;  %v12289_v55 = vcombine.low %v2512_v53, %v2516_v54  ;;  %3344 = vmatprep.mubr.bf16.mxu1 %v1165_v45  ;;  %v12361_v49 = vcombine.low %v2584_v46, %v2588_v47  ;;  %v12362_v50 = vcombine.high %v2584_v46, %v2588_v47  ;;  %v1226_v46 = vld [vmem:[%s19516_s5 + $0x1e0] sm:$0xff] }
  0x68   :  { %3291 = vmatprep.subr.bf16.mxu0 %v12344_v63  ;;  %3314 = vmatprep.subr.bf16.mxu1 %v12290_v56  ;;  %v2580_v56 = vld [vmem:[%s19514_s6 + $0x3b0] sm:$0xff] }
  0x6a   :  { %3315 = vmatpush1.bf16.msra.mxu1 %v12289_v55  ;;  %v2576_v55 = vld [vmem:[%s19514_s6 + $0x390] sm:$0xff] }
  0x6b   :  { %3292 = vmatpush2.bf16.msra.mxu0 %v12343_v62  ;;  %v2508_v62 = vld [vmem:[%s19514_s6 + $0x170] sm:$0xff]  ;;  %v12353_v58 = vcombine.low %v2576_v55, %v2580_v56 }
  0x6c   :  { %3293 = vmatprep.subr.bf16.mxu0 %v12336_v8  ;;  %v12281_v63 = vcombine.low %v2504_v61, %v2508_v62  ;;  %v12282_v0 = vcombine.high %v2504_v61, %v2508_v62 }
  0x6e   :  { %3316 = vmatprep.subr.bf16.mxu1 %v12282_v0  ;;  %v2572_v0 = vld [vmem:[%s19514_s6 + $0x370] sm:$0xff] }
  0x6f   :  { %3294 = vmatpush2.bf16.msra.mxu0 %v12335_v7  ;;  %v2500_v7 = vld [vmem:[%s19514_s6 + $0x130] sm:$0xff]  ;;  %3317 = vmatpush1.bf16.msra.mxu1 %v12281_v63 }
  0x70   :  { %3295 = vmatprep.subr.bf16.mxu0 %v12328_v16  ;;  %v12273_v8 = vcombine.low %v2496_v6, %v2500_v7  ;;  %v12274_v9 = vcombine.high %v2496_v6, %v2500_v7  ;;  %v2568_v63 = vld [vmem:[%s19514_s6 + $0x350] sm:$0xff] }
  0x71   :  { %v12345_v3 = vcombine.low %v2568_v63, %v2572_v0  ;;  %v2560_v6 = vld [vmem:[%s19514_s6 + $0x310] sm:$0xff] }
  0x72   :  { %3318 = vmatprep.subr.bf16.mxu1 %v12274_v9  ;;  %v2564_v7 = vld [vmem:[%s19514_s6 + $0x330] sm:$0xff] }
  0x73   :  { %3296 = vmatpush2.bf16.msra.mxu0 %v12327_v15  ;;  %3319 = vmatpush1.bf16.msra.mxu1 %v12273_v8  ;;  %v2492_v15 = vld [vmem:[%s19514_s6 + $0xf0] sm:$0xff]  ;;  %v12338_v10 = vcombine.high %v2560_v6, %v2564_v7 }
  0x74   :  { %3297 = vmatprep.subr.bf16.mxu0 %v12320_v24  ;;  %v12265_v16 = vcombine.low %v2488_v14, %v2492_v15  ;;  %v12266_v17 = vcombine.high %v2488_v14, %v2492_v15  ;;  %v2556_v15 = vld [vmem:[%s19514_s6 + $0x2f0] sm:$0xff] }
  0x76   :  { %3320 = vmatprep.subr.bf16.mxu1 %v12266_v17  ;;  %v2553_v17 = vld [vmem:[%s19514_s6 + $0x2d8] sm:$0xff] }
  0x77   :  { %3298 = vmatpush2.bf16.msra.mxu0 %v12319_v23  ;;  %3321 = vmatpush1.bf16.msra.mxu1 %v12265_v16  ;;  %v2484_v23 = vld [vmem:[%s19514_s6 + $0xb0] sm:$0xff]  ;;  %v12337_v16 = vcombine.low %v2560_v6, %v2564_v7  ;;  %v1198_v7 = vld [vmem:[%s19516_s5 + $0x100] sm:$0xff] }
  0x78   :  { %3299 = vmatprep.subr.bf16.mxu0 %v12312_v32  ;;  %v12257_v24 = vcombine.low %v2480_v22, %v2484_v23  ;;  %v12258_v25 = vcombine.high %v2480_v22, %v2484_v23  ;;  %v2548_v22 = vld [vmem:[%s19514_s6 + $0x2b0] sm:$0xff]  ;;  %v12332_v23 = vcombine.high %v2553_v17, %v2557_v18 }
  0x7a   :  { %3322 = vmatprep.subr.bf16.mxu1 %v12258_v25  ;;  %v2545_v25 = vld [vmem:[%s19514_s6 + $0x298] sm:$0xff] }
  0x7b   :  { %3300 = vmatpush2.bf16.msra.mxu0 %v12311_v31  ;;  %3323 = vmatpush1.bf16.msra.mxu1 %v12257_v24  ;;  %v2476_v31 = vld [vmem:[%s19514_s6 + $0x70] sm:$0xff] }
  0x7c   :  { %3301 = vmatprep.subr.bf16.mxu0 %v12304_v41  ;;  %v12249_v32 = vcombine.low %v2472_v30, %v2476_v31  ;;  %v12250_v33 = vcombine.high %v2472_v30, %v2476_v31  ;;  %v12242_v41 = vcombine.high %v2464_v38, %v2468_v39  ;;  %v2540_v30 = vld [vmem:[%s19514_s6 + $0x270] sm:$0xff]  ;;  %v12324_v31 = vcombine.high %v2545_v25, %v2549_v26 }
  0x7e   :  { %3324 = vmatprep.subr.bf16.mxu1 %v12250_v33  ;;  %v2537_v33 = vld [vmem:[%s19514_s6 + $0x258] sm:$0xff] }
  0x7f   :  { %3302 = vmatpush2.bf16.msra.mxu0 %v12303_v40  ;;  %3325 = vmatpush1.bf16.msra.mxu1 %v12249_v32  ;;  %v12241_v40 = vcombine.low %v2464_v38, %v2468_v39  ;;  %v2532_v38 = vld [vmem:[%s19514_s6 + $0x230] sm:$0xff]  ;;  %v12316_v39 = vcombine.high %v2537_v33, %v2541_v34 }
  0x80   :  { %3353 = vmatprep.subr.bf16.mxu0 %v12300_v52  ;;  %3326 = vmatprep.subr.bf16.mxu1 %v12242_v41  ;;  %v2589_v52 = vld [vmem:[%s19514_s6 + $0x3f8] sm:$0xff] }
  0x81   :  { %v2529_v41 = vld [vmem:[%s19514_s6 + $0x218] sm:$0xff] }
  0x82   :  { %3304 = vmatmul.mubr.bf16.vlgmr.msra.gmra.mxu0 %v14320_v48 }
  0x83   :  { %3354 = vmatpush1.bf16.msra.mxu0 %v12299_v51  ;;  %3385 = vmatprep.mubr.bf16.mxu0 %v1165_v45  ;;  %v12244_v45 = vcombine.high %v2465_v42, %v2469_v43  ;;  %v2585_v51 = vld [vmem:[%s19514_s6 + $0x3d8] sm:$0xff] }
  0x84   :  { %3355 = vmatprep.subr.bf16.mxu0 %v12292_v60  ;;  %3327 = vmatpush1.bf16.msra.mxu1 %v12241_v40  ;;  %v12363_v53 = vcombine.low %v2585_v51, %v2589_v52  ;;  %v12364_v54 = vcombine.high %v2585_v51, %v2589_v52  ;;  %v2581_v60 = vld [vmem:[%s19514_s6 + $0x3b8] sm:$0xff]  ;;  %v1354_v51 = vld [vmem:[%s19516_s5 + $0x5e0] sm:$0xff] }
  0x85   :  { %3328 = vmatprep.subr.bf16.mxu1 %v12362_v50  ;;  %v12355_v61 = vcombine.low %v2577_v57, %v2581_v60  ;;  %v12356_v62 = vcombine.high %v2577_v57, %v2581_v60  ;;  %v2533_v42 = vld [vmem:[%s19514_s6 + $0x238] sm:$0xff]  ;;  %v1350_v50 = vld [vmem:[%s19516_s5 + $0x5c0] sm:$0xff] }
  0x86   :  { %v12308_v47 = vcombine.high %v2529_v41, %v2533_v42 }
  0x87   :  { %3356 = vmatpush1.bf16.msra.mxu0 %v12291_v59  ;;  %v12354_v59 = vcombine.high %v2576_v55, %v2580_v56  ;;  %v1218_v55 = vld [vmem:[%s19516_s5 + $0x1a0] sm:$0xff]  ;;  %v12550_v56 = vcombine.high %v1350_v50, %v1354_v51 }
  0x88   :  { %3357 = vmatprep.subr.bf16.mxu0 %v12284_v5  ;;  %3329 = vmatpush2.bf16.msra.mxu1 %v12361_v49  ;;  %v2573_v5 = vld [vmem:[%s19514_s6 + $0x378] sm:$0xff] }
  0x89   :  { %3330 = vmatprep.subr.bf16.mxu1 %v12354_v59  ;;  %v12347_v8 = vcombine.low %v2569_v2, %v2573_v5  ;;  %v12348_v9 = vcombine.high %v2569_v2, %v2573_v5  ;;  %v1346_v59 = vld [vmem:[%s19516_s5 + $0x5a0] sm:$0xff] }
  0x8b   :  { %3358 = vmatpush1.bf16.msra.mxu0 %v12283_v4  ;;  %v12346_v4 = vcombine.high %v2568_v63, %v2572_v0  ;;  %v1210_v63 = vld [vmem:[%s19516_s5 + $0x160] sm:$0xff] }
  0x8c   :  { %3359 = vmatprep.subr.bf16.mxu0 %v12276_v13  ;;  %3331 = vmatpush2.bf16.msra.mxu1 %v12353_v58  ;;  %v2552_v13 = vld [vmem:[%s19514_s6 + $0x2d0] sm:$0xff]  ;;  %v1342_v58 = vld [vmem:[%s19516_s5 + $0x580] sm:$0xff] }
  0x8d   :  { %3332 = vmatprep.subr.bf16.mxu1 %v12346_v4  ;;  %v12330_v19 = vcombine.high %v2552_v13, %v2556_v15  ;;  %v12329_v24 = vcombine.low %v2552_v13, %v2556_v15  ;;  %v12542_v0 = vcombine.high %v1342_v58, %v1346_v59  ;;  %v1338_v4 = vld [vmem:[%s19516_s5 + $0x560] sm:$0xff]  ;;  %v12541_v6 = vcombine.low %v1342_v58, %v1346_v59 }
  0x8e   :  { %v1194_v15 = vld [vmem:[%s19516_s5 + $0xe0] sm:$0xff] }
  0x8f   :  { %3360 = vmatpush1.bf16.msra.mxu0 %v12275_v12  ;;  %v2565_v12 = vld [vmem:[%s19514_s6 + $0x338] sm:$0xff] }
  0x90   :  { %3361 = vmatprep.subr.bf16.mxu0 %v12268_v21  ;;  %v12340_v14 = vcombine.high %v2561_v11, %v2565_v12  ;;  %3333 = vmatpush2.bf16.msra.mxu1 %v12345_v3  ;;  %v2544_v21 = vld [vmem:[%s19514_s6 + $0x290] sm:$0xff]  ;;  %v1334_v3 = vld [vmem:[%s19516_s5 + $0x540] sm:$0xff] }
  0x91   :  { %3334 = vmatprep.subr.bf16.mxu1 %v12338_v10  ;;  %v12322_v27 = vcombine.high %v2544_v21, %v2548_v22  ;;  %v12321_v32 = vcombine.low %v2544_v21, %v2548_v22  ;;  %v12533_v13 = vcombine.low %v1334_v3, %v1338_v4  ;;  %v1182_v22 = vld [vmem:[%s19516_s5 + $0x80] sm:$0xff] }
  0x93   :  { %3362 = vmatpush1.bf16.msra.mxu0 %v12267_v20  ;;  %v12339_v20 = vcombine.low %v2561_v11, %v2565_v12  ;;  %v1330_v11 = vld [vmem:[%s19516_s5 + $0x520] sm:$0xff] }
  0x94   :  { %3363 = vmatprep.subr.bf16.mxu0 %v12260_v29  ;;  %3335 = vmatpush2.bf16.msra.mxu1 %v12337_v16  ;;  %v2536_v29 = vld [vmem:[%s19514_s6 + $0x250] sm:$0xff] }
  0x95   :  { %3336 = vmatprep.subr.bf16.mxu1 %v12330_v19  ;;  %v12314_v35 = vcombine.high %v2536_v29, %v2540_v30  ;;  %v12313_v40 = vcombine.low %v2536_v29, %v2540_v30  ;;  %v1322_v19 = vld [vmem:[%s19516_s5 + $0x4e0] sm:$0xff] }
  0x96   :  { %v1174_v30 = vld [vmem:[%s19516_s5 + $0x40] sm:$0xff] }
  0x97   :  { %3364 = vmatpush1.bf16.msra.mxu0 %v12259_v28  ;;  %v12331_v28 = vcombine.low %v2553_v17, %v2557_v18  ;;  %v1318_v18 = vld [vmem:[%s19516_s5 + $0x4c0] sm:$0xff] }
  0x98   :  { %3365 = vmatprep.subr.bf16.mxu0 %v12252_v37  ;;  %3337 = vmatpush2.bf16.msra.mxu1 %v12329_v24  ;;  %v2528_v37 = vld [vmem:[%s19514_s6 + $0x210] sm:$0xff]  ;;  %v12518_v24 = vcombine.high %v1318_v18, %v1322_v19  ;;  %v12517_v29 = vcombine.low %v1318_v18, %v1322_v19  ;;  %s13910_s6 = smov 68  }
  0x99   :  { %3338 = vmatprep.subr.bf16.mxu1 %v12322_v27  ;;  %v12306_v43 = vcombine.high %v2528_v37, %v2532_v38  ;;  %v12305_v49 = vcombine.low %v2528_v37, %v2532_v38  ;;  %v1314_v27 = vld [vmem:[%s19516_s5 + $0x4a0] sm:$0xff]  ;;  %v345_v38 = vlaneseq }
  0x9b   :  { %3366 = vmatpush1.bf16.msra.mxu0 %v12251_v36  ;;  %v12323_v36 = vcombine.low %v2545_v25, %v2549_v26  ;;  %v1310_v26 = vld [vmem:[%s19516_s5 + $0x480] sm:$0xff] }
  0x9c   :  { %3367 = vmatprep.subr.bf16.mxu0 %v12244_v45  ;;  %3339 = vmatpush2.bf16.msra.mxu1 %v12321_v32  ;;  %v1222_v45 = vld [vmem:[%s19516_s5 + $0x1c0] sm:$0xff]  ;;  %v12510_v32 = vcombine.high %v1310_v26, %v1314_v27 }
  0x9d   :  { %3340 = vmatprep.subr.bf16.mxu1 %v12314_v35  ;;  %v12422_v52 = vcombine.high %v1222_v45, %v1226_v46  ;;  %v12421_v57 = vcombine.low %v1222_v45, %v1226_v46  ;;  %v12509_v35 = vcombine.low %v1310_v26, %v1314_v27  ;;  %v1166_v46 = vld [vmem:[%s19516_s5] sm:$0xff] }
  0x9f   :  { %3368 = vmatpush1.bf16.msra.mxu0 %v12243_v44  ;;  %v12315_v44 = vcombine.low %v2537_v33, %v2541_v34 }
  0xa0   :  { %3369 = vmatprep.subr.bf16.mxu0 %v12364_v54  ;;  %3341 = vmatpush2.bf16.msra.mxu1 %v12313_v40  ;;  %v1214_v54 = vld [vmem:[%s19516_s5 + $0x180] sm:$0xff] }
  0xa1   :  { %3342 = vmatprep.subr.bf16.mxu1 %v12306_v43  ;;  %v12414_v60 = vcombine.high %v1214_v54, %v1218_v55  ;;  %v12413_v2 = vcombine.low %v1214_v54, %v1218_v55  ;;  %v1302_v40 = vld [vmem:[%s19516_s5 + $0x440] sm:$0xff]  ;;  %v14596_v43 = vshrl.u32 %v345_v38, 7 }
  0xa2   :  { %v1298_v54 = vld [vmem:[%s19516_s5 + $0x420] sm:$0xff] }
  0xa3   :  { %3370 = vmatpush2.bf16.msra.mxu0 %v12363_v53  ;;  %v12307_v53 = vcombine.low %v2529_v41, %v2533_v42  ;;  %v1306_v41 = vld [vmem:[%s19516_s5 + $0x460] sm:$0xff] }
  0xa4   :  { %3371 = vmatprep.subr.bf16.mxu0 %v12356_v62  ;;  %3343 = vmatpush2.bf16.msra.mxu1 %v12305_v49  ;;  %v1206_v62 = vld [vmem:[%s19516_s5 + $0x140] sm:$0xff]  ;;  %v12501_v45 = vcombine.low %v1302_v40, %v1306_v41 }
  0xa5   :  { %9878 = vmatprep.subr.bf16.mxu1 %v12422_v52  ;;  %v12406_v5 = vcombine.high %v1206_v62, %v1210_v63  ;;  %v12405_v10 = vcombine.low %v1206_v62, %v1210_v63 }
  0xa7   :  { %3372 = vmatpush2.bf16.msra.mxu0 %v12355_v61  ;;  %v12549_v61 = vcombine.low %v1350_v50, %v1354_v51  ;;  %3345 = vmatmul.mubr.bf16.vlgmr.msra.gmra.mxu1 %v14320_v48  ;;  %v79_v50 = vpop.permute.xlu0 %78 }
  0xa8   :  { %3373 = vmatprep.subr.bf16.mxu0 %v12348_v9  ;;  %9879 = vmatpush1.bf16.msra.mxu1 %v12421_v57  ;;  %v12534_v9 = vcombine.high %v1334_v3, %v1338_v4  ;;  %v1414_v3 = vld [vmem:[%s19516_s5 + $0x7c0] sm:$0xff] }
  0xa9   :  { %9880 = vmatprep.subr.bf16.mxu1 %v12414_v60  ;;  %v1286_v60 = vld [vmem:[%s19516_s5 + $0x3c0] sm:$0xff] }
  0xaa   :  { %v1418_v4 = vld [vmem:[%s19516_s5 + $0x7e0] sm:$0xff] }
  0xab   :  { %3374 = vmatpush2.bf16.msra.mxu0 %v12347_v8  ;;  %v1202_v8 = vld [vmem:[%s19516_s5 + $0x120] sm:$0xff] }
  0xac   :  { %3375 = vmatprep.subr.bf16.mxu0 %v12340_v14  ;;  %9881 = vmatpush1.bf16.msra.mxu1 %v12413_v2  ;;  %v12398_v12 = vcombine.high %v1198_v7, %v1202_v8  ;;  %v1190_v14 = vld [vmem:[%s19516_s5 + $0xc0] sm:$0xff]  ;;  %v12397_v17 = vcombine.low %v1198_v7, %v1202_v8  ;;  %v12613_v7 = vcombine.low %v1414_v3, %v1418_v4 }
  0xad   :  { %9882 = vmatprep.subr.bf16.mxu1 %v12406_v5  ;;  %v12389_v25 = vcombine.low %v1190_v14, %v1194_v15  ;;  %v12614_v8 = vcombine.high %v1414_v3, %v1418_v4 }
  0xaf   :  { %3376 = vmatpush2.bf16.msra.mxu0 %v12339_v20  ;;  %v12390_v20 = vcombine.high %v1190_v14, %v1194_v15  ;;  %v1278_v14 = vld [vmem:[%s19516_s5 + $0x380] sm:$0xff] }
  0xb0   :  { %3377 = vmatprep.subr.bf16.mxu0 %v12332_v23  ;;  %9883 = vmatpush1.bf16.msra.mxu1 %v12405_v10  ;;  %v1186_v23 = vld [vmem:[%s19516_s5 + $0xa0] sm:$0xff] }
  0xb1   :  { %9884 = vmatprep.subr.bf16.mxu1 %v12398_v12  ;;  %v12381_v33 = vcombine.low %v1182_v22, %v1186_v23  ;;  %v1282_v15 = vld [vmem:[%s19516_s5 + $0x3a0] sm:$0xff] }
  0xb2   :  { %v12477_v18 = vcombine.low %v1278_v14, %v1282_v15  ;;  %v12478_v19 = vcombine.high %v1278_v14, %v1282_v15 }
  0xb3   :  { %3378 = vmatpush2.bf16.msra.mxu0 %v12331_v28  ;;  %v12382_v28 = vcombine.high %v1182_v22, %v1186_v23  ;;  %v1270_v23 = vld [vmem:[%s19516_s5 + $0x340] sm:$0xff] }
  0xb4   :  { %3379 = vmatprep.subr.bf16.mxu0 %v12324_v31  ;;  %9885 = vmatpush1.bf16.msra.mxu1 %v12397_v17  ;;  %v1178_v31 = vld [vmem:[%s19516_s5 + $0x60] sm:$0xff] }
  0xb5   :  { %9886 = vmatprep.subr.bf16.mxu1 %v12390_v20  ;;  %v12374_v34 = vcombine.high %v1174_v30, %v1178_v31  ;;  %v1406_v20 = vld [vmem:[%s19516_s5 + $0x780] sm:$0xff] }
  0xb7   :  { %3380 = vmatpush2.bf16.msra.mxu0 %v12323_v36  ;;  %v13907_v36 = vmov 1983009808  }
  0xb8   :  { %3381 = vmatprep.subr.bf16.mxu0 %v12316_v39  ;;  %9887 = vmatpush1.bf16.msra.mxu1 %v12389_v25  ;;  %v343_v37 = vunpack.c.l.s4 %v13907_v36  ;;  %v12373_v39 = vcombine.low %v1174_v30, %v1178_v31  ;;  %v1262_v31 = vld [vmem:[%s19516_s5 + $0x300] sm:$0xff] }
  0xb9   :  { %9888 = vmatprep.subr.bf16.mxu1 %v12382_v28  ;;  %v1398_v28 = vld [vmem:[%s19516_s5 + $0x740] sm:$0xff] }
  0xba   :  { %v344_v42 = vunpack.c.0.s8 %v343_v37  ;;  %v1394_v36 = vld [vmem:[%s19516_s5 + $0x720] sm:$0xff]  ;;  %v84_v37 = vpop.permute.xlu0 %83 }
  0xbb   :  { %3382 = vmatpush2.bf16.msra.mxu0 %v12315_v44  ;;  %v12502_v44 = vcombine.high %v1302_v40, %v1306_v41  ;;  %v1254_v40 = vld [vmem:[%s19516_s5 + $0x2c0] sm:$0xff] }
  0xbc   :  { %3383 = vmatprep.subr.bf16.mxu0 %v12308_v47  ;;  %9889 = vmatpush1.bf16.msra.mxu1 %v12381_v33  ;;  %v1170_v47 = vld [vmem:[%s19516_s5 + $0x20] sm:$0xff] }
  0xbd   :  { %9890 = vmatprep.subr.bf16.mxu1 %v12374_v34  ;;  %v12366_v49 = vcombine.high %v1166_v46, %v1170_v47  ;;  %v12365_v52 = vcombine.low %v1166_v46, %v1170_v47  ;;  %v1258_v41 = vld [vmem:[%s19516_s5 + $0x2e0] sm:$0xff] }
  0xbf   :  { %3384 = vmatpush2.bf16.msra.mxu0 %v12307_v53  ;;  %v1294_v53 = vld [vmem:[%s19516_s5 + $0x400] sm:$0xff] }
  0xc0   :  { %9919 = vmatprep.subr.bf16.mxu0 %v12550_v56  ;;  %9891 = vmatpush1.bf16.msra.mxu1 %v12373_v39  ;;  %v14611_v56 = vsub.s32 %v344_v42, %v14596_v43  ;;  %v12494_v57 = vcombine.high %v1294_v53, %v1298_v54  ;;  %v12493_v59 = vcombine.low %v1294_v53, %v1298_v54  ;;  %v1246_v54 = vld [vmem:[%s19516_s5 + $0x280] sm:$0xff] }
  0xc1   :  { %9892 = vmatprep.subr.bf16.mxu1 %v12366_v49  ;;  %v1382_v49 = vld [vmem:[%s19516_s5 + $0x6c0] sm:$0xff] }
  0xc2   :  { %3386 = vmatmul.mubr.bf16.vlgmr.msra.gmra.mxu0 %v14320_v48  ;;  %v1326_v48 = vld [vmem:[%s19516_s5 + $0x500] sm:$0xff] }
  0xc3   :  { %9920 = vmatpush1.bf16.msra.mxu0 %v12549_v61  ;;  %v12526_v16 = vcombine.high %v1326_v48, %v1330_v11  ;;  %v12525_v21 = vcombine.low %v1326_v48, %v1330_v11  ;;  %v1290_v61 = vld [vmem:[%s19516_s5 + $0x3e0] sm:$0xff] }
  0xc4   :  { %9921 = vmatprep.subr.bf16.mxu0 %v12542_v0  ;;  %9893 = vmatpush1.bf16.msra.mxu1 %v12365_v52  ;;  %v12486_v0 = vcombine.high %v1286_v60, %v1290_v61  ;;  %v12485_v2 = vcombine.low %v1286_v60, %v1290_v61  ;;  %v12453_v60 = vcombine.low %v1254_v40, %v1258_v41 }
  0xc6   :  { %9894 = vmatprep.subr.bf16.mxu1 %v12486_v0 }
  0xc7   :  { %9922 = vmatpush1.bf16.msra.mxu0 %v12541_v6 }
  0xc8   :  { %9923 = vmatprep.subr.bf16.mxu0 %v12534_v9  ;;  %9895 = vmatpush2.bf16.msra.mxu1 %v12485_v2  ;;  %v74_v2 = vld [vmem:[%s19513_s4 + $0x10] sm:$0xff] }
  0xc9   :  { %9896 = vmatprep.subr.bf16.mxu1 %v12478_v19 }
  0xcb   :  { %9924 = vmatpush1.bf16.msra.mxu0 %v12533_v13 }
  0xcc   :  { %9925 = vmatprep.subr.bf16.mxu0 %v12526_v16  ;;  %9897 = vmatpush2.bf16.msra.mxu1 %v12477_v18 }
  0xcf   :  { %9926 = vmatpush1.bf16.msra.mxu0 %v12525_v21  ;;  %v1410_v21 = vld [vmem:[%s19516_s5 + $0x7a0] sm:$0xff] }
  0xd0   :  { %9927 = vmatprep.subr.bf16.mxu0 %v12518_v24  ;;  %v1274_v24 = vld [vmem:[%s19516_s5 + $0x360] sm:$0xff]  ;;  %v12605_v26 = vcombine.low %v1406_v20, %v1410_v21  ;;  %v12606_v27 = vcombine.high %v1406_v20, %v1410_v21 }
  0xd1   :  { %v12469_v33 = vcombine.low %v1270_v23, %v1274_v24  ;;  %v12470_v34 = vcombine.high %v1270_v23, %v1274_v24  ;;  %v1230_v20 = vld [vmem:[%s19516_s5 + $0x200] sm:$0xff] }
  0xd2   :  { %v1234_v21 = vld [vmem:[%s19516_s5 + $0x220] sm:$0xff] }
  0xd3   :  { %9928 = vmatpush1.bf16.msra.mxu0 %v12517_v29  ;;  %v1402_v29 = vld [vmem:[%s19516_s5 + $0x760] sm:$0xff]  ;;  %9898 = vmatprep.subr.bf16.mxu1 %v12470_v34 }
  0xd4   :  { %9929 = vmatprep.subr.bf16.mxu0 %v12510_v32  ;;  %v1266_v32 = vld [vmem:[%s19516_s5 + $0x320] sm:$0xff]  ;;  %v12597_v38 = vcombine.low %v1398_v28, %v1402_v29  ;;  %v12598_v39 = vcombine.high %v1398_v28, %v1402_v29  ;;  %9899 = vmatpush2.bf16.msra.mxu1 %v12469_v33 }
  0xd5   :  { %v12461_v46 = vcombine.low %v1262_v31, %v1266_v32  ;;  %v1358_v23 = vld [vmem:[%s19516_s5 + $0x600] sm:$0xff] }
  0xd6   :  { %v1362_v24 = vld [vmem:[%s19516_s5 + $0x620] sm:$0xff] }
  0xd7   :  { %9930 = vmatpush1.bf16.msra.mxu0 %v12509_v35  ;;  %v1390_v35 = vld [vmem:[%s19516_s5 + $0x700] sm:$0xff]  ;;  %v12558_v29 = vcombine.high %v1358_v23, %v1362_v24 }
  0xd8   :  { %9931 = vmatprep.subr.bf16.mxu0 %v12502_v44  ;;  %v12590_v47 = vcombine.high %v1390_v35, %v1394_v36  ;;  %v12589_v53 = vcombine.low %v1390_v35, %v1394_v36  ;;  %v14771_v35 = vld [vmem:[%s19516_s5 + $0xdc0] sm:$0xff] }
  0xd9   :  { %v14776_v36 = vld [vmem:[%s19516_s5 + $0xde0] sm:$0xff] }
  0xdb   :  { %9932 = vmatpush1.bf16.msra.mxu0 %v12501_v45  ;;  %v12462_v45 = vcombine.high %v1262_v31, %v1266_v32  ;;  %v14760_v31 = vld [vmem:[%s19516_s5 + $0x9e0] sm:$0xff]  ;;  %v12429_v32 = vcombine.low %v1230_v20, %v1234_v21 }
  0xdc   :  { %9933 = vmatprep.subr.bf16.mxu0 %v12494_v57 }
  0xdd   :  { %9900 = vmatprep.subr.bf16.mxu1 %v12462_v45 }
  0xde   :  { %9901 = vmatpush2.bf16.msra.mxu1 %v12461_v46 }
  0xdf   :  { %9934 = vmatpush1.bf16.msra.mxu0 %v12493_v59 }
  0xe0   :  { %9935 = vmatprep.subr.bf16.mxu0 %v12614_v8  ;;  %v1242_v8 = vld [vmem:[%s19516_s5 + $0x260] sm:$0xff] }
  0xe3   :  { %9936 = vmatpush2.bf16.msra.mxu0 %v12613_v7  ;;  %v1238_v7 = vld [vmem:[%s19516_s5 + $0x240] sm:$0xff] }
  0xe4   :  { %9937 = vmatprep.subr.bf16.mxu0 %v12606_v27 }
  0xe7   :  { %9938 = vmatpush2.bf16.msra.mxu0 %v12605_v26 }
  0xe8   :  { %9939 = vmatprep.subr.bf16.mxu0 %v12598_v39  ;;  %v12805_v39 = vcombine.low %v14771_v35, %v14776_v36 }
  0xeb   :  { %9940 = vmatpush2.bf16.msra.mxu0 %v12597_v38  ;;  %v12557_v38 = vcombine.low %v1358_v23, %v1362_v24 }
  0xec   :  { %9941 = vmatprep.subr.bf16.mxu0 %v12590_v47 }
  0xef   :  { %9942 = vmatpush2.bf16.msra.mxu0 %v12589_v53  ;;  %v75_v53 = vld [vmem:[%s19513_s4 + $0x18] sm:$0xff]  ;;  %s13935_s4 = smov 92  }
 0x102   :  { %v310_v51 = vpop.f32.mrf.mxu0 }
 0x103   :  { %v311_v55 = vadd.f32 %v310_v51, %v79_v50  ;;  %v12454_v51 = vcombine.high %v1254_v40, %v1258_v41 }
 0x104   :  { %v312_v58 = vpop.f32.mrf.mxu0 }
 0x105   :  { %v329_v62 = vmax.f32 %v311_v55, 0.0  ;;  %v313_v63 = vadd.f32 %v312_v58, %v79_v50  ;;  %v1386_v50 = vld [vmem:[%s19516_s5 + $0x6e0] sm:$0xff]  ;;  %9902 = vmatprep.subr.bf16.mxu1 %v12454_v51 }
 0x106   :  { %v314_v30 = vpop.f32.mrf.mxu0  ;;  %v1250_v55 = vld [vmem:[%s19516_s5 + $0x2a0] sm:$0xff]  ;;  %v12582_v59 = vcombine.high %v1382_v49, %v1386_v50  ;;  %v12581_v3 = vcombine.low %v1382_v49, %v1386_v50  ;;  %9903 = vmatpush2.bf16.msra.mxu1 %v12453_v60 }
 0x107   :  { %v330_v5 = vmax.f32 %v313_v63, 0.0  ;;  %v362_v6 = vrot.slane %v329_v62, %v14611_v56  ;;  %338 = vst.msk [vmem:[#allocation2] sm:$0x1] %vm337_vm0, %v329_v62  ;;  %v413_v11 = vcombine.high %v329_v62, %v329_v62  ;;  %v315_v42 = vadd.f32 %v314_v30, %v84_v37  ;;  %v1378_v63 = vld [vmem:[%s19516_s5 + $0x6a0] sm:$0xff] }
 0x108   :  { %v12446_v61 = vcombine.high %v1246_v54, %v1250_v55  ;;  %v316_v4 = vpop.f32.mrf.mxu0  ;;  %9943 = vmatprep.subr.bf16.mxu0 %v12582_v59  ;;  %v14755_v30 = vld [vmem:[%s19516_s5 + $0x9c0] sm:$0xff] }
 0x109   :  { %v341_v9 = vcombine.low %v329_v62, %v330_v5  ;;  %v431_v10 = vcombine.high %v329_v62, %v330_v5  ;;  %v12203_v48 = vrot.slane %v362_v6, 9  ;;  %v14642_v16 = vrot.slane %v413_v11, %v14611_v56  ;;  %v1374_v62 = vld [vmem:[%s19516_s5 + $0x680] sm:$0xff]  ;;  %9944 = vmatpush2.bf16.msra.mxu0 %v12581_v3 }
 0x10a   :  { %v379_v22 = vcombine.high %v362_v6, %v362_v6  ;;  %v14697_v57 = vmax.f32 %v315_v42, 0.0  ;;  %v12574_v6 = vcombine.high %v1374_v62, %v1378_v63  ;;  %9904 = vmatprep.subr.bf16.mxu1 %v12446_v61  ;;  %v1370_v11 = vld [vmem:[%s19516_s5 + $0x660] sm:$0xff]  ;;  %v12573_v15 = vcombine.low %v1374_v62, %v1378_v63 }
 0x10b   :  { %v14628_v12 = vrot.slane %v341_v9, %v14611_v56  ;;  %v14631_v13 = vrot.slane %v431_v10, %v14611_v56  ;;  %365 = vrot.lane.b32.xlu1 %v12203_v48, %s13908_s3  ;;  %v460_v0 = vcombine.high %v14642_v16, %v14642_v16  ;;  %v12445_v9 = vcombine.low %v1246_v54, %v1250_v55  ;;  %v1366_v48 = vld [vmem:[%s19516_s5 + $0x640] sm:$0xff] }
 0x10c   :  { %v12205_v52 = vrot.slane %v379_v22, 9  ;;  %v506_v5 = vrot.slane %v14697_v57, %v14611_v56  ;;  %v12438_v10 = vcombine.high %v1238_v7, %v1242_v8  ;;  %v12207_v14 = vrot.slane %v14642_v16, 9  ;;  %9945 = vmatprep.subr.bf16.mxu0 %v12574_v6 }
 0x10d   :  { %439 = vrot.lane.b32.xlu0 %v14631_v13, %s13909_s26  ;;  %v385_v17 = vcombine.high %v14628_v12, %v14628_v12  ;;  %v12208_v25 = vrot.slane %v14631_v13, 9  ;;  %v14701_v58 = vcombine.high %v14631_v13, %v14631_v13  ;;  %v317_v13 = vadd.f32 %v316_v4, %v84_v37  ;;  %9905 = vmatpush2.bf16.msra.mxu1 %v12445_v9 }
 0x10e   :  { %v582_v18 = vcombine.high %v14697_v57, %v14697_v57  ;;  %v12566_v19 = vcombine.high %v1366_v48, %v1370_v11  ;;  %9906 = vmatprep.subr.bf16.mxu1 %v12438_v10  ;;  %v12209_v26 = vrot.slane %v460_v0, 9  ;;  %9946 = vmatpush2.bf16.msra.mxu0 %v12573_v15  ;;  %v12565_v27 = vcombine.low %v1366_v48, %v1370_v11 }
 0x10f   :  { %421 = vrot.lane.b32.xlu1 %v14642_v16, %s13910_s6  ;;  %v12206_v44 = vrot.slane %v385_v17, 9  ;;  %v12437_v16 = vcombine.low %v1238_v7, %v1242_v8  ;;  %v12677_v33 = vcombine.low %v14755_v30, %v14760_v31  ;;  %v12678_v34 = vcombine.high %v14755_v30, %v14760_v31 }
 0x110   :  { %v14750_v28 = vrot.slane %v582_v18, %v14611_v56  ;;  %9947 = vmatprep.subr.bf16.mxu0 %v12566_v19  ;;  %v12210_v40 = vrot.slane %v14701_v58, 9  ;;  %v548_v41 = vcombine.high %v506_v5, %v506_v5  ;;  %v12806_v42 = vcombine.high %v14771_v35, %v14776_v36  ;;  %v14958_v35 = vld [vmem:[%s19516_s5 + $0x920] sm:$0xff] }
 0x111   :  { %386 = vrot.lane.b32.xlu0 %v385_v17, %s13908_s3  ;;  %v12211_v17 = vrot.slane %v506_v5, 9  ;;  %9907 = vmatpush2.bf16.msra.mxu1 %v12437_v16 }
 0x112   :  { %9948 = vmatpush2.bf16.msra.mxu0 %v12565_v27  ;;  %v12213_v45 = vrot.slane %v548_v41, 9  ;;  %v629_v55 = vcombine.high %v14750_v28, %v14750_v28  ;;  %v12215_v59 = vrot.slane %v14750_v28, 9 }
 0x113   :  { %380 = vrot.lane.b32.xlu1 %v379_v22, %s13911_s17  ;;  %v12430_v22 = vcombine.high %v1230_v20, %v1234_v21  ;;  %9949 = vmatprep.subr.bf16.mxu0 %v12558_v29 }
 0x115   :  { %454 = vrot.lane.b32.xlu0 %v12208_v25, %s13910_s6  ;;  %v332_v25 = vmax.f32 %v317_v13, 0.0  ;;  %9908 = vmatprep.subr.bf16.mxu1 %v12430_v22  ;;  %s13919_s6 = smov 123  }
 0x116   :  { %9909 = vmatpush2.bf16.msra.mxu1 %v12429_v32  ;;  %9950 = vmatpush2.bf16.msra.mxu0 %v12557_v38 }
 0x117   :  { %349 = vrot.lane.b32.xlu1 %v14628_v12, %s13912_s28  ;;  %v513_v37 = vcombine.low %v14697_v57, %v332_v25  ;;  %9960 = vmatprep.subr.bf16.mxu1 %v12678_v34  ;;  %v600_v49 = vcombine.high %v14697_v57, %v332_v25  ;;  %v12204_v25 = vrot.slane %v14628_v12, 9  ;;  %s13929_s28 = smov 118  }
 0x118   :  { %10001 = vmatprep.subr.bf16.mxu0 %v12806_v42 }
 0x119   :  { %406 = vrot.lane.b32.xlu0 %v12206_v44, %s13911_s17  ;;  %v520_v44 = vrot.slane %v513_v37, %v14611_v56  ;;  %v607_v51 = vrot.slane %v600_v49, %v14611_v56  ;;  %s13932_s17 = smov 105  }
 0x11b   :  { %394 = vrot.lane.b32.xlu1 %v12205_v52, %s13909_s26  ;;  %s13916_s26 = smov 55   ;;  %v12212_v46 = vrot.slane %v520_v44, 9  ;;  %v554_v47 = vcombine.high %v520_v44, %v520_v44  ;;  %v12216_v52 = vrot.slane %v607_v51, 9  ;;  %v640_v54 = vcombine.high %v607_v51, %v607_v51 }
 0x11d   :  { %472 = vrot.lane.b32.xlu0 %v14701_v58, %s13913_s16  ;;  %v12214_v50 = vrot.slane %v554_v47, 9  ;;  %v12218_v57 = vrot.slane %v640_v54, 9  ;;  %v12217_v58 = vrot.slane %v629_v55, 9 }
 0x11f   :  { %461 = vrot.lane.b32.xlu1 %v460_v0, %s13914_s25  ;;  %v14801_v0 = vpop.f32.mrf.mxu0 }
 0x121   :  { %88 = vperm.xlu0 %13783, %v74_v2   ;;  %v14803_v2 = vpop.f32.mrf.mxu0 }
 0x123   :  { %447 = vrot.lane.b32.xlu1 %v12207_v14, %s13913_s16  ;;  %v14805_v3 = vpop.f32.mrf.mxu0 }
 0x125   :  { %529 = vrot.lane.b32.xlu0 %v12211_v17, %s13915_s13  ;;  %v14797_v60 = vpop.f32.mrf.mxu1 }
 0x127   :  { %481 = vrot.lane.b32.xlu1 %v12209_v26, %s13916_s26  ;;  %v14799_v61 = vpop.f32.mrf.mxu1 }
 0x129   :  { %590 = vrot.lane.b32.xlu0 %v14750_v28, %s13917_s21  ;;  %v3268_v62 = vpop.f32.mrf.mxu1 }
 0x12b   :  { %507 = vrot.lane.b32.xlu1 %v506_v5, %s13918_s0  ;;  %v3269_v63 = vpop.f32.mrf.mxu1  ;;  %v14807_v5 = vpop.f32.mrf.mxu0 }
 0x12d   :  { %493 = vrot.lane.b32.xlu0 %v12210_v40, %s13914_s25  ;;  %s13920_s25 = smov 42  }
 0x12f   :  { %521 = vrot.lane.b32.xlu1 %v520_v44, %s13916_s26  ;;  %s13928_s26 = smov 84  }
 0x131   :  { %563 = vrot.lane.b32.xlu0 %v12213_v45, %s13919_s6 }
 0x133   :  { %541 = vrot.lane.b32.xlu1 %v12212_v46, %s13918_s0  ;;  %s13925_s0 = smov 16  }
 0x135   :  { %555 = vrot.lane.b32.xlu0 %v554_v47, %s13915_s13 }
 0x137   :  { %575 = vrot.lane.b32.xlu1 %v12214_v50, %s13920_s25 }
 0x139   :  { %549 = vrot.lane.b32.xlu0 %v548_v41, %s13920_s25 }
 0x13b   :  { %608 = vrot.lane.b32.xlu1 %v607_v51, %s13919_s6  ;;  %s13926_s6 = smov 50  }
 0x13d   :  { %623 = vrot.lane.b32.xlu0 %v12216_v52, %s13917_s21  ;;  %s13937_s21 = smov 126  }
 0x13f   :  { %93 = vperm.xlu1 %13784, %v75_v53  }
 0x141   :  { %641 = vrot.lane.b32.xlu0 %v640_v54, %s13921_s29 }
 0x142   :  { %v14813_v9 = vpop.f32.mrf.mxu0 }
 0x143   :  { %630 = vrot.lane.b32.xlu1 %v629_v55, %s13922_s30 }
 0x144   :  { %v14818_v11 = vpop.f32.mrf.mxu0 }
 0x145   :  { %662 = vrot.lane.b32.xlu0 %v12218_v57, %s13922_s30  ;;  %s13931_s30 = smov 71  }
 0x146   :  { %v3309_v14 = vpop.f32.mrf.mxu0 }
 0x147   :  { %650 = vrot.lane.b32.xlu1 %v12217_v58, %s13923_s11 }
 0x148   :  { %v3310_v17 = vpop.f32.mrf.mxu0 }
 0x14b   :  { %616 = vrot.lane.b32.xlu1 %v12215_v59, %s13921_s29 }
 0x17d   :  { %v366_v4 = vpop.permute.xlu1 %365 }
 0x17e   :  { %v367_v6 = vrot.slane %v366_v4, 6 }
 0x17f   :  { %v440_v7 = vpop.permute.xlu0 %439 }
 0x180   :  { %v369_v10 = vsel %vm368_vm3, %v367_v6, %v366_v4  ;;  %v441_v23 = vrot.slane %v440_v7, 2 }
 0x181   :  { %v422_v48 = vpop.permute.xlu1 %421  ;;  %374 = vst.msk [vmem:[#allocation2] sm:$0x5] %vm14809_vm4, %v369_v10 }
 0x182   :  { %v423_v26 = vrot.slane %v422_v48, 6  ;;  %v442_v41 = vsel %vm397_vm10, %v440_v7, %v441_v23 }
 0x183   :  { %v387_v13 = vpop.permute.xlu0 %386 }
 0x184   :  { %v388_v20 = vrot.slane %v387_v13, 2  ;;  %v425_v44 = vsel %vm424_vm1, %v423_v26, %v422_v48  ;;  %v1602_v26 = vld [vmem:[%s19516_s5 + $0xda0] sm:$0xff] }
 0x185   :  { %v381_v15 = vpop.permute.xlu1 %380 }
 0x186   :  { %384 = vst.msk [vmem:[#allocation2 + $0x2] sm:$0x1] %vm383_vm5, %v381_v15  ;;  %v389_v34 = vsel %vm368_vm3, %v387_v13, %v388_v20  ;;  %vm469_vm3 = vmor %vm468_vm15, %vm467_vm13  ;;  %vm532_vm13 = vcmask 728064   ;;  %vm544_vm15 = vcmask 64512  }
 0x187   :  { %v455_v18 = vpop.permute.xlu0 %454 }
 0x188   :  { %v456_v27 = vrot.slane %v455_v18, 2 }
 0x189   :  { %v350_v19 = vpop.permute.xlu1 %349 }
 0x18a   :  { %v351_v21 = vrot.slane %v350_v19, 2  ;;  %v457_v45 = vsel %vm424_vm1, %v455_v18, %v456_v27  ;;  %vm578_vm1 = vcmask 343040  }
 0x18b   :  { %v407_v16 = vpop.permute.xlu0 %406 }
 0x18c   :  { %v408_v22 = vrot.slane %v407_v16, 6  ;;  %v353_v24 = vsel %vm352_vm6, %v350_v19, %v351_v21  ;;  %vm450_vm6 = vcmask 827560   ;;  %v1470_v21 = vld [vmem:[%s19516_s5 + $0x980] sm:$0xff] }
 0x18d   :  { %355 = vst.msk [vmem:[#allocation2 + $0x1] sm:$0x1] %vm337_vm0, %v353_v24  ;;  %v395_v32 = vpop.permute.xlu1 %394  ;;  %vm475_vm0 = vcmask 171008   ;;  %v1474_v24 = vld [vmem:[%s19516_s5 + $0x9a0] sm:$0xff] }
 0x18e   :  { %v410_v29 = vsel %vm409_vm9, %v408_v22, %v407_v16  ;;  %378 = vst.msk [vmem:[#allocation2 + $0x1] sm:$0x5] %vm14809_vm4, %v12204_v25  ;;  %v396_v37 = vrot.slane %v395_v32, 6  ;;  %vm464_vm4 = vcmask 834560   ;;  %v1598_v25 = vld [vmem:[%s19516_s5 + $0xd80] sm:$0xff] }
 0x18f   :  { %v473_v38 = vpop.permute.xlu0 %472  ;;  %391 = vst.msk [vmem:[#allocation2 + $0x3] sm:$0x1] %vm383_vm5, %v389_v34  ;;  %vm487_vm5 = vcmask 1040824   ;;  %v14914_v34 = vld [vmem:[%s19516_s5 + $0x960] sm:$0xff]  ;;  %v12797_v31 = vcombine.low %v1598_v25, %v1602_v26 }
 0x190   :  { %v474_v40 = vrot.slane %v473_v38, 6  ;;  %412 = vst.msk [vmem:[#allocation2 + $0x3] sm:$0x5] %vm14824_vm14, %v410_v29  ;;  %v398_v42 = vsel %vm397_vm10, %v396_v37, %v395_v32  ;;  %vm14852_vm9 = vmor %vm488_vm7, %vm487_vm5  ;;  %vm510_vm10 = vcmask 720960   ;;  %v14909_v32 = vld [vmem:[%s19516_s5 + $0x940] sm:$0xff]  ;;  %vm566_vm5 = vcmask 1006592  }
 0x191   :  { %444 = vst.msk [vmem:[#allocation2 + $0x5] sm:$0x5] %vm14833_vm2, %v442_v41  ;;  %v462_v47 = vpop.permute.xlu1 %461  ;;  %v14922_v41 = vld [vmem:[%s19516_s5 + $0xd40] sm:$0xff] }
 0x192   :  { %403 = vst.msk [vmem:[#allocation2 + $0x2] sm:$0x5] %vm14824_vm14, %v398_v42  ;;  %v476_v46 = vsel %vm475_vm0, %v474_v40, %v473_v38  ;;  %v463_v49 = vrot.slane %v462_v47, 6  ;;  %vm14873_vm14 = vmor %vm536_vm12, %vm535_vm11  ;;  %v12670_v38 = vcombine.high %v1470_v21, %v1474_v24  ;;  %v12798_v40 = vcombine.high %v1598_v25, %v1602_v26  ;;  %v14927_v42 = vld [vmem:[%s19516_s5 + $0xd60] sm:$0xff] }
 0x193   :  { %430 = vst.msk [vmem:[#allocation2 + $0x4] sm:$0x5] %vm14833_vm2, %v425_v44  ;;  %vm552_vm2 = vcmask 999760   ;;  %vm569_vm0 = vcmask 1041368   ;;  %vm636_vm11 = vcmask 1041264   ;;  %vm637_vm12 = vcmask 509954  }
 0x194   :  { %459 = vst.msk [vmem:[#allocation2 + $0x7] sm:$0x1] %vm450_vm6, %v457_v45  ;;  %v465_v51 = vsel %vm464_vm4, %v463_v49, %v462_v47  ;;  %v12669_v47 = vcombine.low %v1470_v21, %v1474_v24 }
 0x195   :  { %478 = vst.msk [vmem:[#allocation2 + $0x7] sm:$0x5] %vm469_vm3, %v476_v46  ;;  %v448_v50 = vpop.permute.xlu1 %447 }
 0x196   :  { %451 = vst.msk [vmem:[#allocation2 + $0x6] sm:$0x1] %vm450_vm6, %v448_v50  ;;  %vm570_vm6 = vcmask 616450  }
 0x197   :  { %470 = vst.msk [vmem:[#allocation2 + $0x6] sm:$0x5] %vm469_vm3, %v465_v51  ;;  %v12662_v51 = vcombine.high %v14909_v32, %v14914_v34  ;;  %vm596_vm3 = vcmask 1040992   ;;  %vm15038_vm7 = vmor %vm570_vm6, %vm569_vm0  ;;  %vm633_vm0 = vcmask 900096   ;;  %vm653_vm6 = vcmask 515072  }
 0x199   :  { %v482_v52 = vpop.permute.xlu1 %481 }
 0x19a   :  { %v483_v53 = vrot.slane %v482_v52, 6 }
 0x19c   :  { %v89_v55 = vpop.permute.xlu0 %88  ;;  %v485_v57 = vsel %vm484_vm8, %v483_v53, %v482_v52  ;;  %v14953_v52 = vld [vmem:[%s19516_s5 + $0x900] sm:$0xff] }
 0x19d   :  { %v321_v58 = vadd.f32 %v14801_v0, %v89_v55  ;;  %v14859_v59 = vadd.f32 %v14803_v2, %v89_v55  ;;  %v508_v62 = vpop.permute.xlu1 %507  ;;  %490 = vst.msk [vmem:[#allocation2 + $0x8] sm:$0x5] %vm14852_vm9, %v485_v57 }
 0x19e   :  { %511 = vst.msk [vmem:[#allocation2 + $0xa] sm:$0x1] %vm510_vm10, %v508_v62  ;;  %v1006_v6 = vld [vmem:[#allocation2] sm:$0xff] }
 0x19f   :  { %v14863_v63 = vmax.f32 %v321_v58, 0.0  ;;  %v334_v4 = vmax.f32 %v14859_v59, 0.0  ;;  %v1025_v0 = vrot.slane %v1006_v6, %v14611_v56  ;;  %v1018_v8 = vcombine.high %v1006_v6, %v1006_v6  ;;  %v14976_v62 = vld [vmem:[%s19516_s5 + $0xd00] sm:$0xff] }
 0x1a0   :  { %v530_v7 = vpop.permute.xlu0 %529  ;;  %v12661_v58 = vcombine.low %v14909_v32, %v14914_v34  ;;  %v15049_v34 = vld [vmem:[%s19516_s5 + $0x880] sm:$0xff] }
 0x1a1   :  { %v682_v2 = vcombine.low %v14863_v63, %v334_v4  ;;  %v531_v10 = vrot.slane %v530_v7, 6  ;;  %v14871_v48 = vrot.slane %v14863_v63, %v14611_v56  ;;  %v522_v14 = vpop.permute.xlu1 %521  ;;  %v1033_v15 = vcombine.high %v1025_v0, %v1025_v0 }
 0x1a2   :  { %v1032_v17 = vrot.slane %v1018_v8, %v14611_v56  ;;  %v14901_v27 = vpack.c.bf16 %v1025_v0, %v1025_v0  ;;  %v523_v44 = vrot.slane %v522_v14, 2  ;;  %v768_v36 = vcombine.high %v14863_v63, %v334_v4  ;;  %v14981_v4 = vld [vmem:[%s19516_s5 + $0xd20] sm:$0xff] }
 0x1a3   :  { %v533_v18 = vsel %vm532_vm13, %v531_v10, %v530_v7  ;;  %v689_v19 = vrot.slane %v682_v2, %v14611_v56  ;;  %v12219_v20 = vrot.slane %v14871_v48, 9  ;;  %v14886_v22 = vpack.c.bf16 %v1033_v15, %v1033_v15  ;;  %v14998_v0 = vld [vmem:[%s19516_s5 + $0x8c0] sm:$0xff]  ;;  %v15005_v2 = vpop.f32.mrf.mxu1 }
 0x1a4   :  { %v14884_v16 = vpop.permute.xlu0 %590  ;;  %v1034_v23 = vcombine.high %v1032_v17, %v1032_v17  ;;  %538 = vst.msk [vmem:[#allocation2 + $0xa] sm:$0x5] %vm14873_vm14, %v533_v18  ;;  %v14917_v12 = vpack.c.bf16 %v1032_v17, %v1032_v17  ;;  %v14935_v46 = vcombine.high %v14871_v48, %v14871_v48  ;;  %v524_v55 = vsel %vm484_vm8, %v522_v14, %v523_v44  ;;  %v15003_v8 = vld [vmem:[%s19516_s5 + $0x8e0] sm:$0xff] }
 0x1a5   :  { %690 = vrot.lane.b32.xlu0 %v689_v19, %s13923_s11  ;;  %698 = vrot.lane.b32.xlu1 %v12219_v20, %s13924_s18  ;;  %v542_v28 = vpop.permute.xlu1 %541  ;;  %v12220_v37 = vrot.slane %v689_v19, 9  ;;  %v14962_v53 = vcombine.high %v689_v19, %v689_v19  ;;  %v750_v59 = vcombine.high %v14863_v63, %v14863_v63  ;;  %v12654_v63 = vcombine.high %v14953_v52, %v14958_v35  ;;  %v15021_v18 = vld [vmem:[%s19516_s5 + $0xcc0] sm:$0xff]  ;;  %v15028_v20 = vpop.f32.mrf.mxu1  ;;  %s13934_s11 = smov 58  }
 0x1a6   :  { %9910 = vmatprep.mubr.bf16.mxu1 %v14886_v22  ;;  %v14904_v29 = vpack.c.bf16 %v1034_v23, %v1034_v23  ;;  %v543_v49 = vrot.slane %v542_v28, 6  ;;  %v12789_v7 = vcombine.low %v14922_v41, %v14927_v42  ;;  %v15008_v10 = vrot.slane %v768_v36, %v14611_v56  ;;  %v15026_v19 = vld [vmem:[%s19516_s5 + $0xce0] sm:$0xff] }
 0x1a7   :  { %9911 = vmatmul.mubr.bf16.vlgmr.msra.gmra.mxu1 %v14901_v27  ;;  %v12782_v13 = vcombine.high %v14976_v62, %v14981_v4  ;;  %v15016_v17 = vrot.slane %v750_v59, %v14611_v56  ;;  %v12646_v25 = vcombine.high %v14998_v0, %v15003_v8  ;;  %v592_v26 = vrot.slane %v14884_v16, 6 }
 0x1a8   :  { %9961 = vmatpush1.bf16.msra.mxu1 %v12677_v33  ;;  %9951 = vmatprep.mubr.bf16.mxu0 %v14904_v29  ;;  %v494_v45 = vpop.permute.xlu0 %493  ;;  %v12790_v33 = vcombine.high %v14922_v41, %v14927_v42  ;;  %v545_v54 = vsel %vm544_vm15, %v543_v49, %v542_v28  ;;  %v12781_v32 = vcombine.low %v14976_v62, %v14981_v4  ;;  %vm593_vm8 = vcmask 621568   ;;  %v15128_v4 = vld [vmem:[%s19516_s5 + $0xc40] sm:$0xff] }
 0x1a9   :  { %v495_v50 = vrot.slane %v494_v45, 2  ;;  %9952 = vmatmul.mubr.bf16.vlgmr.msra.gmra.mxu0 %v14917_v12  ;;  %710 = vrot.lane.b32.xlu0 %v12220_v37, %s13925_s0  ;;  %v14944_v30 = vpop.permute.xlu1 %575  ;;  %v15054_v37 = vld [vmem:[%s19516_s5 + $0x8a0] sm:$0xff]  ;;  %v12221_v42 = vrot.slane %v14935_v46, 9  ;;  %v12774_v44 = vcombine.high %v15021_v18, %v15026_v19  ;;  %v15071_v49 = vcombine.high %v15016_v17, %v15016_v17 }
 0x1aa   :  { %10002 = vmatpush1.bf16.msra.mxu0 %v12805_v39  ;;  %718 = vrot.lane.b32.xlu1 %v14935_v46, %s13926_s6  ;;  %v577_v14 = vrot.slane %v14944_v30, 6  ;;  %v15078_v46 = vld [vmem:[%s19516_s5 + $0xc80] sm:$0xff]  ;;  %v12773_v36 = vcombine.low %v15021_v18, %v15026_v19  ;;  %v12223_v59 = vrot.slane %v15016_v17, 9  ;;  %v12637_v62 = vcombine.low %v15049_v34, %v15054_v37 }
 0x1ab   :  { %v496_v39 = vsel %vm464_vm4, %v494_v45, %v495_v50  ;;  %9962 = vmatprep.subr.bf16.mxu1 %v12670_v38  ;;  %10003 = vmatprep.subr.bf16.mxu0 %v12798_v40  ;;  %vm597_vm4 = vcmask 231426   ;;  %v3350_v38 = vpop.f32.mrf.mxu1  ;;  %v12645_v50 = vcombine.low %v14998_v0, %v15003_v8  ;;  %v15143_v0 = vld [vmem:[%s19516_s5 + $0x800] sm:$0xff]  ;;  %vm656_vm15 = vcmask 1040888  }
 0x1ac   :  { %498 = vst.msk [vmem:[#allocation2 + $0x9] sm:$0x5] %vm14852_vm9, %v496_v39  ;;  %9963 = vmatpush1.bf16.msra.mxu1 %v12669_v47  ;;  %v14967_v57 = vpop.permute.xlu0 %563  ;;  %vm15059_vm9 = vmor %vm597_vm4, %vm596_vm3  ;;  %v579_v45 = vsel %vm578_vm1, %v577_v14, %v14944_v30  ;;  %v15107_v39 = vld [vmem:[%s19516_s5 + $0x840] sm:$0xff]  ;;  %v12222_v14 = vrot.slane %v14962_v53, 9  ;;  %vm657_vm1 = vcmask 124930   ;;  %vm679_vm3 = vcmask 786560  }
 0x1ad   :  { %526 = vst.msk [vmem:[#allocation2 + $0xb] sm:$0x1] %vm510_vm10, %v524_v55  ;;  %729 = vrot.lane.b32.xlu0 %v14962_v53, %s13924_s18  ;;  %9964 = vmatprep.subr.bf16.mxu1 %v12662_v51  ;;  %v609_v6 = vpop.permute.xlu1 %608  ;;  %v565_v21 = vrot.slane %v14967_v57, 6  ;;  %v15083_v51 = vld [vmem:[%s19516_s5 + $0xca0] sm:$0xff]  ;;  %v3351_v30 = vpop.f32.mrf.mxu1  ;;  %v15118_v55 = vcombine.high %v15008_v10, %v15008_v10  ;;  %vm619_vm10 = vcmask 893160   ;;  %vm704_vm4 = vcmask 1041160  }
 0x1ae   :  { %10004 = vmatpush1.bf16.msra.mxu0 %v12797_v31  ;;  %676 = vrot.lane.b32.xlu1 %v14871_v48, %s13925_s0  ;;  %547 = vst.msk [vmem:[#allocation2 + $0xb] sm:$0x5] %vm14873_vm14, %v545_v54  ;;  %v12653_v48 = vcombine.low %v14953_v52, %v14958_v35  ;;  %v610_v23 = vrot.slane %v609_v6, 2  ;;  %v12638_v52 = vcombine.high %v15049_v34, %v15054_v37  ;;  %v15133_v54 = vld [vmem:[%s19516_s5 + $0xc60] sm:$0xff]  ;;  %vm15174_vm14 = vmor %vm637_vm12, %vm636_vm11  ;;  %v12225_v30 = vrot.slane %v15071_v49, 9 }
 0x1af   :  { %10005 = vmatprep.subr.bf16.mxu0 %v12790_v33  ;;  %v567_v31 = vsel %vm566_vm5, %v565_v21, %v14967_v57  ;;  %v594_v35 = vsel %vm593_vm8, %v592_v26, %v14884_v16  ;;  %v15112_v16 = vld [vmem:[%s19516_s5 + $0x860] sm:$0xff]  ;;  %v12766_v57 = vcombine.high %v15078_v46, %v15083_v51  ;;  %vm701_vm11 = vcmask 793600  }
 0x1b0   :  { %9965 = vmatpush1.bf16.msra.mxu1 %v12661_v58  ;;  %v556_v15 = vpop.permute.xlu0 %555  ;;  %v611_v33 = vsel %vm566_vm5, %v609_v6, %v610_v23  ;;  %v12630_v6 = vcombine.high %v15107_v39, %v15112_v16  ;;  %v15148_v8 = vld [vmem:[%s19516_s5 + $0x820] sm:$0xff]  ;;  %v12224_v23 = vrot.slane %v15008_v10, 9  ;;  %vm705_vm5 = vcmask 403458  }
 0x1b1   :  { %v557_v24 = vrot.slane %v556_v15, 2  ;;  %776 = vrot.lane.b32.xlu0 %v15008_v10, %s13927_s20  ;;  %9966 = vmatprep.subr.bf16.mxu1 %v12654_v63  ;;  %v15162_v18 = vld [vmem:[%s19516_s5 + $0xc20] sm:$0xff]  ;;  %vm721_vm12 = vcmask 408576  }
 0x1b2   :  { %10006 = vmatpush1.bf16.msra.mxu0 %v12789_v7  ;;  %758 = vrot.lane.b32.xlu1 %v15016_v17, %s13928_s26  ;;  %v12765_v7 = vcombine.low %v15078_v46, %v15083_v51  ;;  %v15157_v17 = vld [vmem:[%s19516_s5 + $0xc00] sm:$0xff] }
 0x1b3   :  { %v558_v40 = vsel %vm532_vm13, %v556_v15, %v557_v24  ;;  %10007 = vmatprep.subr.bf16.mxu0 %v12782_v13  ;;  %vm644_vm13 = vcmask 236544   ;;  %v12758_v15 = vcombine.high %v15128_v4, %v15133_v54  ;;  %v12629_v24 = vcombine.low %v15107_v39, %v15112_v16  ;;  %v15192_v34 = vld [vmem:[%s19516_s5 + $0xbc0] sm:$0xff] }
 0x1b4   :  { %560 = vst.msk [vmem:[#allocation2 + $0xd] sm:$0x1] %vm552_vm2, %v558_v40  ;;  %9967 = vmatpush1.bf16.msra.mxu1 %v12653_v48  ;;  %v550_v47 = vpop.permute.xlu0 %549  ;;  %v15197_v37 = vld [vmem:[%s19516_s5 + $0xbe0] sm:$0xff]  ;;  %v12749_v16 = vcombine.low %v15157_v17, %v15162_v18 }
 0x1b5   :  { %581 = vst.msk [vmem:[#allocation2 + $0xd] sm:$0x5] %vm15038_vm7, %v579_v45  ;;  %737 = vrot.lane.b32.xlu0 %v12221_v42, %s13927_s20  ;;  %9968 = vmatprep.subr.bf16.mxu1 %v12646_v25  ;;  %v12226_v42 = vrot.slane %v15118_v55, 9  ;;  %v15207_v45 = vld [vmem:[%s19516_s5 + $0xfc0] sm:$0xff]  ;;  %s13936_s20 = smov 11  }
 0x1b6   :  { %553 = vst.msk [vmem:[#allocation2 + $0xc] sm:$0x1] %vm552_vm2, %v550_v47  ;;  %10008 = vmatpush1.bf16.msra.mxu0 %v12781_v32  ;;  %799 = vrot.lane.b32.xlu1 %v15071_v49, %s13929_s28  ;;  %v12750_v32 = vcombine.high %v15157_v17, %v15162_v18  ;;  %v15212_v47 = vld [vmem:[%s19516_s5 + $0xfe0] sm:$0xff]  ;;  %vm15228_vm2 = vmor %vm657_vm1, %vm656_vm15  ;;  %v12742_v49 = vcombine.high %v15192_v34, %v15197_v37  ;;  %vm765_vm15 = vcmask 296962   ;;  %vm761_vm1 = vcmask 687104  }
 0x1b7   :  { %572 = vst.msk [vmem:[#allocation2 + $0xc] sm:$0x5] %vm15038_vm7, %v567_v31  ;;  %10009 = vmatprep.subr.bf16.mxu0 %v12774_v44  ;;  %v12621_v31 = vcombine.low %v15143_v0, %v15148_v8  ;;  %v12869_v17 = vcombine.low %v15207_v45, %v15212_v47  ;;  %v1526_v18 = vld [vmem:[%s19516_s5 + $0xb40] sm:$0xff]  ;;  %vm713_vm7 = vcmask 130048  }
 0x1b8   :  { %613 = vst.msk [vmem:[#allocation2 + $0xf] sm:$0x5] %vm15059_vm9, %v611_v33  ;;  %599 = vst.msk [vmem:[#allocation2 + $0xe] sm:$0x5] %vm15059_vm9, %v594_v35  ;;  %9969 = vmatpush1.bf16.msra.mxu1 %v12645_v50  ;;  %v624_v58 = vpop.permute.xlu0 %623  ;;  %v1522_v25 = vld [vmem:[%s19516_s5 + $0xb20] sm:$0xff]  ;;  %vm724_vm9 = vcmask 1040784  }
 0x1b9   :  { %v625_v63 = vrot.slane %v624_v58, 2  ;;  %810 = vrot.lane.b32.xlu0 %v15118_v55, %s13930_s15  ;;  %9970 = vmatprep.subr.bf16.mxu1 %v12638_v52  ;;  %v12870_v55 = vcombine.high %v15207_v45, %v15212_v47 }
 0x1ba   :  { %10010 = vmatpush1.bf16.msra.mxu0 %v12773_v36  ;;  %785 = vrot.lane.b32.xlu1 %v12223_v59, %s13930_s15  ;;  %v94_v13 = vpop.permute.xlu1 %93 }
 0x1bb   :  { %v626_v48 = vsel %vm593_vm8, %v624_v58, %v625_v63  ;;  %10011 = vmatprep.subr.bf16.mxu0 %v12766_v57  ;;  %v325_v19 = vadd.f32 %v14805_v3, %v94_v13  ;;  %v15167_v21 = vadd.f32 %v14807_v5, %v94_v13  ;;  %v12757_v3 = vcombine.low %v15128_v4, %v15133_v54  ;;  %v1534_v57 = vld [vmem:[%s19516_s5 + $0xb80] sm:$0xff]  ;;  %vm15587_vm8 = vmor %vm705_vm5, %vm704_vm4 }
 0x1bc   :  { %628 = vst.msk [vmem:[#allocation2 + $0x11] sm:$0x1] %vm619_vm10, %v626_v48  ;;  %9971 = vmatpush1.bf16.msra.mxu1 %v12637_v62  ;;  %v642_v53 = vpop.permute.xlu0 %641  ;;  %v12622_v5 = vcombine.high %v15143_v0, %v15148_v8  ;;  %v1538_v58 = vld [vmem:[%s19516_s5 + $0xba0] sm:$0xff]  ;;  %v12741_v0 = vcombine.low %v15192_v34, %v15197_v37  ;;  %vm802_vm4 = vcmask 965632   ;;  %vm788_vm5 = vcmask 958760  }
 0x1bd   :  { %v643_v26 = vrot.slane %v642_v53, 6  ;;  %744 = vrot.lane.b32.xlu0 %v12222_v14, %s13926_s6  ;;  %9972 = vmatprep.subr.bf16.mxu1 %v12630_v6  ;;  %v15183_v10 = vmax.f32 %v325_v19, 0.0  ;;  %v336_v28 = vmax.f32 %v15167_v21, 0.0  ;;  %v1662_v8 = vld [vmem:[%s19516_s5 + $0xf80] sm:$0xff]  ;;  %s13939_s6 = smov 79  }
 0x1be   :  { %10012 = vmatpush1.bf16.msra.mxu0 %v12765_v7  ;;  %792 = vrot.lane.b32.xlu1 %v12224_v23, %s13928_s26  ;;  %v631_v41 = vpop.permute.xlu1 %630  ;;  %v1666_v48 = vld [vmem:[%s19516_s5 + $0xfa0] sm:$0xff] }
 0x1bf   :  { %v1007_v38 = vld [vmem:[#allocation2 + $0x8] sm:$0xff]  ;;  %v645_v40 = vsel %vm644_vm13, %v643_v26, %v642_v53  ;;  %10013 = vmatprep.subr.bf16.mxu0 %v12758_v15  ;;  %v851_v46 = vcombine.low %v15183_v10, %v336_v28  ;;  %v15224_v33 = vrot.slane %v15183_v10, %v14611_v56  ;;  %v632_v6 = vrot.slane %v631_v41, 6  ;;  %v1530_v19 = vld [vmem:[%s19516_s5 + $0xb60] sm:$0xff] }
 0x1c0   :  { %v15202_v44 = vrot.slane %v1007_v38, %v14611_v56  ;;  %v1035_v50 = vcombine.high %v1007_v38, %v1007_v38  ;;  %647 = vst.msk [vmem:[#allocation2 + $0x11] sm:$0x5] %vm15174_vm14, %v645_v40  ;;  %9973 = vmatpush1.bf16.msra.mxu1 %v12629_v24  ;;  %v663_v51 = vpop.permute.xlu0 %662  ;;  %v12734_v15 = vcombine.high %v1534_v57, %v1538_v58  ;;  %v1658_v34 = vld [vmem:[%s19516_s5 + $0xf60] sm:$0xff] }
 0x1c1   :  { %v664_v35 = vrot.slane %v663_v51, 2  ;;  %831 = vrot.lane.b32.xlu0 %v12226_v42, %s13929_s28  ;;  %9974 = vmatprep.subr.bf16.mxu1 %v12622_v5  ;;  %v15252_v4 = vrot.slane %v851_v46, %v14611_v56  ;;  %v12227_v7 = vrot.slane %v15224_v33, 9  ;;  %v12862_v24 = vcombine.high %v1662_v8, %v1666_v48  ;;  %v1650_v21 = vld [vmem:[%s19516_s5 + $0xf20] sm:$0xff] }
 0x1c2   :  { %v1050_v36 = vcombine.high %v15202_v44, %v15202_v44  ;;  %v15238_v39 = vrot.slane %v1035_v50, %v14611_v56  ;;  %10014 = vmatpush1.bf16.msra.mxu0 %v12757_v3  ;;  %819 = vrot.lane.b32.xlu1 %v12225_v30, %s13931_s30  ;;  %v651_v62 = vpop.permute.xlu1 %650  ;;  %v634_v26 = vsel %vm633_vm0, %v632_v6, %v631_v41  ;;  %v1518_v41 = vld [vmem:[%s19516_s5 + $0xb00] sm:$0xff]  ;;  %v15320_v30 = vpop.f32.mrf.mxu0 }
 0x1c3   :  { %v665_v59 = vsel %vm633_vm0, %v663_v51, %v664_v35  ;;  %10015 = vmatprep.subr.bf16.mxu0 %v12750_v32  ;;  %v652_v13 = vrot.slane %v651_v62, 6  ;;  %v12228_v23 = vrot.slane %v15252_v4, 9  ;;  %v12733_v3 = vcombine.low %v1534_v57, %v1538_v58  ;;  %v1654_v32 = vld [vmem:[%s19516_s5 + $0xf40] sm:$0xff] }
 0x1c4   :  { %v15254_v54 = vpack.c.bf16 %v1050_v36, %v1050_v36  ;;  %v1051_v63 = vcombine.high %v15238_v39, %v15238_v39  ;;  %667 = vst.msk [vmem:[#allocation2 + $0x13] sm:$0x5] %vm15228_vm2, %v665_v59  ;;  %9975 = vmatpush1.bf16.msra.mxu1 %v12621_v31  ;;  %v919_v5 = vcombine.high %v15183_v10, %v15183_v10  ;;  %v1646_v51 = vld [vmem:[%s19516_s5 + $0xf00] sm:$0xff] }
 0x1c5   :  { %859 = vrot.lane.b32.xlu0 %v15252_v4, %s13931_s30  ;;  %9976 = vmatprep.subr.bf16.mxu1 %v12742_v49  ;;  %v654_v37 = vsel %vm653_vm6, %v652_v13, %v651_v62  ;;  %v12726_v38 = vcombine.high %v1526_v18, %v1530_v19  ;;  %v12861_v40 = vcombine.low %v1662_v8, %v1666_v48  ;;  %v1510_v31 = vld [vmem:[%s19516_s5 + $0xac0] sm:$0xff]  ;;  %v15332_v49 = vpop.f32.mrf.mxu0 }
 0x1c6   :  { %v15270_v14 = vpack.c.bf16 %v1051_v63, %v1051_v63  ;;  %10016 = vmatpush1.bf16.msra.mxu0 %v12749_v16  ;;  %867 = vrot.lane.b32.xlu1 %v12227_v7, %s13932_s17  ;;  %v617_v53 = vpop.permute.xlu1 %616  ;;  %v937_v42 = vcombine.high %v15183_v10, %v336_v28  ;;  %v886_v45 = vcombine.high %v15224_v33, %v15224_v33  ;;  %v1642_v57 = vld [vmem:[%s19516_s5 + $0xee0] sm:$0xff] }
 0x1c7   :  { %9992 = vmatprep.mubr.bf16.mxu1 %v15254_v54  ;;  %10017 = vmatprep.subr.bf16.mxu0 %v12870_v55  ;;  %620 = vst.msk [vmem:[#allocation2 + $0x10] sm:$0x1] %vm619_vm10, %v617_v53  ;;  %v12854_v47 = vcombine.high %v1654_v32, %v1658_v34  ;;  %v15312_v50 = vrot.slane %v919_v5, %v14611_v56  ;;  %v1638_v55 = vld [vmem:[%s19516_s5 + $0xec0] sm:$0xff]  ;;  %v3391_v59 = vpop.f32.mrf.mxu0  ;;  %vm725_vm10 = vcmask 18434  }
 0x1c8   :  { %9977 = vmatpush2.bf16.msra.mxu1 %v12741_v0  ;;  %10033 = vmatprep.mubr.bf16.mxu0 %v15270_v14  ;;  %639 = vst.msk [vmem:[#allocation2 + $0x10] sm:$0x5] %vm15174_vm14, %v634_v26  ;;  %v12725_v46 = vcombine.low %v1526_v18, %v1530_v19  ;;  %v12718_v10 = vcombine.high %v1518_v41, %v1522_v25  ;;  %v1502_v63 = vld [vmem:[%s19516_s5 + $0xa80] sm:$0xff]  ;;  %v12229_v7 = vrot.slane %v886_v45, 9  ;;  %vm15612_vm13 = vmor %vm725_vm10, %vm724_vm9  ;;  %vm764_vm14 = vcmask 1041056  }
 0x1c9   :  { %879 = vrot.lane.b32.xlu0 %v12228_v23, %s13933_s23  ;;  %9978 = vmatprep.subr.bf16.mxu1 %v12734_v15  ;;  %659 = vst.msk [vmem:[#allocation2 + $0x12] sm:$0x5] %vm15228_vm2, %v654_v37  ;;  %v12853_v28 = vcombine.low %v1654_v32, %v1658_v34  ;;  %v944_v52 = vrot.slane %v937_v42, %v14611_v56  ;;  %v1506_v6 = vld [vmem:[%s19516_s5 + $0xaa0] sm:$0xff]  ;;  %v3392_v8 = vpop.f32.mrf.mxu0  ;;  %vm740_vm2 = vcmask 679960   ;;  %vm15642_vm0 = vmor %vm765_vm15, %vm764_vm14  ;;  %vm825_vm9 = vcmask 1040952  }
 0x1ca   :  { %10018 = vmatpush2.bf16.msra.mxu0 %v12869_v17  ;;  %845 = vrot.lane.b32.xlu1 %v15224_v33, %s13933_s23  ;;  %v1514_v33 = vld [vmem:[%s19516_s5 + $0xae0] sm:$0xff]  ;;  %v12846_v35 = vcombine.high %v1646_v51, %v1650_v21  ;;  %v967_v36 = vcombine.high %v15312_v50, %v15312_v50  ;;  %v12717_v16 = vcombine.low %v1518_v41, %v1522_v25  ;;  %vm826_vm10 = vcmask 190466  }
 0x1cb   :  { %10019 = vmatprep.subr.bf16.mxu0 %v12862_v24  ;;  %v12710_v58 = vcombine.high %v1510_v31, %v1514_v33  ;;  %v12845_v62 = vcombine.low %v1646_v51, %v1650_v21  ;;  %v12838_v0 = vcombine.high %v1638_v55, %v1642_v57  ;;  %v897_v48 = vcombine.high %v15252_v4, %v15252_v4  ;;  %v1630_v15 = vld [vmem:[%s19516_s5 + $0xe80] sm:$0xff] }
 0x1cc   :  { %9979 = vmatpush2.bf16.msra.mxu1 %v12733_v3  ;;  %v12709_v13 = vcombine.low %v1510_v31, %v1514_v33  ;;  %v1634_v17 = vld [vmem:[%s19516_s5 + $0xea0] sm:$0xff]  ;;  %v12702_v18 = vcombine.high %v1502_v63, %v1506_v6  ;;  %v12837_v19 = vcombine.low %v1638_v55, %v1642_v57  ;;  %v978_v23 = vcombine.high %v944_v52, %v944_v52 }
 0x1cd   :  { %887 = vrot.lane.b32.xlu0 %v886_v45, %s13934_s11  ;;  %9980 = vmatprep.subr.bf16.mxu1 %v12726_v38  ;;  %v1494_v4 = vld [vmem:[%s19516_s5 + $0xa40] sm:$0xff]  ;;  %v12830_v24 = vcombine.high %v1630_v15, %v1634_v17  ;;  %v12232_v26 = vrot.slane %v944_v52, 9  ;;  %v12701_v3 = vcombine.low %v1502_v63, %v1506_v6  ;;  %v12829_v37 = vcombine.low %v1630_v15, %v1634_v17 }
 0x1ce   :  { %10020 = vmatpush2.bf16.msra.mxu0 %v12861_v40  ;;  %927 = vrot.lane.b32.xlu1 %v15312_v50, %s13935_s4  ;;  %v1498_v53 = vld [vmem:[%s19516_s5 + $0xa60] sm:$0xff]  ;;  %v12230_v41 = vrot.slane %v897_v48, 9  ;;  %v12233_v42 = vrot.slane %v967_v36, 9  ;;  %v12234_v31 = vrot.slane %v978_v23, 9  ;;  %v15425_v15 = vpack.c.bf16 %v15238_v39, %v15238_v39 }
 0x1cf   :  { %10021 = vmatprep.subr.bf16.mxu0 %v12854_v47  ;;  %v1622_v5 = vld [vmem:[%s19516_s5 + $0xe40] sm:$0xff]  ;;  %v12694_v34 = vcombine.high %v1494_v4, %v1498_v53  ;;  %v12693_v45 = vcombine.low %v1494_v4, %v1498_v53  ;;  %vm848_vm14 = vcmask 852160   ;;  %vm873_vm15 = vcmask 1041224  }
 0x1d0   :  { %9981 = vmatpush2.bf16.msra.mxu1 %v12725_v46  ;;  %v1626_v32 = vld [vmem:[%s19516_s5 + $0xe60] sm:$0xff] }
 0x1d1   :  { %945 = vrot.lane.b32.xlu0 %v944_v52, %s13936_s20  ;;  %9982 = vmatprep.subr.bf16.mxu1 %v12718_v10  ;;  %v1486_v38 = vld [vmem:[%s19516_s5 + $0xa00] sm:$0xff]  ;;  %v12822_v25 = vcombine.high %v1622_v5, %v1626_v32  ;;  %v12821_v21 = vcombine.low %v1622_v5, %v1626_v32  ;;  %v12231_v52 = vrot.slane %v15312_v50, 9 }
 0x1d2   :  { %10022 = vmatpush2.bf16.msra.mxu0 %v12853_v28  ;;  %968 = vrot.lane.b32.xlu1 %v967_v36, %s13937_s21  ;;  %v1490_v40 = vld [vmem:[%s19516_s5 + $0xa20] sm:$0xff] }
 0x1d3   :  { %10023 = vmatprep.subr.bf16.mxu0 %v12846_v35  ;;  %v1614_v47 = vld [vmem:[%s19516_s5 + $0xe00] sm:$0xff]  ;;  %v12686_v51 = vcombine.high %v1486_v38, %v1490_v40  ;;  %v12685_v35 = vcombine.low %v1486_v38, %v1490_v40 }
 0x1d4   :  { %9983 = vmatpush2.bf16.msra.mxu1 %v12717_v16  ;;  %v1618_v46 = vld [vmem:[%s19516_s5 + $0xe20] sm:$0xff] }
 0x1d5   :  { %906 = vrot.lane.b32.xlu0 %v12229_v7, %s13936_s20  ;;  %9984 = vmatprep.subr.bf16.mxu1 %v12710_v58  ;;  %v1734_v10 = vld [vmem:[%s19516_s5 + $0x11c0] sm:$0xff]  ;;  %v12814_v33 = vcombine.high %v1614_v47, %v1618_v46  ;;  %v12813_v57 = vcombine.low %v1614_v47, %v1618_v46  ;;  %v15414_v7 = vpack.c.bf16 %v15202_v44, %v15202_v44 }
 0x1d6   :  { %10024 = vmatpush2.bf16.msra.mxu0 %v12845_v62  ;;  %898 = vrot.lane.b32.xlu1 %v897_v48, %s13932_s17  ;;  %v1738_v28 = vld [vmem:[%s19516_s5 + $0x11e0] sm:$0xff] }
 0x1d7   :  { %10025 = vmatprep.subr.bf16.mxu0 %v12838_v0  ;;  %v1862_v36 = vld [vmem:[%s19516_s5 + $0x15c0] sm:$0xff]  ;;  %v12934_v55 = vcombine.high %v1734_v10, %v1738_v28  ;;  %v12933_v62 = vcombine.low %v1734_v10, %v1738_v28 }
 0x1d8   :  { %9985 = vmatpush2.bf16.msra.mxu1 %v12709_v13  ;;  %v1866_v16 = vld [vmem:[%s19516_s5 + $0x15e0] sm:$0xff] }
 0x1d9   :  { %979 = vrot.lane.b32.xlu0 %v978_v23, %s13938_s14  ;;  %9986 = vmatprep.subr.bf16.mxu1 %v12702_v18  ;;  %v1726_v50 = vld [vmem:[%s19516_s5 + $0x1180] sm:$0xff]  ;;  %v13062_v59 = vcombine.high %v1862_v36, %v1866_v16  ;;  %v13061_v8 = vcombine.low %v1862_v36, %v1866_v16 }
 0x1da   :  { %10026 = vmatpush2.bf16.msra.mxu0 %v12837_v19  ;;  %961 = vrot.lane.b32.xlu1 %v12232_v26, %s13935_s4  ;;  %v1730_v58 = vld [vmem:[%s19516_s5 + $0x11a0] sm:$0xff] }
 0x1db   :  { %10027 = vmatprep.subr.bf16.mxu0 %v12830_v24  ;;  %v1854_v63 = vld [vmem:[%s19516_s5 + $0x1580] sm:$0xff]  ;;  %v12926_v0 = vcombine.high %v1726_v50, %v1730_v58  ;;  %v12925_v17 = vcombine.low %v1726_v50, %v1730_v58 }
 0x1dc   :  { %9987 = vmatpush2.bf16.msra.mxu1 %v12701_v3  ;;  %v1858_v6 = vld [vmem:[%s19516_s5 + $0x15a0] sm:$0xff] }
 0x1dd   :  { %913 = vrot.lane.b32.xlu0 %v12230_v41, %s13934_s11  ;;  %9988 = vmatprep.subr.bf16.mxu1 %v12694_v34  ;;  %v1718_v48 = vld [vmem:[%s19516_s5 + $0x1140] sm:$0xff]  ;;  %v13054_v44 = vcombine.high %v1854_v63, %v1858_v6  ;;  %v13053_v53 = vcombine.low %v1854_v63, %v1858_v6 }
 0x1de   :  { %10028 = vmatpush2.bf16.msra.mxu0 %v12829_v37  ;;  %988 = vrot.lane.b32.xlu1 %v12233_v42, %s13939_s6  ;;  %v1722_v13 = vld [vmem:[%s19516_s5 + $0x1160] sm:$0xff] }
 0x1df   :  { %10029 = vmatprep.subr.bf16.mxu0 %v12822_v25  ;;  %v1846_v18 = vld [vmem:[%s19516_s5 + $0x1540] sm:$0xff]  ;;  %v12918_v4 = vcombine.high %v1718_v48, %v1722_v13  ;;  %v12917_v26 = vcombine.low %v1718_v48, %v1722_v13 }
 0x1e0   :  { %9989 = vmatpush2.bf16.msra.mxu1 %v12693_v45  ;;  %v1850_v19 = vld [vmem:[%s19516_s5 + $0x1560] sm:$0xff] }
 0x1e1   :  { %1000 = vrot.lane.b32.xlu0 %v12234_v31, %s13937_s21  ;;  %9990 = vmatprep.subr.bf16.mxu1 %v12686_v51  ;;  %v1710_v39 = vld [vmem:[%s19516_s5 + $0x1100] sm:$0xff]  ;;  %v13046_v24 = vcombine.high %v1846_v18, %v1850_v19  ;;  %v13045_v34 = vcombine.low %v1846_v18, %v1850_v19 }
 0x1e2   :  { %10030 = vmatpush2.bf16.msra.mxu0 %v12821_v21  ;;  %954 = vrot.lane.b32.xlu1 %v12231_v52, %s13938_s14  ;;  %v1714_v23 = vld [vmem:[%s19516_s5 + $0x1120] sm:$0xff] }
 0x1e3   :  { %10031 = vmatprep.subr.bf16.mxu0 %v12814_v33  ;;  %v1838_v3 = vld [vmem:[%s19516_s5 + $0x1500] sm:$0xff]  ;;  %v12910_v32 = vcombine.high %v1710_v39, %v1714_v23  ;;  %v12909_v41 = vcombine.low %v1710_v39, %v1714_v23 }
 0x1e4   :  { %9991 = vmatpush2.bf16.msra.mxu1 %v12685_v35  ;;  %v1842_v5 = vld [vmem:[%s19516_s5 + $0x1520] sm:$0xff] }
 0x1e5   :  { %10042 = vmatprep.subr.bf16.mxu1 %v12934_v55  ;;  %v1702_v37 = vld [vmem:[%s19516_s5 + $0x10c0] sm:$0xff]  ;;  %v13038_v40 = vcombine.high %v1838_v3, %v1842_v5  ;;  %v13037_v47 = vcombine.low %v1838_v3, %v1842_v5 }
 0x1e6   :  { %10032 = vmatpush2.bf16.msra.mxu0 %v12813_v57  ;;  %v1706_v38 = vld [vmem:[%s19516_s5 + $0x10e0] sm:$0xff] }
 0x1e7   :  { %9993 = vmatmul.mubr.bf16.vlgmr.msra.gmra.mxu1 %v15414_v7  ;;  %10083 = vmatprep.subr.bf16.mxu0 %v13062_v59  ;;  %v1830_v25 = vld [vmem:[%s19516_s5 + $0x14c0] sm:$0xff]  ;;  %v12902_v45 = vcombine.high %v1702_v37, %v1706_v38  ;;  %v12901_v10 = vcombine.low %v1702_v37, %v1706_v38 }
 0x1e8   :  { %10043 = vmatpush1.bf16.msra.mxu1 %v12933_v62  ;;  %v1834_v42 = vld [vmem:[%s19516_s5 + $0x14e0] sm:$0xff] }
 0x1e9   :  { %10034 = vmatmul.mubr.bf16.vlgmr.msra.gmra.mxu0 %v15425_v15  ;;  %10044 = vmatprep.subr.bf16.mxu1 %v12926_v0  ;;  %v1694_v46 = vld [vmem:[%s19516_s5 + $0x1080] sm:$0xff]  ;;  %v13030_v21 = vcombine.high %v1830_v25, %v1834_v42  ;;  %v13029_v52 = vcombine.low %v1830_v25, %v1834_v42 }
 0x1ea   :  { %10084 = vmatpush1.bf16.msra.mxu0 %v13061_v8  ;;  %v1698_v51 = vld [vmem:[%s19516_s5 + $0x10a0] sm:$0xff] }
 0x1eb   :  { %10085 = vmatprep.subr.bf16.mxu0 %v13054_v44  ;;  %v1822_v28 = vld [vmem:[%s19516_s5 + $0x1480] sm:$0xff]  ;;  %v12894_v33 = vcombine.high %v1694_v46, %v1698_v51  ;;  %v12893_v55 = vcombine.low %v1694_v46, %v1698_v51 }
 0x1ec   :  { %10045 = vmatpush1.bf16.msra.mxu1 %v12925_v17  ;;  %v1826_v31 = vld [vmem:[%s19516_s5 + $0x14a0] sm:$0xff] }
 0x1ed   :  { %10046 = vmatprep.subr.bf16.mxu1 %v12918_v4  ;;  %v1686_v35 = vld [vmem:[%s19516_s5 + $0x1040] sm:$0xff]  ;;  %v13022_v16 = vcombine.high %v1822_v28, %v1826_v31  ;;  %v13021_v59 = vcombine.low %v1822_v28, %v1826_v31 }
 0x1ee   :  { %10086 = vmatpush1.bf16.msra.mxu0 %v13053_v53  ;;  %v1690_v36 = vld [vmem:[%s19516_s5 + $0x1060] sm:$0xff] }
 0x1ef   :  { %10087 = vmatprep.subr.bf16.mxu0 %v13046_v24  ;;  %v1814_v57 = vld [vmem:[%s19516_s5 + $0x1440] sm:$0xff]  ;;  %v12886_v58 = vcombine.high %v1686_v35, %v1690_v36  ;;  %v12885_v0 = vcombine.low %v1686_v35, %v1690_v36 }
 0x1f0   :  { %10047 = vmatpush1.bf16.msra.mxu1 %v12917_v26  ;;  %v1818_v50 = vld [vmem:[%s19516_s5 + $0x1460] sm:$0xff] }
 0x1f1   :  { %10048 = vmatprep.subr.bf16.mxu1 %v12910_v32  ;;  %v1678_v62 = vld [vmem:[%s19516_s5 + $0x1000] sm:$0xff]  ;;  %v13014_v6 = vcombine.high %v1814_v57, %v1818_v50  ;;  %v13013_v44 = vcombine.low %v1814_v57, %v1818_v50 }
 0x1f2   :  { %10088 = vmatpush1.bf16.msra.mxu0 %v13045_v34  ;;  %v1682_v63 = vld [vmem:[%s19516_s5 + $0x1020] sm:$0xff] }
 0x1f3   :  { %10089 = vmatprep.subr.bf16.mxu0 %v13038_v40  ;;  %v1806_v8 = vld [vmem:[%s19516_s5 + $0x1400] sm:$0xff]  ;;  %v12878_v13 = vcombine.high %v1678_v62, %v1682_v63  ;;  %v12877_v4 = vcombine.low %v1678_v62, %v1682_v63 }
 0x1f4   :  { %10049 = vmatpush1.bf16.msra.mxu1 %v12909_v41  ;;  %v1810_v48 = vld [vmem:[%s19516_s5 + $0x1420] sm:$0xff] }
 0x1f5   :  { %10050 = vmatprep.subr.bf16.mxu1 %v12902_v45  ;;  %v1798_v17 = vld [vmem:[%s19516_s5 + $0x13c0] sm:$0xff]  ;;  %v13006_v19 = vcombine.high %v1806_v8, %v1810_v48  ;;  %v13005_v24 = vcombine.low %v1806_v8, %v1810_v48 }
 0x1f6   :  { %10090 = vmatpush1.bf16.msra.mxu0 %v13037_v47  ;;  %v1802_v18 = vld [vmem:[%s19516_s5 + $0x13e0] sm:$0xff] }
 0x1f7   :  { %10091 = vmatprep.subr.bf16.mxu0 %v13030_v21  ;;  %v1926_v53 = vld [vmem:[%s19516_s5 + $0x17c0] sm:$0xff]  ;;  %v12998_v23 = vcombine.high %v1798_v17, %v1802_v18  ;;  %v12997_v32 = vcombine.low %v1798_v17, %v1802_v18 }
 0x1f8   :  { %10051 = vmatpush1.bf16.msra.mxu1 %v12901_v10  ;;  %v1930_v39 = vld [vmem:[%s19516_s5 + $0x17e0] sm:$0xff] }
 0x1f9   :  { %10052 = vmatprep.subr.bf16.mxu1 %v12894_v33  ;;  %v1790_v26 = vld [vmem:[%s19516_s5 + $0x1380] sm:$0xff]  ;;  %v13126_v5 = vcombine.high %v1926_v53, %v1930_v39  ;;  %v13125_v40 = vcombine.low %v1926_v53, %v1930_v39 }
 0x1fa   :  { %10092 = vmatpush1.bf16.msra.mxu0 %v13029_v52  ;;  %v1794_v3 = vld [vmem:[%s19516_s5 + $0x13a0] sm:$0xff] }
 0x1fb   :  { %10093 = vmatprep.subr.bf16.mxu0 %v13022_v16  ;;  %v1918_v34 = vld [vmem:[%s19516_s5 + $0x1780] sm:$0xff]  ;;  %v12990_v38 = vcombine.high %v1790_v26, %v1794_v3  ;;  %v12989_v45 = vcombine.low %v1790_v26, %v1794_v3 }
 0x1fc   :  { %10053 = vmatpush1.bf16.msra.mxu1 %v12893_v55  ;;  %v1922_v37 = vld [vmem:[%s19516_s5 + $0x17a0] sm:$0xff] }
 0x1fd   :  { %10054 = vmatprep.subr.bf16.mxu1 %v12886_v58  ;;  %v1782_v41 = vld [vmem:[%s19516_s5 + $0x1340] sm:$0xff]  ;;  %v13118_v42 = vcombine.high %v1918_v34, %v1922_v37  ;;  %v13117_v21 = vcombine.low %v1918_v34, %v1922_v37 }
 0x1fe   :  { %10094 = vmatpush1.bf16.msra.mxu0 %v13021_v59  ;;  %v1786_v25 = vld [vmem:[%s19516_s5 + $0x1360] sm:$0xff] }
 0x1ff   :  { %10095 = vmatprep.subr.bf16.mxu0 %v13014_v6  ;;  %v1910_v47 = vld [vmem:[%s19516_s5 + $0x1740] sm:$0xff]  ;;  %v12982_v51 = vcombine.high %v1782_v41, %v1786_v25  ;;  %v12981_v33 = vcombine.low %v1782_v41, %v1786_v25 }
 0x200   :  { %10055 = vmatpush1.bf16.msra.mxu1 %v12885_v0  ;;  %v1914_v46 = vld [vmem:[%s19516_s5 + $0x1760] sm:$0xff] }
 0x201   :  { %10056 = vmatprep.subr.bf16.mxu1 %v12878_v13  ;;  %v1774_v10 = vld [vmem:[%s19516_s5 + $0x1300] sm:$0xff]  ;;  %v13110_v31 = vcombine.high %v1910_v47, %v1914_v46  ;;  %v13109_v16 = vcombine.low %v1910_v47, %v1914_v46 }
 0x202   :  { %10096 = vmatpush1.bf16.msra.mxu0 %v13013_v44  ;;  %v1778_v28 = vld [vmem:[%s19516_s5 + $0x1320] sm:$0xff] }
 0x203   :  { %10097 = vmatprep.subr.bf16.mxu0 %v13006_v19  ;;  %v1902_v52 = vld [vmem:[%s19516_s5 + $0x1700] sm:$0xff]  ;;  %v12974_v36 = vcombine.high %v1774_v10, %v1778_v28  ;;  %v12973_v58 = vcombine.low %v1774_v10, %v1778_v28 }
 0x204   :  { %10057 = vmatpush1.bf16.msra.mxu1 %v12877_v4  ;;  %v1906_v35 = vld [vmem:[%s19516_s5 + $0x1720] sm:$0xff] }
 0x205   :  { %10058 = vmatprep.subr.bf16.mxu1 %v12998_v23  ;;  %v1766_v55 = vld [vmem:[%s19516_s5 + $0x12c0] sm:$0xff]  ;;  %v13102_v50 = vcombine.high %v1902_v52, %v1906_v35  ;;  %v13101_v6 = vcombine.low %v1902_v52, %v1906_v35 }
 0x206   :  { %10098 = vmatpush1.bf16.msra.mxu0 %v13005_v24  ;;  %v1770_v57 = vld [vmem:[%s19516_s5 + $0x12e0] sm:$0xff] }
 0x207   :  { %10099 = vmatprep.subr.bf16.mxu0 %v13126_v5  ;;  %v1894_v59 = vld [vmem:[%s19516_s5 + $0x16c0] sm:$0xff]  ;;  %v12966_v63 = vcombine.high %v1766_v55, %v1770_v57  ;;  %v12965_v13 = vcombine.low %v1766_v55, %v1770_v57 }
 0x208   :  { %10059 = vmatpush2.bf16.msra.mxu1 %v12997_v32  ;;  %v1898_v62 = vld [vmem:[%s19516_s5 + $0x16e0] sm:$0xff] }
 0x209   :  { %10060 = vmatprep.subr.bf16.mxu1 %v12990_v38  ;;  %v1758_v0 = vld [vmem:[%s19516_s5 + $0x1280] sm:$0xff]  ;;  %v13094_v48 = vcombine.high %v1894_v59, %v1898_v62  ;;  %v13093_v19 = vcombine.low %v1894_v59, %v1898_v62 }
 0x20a   :  { %10100 = vmatpush2.bf16.msra.mxu0 %v13125_v40  ;;  %v1762_v8 = vld [vmem:[%s19516_s5 + $0x12a0] sm:$0xff] }
 0x20b   :  { %10101 = vmatprep.subr.bf16.mxu0 %v13118_v42  ;;  %v1886_v44 = vld [vmem:[%s19516_s5 + $0x1680] sm:$0xff]  ;;  %v12958_v18 = vcombine.high %v1758_v0, %v1762_v8  ;;  %v12957_v3 = vcombine.low %v1758_v0, %v1762_v8 }
 0x20c   :  { %10061 = vmatpush2.bf16.msra.mxu1 %v12989_v45  ;;  %v1890_v17 = vld [vmem:[%s19516_s5 + $0x16a0] sm:$0xff] }
 0x20d   :  { %10062 = vmatprep.subr.bf16.mxu1 %v12982_v51  ;;  %v1750_v4 = vld [vmem:[%s19516_s5 + $0x1240] sm:$0xff]  ;;  %v13086_v24 = vcombine.high %v1886_v44, %v1890_v17  ;;  %v13085_v38 = vcombine.low %v1886_v44, %v1890_v17 }
 0x20e   :  { %10102 = vmatpush2.bf16.msra.mxu0 %v13117_v21  ;;  %v1754_v53 = vld [vmem:[%s19516_s5 + $0x1260] sm:$0xff] }
 0x20f   :  { %10103 = vmatprep.subr.bf16.mxu0 %v13110_v31  ;;  %v1878_v5 = vld [vmem:[%s19516_s5 + $0x1640] sm:$0xff]  ;;  %v12950_v34 = vcombine.high %v1750_v4, %v1754_v53  ;;  %v12949_v51 = vcombine.low %v1750_v4, %v1754_v53 }
 0x210   :  { %10063 = vmatpush2.bf16.msra.mxu1 %v12981_v33  ;;  %v1882_v32 = vld [vmem:[%s19516_s5 + $0x1660] sm:$0xff] }
 0x211   :  { %10064 = vmatprep.subr.bf16.mxu1 %v12974_v36  ;;  %v1742_v40 = vld [vmem:[%s19516_s5 + $0x1200] sm:$0xff]  ;;  %v13078_v42 = vcombine.high %v1878_v5, %v1882_v32  ;;  %v13077_v35 = vcombine.low %v1878_v5, %v1882_v32 }
 0x212   :  { %10104 = vmatpush2.bf16.msra.mxu0 %v13109_v16  ;;  %v1746_v41 = vld [vmem:[%s19516_s5 + $0x1220] sm:$0xff] }
 0x213   :  { %10105 = vmatprep.subr.bf16.mxu0 %v13102_v50  ;;  %v1870_v21 = vld [vmem:[%s19516_s5 + $0x1600] sm:$0xff]  ;;  %v12942_v31 = vcombine.high %v1742_v40, %v1746_v41  ;;  %v12941_v62 = vcombine.low %v1742_v40, %v1746_v41 }
 0x214   :  { %10065 = vmatpush2.bf16.msra.mxu1 %v12973_v58  ;;  %v1874_v10 = vld [vmem:[%s19516_s5 + $0x1620] sm:$0xff] }
 0x215   :  { %10066 = vmatprep.subr.bf16.mxu1 %v12966_v63  ;;  %v15601_v36 = vld [vmem:[%s19516_s5 + $0x19c0] sm:$0xff]  ;;  %v13070_v57 = vcombine.high %v1870_v21, %v1874_v10  ;;  %v13069_v44 = vcombine.low %v1870_v21, %v1874_v10 }
 0x216   :  { %10106 = vmatpush2.bf16.msra.mxu0 %v13101_v6  ;;  %v15606_v16 = vld [vmem:[%s19516_s5 + $0x19e0] sm:$0xff] }
 0x217   :  { %v699_v39 = vpop.permute.xlu1 %698  ;;  %v691_v23 = vpop.permute.xlu0 %690  ;;  %10107 = vmatprep.subr.bf16.mxu0 %v13094_v48  ;;  %v15619_v63 = vld [vmem:[%s19516_s5 + $0x1dc0] sm:$0xff]  ;;  %v13190_v8 = vcombine.high %v15601_v36, %v15606_v16  ;;  %v13189_v47 = vcombine.low %v15601_v36, %v15606_v16 }
 0x218   :  { %v692_v26 = vrot.slane %v691_v23, 2  ;;  %10067 = vmatpush2.bf16.msra.mxu1 %v12965_v13  ;;  %v700_v28 = vrot.slane %v699_v39, 6  ;;  %v15624_v6 = vld [vmem:[%s19516_s5 + $0x1de0] sm:$0xff] }
 0x219   :  { %10068 = vmatprep.subr.bf16.mxu1 %v12958_v18  ;;  %v13318_v18 = vcombine.high %v15619_v63, %v15624_v6  ;;  %v1974_v58 = vld [vmem:[%s19516_s5 + $0x1940] sm:$0xff] }
 0x21a   :  { %v693_v37 = vsel %vm653_vm6, %v691_v23, %v692_v26  ;;  %10108 = vmatpush2.bf16.msra.mxu0 %v13093_v19  ;;  %v702_v0 = vsel %vm701_vm11, %v700_v28, %v699_v39  ;;  %vm805_vm6 = vcmask 1041328   ;;  %v15674_v28 = vld [vmem:[%s19516_s5 + $0x1d80] sm:$0xff] }
 0x21b   :  { %695 = vst.msk [vmem:[#allocation2 + $0x15] sm:$0x1] %vm679_vm3, %v693_v37  ;;  %v711_v25 = vpop.permute.xlu0 %710  ;;  %10109 = vmatprep.subr.bf16.mxu0 %v13086_v24  ;;  %v2098_v5 = vld [vmem:[%s19516_s5 + $0x1d20] sm:$0xff] }
 0x21c   :  { %v719_v45 = vpop.permute.xlu1 %718  ;;  %v712_v46 = vrot.slane %v711_v25, 6  ;;  %10069 = vmatpush2.bf16.msra.mxu1 %v12957_v3 }
 0x21d   :  { %10070 = vmatprep.subr.bf16.mxu1 %v12950_v34  ;;  %v720_v33 = vrot.slane %v719_v45, 6 }
 0x21e   :  { %v714_v52 = vsel %vm713_vm7, %v712_v46, %v711_v25  ;;  %10110 = vmatpush2.bf16.msra.mxu0 %v13085_v38 }
 0x21f   :  { %716 = vst.msk [vmem:[#allocation2 + $0x15] sm:$0x5] %vm15587_vm8, %v714_v52  ;;  %v730_v55 = vpop.permute.xlu0 %729  ;;  %10111 = vmatprep.subr.bf16.mxu0 %v13078_v42  ;;  %v722_v48 = vsel %vm721_vm12, %v720_v33, %v719_v45  ;;  %v1982_v42 = vld [vmem:[%s19516_s5 + $0x1980] sm:$0xff] }
 0x220   :  { %v677_v50 = vpop.permute.xlu1 %676  ;;  %v731_v59 = vrot.slane %v730_v55, 2  ;;  %10071 = vmatpush2.bf16.msra.mxu1 %v12949_v51  ;;  %v1986_v45 = vld [vmem:[%s19516_s5 + $0x19a0] sm:$0xff] }
 0x221   :  { %680 = vst.msk [vmem:[#allocation2 + $0x14] sm:$0x1] %vm679_vm3, %v677_v50  ;;  %10072 = vmatprep.subr.bf16.mxu1 %v12942_v31  ;;  %vm806_vm3 = vcmask 575490   ;;  %v2114_v31 = vld [vmem:[%s19516_s5 + $0x1da0] sm:$0xff]  ;;  %v13182_v36 = vcombine.high %v1982_v42, %v1986_v45  ;;  %v13317_v50 = vcombine.low %v15619_v63, %v15624_v6 }
 0x222   :  { %707 = vst.msk [vmem:[#allocation2 + $0x14] sm:$0x5] %vm15587_vm8, %v702_v0  ;;  %v732_v13 = vsel %vm701_vm11, %v730_v55, %v731_v59  ;;  %10112 = vmatpush2.bf16.msra.mxu0 %v13077_v35  ;;  %vm15650_vm7 = vmor %vm806_vm3, %vm805_vm6  ;;  %vm779_vm8 = vcmask 23552   ;;  %v1978_v59 = vld [vmem:[%s19516_s5 + $0x1960] sm:$0xff]  ;;  %vm813_vm11 = vcmask 302080   ;;  %v13309_v53 = vcombine.low %v15674_v28, %v2114_v31 }
 0x223   :  { %734 = vst.msk [vmem:[#allocation2 + $0x17] sm:$0x5] %vm15612_vm13, %v732_v13  ;;  %727 = vst.msk [vmem:[#allocation2 + $0x16] sm:$0x5] %vm15612_vm13, %v722_v48  ;;  %v15638_v17 = vpop.permute.xlu0 %776  ;;  %10113 = vmatprep.subr.bf16.mxu0 %v13070_v57  ;;  %v13181_v48 = vcombine.low %v1982_v42, %v1986_v45  ;;  %v2102_v13 = vld [vmem:[%s19516_s5 + $0x1d40] sm:$0xff]  ;;  %vm882_vm6 = vcmask 195584  }
 0x224   :  { %v759_v19 = vpop.permute.xlu1 %758  ;;  %10073 = vmatpush2.bf16.msra.mxu1 %v12941_v62  ;;  %v778_v46 = vrot.slane %v15638_v17, 6  ;;  %vm15712_vm13 = vmor %vm826_vm10, %vm825_vm9  ;;  %vm893_vm3 = vcmask 1040848   ;;  %vm934_vm9 = vcmask 362498   ;;  %vm930_vm10 = vcmask 752640  }
 0x225   :  { %v760_v4 = vrot.slane %v759_v19, 6  ;;  %10124 = vmatprep.subr.bf16.mxu1 %v13190_v8  ;;  %v13310_v8 = vcombine.high %v15674_v28, %v2114_v31 }
 0x226   :  { %10114 = vmatpush2.bf16.msra.mxu0 %v13069_v44  ;;  %v780_v63 = vsel %vm779_vm8, %v778_v46, %v15638_v17  ;;  %v2106_v44 = vld [vmem:[%s19516_s5 + $0x1d60] sm:$0xff]  ;;  %vm933_vm8 = vcmask 1041120  }
 0x227   :  { %v738_v39 = vpop.permute.xlu0 %737  ;;  %10165 = vmatprep.subr.bf16.mxu0 %v13318_v18  ;;  %v762_v23 = vsel %vm761_vm1, %v760_v4, %v759_v19  ;;  %v13301_v46 = vcombine.low %v2102_v13, %v2106_v44  ;;  %v2082_v19 = vld [vmem:[%s19516_s5 + $0x1ca0] sm:$0xff] }
 0x228   :  { %v800_v24 = vpop.permute.xlu1 %799  ;;  %741 = vst.msk [vmem:[#allocation2 + $0x18] sm:$0x1] %vm740_vm2, %v738_v39  ;;  %v13174_v39 = vcombine.high %v1974_v58, %v1978_v59 }
 0x229   :  { %v801_v26 = vrot.slane %v800_v24, 6  ;;  %767 = vst.msk [vmem:[#allocation2 + $0x18] sm:$0x5] %vm15642_vm0, %v762_v23 }
 0x22a   :  { %v1008_v3 = vld [vmem:[#allocation2 + $0x10] sm:$0xff] }
 0x22b   :  { %v811_v32 = vpop.permute.xlu0 %810  ;;  %v1059_v34 = vrot.slane %v1008_v3, %v14611_v56  ;;  %v1052_v37 = vcombine.high %v1008_v3, %v1008_v3  ;;  %v803_v40 = vsel %vm802_vm4, %v801_v26, %v800_v24  ;;  %v1966_v26 = vld [vmem:[%s19516_s5 + $0x1900] sm:$0xff] }
 0x22c   :  { %v786_v38 = vpop.permute.xlu1 %785  ;;  %v812_v16 = vrot.slane %v811_v32, 6  ;;  %v1970_v3 = vld [vmem:[%s19516_s5 + $0x1920] sm:$0xff] }
 0x22d   :  { %789 = vst.msk [vmem:[#allocation2 + $0x1a] sm:$0x1] %vm788_vm5, %v786_v38  ;;  %v1067_v41 = vcombine.high %v1059_v34, %v1059_v34  ;;  %v1066_v25 = vrot.slane %v1052_v37, %v14611_v56  ;;  %v15679_v35 = vpack.c.bf16 %v1059_v34, %v1059_v34  ;;  %v13166_v45 = vcombine.high %v1966_v26, %v1970_v3 }
 0x22e   :  { %808 = vst.msk [vmem:[#allocation2 + $0x1a] sm:$0x5] %vm15650_vm7, %v803_v40  ;;  %v814_v23 = vsel %vm813_vm11, %v812_v16, %v811_v32  ;;  %v13302_v32 = vcombine.high %v2102_v13, %v2106_v44  ;;  %v13173_v40 = vcombine.low %v1974_v58, %v1978_v59  ;;  %v2086_v16 = vld [vmem:[%s19516_s5 + $0x1cc0] sm:$0xff]  ;;  %vm909_vm11 = vcmask 745560  }
 0x22f   :  { %v745_v51 = vpop.permute.xlu0 %744  ;;  %v15669_v21 = vpack.c.bf16 %v1067_v41, %v1067_v41  ;;  %v1068_v10 = vcombine.high %v1066_v25, %v1066_v25  ;;  %v15694_v0 = vpack.c.bf16 %v1066_v25, %v1066_v25  ;;  %v2094_v41 = vld [vmem:[%s19516_s5 + $0x1d00] sm:$0xff] }
 0x230   :  { %v793_v33 = vpop.permute.xlu1 %792  ;;  %v746_v52 = vrot.slane %v745_v51, 2  ;;  %v13294_v31 = vcombine.high %v2094_v41, %v2098_v5 }
 0x231   :  { %v794_v55 = vrot.slane %v793_v33, 2  ;;  %10074 = vmatprep.mubr.bf16.mxu1 %v15669_v21  ;;  %v15682_v57 = vpack.c.bf16 %v1068_v10, %v1068_v10  ;;  %v1962_v10 = vld [vmem:[%s19516_s5 + $0x18e0] sm:$0xff] }
 0x232   :  { %v747_v62 = vsel %vm721_vm12, %v745_v51, %v746_v52  ;;  %10075 = vmatmul.mubr.bf16.vlgmr.msra.gmra.mxu1 %v15679_v35  ;;  %vm822_vm12 = vcmask 580608   ;;  %v1958_v51 = vld [vmem:[%s19516_s5 + $0x18c0] sm:$0xff] }
 0x233   :  { %749 = vst.msk [vmem:[#allocation2 + $0x19] sm:$0x1] %vm740_vm2, %v747_v62  ;;  %10125 = vmatpush1.bf16.msra.mxu1 %v13189_v47  ;;  %v832_v6 = vpop.permute.xlu0 %831  ;;  %10115 = vmatprep.mubr.bf16.mxu0 %v15682_v57  ;;  %v795_v18 = vsel %vm761_vm1, %v793_v33, %v794_v55  ;;  %vm874_vm1 = vcmask 468994   ;;  %vm870_vm2 = vcmask 859136   ;;  %v2090_v55 = vld [vmem:[%s19516_s5 + $0x1ce0] sm:$0xff]  ;;  %v13158_v59 = vcombine.high %v1958_v51, %v1962_v10 }
 0x234   :  { %782 = vst.msk [vmem:[#allocation2 + $0x19] sm:$0x5] %vm15642_vm0, %v780_v63  ;;  %v820_v17 = vpop.permute.xlu1 %819  ;;  %v833_v4 = vrot.slane %v832_v6, 2  ;;  %10116 = vmatmul.mubr.bf16.vlgmr.msra.gmra.mxu0 %v15694_v0  ;;  %10126 = vmatprep.subr.bf16.mxu1 %v13182_v36  ;;  %vm15748_vm0 = vmor %vm874_vm1, %vm873_vm15  ;;  %v13165_v36 = vcombine.low %v1966_v26, %v1970_v3  ;;  %v1950_v63 = vld [vmem:[%s19516_s5 + $0x1880] sm:$0xff]  ;;  %v13286_v13 = vcombine.high %v2086_v16, %v2090_v55  ;;  %vm982_vm15 = vcmask 367616  }
 0x235   :  { %797 = vst.msk [vmem:[#allocation2 + $0x1b] sm:$0x1] %vm788_vm5, %v795_v18  ;;  %v821_v24 = vrot.slane %v820_v17, 6  ;;  %10166 = vmatpush1.bf16.msra.mxu0 %v13317_v50  ;;  %vm890_vm5 = vcmask 474112   ;;  %v13157_v18 = vcombine.low %v1958_v51, %v1962_v10  ;;  %v1942_v26 = vld [vmem:[%s19516_s5 + $0x1840] sm:$0xff]  ;;  %vm974_vm1 = vcmask 1041392  }
 0x236   :  { %816 = vst.msk [vmem:[#allocation2 + $0x1b] sm:$0x5] %vm15650_vm7, %v814_v23  ;;  %v834_v34 = vsel %vm802_vm4, %v832_v6, %v833_v4  ;;  %10167 = vmatprep.subr.bf16.mxu0 %v13310_v8  ;;  %v13293_v8 = vcombine.low %v2094_v41, %v2098_v5  ;;  %v1954_v6 = vld [vmem:[%s19516_s5 + $0x18a0] sm:$0xff]  ;;  %vm894_vm4 = vcmask 83970  }
 0x237   :  { %v823_v37 = vsel %vm822_vm12, %v821_v24, %v820_v17  ;;  %836 = vst.msk [vmem:[#allocation2 + $0x1d] sm:$0x5] %vm15712_vm13, %v834_v34  ;;  %10127 = vmatpush1.bf16.msra.mxu1 %v13181_v48  ;;  %v860_v38 = vpop.permute.xlu0 %859  ;;  %v2078_v17 = vld [vmem:[%s19516_s5 + $0x1c80] sm:$0xff]  ;;  %v13150_v23 = vcombine.high %v1950_v63, %v1954_v6  ;;  %vm15779_vm7 = vmor %vm894_vm4, %vm893_vm3  ;;  %vm957_vm3 = vcmask 1024360   ;;  %vm991_vm4 = vcmask 646144  }
 0x238   :  { %828 = vst.msk [vmem:[#allocation2 + $0x1c] sm:$0x5] %vm15712_vm13, %v823_v37  ;;  %v868_v25 = vpop.permute.xlu1 %867  ;;  %v861_v42 = vrot.slane %v860_v38, 2  ;;  %10128 = vmatprep.subr.bf16.mxu1 %v13174_v39  ;;  %v1946_v3 = vld [vmem:[%s19516_s5 + $0x1860] sm:$0xff]  ;;  %vm971_vm13 = vcmask 1031168  }
 0x239   :  { %v869_v47 = vrot.slane %v868_v25, 6  ;;  %10168 = vmatpush1.bf16.msra.mxu0 %v13309_v53  ;;  %v13285_v53 = vcombine.low %v2086_v16, %v2090_v55  ;;  %v2074_v41 = vld [vmem:[%s19516_s5 + $0x1c60] sm:$0xff]  ;;  %v13141_v33 = vcombine.low %v1942_v26, %v1946_v3 }
 0x23a   :  { %v862_v28 = vsel %vm822_vm12, %v860_v38, %v861_v42  ;;  %10169 = vmatprep.subr.bf16.mxu0 %v13302_v32  ;;  %v13278_v32 = vcombine.high %v2078_v17, %v2082_v19  ;;  %v13149_v38 = vcombine.low %v1950_v63, %v1954_v6  ;;  %v13142_v42 = vcombine.high %v1942_v26, %v1946_v3  ;;  %vm15809_vm12 = vmor %vm934_vm9, %vm933_vm8  ;;  %v2066_v16 = vld [vmem:[%s19516_s5 + $0x1c20] sm:$0xff] }
 0x23b   :  { %864 = vst.msk [vmem:[#allocation2 + $0x1f] sm:$0x1] %vm848_vm14, %v862_v28  ;;  %10129 = vmatpush1.bf16.msra.mxu1 %v13173_v40  ;;  %v880_v52 = vpop.permute.xlu0 %879  ;;  %v871_v62 = vsel %vm870_vm2, %v869_v47, %v868_v25  ;;  %v2070_v40 = vld [vmem:[%s19516_s5 + $0x1c40] sm:$0xff]  ;;  %vm9874_vm8 = vcmask 261120  }
 0x23c   :  { %v846_v50 = vpop.permute.xlu1 %845  ;;  %v881_v58 = vrot.slane %v880_v52, 6  ;;  %10130 = vmatprep.subr.bf16.mxu1 %v13166_v45  ;;  %v13277_v45 = vcombine.low %v2078_v17, %v2082_v19  ;;  %v1934_v47 = vld [vmem:[%s19516_s5 + $0x1800] sm:$0xff]  ;;  %v13270_v51 = vcombine.high %v2070_v40, %v2074_v41 }
 0x23d   :  { %849 = vst.msk [vmem:[#allocation2 + $0x1e] sm:$0x1] %vm848_vm14, %v846_v50  ;;  %10170 = vmatpush1.bf16.msra.mxu0 %v13301_v46  ;;  %v1938_v46 = vld [vmem:[%s19516_s5 + $0x1820] sm:$0xff]  ;;  %vm948_vm14 = vcmask 89088  }
 0x23e   :  { %876 = vst.msk [vmem:[#allocation2 + $0x1e] sm:$0x5] %vm15748_vm0, %v871_v62  ;;  %v883_v48 = vsel %vm882_vm6, %v881_v58, %v880_v52  ;;  %10171 = vmatprep.subr.bf16.mxu0 %v13294_v31  ;;  %v13133_v19 = vcombine.low %v1934_v47, %v1938_v46  ;;  %vm995_vm6 = vcmask 256002  }
 0x23f   :  { %885 = vst.msk [vmem:[#allocation2 + $0x1f] sm:$0x5] %vm15748_vm0, %v883_v48  ;;  %10131 = vmatpush1.bf16.msra.mxu1 %v13165_v36  ;;  %v888_v44 = vpop.permute.xlu0 %887  ;;  %v2062_v36 = vld [vmem:[%s19516_s5 + $0x1c00] sm:$0xff]  ;;  %vm994_vm0 = vcmask 1041016  }
 0x240   :  { %v928_v4 = vpop.permute.xlu1 %927  ;;  %v889_v39 = vrot.slane %v888_v44, 6  ;;  %10132 = vmatprep.subr.bf16.mxu1 %v13158_v59  ;;  %v13134_v59 = vcombine.high %v1934_v47, %v1938_v46  ;;  %v2054_v48 = vld [vmem:[%s19516_s5 + $0x1bc0] sm:$0xff] }
 0x241   :  { %10172 = vmatpush1.bf16.msra.mxu0 %v13293_v8  ;;  %v929_v5 = vrot.slane %v928_v4, 6  ;;  %v13269_v8 = vcombine.low %v2070_v40, %v2074_v41  ;;  %v15867_v40 = vld [vmem:[%s19516_s5 + $0x1ba0] sm:$0xff] }
 0x242   :  { %v891_v34 = vsel %vm890_vm5, %v889_v39, %v888_v44  ;;  %10173 = vmatprep.subr.bf16.mxu0 %v13286_v13  ;;  %v2058_v13 = vld [vmem:[%s19516_s5 + $0x1be0] sm:$0xff]  ;;  %v13262_v44 = vcombine.high %v2062_v36, %v2066_v16 }
 0x243   :  { %10133 = vmatpush1.bf16.msra.mxu1 %v13157_v18  ;;  %v15790_v37 = vpop.permute.xlu0 %945  ;;  %896 = vst.msk [vmem:[#allocation2 + $0x20] sm:$0x5] %vm15779_vm7, %v891_v34  ;;  %v931_v50 = vsel %vm930_vm10, %v929_v5, %v928_v4  ;;  %v13254_v3 = vcombine.high %v2054_v48, %v2058_v13  ;;  %v13261_v34 = vcombine.low %v2062_v36, %v2066_v16  ;;  %v2178_v47 = vld [vmem:[%s19516_s5 + $0x1fa0] sm:$0xff] }
 0x244   :  { %v15800_v25 = vpop.permute.xlu1 %968  ;;  %10134 = vmatprep.subr.bf16.mxu1 %v13150_v23  ;;  %v15847_v23 = vld [vmem:[%s19516_s5 + $0x1fc0] sm:$0xff]  ;;  %v947_v41 = vrot.slane %v15790_v37, 6 }
 0x245   :  { %10174 = vmatpush1.bf16.msra.mxu0 %v13285_v53  ;;  %v15852_v53 = vld [vmem:[%s19516_s5 + $0x1fe0] sm:$0xff] }
 0x246   :  { %10175 = vmatprep.subr.bf16.mxu0 %v13278_v32  ;;  %v1009_v10 = vld [vmem:[#allocation2 + $0x18] sm:$0xff]  ;;  %v13382_v24 = vcombine.high %v15847_v23, %v15852_v53  ;;  %v13381_v16 = vcombine.low %v15847_v23, %v15852_v53 }
 0x247   :  { %10135 = vmatpush1.bf16.msra.mxu1 %v13149_v38  ;;  %v907_v31 = vpop.permute.xlu0 %906  ;;  %v15814_v52 = vrot.slane %v1009_v10, %v14611_v56  ;;  %v1069_v55 = vcombine.high %v1009_v10, %v1009_v10  ;;  %v15862_v38 = vld [vmem:[%s19516_s5 + $0x1b80] sm:$0xff] }
 0x248   :  { %v899_v58 = vpop.permute.xlu1 %898  ;;  %910 = vst.msk [vmem:[#allocation2 + $0x22] sm:$0x1] %vm909_vm11, %v907_v31  ;;  %10136 = vmatprep.subr.bf16.mxu1 %v13142_v42  ;;  %v13253_v42 = vcombine.low %v2054_v48, %v2058_v13  ;;  %v13246_v31 = vcombine.high %v15862_v38, %v15867_v40  ;;  %v13245_v13 = vcombine.low %v15862_v38, %v15867_v40  ;;  %v2034_v38 = vld [vmem:[%s19516_s5 + $0x1b20] sm:$0xff] }
 0x249   :  { %v900_v62 = vrot.slane %v899_v58, 2  ;;  %10176 = vmatpush1.bf16.msra.mxu0 %v13277_v45  ;;  %v1084_v63 = vcombine.high %v15814_v52, %v15814_v52  ;;  %936 = vst.msk [vmem:[#allocation2 + $0x22] sm:$0x5] %vm15809_vm12, %v931_v50  ;;  %v15829_v6 = vrot.slane %v1069_v55, %v14611_v56  ;;  %v2174_v45 = vld [vmem:[%s19516_s5 + $0x1f80] sm:$0xff] }
 0x24a   :  { %10177 = vmatprep.subr.bf16.mxu0 %v13270_v51  ;;  %v2038_v55 = vld [vmem:[%s19516_s5 + $0x1b40] sm:$0xff]  ;;  %v13373_v28 = vcombine.low %v2174_v45, %v2178_v47 }
 0x24b   :  { %v901_v18 = vsel %vm870_vm2, %v899_v58, %v900_v62  ;;  %10137 = vmatpush1.bf16.msra.mxu1 %v13141_v33  ;;  %v15838_v17 = vpop.permute.xlu0 %979  ;;  %v15840_v4 = vpack.c.bf16 %v1084_v63, %v1084_v63  ;;  %v1085_v39 = vcombine.high %v15829_v6, %v15829_v6  ;;  %vm975_vm2 = vcmask 641026   ;;  %v2042_v50 = vld [vmem:[%s19516_s5 + $0x1b60] sm:$0xff] }
 0x24c   :  { %903 = vst.msk [vmem:[#allocation2 + $0x21] sm:$0x5] %vm15779_vm7, %v901_v18  ;;  %v962_v26 = vpop.permute.xlu1 %961  ;;  %10138 = vmatprep.subr.bf16.mxu1 %v13134_v59  ;;  %v970_v33 = vrot.slane %v15800_v25, 6  ;;  %v981_v36 = vrot.slane %v15838_v17, 6  ;;  %v13374_v62 = vcombine.high %v2174_v45, %v2178_v47  ;;  %vm15897_vm7 = vmor %vm975_vm2, %vm974_vm1  ;;  %v13238_v53 = vcombine.high %v2038_v55, %v2042_v50  ;;  %v2022_v47 = vld [vmem:[%s19516_s5 + $0x1ac0] sm:$0xff] }
 0x24d   :  { %10178 = vmatpush1.bf16.msra.mxu0 %v13269_v8  ;;  %10156 = vmatprep.mubr.bf16.mxu1 %v15840_v4  ;;  %v15857_v32 = vpack.c.bf16 %v1085_v39, %v1085_v39  ;;  %v963_v46 = vrot.slane %v962_v26, 2  ;;  %v949_v8 = vsel %vm948_vm14, %v947_v41, %v15790_v37  ;;  %v2170_v37 = vld [vmem:[%s19516_s5 + $0x1f60] sm:$0xff] }
 0x24e   :  { %10179 = vmatprep.subr.bf16.mxu0 %v13262_v44  ;;  %v2166_v44 = vld [vmem:[%s19516_s5 + $0x1f40] sm:$0xff] }
 0x24f   :  { %10139 = vmatpush1.bf16.msra.mxu1 %v13133_v19  ;;  %v914_v5 = vpop.permute.xlu0 %913  ;;  %10197 = vmatprep.mubr.bf16.mxu0 %v15857_v32  ;;  %v964_v18 = vsel %vm930_vm10, %v962_v26, %v963_v46  ;;  %v2030_v26 = vld [vmem:[%s19516_s5 + $0x1b00] sm:$0xff]  ;;  %v13365_v45 = vcombine.low %v2166_v44, %v2170_v37 }
 0x250   :  { %v989_v51 = vpop.permute.xlu1 %988  ;;  %v915_v10 = vrot.slane %v914_v5, 2  ;;  %10140 = vmatprep.subr.bf16.mxu1 %v13254_v3  ;;  %v972_v3 = vsel %vm971_vm13, %v970_v33, %v15800_v25  ;;  %v2158_v41 = vld [vmem:[%s19516_s5 + $0x1f00] sm:$0xff] }
 0x251   :  { %10180 = vmatpush1.bf16.msra.mxu0 %v13261_v34  ;;  %v990_v58 = vrot.slane %v989_v51, 6  ;;  %v983_v34 = vsel %vm982_vm15, %v981_v36, %v15838_v17  ;;  %v13366_v17 = vcombine.high %v2166_v44, %v2170_v37  ;;  %v2026_v46 = vld [vmem:[%s19516_s5 + $0x1ae0] sm:$0xff] }
 0x252   :  { %v916_v59 = vsel %vm890_vm5, %v914_v5, %v915_v10  ;;  %10181 = vmatprep.subr.bf16.mxu0 %v13382_v24  ;;  %vm15914_vm5 = vmor %vm995_vm6, %vm994_vm0  ;;  %v13237_v24 = vcombine.low %v2038_v55, %v2042_v50  ;;  %v2162_v5 = vld [vmem:[%s19516_s5 + $0x1f20] sm:$0xff]  ;;  %v13229_v10 = vcombine.low %v2030_v26, %v2034_v38  ;;  %v13222_v36 = vcombine.high %v2022_v47, %v2026_v46 }
 0x253   :  { %918 = vst.msk [vmem:[#allocation2 + $0x23] sm:$0x1] %vm909_vm11, %v916_v59  ;;  %10141 = vmatpush2.bf16.msra.mxu1 %v13253_v42  ;;  %v1001_v48 = vpop.permute.xlu0 %1000  ;;  %v992_v40 = vsel %vm991_vm4, %v990_v58, %v989_v51  ;;  %v13230_v42 = vcombine.high %v2030_v26, %v2034_v38  ;;  %v13358_v51 = vcombine.high %v2158_v41, %v2162_v5  ;;  %v2154_v33 = vld [vmem:[%s19516_s5 + $0x1ee0] sm:$0xff] }
 0x254   :  { %951 = vst.msk [vmem:[#allocation2 + $0x23] sm:$0x5] %vm15809_vm12, %v949_v8  ;;  %v955_v39 = vpop.permute.xlu1 %954  ;;  %v1002_v23 = vrot.slane %v1001_v48, 2  ;;  %10142 = vmatprep.subr.bf16.mxu1 %v13246_v31  ;;  %v2150_v31 = vld [vmem:[%s19516_s5 + $0x1ec0] sm:$0xff]  ;;  %v13221_v59 = vcombine.low %v2022_v47, %v2026_v46 }
 0x255   :  { %958 = vst.msk [vmem:[#allocation2 + $0x24] sm:$0x1] %vm957_vm3, %v955_v39  ;;  %966 = vst.msk [vmem:[#allocation2 + $0x25] sm:$0x1] %vm957_vm3, %v964_v18  ;;  %10182 = vmatpush2.bf16.msra.mxu0 %v13381_v16  ;;  %v13357_v16 = vcombine.low %v2158_v41, %v2162_v5  ;;  %v2014_v55 = vld [vmem:[%s19516_s5 + $0x1a80] sm:$0xff]  ;;  %v13350_v58 = vcombine.high %v2150_v31, %v2154_v33 }
 0x256   :  { %977 = vst.msk [vmem:[#allocation2 + $0x24] sm:$0x5] %vm15897_vm7, %v972_v3  ;;  %985 = vst.msk [vmem:[#allocation2 + $0x25] sm:$0x5] %vm15897_vm7, %v983_v34  ;;  %v1003_v25 = vsel %vm971_vm13, %v1001_v48, %v1002_v23  ;;  %10183 = vmatprep.subr.bf16.mxu0 %v13374_v62  ;;  %v2018_v50 = vld [vmem:[%s19516_s5 + $0x1aa0] sm:$0xff]  ;;  %v13349_v48 = vcombine.low %v2150_v31, %v2154_v33 }
 0x257   :  { %997 = vst.msk [vmem:[#allocation2 + $0x26] sm:$0x5] %vm15914_vm5, %v992_v40  ;;  %1005 = vst.msk [vmem:[#allocation2 + $0x27] sm:$0x5] %vm15914_vm5, %v1003_v25  ;;  %10143 = vmatpush2.bf16.msra.mxu1 %v13245_v13  ;;  %v2142_v62 = vld [vmem:[%s19516_s5 + $0x1e80] sm:$0xff]  ;;  %v13214_v63 = vcombine.high %v2014_v55, %v2018_v50  ;;  %v13213_v18 = vcombine.low %v2014_v55, %v2018_v50 }
 0x258   :  { %10144 = vmatprep.subr.bf16.mxu1 %v13238_v53  ;;  %v2146_v8 = vld [vmem:[%s19516_s5 + $0x1ea0] sm:$0xff] }
 0x259   :  { %10184 = vmatpush2.bf16.msra.mxu0 %v13373_v28  ;;  %v2006_v13 = vld [vmem:[%s19516_s5 + $0x1a40] sm:$0xff]  ;;  %v13342_v37 = vcombine.high %v2142_v62, %v2146_v8  ;;  %v13341_v3 = vcombine.low %v2142_v62, %v2146_v8 }
 0x25a   :  { %10185 = vmatprep.subr.bf16.mxu0 %v13366_v17  ;;  %v2010_v44 = vld [vmem:[%s19516_s5 + $0x1a60] sm:$0xff] }
 0x25b   :  { %10145 = vmatpush2.bf16.msra.mxu1 %v13237_v24  ;;  %v2134_v19 = vld [vmem:[%s19516_s5 + $0x1e40] sm:$0xff]  ;;  %v13206_v23 = vcombine.high %v2006_v13, %v2010_v44  ;;  %v13205_v40 = vcombine.low %v2006_v13, %v2010_v44 }
 0x25c   :  { %10146 = vmatprep.subr.bf16.mxu1 %v13230_v42  ;;  %v2138_v39 = vld [vmem:[%s19516_s5 + $0x1e60] sm:$0xff] }
 0x25d   :  { %10186 = vmatpush2.bf16.msra.mxu0 %v13365_v45  ;;  %v1998_v34 = vld [vmem:[%s19516_s5 + $0x1a00] sm:$0xff]  ;;  %v13334_v26 = vcombine.high %v2134_v19, %v2138_v39  ;;  %v13333_v47 = vcombine.low %v2134_v19, %v2138_v39 }
 0x25e   :  { %10187 = vmatprep.subr.bf16.mxu0 %v13358_v51  ;;  %v1010_v53 = vld [vmem:[#allocation2 + $0x20] sm:$0xff] }
 0x25f   :  { %10147 = vmatpush2.bf16.msra.mxu1 %v13229_v10  ;;  %v2002_v28 = vld [vmem:[%s19516_s5 + $0x1a20] sm:$0xff]  ;;  %v1086_v24 = vcombine.high %v1010_v53, %v1010_v53  ;;  %v16002_v10 = vrot.slane %v1010_v53, %v14611_v56 }
 0x260   :  { %10148 = vmatprep.subr.bf16.mxu1 %v13222_v36  ;;  %v2126_v25 = vld [vmem:[%s19516_s5 + $0x1e00] sm:$0xff]  ;;  %v13198_v5 = vcombine.high %v1998_v34, %v2002_v28  ;;  %v13197_v55 = vcombine.low %v1998_v34, %v2002_v28  ;;  %v16036_v34 = vpack.c.bf16 %v15814_v52, %v15814_v52  ;;  %v16049_v52 = vpack.c.bf16 %v15829_v6, %v15829_v6 }
 0x261   :  { %10188 = vmatpush2.bf16.msra.mxu0 %v13357_v16  ;;  %v2130_v17 = vld [vmem:[%s19516_s5 + $0x1e20] sm:$0xff]  ;;  %v1101_v13 = vcombine.high %v16002_v10, %v16002_v10 }
 0x262   :  { %10189 = vmatprep.subr.bf16.mxu0 %v13350_v58  ;;  %v2246_v46 = vld [vmem:[%s19516_s5 + $0x21c0] sm:$0xff]  ;;  %v13326_v33 = vcombine.high %v2126_v25, %v2130_v17 }
 0x263   :  { %10149 = vmatpush2.bf16.msra.mxu1 %v13221_v59  ;;  %v2250_v51 = vld [vmem:[%s19516_s5 + $0x21e0] sm:$0xff]  ;;  %v16014_v59 = vrot.slane %v1086_v24, %v14611_v56 }
 0x264   :  { %10150 = vmatprep.subr.bf16.mxu1 %v13214_v63  ;;  %v2374_v50 = vld [vmem:[%s19516_s5 + $0x25c0] sm:$0xff]  ;;  %v13446_v62 = vcombine.high %v2246_v46, %v2250_v51  ;;  %v13445_v39 = vcombine.low %v2246_v46, %v2250_v51 }
 0x265   :  { %10190 = vmatpush2.bf16.msra.mxu0 %v13349_v48  ;;  %v2378_v58 = vld [vmem:[%s19516_s5 + $0x25e0] sm:$0xff]  ;;  %v13325_v48 = vcombine.low %v2126_v25, %v2130_v17 }
 0x266   :  { %10191 = vmatprep.subr.bf16.mxu0 %v13342_v37  ;;  %v2238_v44 = vld [vmem:[%s19516_s5 + $0x2180] sm:$0xff] }
 0x267   :  { %v9912_v38 = vpop.f32.mrf.mxu1  ;;  %10151 = vmatpush2.bf16.msra.mxu1 %v13213_v18  ;;  %v2242_v37 = vld [vmem:[%s19516_s5 + $0x21a0] sm:$0xff]  ;;  %v13574_v18 = vcombine.high %v2374_v50, %v2378_v58 }
 0x268   :  { %v9913_v41 = vadd.f32 %v9912_v38, %v14797_v60  ;;  %10152 = vmatprep.subr.bf16.mxu1 %v13206_v23  ;;  %v1102_v23 = vcombine.high %v16014_v59, %v16014_v59  ;;  %v2366_v53 = vld [vmem:[%s19516_s5 + $0x2580] sm:$0xff]  ;;  %v13438_v28 = vcombine.high %v2238_v44, %v2242_v37  ;;  %v13573_v38 = vcombine.low %v2374_v50, %v2378_v58 }
 0x269   :  { %v9914_v42 = vpop.f32.mrf.mxu1  ;;  %v9953_v45 = vpop.f32.mrf.mxu0  ;;  %10192 = vmatpush2.bf16.msra.mxu0 %v13341_v3  ;;  %v2370_v3 = vld [vmem:[%s19516_s5 + $0x25a0] sm:$0xff] }
 0x26a   :  { %v9915_v31 = vadd.f32 %v9914_v42, %v14799_v61  ;;  %v16005_v60 = vadd.f32 %v9953_v45, %v9913_v41  ;;  %10193 = vmatprep.subr.bf16.mxu0 %v13334_v26  ;;  %v16038_v26 = vpack.c.bf16 %v1101_v13, %v1101_v13  ;;  %v2234_v25 = vld [vmem:[%s19516_s5 + $0x2160] sm:$0xff]  ;;  %v13566_v17 = vcombine.high %v2366_v53, %v2370_v3 }
 0x26b   :  { %v9916_v36 = vpop.f32.mrf.mxu1  ;;  %v9955_v16 = vpop.f32.mrf.mxu0  ;;  %10153 = vmatpush2.bf16.msra.mxu1 %v13205_v40  ;;  %v2230_v40 = vld [vmem:[%s19516_s5 + $0x2140] sm:$0xff]  ;;  %v16052_v24 = vpack.c.bf16 %v1102_v23, %v1102_v23  ;;  %v13437_v41 = vcombine.low %v2238_v44, %v2242_v37  ;;  %v13565_v45 = vcombine.low %v2366_v53, %v2370_v3 }
 0x26c   :  { %v16016_v61 = vadd.f32 %v9955_v16, %v9915_v31  ;;  %10154 = vmatprep.subr.bf16.mxu1 %v13198_v5  ;;  %v2358_v5 = vld [vmem:[%s19516_s5 + $0x2540] sm:$0xff]  ;;  %v13430_v6 = vcombine.high %v2230_v40, %v2234_v25  ;;  %v13429_v31 = vcombine.low %v2230_v40, %v2234_v25 }
 0x26d   :  { %v9917_v8 = vpop.f32.mrf.mxu1  ;;  %v9957_v63 = vpop.f32.mrf.mxu0  ;;  %10194 = vmatpush2.bf16.msra.mxu0 %v13333_v47  ;;  %v2362_v42 = vld [vmem:[%s19516_s5 + $0x2560] sm:$0xff] }
 0x26e   :  { %10195 = vmatprep.subr.bf16.mxu0 %v13326_v33  ;;  %v2222_v47 = vld [vmem:[%s19516_s5 + $0x2100] sm:$0xff]  ;;  %v13558_v51 = vcombine.high %v2358_v5, %v2362_v42 }
 0x26f   :  { %v9958_v19 = vpop.f32.mrf.mxu0  ;;  %10155 = vmatpush2.bf16.msra.mxu1 %v13197_v55  ;;  %v2226_v46 = vld [vmem:[%s19516_s5 + $0x2120] sm:$0xff]  ;;  %v13557_v55 = vcombine.low %v2358_v5, %v2362_v42 }
 0x270   :  { %10206 = vmatprep.subr.bf16.mxu1 %v13446_v62  ;;  %v2350_v33 = vld [vmem:[%s19516_s5 + $0x2500] sm:$0xff]  ;;  %v13422_v16 = vcombine.high %v2222_v47, %v2226_v46  ;;  %v13421_v8 = vcombine.low %v2222_v47, %v2226_v46 }
 0x271   :  { %10196 = vmatpush2.bf16.msra.mxu0 %v13325_v48  ;;  %v2354_v36 = vld [vmem:[%s19516_s5 + $0x2520] sm:$0xff] }
 0x272   :  { %10157 = vmatmul.mubr.bf16.vlgmr.msra.gmra.mxu1 %v16036_v34  ;;  %10247 = vmatprep.subr.bf16.mxu0 %v13574_v18  ;;  %v2214_v50 = vld [vmem:[%s19516_s5 + $0x20c0] sm:$0xff]  ;;  %v13550_v62 = vcombine.high %v2350_v33, %v2354_v36  ;;  %v13549_v44 = vcombine.low %v2350_v33, %v2354_v36 }
 0x273   :  { %10207 = vmatpush1.bf16.msra.mxu1 %v13445_v39  ;;  %10238 = vmatprep.mubr.bf16.mxu1 %v16038_v26  ;;  %v2218_v58 = vld [vmem:[%s19516_s5 + $0x20e0] sm:$0xff] }
 0x274   :  { %10198 = vmatmul.mubr.bf16.vlgmr.msra.gmra.mxu0 %v16049_v52  ;;  %10208 = vmatprep.subr.bf16.mxu1 %v13438_v28  ;;  %v2342_v63 = vld [vmem:[%s19516_s5 + $0x24c0] sm:$0xff]  ;;  %v13414_v13 = vcombine.high %v2214_v50, %v2218_v58  ;;  %v13413_v39 = vcombine.low %v2214_v50, %v2218_v58 }
 0x275   :  { %10248 = vmatpush1.bf16.msra.mxu0 %v13573_v38  ;;  %10279 = vmatprep.mubr.bf16.mxu0 %v16052_v24  ;;  %v2346_v48 = vld [vmem:[%s19516_s5 + $0x24e0] sm:$0xff] }
 0x276   :  { %10249 = vmatprep.subr.bf16.mxu0 %v13566_v17  ;;  %v2206_v37 = vld [vmem:[%s19516_s5 + $0x2080] sm:$0xff]  ;;  %v13542_v19 = vcombine.high %v2342_v63, %v2346_v48  ;;  %v13541_v28 = vcombine.low %v2342_v63, %v2346_v48 }
 0x277   :  { %10209 = vmatpush1.bf16.msra.mxu1 %v13437_v41  ;;  %v2210_v18 = vld [vmem:[%s19516_s5 + $0x20a0] sm:$0xff] }
 0x278   :  { %10210 = vmatprep.subr.bf16.mxu1 %v13430_v6  ;;  %v2334_v23 = vld [vmem:[%s19516_s5 + $0x2480] sm:$0xff]  ;;  %v13406_v3 = vcombine.high %v2206_v37, %v2210_v18  ;;  %v13405_v17 = vcombine.low %v2206_v37, %v2210_v18 }
 0x279   :  { %10250 = vmatpush1.bf16.msra.mxu0 %v13565_v45  ;;  %v2338_v53 = vld [vmem:[%s19516_s5 + $0x24a0] sm:$0xff] }
 0x27a   :  { %10251 = vmatprep.subr.bf16.mxu0 %v13558_v51  ;;  %v2198_v38 = vld [vmem:[%s19516_s5 + $0x2040] sm:$0xff]  ;;  %v13534_v25 = vcombine.high %v2334_v23, %v2338_v53  ;;  %v13533_v6 = vcombine.low %v2334_v23, %v2338_v53 }
 0x27b   :  { %10211 = vmatpush1.bf16.msra.mxu1 %v13429_v31  ;;  %v2202_v40 = vld [vmem:[%s19516_s5 + $0x2060] sm:$0xff] }
 0x27c   :  { %10212 = vmatprep.subr.bf16.mxu1 %v13422_v16  ;;  %v2326_v41 = vld [vmem:[%s19516_s5 + $0x2440] sm:$0xff]  ;;  %v13398_v42 = vcombine.high %v2198_v38, %v2202_v40  ;;  %v13397_v51 = vcombine.low %v2198_v38, %v2202_v40 }
 0x27d   :  { %10252 = vmatpush1.bf16.msra.mxu0 %v13557_v55  ;;  %v2330_v5 = vld [vmem:[%s19516_s5 + $0x2460] sm:$0xff] }
 0x27e   :  { %10253 = vmatprep.subr.bf16.mxu0 %v13550_v62  ;;  %v2190_v45 = vld [vmem:[%s19516_s5 + $0x2000] sm:$0xff]  ;;  %v13526_v46 = vcombine.high %v2326_v41, %v2330_v5  ;;  %v13525_v16 = vcombine.low %v2326_v41, %v2330_v5 }
 0x27f   :  { %10213 = vmatpush1.bf16.msra.mxu1 %v13421_v8  ;;  %v2194_v47 = vld [vmem:[%s19516_s5 + $0x2020] sm:$0xff] }
 0x280   :  { %10214 = vmatprep.subr.bf16.mxu1 %v13414_v13  ;;  %v2318_v31 = vld [vmem:[%s19516_s5 + $0x2400] sm:$0xff]  ;;  %v13390_v36 = vcombine.high %v2190_v45, %v2194_v47  ;;  %v13389_v62 = vcombine.low %v2190_v45, %v2194_v47 }
 0x281   :  { %10254 = vmatpush1.bf16.msra.mxu0 %v13549_v44  ;;  %v2322_v33 = vld [vmem:[%s19516_s5 + $0x2420] sm:$0xff] }
 0x282   :  { %10255 = vmatprep.subr.bf16.mxu0 %v13542_v19  ;;  %v2310_v55 = vld [vmem:[%s19516_s5 + $0x23c0] sm:$0xff]  ;;  %v13518_v58 = vcombine.high %v2318_v31, %v2322_v33  ;;  %v13517_v13 = vcombine.low %v2318_v31, %v2322_v33 }
 0x283   :  { %10215 = vmatpush1.bf16.msra.mxu1 %v13413_v39  ;;  %v2314_v50 = vld [vmem:[%s19516_s5 + $0x23e0] sm:$0xff] }
 0x284   :  { %10216 = vmatprep.subr.bf16.mxu1 %v13406_v3  ;;  %v2438_v8 = vld [vmem:[%s19516_s5 + $0x27c0] sm:$0xff]  ;;  %v13510_v48 = vcombine.high %v2310_v55, %v2314_v50  ;;  %v13509_v19 = vcombine.low %v2310_v55, %v2314_v50 }
 0x285   :  { %10256 = vmatpush1.bf16.msra.mxu0 %v13541_v28  ;;  %v2442_v63 = vld [vmem:[%s19516_s5 + $0x27e0] sm:$0xff] }
 0x286   :  { %10257 = vmatprep.subr.bf16.mxu0 %v13534_v25  ;;  %v2302_v44 = vld [vmem:[%s19516_s5 + $0x2380] sm:$0xff]  ;;  %v13638_v18 = vcombine.high %v2438_v8, %v2442_v63  ;;  %v13637_v3 = vcombine.low %v2438_v8, %v2442_v63 }
 0x287   :  { %10217 = vmatpush1.bf16.msra.mxu1 %v13405_v17  ;;  %v2306_v37 = vld [vmem:[%s19516_s5 + $0x23a0] sm:$0xff] }
 0x288   :  { %10218 = vmatprep.subr.bf16.mxu1 %v13398_v42  ;;  %v2430_v39 = vld [vmem:[%s19516_s5 + $0x2780] sm:$0xff]  ;;  %v13502_v53 = vcombine.high %v2302_v44, %v2306_v37  ;;  %v13501_v25 = vcombine.low %v2302_v44, %v2306_v37 }
 0x289   :  { %10258 = vmatpush1.bf16.msra.mxu0 %v13533_v6  ;;  %v2434_v23 = vld [vmem:[%s19516_s5 + $0x27a0] sm:$0xff] }
 0x28a   :  { %10259 = vmatprep.subr.bf16.mxu0 %v13526_v46  ;;  %v2294_v28 = vld [vmem:[%s19516_s5 + $0x2340] sm:$0xff]  ;;  %v13630_v40 = vcombine.high %v2430_v39, %v2434_v23  ;;  %v13629_v42 = vcombine.low %v2430_v39, %v2434_v23 }
 0x28b   :  { %10219 = vmatpush1.bf16.msra.mxu1 %v13397_v51  ;;  %v2298_v38 = vld [vmem:[%s19516_s5 + $0x2360] sm:$0xff] }
 0x28c   :  { %10220 = vmatprep.subr.bf16.mxu1 %v13390_v36  ;;  %v2422_v17 = vld [vmem:[%s19516_s5 + $0x2740] sm:$0xff]  ;;  %v13494_v5 = vcombine.high %v2294_v28, %v2298_v38  ;;  %v13493_v46 = vcombine.low %v2294_v28, %v2298_v38 }
 0x28d   :  { %10260 = vmatpush1.bf16.msra.mxu0 %v13525_v16  ;;  %v2426_v41 = vld [vmem:[%s19516_s5 + $0x2760] sm:$0xff] }
 0x28e   :  { %10261 = vmatprep.subr.bf16.mxu0 %v13518_v58  ;;  %v2286_v6 = vld [vmem:[%s19516_s5 + $0x2300] sm:$0xff]  ;;  %v13622_v47 = vcombine.high %v2422_v17, %v2426_v41  ;;  %v13621_v36 = vcombine.low %v2422_v17, %v2426_v41 }
 0x28f   :  { %10221 = vmatpush1.bf16.msra.mxu1 %v13389_v62  ;;  %v2290_v45 = vld [vmem:[%s19516_s5 + $0x2320] sm:$0xff] }
 0x290   :  { %10222 = vmatprep.subr.bf16.mxu1 %v13510_v48  ;;  %v2414_v51 = vld [vmem:[%s19516_s5 + $0x2700] sm:$0xff]  ;;  %v13486_v33 = vcombine.high %v2286_v6, %v2290_v45  ;;  %v13485_v58 = vcombine.low %v2286_v6, %v2290_v45 }
 0x291   :  { %10262 = vmatpush1.bf16.msra.mxu0 %v13517_v13  ;;  %v2418_v31 = vld [vmem:[%s19516_s5 + $0x2720] sm:$0xff] }
 0x292   :  { %10263 = vmatprep.subr.bf16.mxu0 %v13638_v18  ;;  %v2278_v16 = vld [vmem:[%s19516_s5 + $0x22c0] sm:$0xff]  ;;  %v13614_v50 = vcombine.high %v2414_v51, %v2418_v31  ;;  %v13613_v48 = vcombine.low %v2414_v51, %v2418_v31 }
 0x293   :  { %10223 = vmatpush2.bf16.msra.mxu1 %v13509_v19  ;;  %v2282_v55 = vld [vmem:[%s19516_s5 + $0x22e0] sm:$0xff] }
 0x294   :  { %10224 = vmatprep.subr.bf16.mxu1 %v13502_v53  ;;  %v2406_v62 = vld [vmem:[%s19516_s5 + $0x26c0] sm:$0xff]  ;;  %v13478_v63 = vcombine.high %v2278_v16, %v2282_v55  ;;  %v13477_v18 = vcombine.low %v2278_v16, %v2282_v55 }
 0x295   :  { %10264 = vmatpush2.bf16.msra.mxu0 %v13637_v3  ;;  %v2410_v8 = vld [vmem:[%s19516_s5 + $0x26e0] sm:$0xff] }
 0x296   :  { %10265 = vmatprep.subr.bf16.mxu0 %v13630_v40  ;;  %v2270_v13 = vld [vmem:[%s19516_s5 + $0x2280] sm:$0xff]  ;;  %v13606_v37 = vcombine.high %v2406_v62, %v2410_v8  ;;  %v13605_v53 = vcombine.low %v2406_v62, %v2410_v8 }
 0x297   :  { %10225 = vmatpush2.bf16.msra.mxu1 %v13501_v25  ;;  %v2274_v44 = vld [vmem:[%s19516_s5 + $0x22a0] sm:$0xff] }
 0x298   :  { %10226 = vmatprep.subr.bf16.mxu1 %v13494_v5  ;;  %v2398_v19 = vld [vmem:[%s19516_s5 + $0x2680] sm:$0xff]  ;;  %v13470_v23 = vcombine.high %v2270_v13, %v2274_v44  ;;  %v13469_v40 = vcombine.low %v2270_v13, %v2274_v44 }
 0x299   :  { %10266 = vmatpush2.bf16.msra.mxu0 %v13629_v42  ;;  %v2402_v39 = vld [vmem:[%s19516_s5 + $0x26a0] sm:$0xff] }
 0x29a   :  { %10267 = vmatprep.subr.bf16.mxu0 %v13622_v47  ;;  %v2262_v3 = vld [vmem:[%s19516_s5 + $0x2240] sm:$0xff]  ;;  %v13598_v38 = vcombine.high %v2398_v19, %v2402_v39  ;;  %v13597_v5 = vcombine.low %v2398_v19, %v2402_v39 }
 0x29b   :  { %10227 = vmatpush2.bf16.msra.mxu1 %v13493_v46  ;;  %v2266_v28 = vld [vmem:[%s19516_s5 + $0x2260] sm:$0xff] }
 0x29c   :  { %10228 = vmatprep.subr.bf16.mxu1 %v13486_v33  ;;  %v2390_v25 = vld [vmem:[%s19516_s5 + $0x2640] sm:$0xff]  ;;  %v13462_v41 = vcombine.high %v2262_v3, %v2266_v28  ;;  %v13461_v46 = vcombine.low %v2262_v3, %v2266_v28 }
 0x29d   :  { %10268 = vmatpush2.bf16.msra.mxu0 %v13621_v36  ;;  %v2394_v17 = vld [vmem:[%s19516_s5 + $0x2660] sm:$0xff] }
 0x29e   :  { %10269 = vmatprep.subr.bf16.mxu0 %v13614_v50  ;;  %v2254_v42 = vld [vmem:[%s19516_s5 + $0x2200] sm:$0xff]  ;;  %v13590_v45 = vcombine.high %v2390_v25, %v2394_v17  ;;  %v13589_v50 = vcombine.low %v2390_v25, %v2394_v17  ;;  %v1343_v17 = vld [vmem:[%s19516_s5 + $0x588] sm:$0xff] }
 0x29f   :  { %10229 = vmatpush2.bf16.msra.mxu1 %v13485_v58  ;;  %v2258_v6 = vld [vmem:[%s19516_s5 + $0x2220] sm:$0xff] }
 0x2a0   :  { %10230 = vmatprep.subr.bf16.mxu1 %v13478_v63  ;;  %v2382_v51 = vld [vmem:[%s19516_s5 + $0x2600] sm:$0xff]  ;;  %v13454_v36 = vcombine.high %v2254_v42, %v2258_v6  ;;  %v13453_v44 = vcombine.low %v2254_v42, %v2258_v6 }
 0x2a1   :  { %10270 = vmatpush2.bf16.msra.mxu0 %v13613_v48  ;;  %v2386_v31 = vld [vmem:[%s19516_s5 + $0x2620] sm:$0xff] }
 0x2a2   :  { %10271 = vmatprep.subr.bf16.mxu0 %v13606_v37  ;;  %v2454_v58 = vld [vmem:[%s19516_s5 + $0x2840] sm:$0xff]  ;;  %v1351_v37 = vld [vmem:[%s19516_s5 + $0x5c8] sm:$0xff] }
 0x2a3   :  { %10231 = vmatpush2.bf16.msra.mxu1 %v13477_v18  ;;  %v2458_v62 = vld [vmem:[%s19516_s5 + $0x2860] sm:$0xff]  ;;  %v1355_v18 = vld [vmem:[%s19516_s5 + $0x5e8] sm:$0xff] }
 0x2a4   :  { %10232 = vmatprep.subr.bf16.mxu1 %v13470_v23  ;;  %v2446_v3 = vld [vmem:[%s19516_s5 + $0x2800] sm:$0xff]  ;;  %v13653_v25 = vcombine.low %v2454_v58, %v2458_v62  ;;  %v12551_v6 = vcombine.low %v1351_v37, %v1355_v18 }
 0x2a5   :  { %10272 = vmatpush2.bf16.msra.mxu0 %v13605_v53  ;;  %v13581_v53 = vcombine.low %v2382_v51, %v2386_v31  ;;  %v2450_v28 = vld [vmem:[%s19516_s5 + $0x2820] sm:$0xff] }
 0x2a6   :  { %10273 = vmatprep.subr.bf16.mxu0 %v13598_v38  ;;  %v12552_v38 = vcombine.high %v1351_v37, %v1355_v18  ;;  %v13646_v42 = vcombine.high %v2446_v3, %v2450_v28  ;;  %v1207_v37 = vld [vmem:[%s19516_s5 + $0x148] sm:$0xff] }
 0x2a7   :  { %v9994_v47 = vpop.f32.mrf.mxu1  ;;  %10233 = vmatpush2.bf16.msra.mxu1 %v13469_v40  ;;  %v1211_v18 = vld [vmem:[%s19516_s5 + $0x168] sm:$0xff] }
 0x2a8   :  { %v9995_v33 = vadd.f32 %v9994_v47, %v16005_v60  ;;  %10234 = vmatprep.subr.bf16.mxu1 %v13462_v41  ;;  %v13582_v60 = vcombine.high %v2382_v51, %v2386_v31  ;;  %v1347_v41 = vld [vmem:[%s19516_s5 + $0x5a8] sm:$0xff]  ;;  %v13645_v51 = vcombine.low %v2446_v3, %v2450_v28  ;;  %v12408_v3 = vcombine.high %v1207_v37, %v1211_v18 }
 0x2a9   :  { %v9996_v16 = vpop.f32.mrf.mxu1  ;;  %v10035_v55 = vpop.f32.mrf.mxu0  ;;  %10274 = vmatpush2.bf16.msra.mxu0 %v13597_v5  ;;  %v16250_v5 = vpack.c.bf16 %v16002_v10, %v16002_v10  ;;  %v1227_v47 = vld [vmem:[%s19516_s5 + $0x1e8] sm:$0xff]  ;;  %v12544_v10 = vcombine.high %v1343_v17, %v1347_v41 }
 0x2aa   :  { %v9997_v8 = vadd.f32 %v9996_v16, %v16016_v61  ;;  %v16226_v63 = vadd.f32 %v10035_v55, %v9995_v33  ;;  %10275 = vmatprep.subr.bf16.mxu0 %v13590_v45  ;;  %v13654_v61 = vcombine.high %v2454_v58, %v2458_v62  ;;  %v1223_v45 = vld [vmem:[%s19516_s5 + $0x1c8] sm:$0xff] }
 0x2ab   :  { %v9998_v48 = vpop.f32.mrf.mxu1  ;;  %v10037_v13 = vpop.f32.mrf.mxu0  ;;  %10235 = vmatpush2.bf16.msra.mxu1 %v13461_v46  ;;  %v16261_v46 = vpack.c.bf16 %v16014_v59, %v16014_v59  ;;  %v1335_v31 = vld [vmem:[%s19516_s5 + $0x548] sm:$0xff]  ;;  %v12543_v59 = vcombine.low %v1343_v17, %v1347_v41  ;;  %v12423_v62 = vcombine.low %v1223_v45, %v1227_v47  ;;  %v12407_v17 = vcombine.low %v1207_v37, %v1211_v18 }
 0x2ac   :  { %v16234_v19 = vadd.f32 %v10037_v13, %v9997_v8  ;;  %10236 = vmatprep.subr.bf16.mxu1 %v13454_v36  ;;  %v1339_v33 = vld [vmem:[%s19516_s5 + $0x568] sm:$0xff]  ;;  %v12424_v36 = vcombine.high %v1223_v45, %v1227_v47 }
 0x2ad   :  { %v9999_v39 = vpop.f32.mrf.mxu1  ;;  %v10039_v23 = vpop.f32.mrf.mxu0  ;;  %10276 = vmatpush2.bf16.msra.mxu0 %v13589_v50  ;;  %v12235_v16 = vld.sshfl [vmem:[#allocation2 + $0x28] sm:$0x3 pattern:$0x76325410]  ;;  %v12536_v58 = vcombine.high %v1335_v31, %v1339_v33 }
 0x2ae   :  { %10277 = vmatprep.subr.bf16.mxu0 %v13582_v60  ;;  %v1215_v55 = vld [vmem:[%s19516_s5 + $0x188] sm:$0xff]  ;;  %v16284_v48 = vpack.c.bf16 %v12235_v16, %v12235_v16 }
 0x2af   :  { %v10040_v40 = vpop.f32.mrf.mxu0  ;;  %10237 = vmatpush2.bf16.msra.mxu1 %v13453_v44  ;;  %v1219_v50 = vld [vmem:[%s19516_s5 + $0x1a8] sm:$0xff]  ;;  %v12535_v44 = vcombine.low %v1335_v31, %v1339_v33 }
 0x2b0   :  { %10300 = vmatprep.subr.bf16.mxu1 %v13654_v61  ;;  %v1327_v8 = vld [vmem:[%s19516_s5 + $0x508] sm:$0xff]  ;;  %v12416_v13 = vcombine.high %v1215_v55, %v1219_v50  ;;  %v12415_v39 = vcombine.low %v1215_v55, %v1219_v50 }
 0x2b1   :  { %10278 = vmatpush2.bf16.msra.mxu0 %v13581_v53  ;;  %v1331_v60 = vld [vmem:[%s19516_s5 + $0x528] sm:$0xff] }
 0x2b2   :  { %10239 = vmatmul.mubr.bf16.vlgmr.msra.gmra.mxu1 %v16250_v5  ;;  %10370 = vmatprep.subr.bf16.mxu0 %v12552_v38  ;;  %v12528_v61 = vcombine.high %v1327_v8, %v1331_v60  ;;  %v1319_v23 = vld [vmem:[%s19516_s5 + $0x4c8] sm:$0xff]  ;;  %v12527_v28 = vcombine.low %v1327_v8, %v1331_v60 }
 0x2b3   :  { %10301 = vmatpush1.bf16.msra.mxu1 %v13653_v25  ;;  %10320 = vmatprep.mubr.bf16.mxu1 %v13906_v1  ;;  %v1323_v53 = vld [vmem:[%s19516_s5 + $0x4e8] sm:$0xff] }
 0x2b4   :  { %10280 = vmatmul.mubr.bf16.vlgmr.msra.gmra.mxu0 %v16261_v46  ;;  %10302 = vmatprep.subr.bf16.mxu1 %v13646_v42  ;;  %v1199_v38 = vld [vmem:[%s19516_s5 + $0x108] sm:$0xff]  ;;  %v12520_v25 = vcombine.high %v1319_v23, %v1323_v53  ;;  %v12519_v45 = vcombine.low %v1319_v23, %v1323_v53 }
 0x2b5   :  { %10371 = vmatpush1.bf16.msra.mxu0 %v12551_v6  ;;  %10402 = vmatprep.mubr.bf16.mxu0 %v14904_v29  ;;  %v1203_v40 = vld [vmem:[%s19516_s5 + $0x128] sm:$0xff] }
 0x2b6   :  { %10372 = vmatprep.subr.bf16.mxu0 %v12544_v10  ;;  %v1311_v41 = vld [vmem:[%s19516_s5 + $0x488] sm:$0xff]  ;;  %v12400_v6 = vcombine.high %v1199_v38, %v1203_v40  ;;  %v12399_v31 = vcombine.low %v1199_v38, %v1203_v40 }
 0x2b7   :  { %10303 = vmatpush1.bf16.msra.mxu1 %v13645_v51  ;;  %v1315_v42 = vld [vmem:[%s19516_s5 + $0x4a8] sm:$0xff] }
 0x2b8   :  { %10329 = vmatprep.subr.bf16.mxu1 %v12424_v36  ;;  %v1191_v47 = vld [vmem:[%s19516_s5 + $0xc8] sm:$0xff]  ;;  %v12512_v51 = vcombine.high %v1311_v41, %v1315_v42  ;;  %v12511_v16 = vcombine.low %v1311_v41, %v1315_v42 }
 0x2b9   :  { %10373 = vmatpush1.bf16.msra.mxu0 %v12543_v59  ;;  %v1195_v10 = vld [vmem:[%s19516_s5 + $0xe8] sm:$0xff] }
 0x2ba   :  { %13661 = vmatmul.mubr.msk.bf16.vlgmr.msra.gmra.mxu1 %vm9874_vm8, %v16284_v48  ;;  %10374 = vmatprep.subr.bf16.mxu0 %v12536_v58  ;;  %v1303_v33 = vld [vmem:[%s19516_s5 + $0x448] sm:$0xff]  ;;  %v12392_v59 = vcombine.high %v1191_v47, %v1195_v10 }
 0x2bb   :  { %10330 = vmatpush1.bf16.msra.mxu1 %v12423_v62  ;;  %10361 = vmatprep.mubr.bf16.mxu1 %v14886_v22  ;;  %v1307_v36 = vld [vmem:[%s19516_s5 + $0x468] sm:$0xff]  ;;  %v12391_v62 = vcombine.low %v1191_v47, %v1195_v10 }
 0x2bc   :  { %10331 = vmatprep.subr.bf16.mxu1 %v12416_v13  ;;  %v1183_v55 = vld [vmem:[%s19516_s5 + $0x88] sm:$0xff]  ;;  %v12504_v58 = vcombine.high %v1303_v33, %v1307_v36 }
 0x2bd   :  { %10375 = vmatpush1.bf16.msra.mxu0 %v12535_v44  ;;  %v1187_v50 = vld [vmem:[%s19516_s5 + $0xa8] sm:$0xff]  ;;  %v12503_v44 = vcombine.low %v1303_v33, %v1307_v36 }
 0x2be   :  { %10376 = vmatprep.subr.bf16.mxu0 %v12528_v61  ;;  %v1295_v8 = vld [vmem:[%s19516_s5 + $0x408] sm:$0xff]  ;;  %v12384_v13 = vcombine.high %v1183_v55, %v1187_v50 }
 0x2bf   :  { %10332 = vmatpush1.bf16.msra.mxu1 %v12415_v39  ;;  %v1299_v60 = vld [vmem:[%s19516_s5 + $0x428] sm:$0xff]  ;;  %v12383_v39 = vcombine.low %v1183_v55, %v1187_v50 }
 0x2c0   :  { %10333 = vmatprep.subr.bf16.mxu1 %v12408_v3  ;;  %v1175_v37 = vld [vmem:[%s19516_s5 + $0x48] sm:$0xff]  ;;  %v12496_v61 = vcombine.high %v1295_v8, %v1299_v60 }
 0x2c1   :  { %10377 = vmatpush1.bf16.msra.mxu0 %v12527_v28  ;;  %v1179_v18 = vld [vmem:[%s19516_s5 + $0x68] sm:$0xff]  ;;  %v12495_v28 = vcombine.low %v1295_v8, %v1299_v60 }
 0x2c2   :  { %10378 = vmatprep.subr.bf16.mxu0 %v12520_v25  ;;  %v1415_v23 = vld [vmem:[%s19516_s5 + $0x7c8] sm:$0xff]  ;;  %v12376_v3 = vcombine.high %v1175_v37, %v1179_v18 }
 0x2c3   :  { %10334 = vmatpush1.bf16.msra.mxu1 %v12407_v17  ;;  %v1419_v53 = vld [vmem:[%s19516_s5 + $0x7e8] sm:$0xff]  ;;  %v12375_v17 = vcombine.low %v1175_v37, %v1179_v18 }
 0x2c4   :  { %10335 = vmatprep.subr.bf16.mxu1 %v12400_v6  ;;  %v1167_v38 = vld [vmem:[%s19516_s5 + $0x8] sm:$0xff]  ;;  %v12616_v25 = vcombine.high %v1415_v23, %v1419_v53 }
 0x2c5   :  { %10379 = vmatpush1.bf16.msra.mxu0 %v12519_v45  ;;  %v1171_v40 = vld [vmem:[%s19516_s5 + $0x28] sm:$0xff]  ;;  %v12615_v45 = vcombine.low %v1415_v23, %v1419_v53 }
 0x2c6   :  { %10380 = vmatprep.subr.bf16.mxu0 %v12512_v51  ;;  %v1407_v41 = vld [vmem:[%s19516_s5 + $0x788] sm:$0xff]  ;;  %v12368_v6 = vcombine.high %v1167_v38, %v1171_v40 }
 0x2c7   :  { %10336 = vmatpush1.bf16.msra.mxu1 %v12399_v31  ;;  %v1411_v42 = vld [vmem:[%s19516_s5 + $0x7a8] sm:$0xff]  ;;  %v12367_v31 = vcombine.low %v1167_v38, %v1171_v40 }
 0x2c8   :  { %10337 = vmatprep.subr.bf16.mxu1 %v12392_v59  ;;  %v1287_v47 = vld [vmem:[%s19516_s5 + $0x3c8] sm:$0xff]  ;;  %v12608_v51 = vcombine.high %v1407_v41, %v1411_v42 }
 0x2c9   :  { %10381 = vmatpush1.bf16.msra.mxu0 %v12511_v16  ;;  %v1291_v10 = vld [vmem:[%s19516_s5 + $0x3e8] sm:$0xff]  ;;  %v12607_v16 = vcombine.low %v1407_v41, %v1411_v42 }
 0x2ca   :  { %10382 = vmatprep.subr.bf16.mxu0 %v12504_v58  ;;  %v1399_v33 = vld [vmem:[%s19516_s5 + $0x748] sm:$0xff]  ;;  %v12488_v59 = vcombine.high %v1287_v47, %v1291_v10 }
 0x2cb   :  { %10338 = vmatpush1.bf16.msra.mxu1 %v12391_v62  ;;  %v1403_v36 = vld [vmem:[%s19516_s5 + $0x768] sm:$0xff]  ;;  %v12487_v62 = vcombine.low %v1287_v47, %v1291_v10 }
 0x2cc   :  { %10339 = vmatprep.subr.bf16.mxu1 %v12384_v13  ;;  %v1279_v55 = vld [vmem:[%s19516_s5 + $0x388] sm:$0xff]  ;;  %v12600_v58 = vcombine.high %v1399_v33, %v1403_v36 }
 0x2cd   :  { %10383 = vmatpush1.bf16.msra.mxu0 %v12503_v44  ;;  %v1283_v50 = vld [vmem:[%s19516_s5 + $0x3a8] sm:$0xff]  ;;  %v12599_v44 = vcombine.low %v1399_v33, %v1403_v36 }
 0x2ce   :  { %10384 = vmatprep.subr.bf16.mxu0 %v12496_v61  ;;  %v1391_v8 = vld [vmem:[%s19516_s5 + $0x708] sm:$0xff]  ;;  %v12480_v13 = vcombine.high %v1279_v55, %v1283_v50 }
 0x2cf   :  { %10340 = vmatpush1.bf16.msra.mxu1 %v12383_v39  ;;  %v1395_v60 = vld [vmem:[%s19516_s5 + $0x728] sm:$0xff]  ;;  %v12479_v39 = vcombine.low %v1279_v55, %v1283_v50 }
 0x2d0   :  { %10341 = vmatprep.subr.bf16.mxu1 %v12376_v3  ;;  %v1271_v37 = vld [vmem:[%s19516_s5 + $0x348] sm:$0xff]  ;;  %v12592_v61 = vcombine.high %v1391_v8, %v1395_v60 }
 0x2d1   :  { %10385 = vmatpush1.bf16.msra.mxu0 %v12495_v28  ;;  %v1275_v18 = vld [vmem:[%s19516_s5 + $0x368] sm:$0xff]  ;;  %v12591_v28 = vcombine.low %v1391_v8, %v1395_v60 }
 0x2d2   :  { %10386 = vmatprep.subr.bf16.mxu0 %v12616_v25  ;;  %v1383_v23 = vld [vmem:[%s19516_s5 + $0x6c8] sm:$0xff]  ;;  %v12472_v3 = vcombine.high %v1271_v37, %v1275_v18 }
 0x2d3   :  { %10342 = vmatpush1.bf16.msra.mxu1 %v12375_v17  ;;  %v1387_v53 = vld [vmem:[%s19516_s5 + $0x6e8] sm:$0xff]  ;;  %v12471_v17 = vcombine.low %v1271_v37, %v1275_v18 }
 0x2d4   :  { %10343 = vmatprep.subr.bf16.mxu1 %v12368_v6  ;;  %v1263_v38 = vld [vmem:[%s19516_s5 + $0x308] sm:$0xff]  ;;  %v12584_v25 = vcombine.high %v1383_v23, %v1387_v53 }
 0x2d5   :  { %10387 = vmatpush2.bf16.msra.mxu0 %v12615_v45  ;;  %v1267_v40 = vld [vmem:[%s19516_s5 + $0x328] sm:$0xff]  ;;  %v12583_v45 = vcombine.low %v1383_v23, %v1387_v53 }
 0x2d6   :  { %10388 = vmatprep.subr.bf16.mxu0 %v12608_v51  ;;  %v1375_v41 = vld [vmem:[%s19516_s5 + $0x688] sm:$0xff]  ;;  %v12464_v6 = vcombine.high %v1263_v38, %v1267_v40 }
 0x2d7   :  { %10344 = vmatpush1.bf16.msra.mxu1 %v12367_v31  ;;  %v1379_v42 = vld [vmem:[%s19516_s5 + $0x6a8] sm:$0xff]  ;;  %v12463_v31 = vcombine.low %v1263_v38, %v1267_v40 }
 0x2d8   :  { %10345 = vmatprep.subr.bf16.mxu1 %v12488_v59  ;;  %v1255_v47 = vld [vmem:[%s19516_s5 + $0x2c8] sm:$0xff]  ;;  %v12576_v51 = vcombine.high %v1375_v41, %v1379_v42 }
 0x2d9   :  { %10389 = vmatpush2.bf16.msra.mxu0 %v12607_v16  ;;  %v1259_v10 = vld [vmem:[%s19516_s5 + $0x2e8] sm:$0xff]  ;;  %v12575_v16 = vcombine.low %v1375_v41, %v1379_v42 }
 0x2da   :  { %10390 = vmatprep.subr.bf16.mxu0 %v12600_v58  ;;  %v1367_v33 = vld [vmem:[%s19516_s5 + $0x648] sm:$0xff]  ;;  %v12456_v59 = vcombine.high %v1255_v47, %v1259_v10 }
 0x2db   :  { %10346 = vmatpush2.bf16.msra.mxu1 %v12487_v62  ;;  %v1371_v36 = vld [vmem:[%s19516_s5 + $0x668] sm:$0xff]  ;;  %v12455_v62 = vcombine.low %v1255_v47, %v1259_v10 }
 0x2dc   :  { %10347 = vmatprep.subr.bf16.mxu1 %v12480_v13  ;;  %v1247_v55 = vld [vmem:[%s19516_s5 + $0x288] sm:$0xff]  ;;  %v12568_v58 = vcombine.high %v1367_v33, %v1371_v36 }
 0x2dd   :  { %10391 = vmatpush2.bf16.msra.mxu0 %v12599_v44  ;;  %v1251_v50 = vld [vmem:[%s19516_s5 + $0x2a8] sm:$0xff]  ;;  %v12567_v44 = vcombine.low %v1367_v33, %v1371_v36 }
 0x2de   :  { %10392 = vmatprep.subr.bf16.mxu0 %v12592_v61  ;;  %v1359_v8 = vld [vmem:[%s19516_s5 + $0x608] sm:$0xff]  ;;  %v12448_v13 = vcombine.high %v1247_v55, %v1251_v50 }
 0x2df   :  { %10348 = vmatpush2.bf16.msra.mxu1 %v12479_v39  ;;  %v1363_v60 = vld [vmem:[%s19516_s5 + $0x628] sm:$0xff]  ;;  %v12447_v39 = vcombine.low %v1247_v55, %v1251_v50 }
 0x2e0   :  { %10349 = vmatprep.subr.bf16.mxu1 %v12472_v3  ;;  %v1239_v37 = vld [vmem:[%s19516_s5 + $0x248] sm:$0xff]  ;;  %v12560_v61 = vcombine.high %v1359_v8, %v1363_v60 }
 0x2e1   :  { %10393 = vmatpush2.bf16.msra.mxu0 %v12591_v28  ;;  %v1243_v18 = vld [vmem:[%s19516_s5 + $0x268] sm:$0xff]  ;;  %v12559_v28 = vcombine.low %v1359_v8, %v1363_v60 }
 0x2e2   :  { %10394 = vmatprep.subr.bf16.mxu0 %v12584_v25  ;;  %v1607_v23 = vld [vmem:[%s19516_s5 + $0xdc8] sm:$0xff]  ;;  %v12440_v3 = vcombine.high %v1239_v37, %v1243_v18 }
 0x2e3   :  { %10350 = vmatpush2.bf16.msra.mxu1 %v12471_v17  ;;  %v1611_v53 = vld [vmem:[%s19516_s5 + $0xde8] sm:$0xff]  ;;  %v12439_v17 = vcombine.low %v1239_v37, %v1243_v18 }
 0x2e4   :  { %10351 = vmatprep.subr.bf16.mxu1 %v12464_v6  ;;  %v1231_v38 = vld [vmem:[%s19516_s5 + $0x208] sm:$0xff]  ;;  %v12808_v25 = vcombine.high %v1607_v23, %v1611_v53 }
 0x2e5   :  { %10395 = vmatpush2.bf16.msra.mxu0 %v12583_v45  ;;  %v1235_v40 = vld [vmem:[%s19516_s5 + $0x228] sm:$0xff]  ;;  %v12807_v45 = vcombine.low %v1607_v23, %v1611_v53 }
 0x2e6   :  { %10396 = vmatprep.subr.bf16.mxu0 %v12576_v51  ;;  %v1599_v41 = vld [vmem:[%s19516_s5 + $0xd88] sm:$0xff]  ;;  %v12432_v6 = vcombine.high %v1231_v38, %v1235_v40  ;;  %v12431_v36 = vcombine.low %v1231_v38, %v1235_v40 }
 0x2e7   :  { %10352 = vmatpush2.bf16.msra.mxu1 %v12463_v31  ;;  %v1603_v42 = vld [vmem:[%s19516_s5 + $0xda8] sm:$0xff] }
 0x2e8   :  { %10353 = vmatprep.subr.bf16.mxu1 %v12456_v59  ;;  %v1479_v47 = vld [vmem:[%s19516_s5 + $0x9c8] sm:$0xff]  ;;  %v12800_v31 = vcombine.high %v1599_v41, %v1603_v42 }
 0x2e9   :  { %10397 = vmatpush2.bf16.msra.mxu0 %v12575_v16  ;;  %v1483_v10 = vld [vmem:[%s19516_s5 + $0x9e8] sm:$0xff] }
 0x2ea   :  { %10398 = vmatprep.subr.bf16.mxu0 %v12568_v58  ;;  %v1591_v59 = vld [vmem:[%s19516_s5 + $0xd48] sm:$0xff]  ;;  %v12680_v58 = vcombine.high %v1479_v47, %v1483_v10 }
 0x2eb   :  { %10354 = vmatpush2.bf16.msra.mxu1 %v12455_v62  ;;  %v1595_v16 = vld [vmem:[%s19516_s5 + $0xd68] sm:$0xff] }
 0x2ec   :  { %10355 = vmatprep.subr.bf16.mxu1 %v12448_v13  ;;  %v1471_v60 = vld [vmem:[%s19516_s5 + $0x988] sm:$0xff]  ;;  %v12792_v18 = vcombine.high %v1591_v59, %v1595_v16  ;;  %v12791_v38 = vcombine.low %v1591_v59, %v1595_v16 }
 0x2ed   :  { %10399 = vmatpush2.bf16.msra.mxu0 %v12567_v44  ;;  %v1475_v13 = vld [vmem:[%s19516_s5 + $0x9a8] sm:$0xff] }
 0x2ee   :  { %10400 = vmatprep.subr.bf16.mxu0 %v12560_v61  ;;  %v1587_v23 = vld [vmem:[%s19516_s5 + $0xd28] sm:$0xff] }
 0x2ef   :  { %10356 = vmatpush2.bf16.msra.mxu1 %v12447_v39  ;;  %v1583_v39 = vld [vmem:[%s19516_s5 + $0xd08] sm:$0xff] }
 0x2f0   :  { %10357 = vmatprep.subr.bf16.mxu1 %v12440_v3  ;;  %v1463_v40 = vld [vmem:[%s19516_s5 + $0x948] sm:$0xff] }
 0x2f1   :  { %10401 = vmatpush2.bf16.msra.mxu0 %v12559_v28  ;;  %v12672_v28 = vcombine.high %v1471_v60, %v1475_v13  ;;  %v1567_v59 = vld [vmem:[%s19516_s5 + $0xc88] sm:$0xff] }
 0x2f2   :  { %v10076_v51 = vpop.f32.mrf.mxu1  ;;  %10452 = vmatprep.subr.bf16.mxu0 %v12808_v25  ;;  %v1467_v25 = vld [vmem:[%s19516_s5 + $0x968] sm:$0xff] }
 0x2f3   :  { %v10077_v33 = vadd.f32 %v10076_v51, %v16226_v63  ;;  %10358 = vmatpush2.bf16.msra.mxu1 %v12439_v17  ;;  %v12799_v63 = vcombine.low %v1599_v41, %v1603_v42  ;;  %v12784_v41 = vcombine.high %v1583_v39, %v1587_v23  ;;  %v12671_v42 = vcombine.low %v1471_v60, %v1475_v13  ;;  %v1455_v51 = vld [vmem:[%s19516_s5 + $0x908] sm:$0xff] }
 0x2f4   :  { %10403 = vmatmul.mubr.bf16.vlgmr.msra.gmra.mxu0 %v14917_v12  ;;  %v10078_v55 = vpop.f32.mrf.mxu1  ;;  %v10117_v50 = vpop.f32.mrf.mxu0  ;;  %10359 = vmatprep.subr.bf16.mxu1 %v12432_v6  ;;  %v1575_v6 = vld [vmem:[%s19516_s5 + $0xcc8] sm:$0xff] }
 0x2f5   :  { %v10079_v62 = vadd.f32 %v10078_v55, %v16234_v19  ;;  %v16472_v8 = vadd.f32 %v10117_v50, %v10077_v33  ;;  %10453 = vmatpush1.bf16.msra.mxu0 %v12807_v45  ;;  %10484 = vmatprep.mubr.bf16.mxu0 %v15270_v14  ;;  %v12679_v19 = vcombine.low %v1479_v47, %v1483_v10  ;;  %v1579_v45 = vld [vmem:[%s19516_s5 + $0xce8] sm:$0xff] }
 0x2f6   :  { %v10080_v44 = vpop.f32.mrf.mxu1  ;;  %v10119_v37 = vpop.f32.mrf.mxu0  ;;  %10454 = vmatprep.subr.bf16.mxu0 %v12800_v31  ;;  %v12664_v47 = vcombine.high %v1463_v40, %v1467_v25  ;;  %v12783_v10 = vcombine.low %v1583_v39, %v1587_v23  ;;  %v1459_v31 = vld [vmem:[%s19516_s5 + $0x928] sm:$0xff]  ;;  %v12776_v33 = vcombine.high %v1575_v6, %v1579_v45  ;;  %v12775_v50 = vcombine.low %v1575_v6, %v1579_v45 }
 0x2f7   :  { %v16481_v61 = vadd.f32 %v10119_v37, %v10079_v62  ;;  %10360 = vmatpush2.bf16.msra.mxu1 %v12431_v36  ;;  %v12663_v36 = vcombine.low %v1463_v40, %v1467_v25  ;;  %v1571_v16 = vld [vmem:[%s19516_s5 + $0xca8] sm:$0xff]  ;;  %v12656_v55 = vcombine.high %v1455_v51, %v1459_v31  ;;  %v12655_v60 = vcombine.low %v1455_v51, %v1459_v31 }
 0x2f8   :  { %v10081_v53 = vpop.f32.mrf.mxu1  ;;  %v10121_v3 = vpop.f32.mrf.mxu0  ;;  %10411 = vmatprep.subr.bf16.mxu1 %v12680_v58  ;;  %v1447_v58 = vld [vmem:[%s19516_s5 + $0x8c8] sm:$0xff] }
 0x2f9   :  { %10455 = vmatpush1.bf16.msra.mxu0 %v12799_v63  ;;  %v1451_v62 = vld [vmem:[%s19516_s5 + $0x8e8] sm:$0xff]  ;;  %v12768_v63 = vcombine.high %v1567_v59, %v1571_v16 }
 0x2fa   :  { %10362 = vmatmul.mubr.bf16.vlgmr.msra.gmra.mxu1 %v14901_v27  ;;  %v10122_v17 = vpop.f32.mrf.mxu0  ;;  %10456 = vmatprep.subr.bf16.mxu0 %v12792_v18  ;;  %v1559_v13 = vld [vmem:[%s19516_s5 + $0xc48] sm:$0xff]  ;;  %v12648_v37 = vcombine.high %v1447_v58, %v1451_v62  ;;  %v12767_v18 = vcombine.low %v1567_v59, %v1571_v16  ;;  %v12647_v53 = vcombine.low %v1447_v58, %v1451_v62 }
 0x2fb   :  { %10412 = vmatpush1.bf16.msra.mxu1 %v12679_v19  ;;  %10443 = vmatprep.mubr.bf16.mxu1 %v15254_v54  ;;  %v1563_v44 = vld [vmem:[%s19516_s5 + $0xc68] sm:$0xff] }
 0x2fc   :  { %10413 = vmatprep.subr.bf16.mxu1 %v12672_v28  ;;  %v1439_v19 = vld [vmem:[%s19516_s5 + $0x888] sm:$0xff]  ;;  %v12760_v23 = vcombine.high %v1559_v13, %v1563_v44  ;;  %v12759_v40 = vcombine.low %v1559_v13, %v1563_v44 }
 0x2fd   :  { %10457 = vmatpush1.bf16.msra.mxu0 %v12791_v38  ;;  %v1443_v39 = vld [vmem:[%s19516_s5 + $0x8a8] sm:$0xff] }
 0x2fe   :  { %10458 = vmatprep.subr.bf16.mxu0 %v12784_v41  ;;  %v1551_v3 = vld [vmem:[%s19516_s5 + $0xc08] sm:$0xff]  ;;  %v12640_v38 = vcombine.high %v1439_v19, %v1443_v39 }
 0x2ff   :  { %10414 = vmatpush1.bf16.msra.mxu1 %v12671_v42  ;;  %v1555_v28 = vld [vmem:[%s19516_s5 + $0xc28] sm:$0xff]  ;;  %v12639_v42 = vcombine.low %v1439_v19, %v1443_v39 }
 0x300   :  { %10415 = vmatprep.subr.bf16.mxu1 %v12664_v47  ;;  %v1431_v25 = vld [vmem:[%s19516_s5 + $0x848] sm:$0xff]  ;;  %v12752_v41 = vcombine.high %v1551_v3, %v1555_v28 }
 0x301   :  { %10459 = vmatpush1.bf16.msra.mxu0 %v12783_v10  ;;  %v1435_v17 = vld [vmem:[%s19516_s5 + $0x868] sm:$0xff]  ;;  %v12751_v10 = vcombine.low %v1551_v3, %v1555_v28 }
 0x302   :  { %10460 = vmatprep.subr.bf16.mxu0 %v12776_v33  ;;  %v1671_v6 = vld [vmem:[%s19516_s5 + $0xfc8] sm:$0xff]  ;;  %v12632_v47 = vcombine.high %v1431_v25, %v1435_v17 }
 0x303   :  { %10416 = vmatpush1.bf16.msra.mxu1 %v12663_v36  ;;  %v1675_v45 = vld [vmem:[%s19516_s5 + $0xfe8] sm:$0xff]  ;;  %v12631_v36 = vcombine.low %v1431_v25, %v1435_v17 }
 0x304   :  { %10417 = vmatprep.subr.bf16.mxu1 %v12656_v55  ;;  %v1423_v51 = vld [vmem:[%s19516_s5 + $0x808] sm:$0xff]  ;;  %v12872_v33 = vcombine.high %v1671_v6, %v1675_v45 }
 0x305   :  { %10461 = vmatpush1.bf16.msra.mxu0 %v12775_v50  ;;  %v1427_v31 = vld [vmem:[%s19516_s5 + $0x828] sm:$0xff]  ;;  %v12871_v50 = vcombine.low %v1671_v6, %v1675_v45 }
 0x306   :  { %10462 = vmatprep.subr.bf16.mxu0 %v12768_v63  ;;  %v1663_v59 = vld [vmem:[%s19516_s5 + $0xf88] sm:$0xff]  ;;  %v12624_v55 = vcombine.high %v1423_v51, %v1427_v31 }
 0x307   :  { %10418 = vmatpush1.bf16.msra.mxu1 %v12655_v60  ;;  %v1667_v16 = vld [vmem:[%s19516_s5 + $0xfa8] sm:$0xff]  ;;  %v12623_v60 = vcombine.low %v1423_v51, %v1427_v31 }
 0x308   :  { %10419 = vmatprep.subr.bf16.mxu1 %v12648_v37  ;;  %v1543_v58 = vld [vmem:[%s19516_s5 + $0xbc8] sm:$0xff]  ;;  %v12864_v63 = vcombine.high %v1663_v59, %v1667_v16 }
 0x309   :  { %10463 = vmatpush1.bf16.msra.mxu0 %v12767_v18  ;;  %v1547_v62 = vld [vmem:[%s19516_s5 + $0xbe8] sm:$0xff]  ;;  %v12863_v18 = vcombine.low %v1663_v59, %v1667_v16 }
 0x30a   :  { %10464 = vmatprep.subr.bf16.mxu0 %v12760_v23  ;;  %v1655_v13 = vld [vmem:[%s19516_s5 + $0xf48] sm:$0xff]  ;;  %v12744_v37 = vcombine.high %v1543_v58, %v1547_v62 }
 0x30b   :  { %10420 = vmatpush1.bf16.msra.mxu1 %v12647_v53  ;;  %v1659_v44 = vld [vmem:[%s19516_s5 + $0xf68] sm:$0xff]  ;;  %v12743_v53 = vcombine.low %v1543_v58, %v1547_v62 }
 0x30c   :  { %10421 = vmatprep.subr.bf16.mxu1 %v12640_v38  ;;  %v1535_v19 = vld [vmem:[%s19516_s5 + $0xb88] sm:$0xff]  ;;  %v12856_v23 = vcombine.high %v1655_v13, %v1659_v44 }
 0x30d   :  { %10465 = vmatpush1.bf16.msra.mxu0 %v12759_v40  ;;  %v1539_v39 = vld [vmem:[%s19516_s5 + $0xba8] sm:$0xff]  ;;  %v12855_v40 = vcombine.low %v1655_v13, %v1659_v44 }
 0x30e   :  { %10466 = vmatprep.subr.bf16.mxu0 %v12752_v41  ;;  %v1647_v3 = vld [vmem:[%s19516_s5 + $0xf08] sm:$0xff]  ;;  %v12736_v38 = vcombine.high %v1535_v19, %v1539_v39 }
 0x30f   :  { %10422 = vmatpush1.bf16.msra.mxu1 %v12639_v42  ;;  %v1651_v28 = vld [vmem:[%s19516_s5 + $0xf28] sm:$0xff]  ;;  %v12735_v42 = vcombine.low %v1535_v19, %v1539_v39 }
 0x310   :  { %10423 = vmatprep.subr.bf16.mxu1 %v12632_v47  ;;  %v1527_v25 = vld [vmem:[%s19516_s5 + $0xb48] sm:$0xff]  ;;  %v12848_v41 = vcombine.high %v1647_v3, %v1651_v28 }
 0x311   :  { %10467 = vmatpush1.bf16.msra.mxu0 %v12751_v10  ;;  %v1531_v17 = vld [vmem:[%s19516_s5 + $0xb68] sm:$0xff]  ;;  %v12847_v10 = vcombine.low %v1647_v3, %v1651_v28 }
 0x312   :  { %10468 = vmatprep.subr.bf16.mxu0 %v12872_v33  ;;  %v1639_v6 = vld [vmem:[%s19516_s5 + $0xec8] sm:$0xff]  ;;  %v12728_v47 = vcombine.high %v1527_v25, %v1531_v17 }
 0x313   :  { %10424 = vmatpush1.bf16.msra.mxu1 %v12631_v36  ;;  %v1643_v45 = vld [vmem:[%s19516_s5 + $0xee8] sm:$0xff]  ;;  %v12727_v36 = vcombine.low %v1527_v25, %v1531_v17 }
 0x314   :  { %10425 = vmatprep.subr.bf16.mxu1 %v12624_v55  ;;  %v1519_v51 = vld [vmem:[%s19516_s5 + $0xb08] sm:$0xff]  ;;  %v12840_v33 = vcombine.high %v1639_v6, %v1643_v45 }
 0x315   :  { %10469 = vmatpush2.bf16.msra.mxu0 %v12871_v50  ;;  %v1523_v31 = vld [vmem:[%s19516_s5 + $0xb28] sm:$0xff]  ;;  %v12839_v50 = vcombine.low %v1639_v6, %v1643_v45 }
 0x316   :  { %10470 = vmatprep.subr.bf16.mxu0 %v12864_v63  ;;  %v1631_v59 = vld [vmem:[%s19516_s5 + $0xe88] sm:$0xff]  ;;  %v12720_v55 = vcombine.high %v1519_v51, %v1523_v31 }
 0x317   :  { %10426 = vmatpush1.bf16.msra.mxu1 %v12623_v60  ;;  %v1635_v16 = vld [vmem:[%s19516_s5 + $0xea8] sm:$0xff]  ;;  %v12719_v60 = vcombine.low %v1519_v51, %v1523_v31 }
 0x318   :  { %10427 = vmatprep.subr.bf16.mxu1 %v12744_v37  ;;  %v1511_v58 = vld [vmem:[%s19516_s5 + $0xac8] sm:$0xff]  ;;  %v12832_v63 = vcombine.high %v1631_v59, %v1635_v16 }
 0x319   :  { %10471 = vmatpush2.bf16.msra.mxu0 %v12863_v18  ;;  %v1515_v62 = vld [vmem:[%s19516_s5 + $0xae8] sm:$0xff]  ;;  %v12831_v18 = vcombine.low %v1631_v59, %v1635_v16 }
 0x31a   :  { %10472 = vmatprep.subr.bf16.mxu0 %v12856_v23  ;;  %v1623_v13 = vld [vmem:[%s19516_s5 + $0xe48] sm:$0xff]  ;;  %v12712_v37 = vcombine.high %v1511_v58, %v1515_v62 }
 0x31b   :  { %10428 = vmatpush2.bf16.msra.mxu1 %v12743_v53  ;;  %v1627_v44 = vld [vmem:[%s19516_s5 + $0xe68] sm:$0xff]  ;;  %v12711_v53 = vcombine.low %v1511_v58, %v1515_v62 }
 0x31c   :  { %10429 = vmatprep.subr.bf16.mxu1 %v12736_v38  ;;  %v1503_v19 = vld [vmem:[%s19516_s5 + $0xa88] sm:$0xff]  ;;  %v12824_v23 = vcombine.high %v1623_v13, %v1627_v44 }
 0x31d   :  { %10473 = vmatpush2.bf16.msra.mxu0 %v12855_v40  ;;  %v1507_v39 = vld [vmem:[%s19516_s5 + $0xaa8] sm:$0xff]  ;;  %v12823_v40 = vcombine.low %v1623_v13, %v1627_v44 }
 0x31e   :  { %10474 = vmatprep.subr.bf16.mxu0 %v12848_v41  ;;  %v1615_v3 = vld [vmem:[%s19516_s5 + $0xe08] sm:$0xff]  ;;  %v12704_v38 = vcombine.high %v1503_v19, %v1507_v39 }
 0x31f   :  { %10430 = vmatpush2.bf16.msra.mxu1 %v12735_v42  ;;  %v1619_v28 = vld [vmem:[%s19516_s5 + $0xe28] sm:$0xff]  ;;  %v12703_v42 = vcombine.low %v1503_v19, %v1507_v39 }
 0x320   :  { %10431 = vmatprep.subr.bf16.mxu1 %v12728_v47  ;;  %v1495_v25 = vld [vmem:[%s19516_s5 + $0xa48] sm:$0xff]  ;;  %v12816_v41 = vcombine.high %v1615_v3, %v1619_v28 }
 0x321   :  { %10475 = vmatpush2.bf16.msra.mxu0 %v12847_v10  ;;  %v1499_v17 = vld [vmem:[%s19516_s5 + $0xa68] sm:$0xff]  ;;  %v12815_v10 = vcombine.low %v1615_v3, %v1619_v28 }
 0x322   :  { %10476 = vmatprep.subr.bf16.mxu0 %v12840_v33  ;;  %v1863_v6 = vld [vmem:[%s19516_s5 + $0x15c8] sm:$0xff]  ;;  %v12696_v47 = vcombine.high %v1495_v25, %v1499_v17 }
 0x323   :  { %10432 = vmatpush2.bf16.msra.mxu1 %v12727_v36  ;;  %v1867_v45 = vld [vmem:[%s19516_s5 + $0x15e8] sm:$0xff]  ;;  %v12695_v36 = vcombine.low %v1495_v25, %v1499_v17 }
 0x324   :  { %10433 = vmatprep.subr.bf16.mxu1 %v12720_v55  ;;  %v1487_v51 = vld [vmem:[%s19516_s5 + $0xa08] sm:$0xff]  ;;  %v13064_v33 = vcombine.high %v1863_v6, %v1867_v45 }
 0x325   :  { %10477 = vmatpush2.bf16.msra.mxu0 %v12839_v50  ;;  %v1491_v31 = vld [vmem:[%s19516_s5 + $0xa28] sm:$0xff]  ;;  %v13063_v50 = vcombine.low %v1863_v6, %v1867_v45 }
 0x326   :  { %10478 = vmatprep.subr.bf16.mxu0 %v12832_v63  ;;  %v1855_v59 = vld [vmem:[%s19516_s5 + $0x1588] sm:$0xff]  ;;  %v12688_v55 = vcombine.high %v1487_v51, %v1491_v31  ;;  %v12687_v44 = vcombine.low %v1487_v51, %v1491_v31 }
 0x327   :  { %10434 = vmatpush2.bf16.msra.mxu1 %v12719_v60  ;;  %v1859_v16 = vld [vmem:[%s19516_s5 + $0x15a8] sm:$0xff] }
 0x328   :  { %10435 = vmatprep.subr.bf16.mxu1 %v12712_v37  ;;  %v1735_v58 = vld [vmem:[%s19516_s5 + $0x11c8] sm:$0xff]  ;;  %v13056_v60 = vcombine.high %v1855_v59, %v1859_v16 }
 0x329   :  { %10479 = vmatpush2.bf16.msra.mxu0 %v12831_v18  ;;  %v1739_v62 = vld [vmem:[%s19516_s5 + $0x11e8] sm:$0xff] }
 0x32a   :  { %10480 = vmatprep.subr.bf16.mxu0 %v12824_v23  ;;  %v1847_v37 = vld [vmem:[%s19516_s5 + $0x1548] sm:$0xff]  ;;  %v12936_v23 = vcombine.high %v1735_v58, %v1739_v62 }
 0x32b   :  { %10436 = vmatpush2.bf16.msra.mxu1 %v12711_v53  ;;  %v1851_v18 = vld [vmem:[%s19516_s5 + $0x1568] sm:$0xff] }
 0x32c   :  { %10437 = vmatprep.subr.bf16.mxu1 %v12704_v38  ;;  %v1727_v28 = vld [vmem:[%s19516_s5 + $0x1188] sm:$0xff]  ;;  %v13048_v17 = vcombine.high %v1847_v37, %v1851_v18  ;;  %v13047_v51 = vcombine.low %v1847_v37, %v1851_v18 }
 0x32d   :  { %10481 = vmatpush2.bf16.msra.mxu0 %v12823_v40  ;;  %v1731_v38 = vld [vmem:[%s19516_s5 + $0x11a8] sm:$0xff] }
 0x32e   :  { %10482 = vmatprep.subr.bf16.mxu0 %v12816_v41  ;;  %v1843_v6 = vld [vmem:[%s19516_s5 + $0x1528] sm:$0xff] }
 0x32f   :  { %10438 = vmatpush2.bf16.msra.mxu1 %v12703_v42  ;;  %v1839_v42 = vld [vmem:[%s19516_s5 + $0x1508] sm:$0xff] }
 0x330   :  { %10439 = vmatprep.subr.bf16.mxu1 %v12696_v47  ;;  %v1719_v31 = vld [vmem:[%s19516_s5 + $0x1148] sm:$0xff] }
 0x331   :  { %10483 = vmatpush2.bf16.msra.mxu0 %v12815_v10  ;;  %v12928_v10 = vcombine.high %v1727_v28, %v1731_v38  ;;  %v1823_v37 = vld [vmem:[%s19516_s5 + $0x1488] sm:$0xff] }
 0x332   :  { %v10158_v63 = vpop.f32.mrf.mxu1  ;;  %10534 = vmatprep.subr.bf16.mxu0 %v13064_v33  ;;  %v1723_v33 = vld [vmem:[%s19516_s5 + $0x1168] sm:$0xff] }
 0x333   :  { %v10159_v13 = vadd.f32 %v10158_v63, %v16472_v8  ;;  %10440 = vmatpush2.bf16.msra.mxu1 %v12695_v36  ;;  %v13055_v8 = vcombine.low %v1855_v59, %v1859_v16  ;;  %v13040_v59 = vcombine.high %v1839_v42, %v1843_v6  ;;  %v12927_v16 = vcombine.low %v1727_v28, %v1731_v38  ;;  %v1711_v63 = vld [vmem:[%s19516_s5 + $0x1108] sm:$0xff] }
 0x334   :  { %v10160_v19 = vpop.f32.mrf.mxu1  ;;  %v10199_v39 = vpop.f32.mrf.mxu0  ;;  %10485 = vmatmul.mubr.bf16.vlgmr.msra.gmra.mxu0 %v15425_v15  ;;  %10441 = vmatprep.subr.bf16.mxu1 %v12688_v55  ;;  %v1831_v55 = vld [vmem:[%s19516_s5 + $0x14c8] sm:$0xff] }
 0x335   :  { %v10161_v53 = vadd.f32 %v10160_v19, %v16481_v61  ;;  %v16674_v3 = vadd.f32 %v10199_v39, %v10159_v13  ;;  %10535 = vmatpush1.bf16.msra.mxu0 %v13063_v50  ;;  %10566 = vmatprep.mubr.bf16.mxu0 %v15682_v57  ;;  %v12935_v61 = vcombine.low %v1735_v58, %v1739_v62  ;;  %v1835_v50 = vld [vmem:[%s19516_s5 + $0x14e8] sm:$0xff] }
 0x336   :  { %v10162_v40 = vpop.f32.mrf.mxu1  ;;  %v10201_v25 = vpop.f32.mrf.mxu0  ;;  %10536 = vmatprep.subr.bf16.mxu0 %v13056_v60  ;;  %v12920_v58 = vcombine.high %v1719_v31, %v1723_v33  ;;  %v13039_v62 = vcombine.low %v1839_v42, %v1843_v6  ;;  %v1715_v60 = vld [vmem:[%s19516_s5 + $0x1128] sm:$0xff]  ;;  %v13032_v13 = vcombine.high %v1831_v55, %v1835_v50  ;;  %v13031_v39 = vcombine.low %v1831_v55, %v1835_v50 }
 0x337   :  { %v16683_v41 = vadd.f32 %v10201_v25, %v10161_v53  ;;  %10442 = vmatpush2.bf16.msra.mxu1 %v12687_v44  ;;  %v12919_v44 = vcombine.low %v1719_v31, %v1723_v33  ;;  %v1827_v18 = vld [vmem:[%s19516_s5 + $0x14a8] sm:$0xff]  ;;  %v12912_v19 = vcombine.high %v1711_v63, %v1715_v60  ;;  %v12911_v28 = vcombine.low %v1711_v63, %v1715_v60 }
 0x338   :  { %v10163_v45 = vpop.f32.mrf.mxu1  ;;  %v10203_v47 = vpop.f32.mrf.mxu0  ;;  %10493 = vmatprep.subr.bf16.mxu1 %v12936_v23  ;;  %v1703_v23 = vld [vmem:[%s19516_s5 + $0x10c8] sm:$0xff] }
 0x339   :  { %10537 = vmatpush1.bf16.msra.mxu0 %v13055_v8  ;;  %v1707_v53 = vld [vmem:[%s19516_s5 + $0x10e8] sm:$0xff]  ;;  %v13024_v8 = vcombine.high %v1823_v37, %v1827_v18 }
 0x33a   :  { %v10204_v36 = vpop.f32.mrf.mxu0  ;;  %10444 = vmatmul.mubr.bf16.vlgmr.msra.gmra.mxu1 %v15414_v7  ;;  %10538 = vmatprep.subr.bf16.mxu0 %v13048_v17  ;;  %v1815_v38 = vld [vmem:[%s19516_s5 + $0x1448] sm:$0xff]  ;;  %v12904_v25 = vcombine.high %v1703_v23, %v1707_v53  ;;  %v13023_v17 = vcombine.low %v1823_v37, %v1827_v18  ;;  %v12903_v45 = vcombine.low %v1703_v23, %v1707_v53 }
 0x33b   :  { %10494 = vmatpush1.bf16.msra.mxu1 %v12935_v61  ;;  %10525 = vmatprep.mubr.bf16.mxu1 %v15669_v21  ;;  %v1819_v40 = vld [vmem:[%s19516_s5 + $0x1468] sm:$0xff] }
 0x33c   :  { %10495 = vmatprep.subr.bf16.mxu1 %v12928_v10  ;;  %v1695_v61 = vld [vmem:[%s19516_s5 + $0x1088] sm:$0xff]  ;;  %v13016_v6 = vcombine.high %v1815_v38, %v1819_v40  ;;  %v13015_v31 = vcombine.low %v1815_v38, %v1819_v40 }
 0x33d   :  { %10539 = vmatpush1.bf16.msra.mxu0 %v13047_v51  ;;  %v1699_v42 = vld [vmem:[%s19516_s5 + $0x10a8] sm:$0xff] }
 0x33e   :  { %10540 = vmatprep.subr.bf16.mxu0 %v13040_v59  ;;  %v1807_v47 = vld [vmem:[%s19516_s5 + $0x1408] sm:$0xff]  ;;  %v12896_v51 = vcombine.high %v1695_v61, %v1699_v42 }
 0x33f   :  { %10496 = vmatpush1.bf16.msra.mxu1 %v12927_v16  ;;  %v1811_v10 = vld [vmem:[%s19516_s5 + $0x1428] sm:$0xff]  ;;  %v12895_v16 = vcombine.low %v1695_v61, %v1699_v42 }
 0x340   :  { %10497 = vmatprep.subr.bf16.mxu1 %v12920_v58  ;;  %v1687_v33 = vld [vmem:[%s19516_s5 + $0x1048] sm:$0xff]  ;;  %v13008_v59 = vcombine.high %v1807_v47, %v1811_v10 }
 0x341   :  { %10541 = vmatpush1.bf16.msra.mxu0 %v13039_v62  ;;  %v1691_v36 = vld [vmem:[%s19516_s5 + $0x1068] sm:$0xff]  ;;  %v13007_v62 = vcombine.low %v1807_v47, %v1811_v10 }
 0x342   :  { %10542 = vmatprep.subr.bf16.mxu0 %v13032_v13  ;;  %v1927_v55 = vld [vmem:[%s19516_s5 + $0x17c8] sm:$0xff]  ;;  %v12888_v58 = vcombine.high %v1687_v33, %v1691_v36 }
 0x343   :  { %10498 = vmatpush1.bf16.msra.mxu1 %v12919_v44  ;;  %v1931_v50 = vld [vmem:[%s19516_s5 + $0x17e8] sm:$0xff]  ;;  %v12887_v44 = vcombine.low %v1687_v33, %v1691_v36 }
 0x344   :  { %10499 = vmatprep.subr.bf16.mxu1 %v12912_v19  ;;  %v1679_v63 = vld [vmem:[%s19516_s5 + $0x1008] sm:$0xff]  ;;  %v13128_v13 = vcombine.high %v1927_v55, %v1931_v50 }
 0x345   :  { %10543 = vmatpush1.bf16.msra.mxu0 %v13031_v39  ;;  %v1683_v60 = vld [vmem:[%s19516_s5 + $0x1028] sm:$0xff]  ;;  %v13127_v39 = vcombine.low %v1927_v55, %v1931_v50 }
 0x346   :  { %10544 = vmatprep.subr.bf16.mxu0 %v13024_v8  ;;  %v1919_v37 = vld [vmem:[%s19516_s5 + $0x1788] sm:$0xff]  ;;  %v12880_v19 = vcombine.high %v1679_v63, %v1683_v60 }
 0x347   :  { %10500 = vmatpush1.bf16.msra.mxu1 %v12911_v28  ;;  %v1923_v18 = vld [vmem:[%s19516_s5 + $0x17a8] sm:$0xff]  ;;  %v12879_v28 = vcombine.low %v1679_v63, %v1683_v60 }
 0x348   :  { %10501 = vmatprep.subr.bf16.mxu1 %v12904_v25  ;;  %v1799_v23 = vld [vmem:[%s19516_s5 + $0x13c8] sm:$0xff]  ;;  %v13120_v8 = vcombine.high %v1919_v37, %v1923_v18 }
 0x349   :  { %10545 = vmatpush1.bf16.msra.mxu0 %v13023_v17  ;;  %v1803_v53 = vld [vmem:[%s19516_s5 + $0x13e8] sm:$0xff]  ;;  %v13119_v17 = vcombine.low %v1919_v37, %v1923_v18 }
 0x34a   :  { %10546 = vmatprep.subr.bf16.mxu0 %v13016_v6  ;;  %v1911_v38 = vld [vmem:[%s19516_s5 + $0x1748] sm:$0xff]  ;;  %v13000_v25 = vcombine.high %v1799_v23, %v1803_v53 }
 0x34b   :  { %10502 = vmatpush1.bf16.msra.mxu1 %v12903_v45  ;;  %v1915_v40 = vld [vmem:[%s19516_s5 + $0x1768] sm:$0xff]  ;;  %v12999_v45 = vcombine.low %v1799_v23, %v1803_v53 }
 0x34c   :  { %10503 = vmatprep.subr.bf16.mxu1 %v12896_v51  ;;  %v1791_v61 = vld [vmem:[%s19516_s5 + $0x1388] sm:$0xff]  ;;  %v13112_v6 = vcombine.high %v1911_v38, %v1915_v40 }
 0x34d   :  { %10547 = vmatpush1.bf16.msra.mxu0 %v13015_v31  ;;  %v1795_v42 = vld [vmem:[%s19516_s5 + $0x13a8] sm:$0xff]  ;;  %v13111_v31 = vcombine.low %v1911_v38, %v1915_v40 }
 0x34e   :  { %10548 = vmatprep.subr.bf16.mxu0 %v13008_v59  ;;  %v1903_v47 = vld [vmem:[%s19516_s5 + $0x1708] sm:$0xff]  ;;  %v12992_v51 = vcombine.high %v1791_v61, %v1795_v42 }
 0x34f   :  { %10504 = vmatpush1.bf16.msra.mxu1 %v12895_v16  ;;  %v1907_v10 = vld [vmem:[%s19516_s5 + $0x1728] sm:$0xff]  ;;  %v12991_v16 = vcombine.low %v1791_v61, %v1795_v42 }
 0x350   :  { %10505 = vmatprep.subr.bf16.mxu1 %v12888_v58  ;;  %v1783_v33 = vld [vmem:[%s19516_s5 + $0x1348] sm:$0xff]  ;;  %v13104_v59 = vcombine.high %v1903_v47, %v1907_v10 }
 0x351   :  { %10549 = vmatpush1.bf16.msra.mxu0 %v13007_v62  ;;  %v1787_v36 = vld [vmem:[%s19516_s5 + $0x1368] sm:$0xff]  ;;  %v13103_v62 = vcombine.low %v1903_v47, %v1907_v10 }
 0x352   :  { %10550 = vmatprep.subr.bf16.mxu0 %v13128_v13  ;;  %v1895_v55 = vld [vmem:[%s19516_s5 + $0x16c8] sm:$0xff]  ;;  %v12984_v58 = vcombine.high %v1783_v33, %v1787_v36 }
 0x353   :  { %10506 = vmatpush1.bf16.msra.mxu1 %v12887_v44  ;;  %v1899_v50 = vld [vmem:[%s19516_s5 + $0x16e8] sm:$0xff]  ;;  %v12983_v44 = vcombine.low %v1783_v33, %v1787_v36 }
 0x354   :  { %10507 = vmatprep.subr.bf16.mxu1 %v12880_v19  ;;  %v1775_v63 = vld [vmem:[%s19516_s5 + $0x1308] sm:$0xff]  ;;  %v13096_v13 = vcombine.high %v1895_v55, %v1899_v50 }
 0x355   :  { %10551 = vmatpush2.bf16.msra.mxu0 %v13127_v39  ;;  %v1779_v60 = vld [vmem:[%s19516_s5 + $0x1328] sm:$0xff]  ;;  %v13095_v39 = vcombine.low %v1895_v55, %v1899_v50 }
 0x356   :  { %10552 = vmatprep.subr.bf16.mxu0 %v13120_v8  ;;  %v1887_v37 = vld [vmem:[%s19516_s5 + $0x1688] sm:$0xff]  ;;  %v12976_v19 = vcombine.high %v1775_v63, %v1779_v60 }
 0x357   :  { %10508 = vmatpush1.bf16.msra.mxu1 %v12879_v28  ;;  %v1891_v18 = vld [vmem:[%s19516_s5 + $0x16a8] sm:$0xff]  ;;  %v12975_v28 = vcombine.low %v1775_v63, %v1779_v60 }
 0x358   :  { %10509 = vmatprep.subr.bf16.mxu1 %v13000_v25  ;;  %v1767_v23 = vld [vmem:[%s19516_s5 + $0x12c8] sm:$0xff]  ;;  %v13088_v8 = vcombine.high %v1887_v37, %v1891_v18 }
 0x359   :  { %10553 = vmatpush2.bf16.msra.mxu0 %v13119_v17  ;;  %v1771_v53 = vld [vmem:[%s19516_s5 + $0x12e8] sm:$0xff]  ;;  %v13087_v17 = vcombine.low %v1887_v37, %v1891_v18 }
 0x35a   :  { %10554 = vmatprep.subr.bf16.mxu0 %v13112_v6  ;;  %v1879_v38 = vld [vmem:[%s19516_s5 + $0x1648] sm:$0xff]  ;;  %v12968_v25 = vcombine.high %v1767_v23, %v1771_v53 }
 0x35b   :  { %10510 = vmatpush2.bf16.msra.mxu1 %v12999_v45  ;;  %v1883_v40 = vld [vmem:[%s19516_s5 + $0x1668] sm:$0xff]  ;;  %v12967_v45 = vcombine.low %v1767_v23, %v1771_v53 }
 0x35c   :  { %10511 = vmatprep.subr.bf16.mxu1 %v12992_v51  ;;  %v1759_v61 = vld [vmem:[%s19516_s5 + $0x1288] sm:$0xff]  ;;  %v13080_v6 = vcombine.high %v1879_v38, %v1883_v40 }
 0x35d   :  { %10555 = vmatpush2.bf16.msra.mxu0 %v13111_v31  ;;  %v1763_v42 = vld [vmem:[%s19516_s5 + $0x12a8] sm:$0xff]  ;;  %v13079_v31 = vcombine.low %v1879_v38, %v1883_v40 }
 0x35e   :  { %10556 = vmatprep.subr.bf16.mxu0 %v13104_v59  ;;  %v1871_v47 = vld [vmem:[%s19516_s5 + $0x1608] sm:$0xff]  ;;  %v12960_v51 = vcombine.high %v1759_v61, %v1763_v42 }
 0x35f   :  { %10512 = vmatpush2.bf16.msra.mxu1 %v12991_v16  ;;  %v1875_v10 = vld [vmem:[%s19516_s5 + $0x1628] sm:$0xff]  ;;  %v12959_v16 = vcombine.low %v1759_v61, %v1763_v42 }
 0x360   :  { %10513 = vmatprep.subr.bf16.mxu1 %v12984_v58  ;;  %v1751_v33 = vld [vmem:[%s19516_s5 + $0x1248] sm:$0xff]  ;;  %v13072_v59 = vcombine.high %v1871_v47, %v1875_v10 }
 0x361   :  { %10557 = vmatpush2.bf16.msra.mxu0 %v13103_v62  ;;  %v1755_v36 = vld [vmem:[%s19516_s5 + $0x1268] sm:$0xff]  ;;  %v13071_v62 = vcombine.low %v1871_v47, %v1875_v10 }
 0x362   :  { %10558 = vmatprep.subr.bf16.mxu0 %v13096_v13  ;;  %v2119_v55 = vld [vmem:[%s19516_s5 + $0x1dc8] sm:$0xff]  ;;  %v12952_v58 = vcombine.high %v1751_v33, %v1755_v36 }
 0x363   :  { %10514 = vmatpush2.bf16.msra.mxu1 %v12983_v44  ;;  %v2123_v50 = vld [vmem:[%s19516_s5 + $0x1de8] sm:$0xff]  ;;  %v12951_v44 = vcombine.low %v1751_v33, %v1755_v36 }
 0x364   :  { %10515 = vmatprep.subr.bf16.mxu1 %v12976_v19  ;;  %v1743_v63 = vld [vmem:[%s19516_s5 + $0x1208] sm:$0xff]  ;;  %v13320_v13 = vcombine.high %v2119_v55, %v2123_v50 }
 0x365   :  { %10559 = vmatpush2.bf16.msra.mxu0 %v13095_v39  ;;  %v1747_v60 = vld [vmem:[%s19516_s5 + $0x1228] sm:$0xff]  ;;  %v13319_v39 = vcombine.low %v2119_v55, %v2123_v50 }
 0x366   :  { %10560 = vmatprep.subr.bf16.mxu0 %v13088_v8  ;;  %v2111_v37 = vld [vmem:[%s19516_s5 + $0x1d88] sm:$0xff]  ;;  %v12944_v19 = vcombine.high %v1743_v63, %v1747_v60  ;;  %v12943_v40 = vcombine.low %v1743_v63, %v1747_v60 }
 0x367   :  { %10516 = vmatpush2.bf16.msra.mxu1 %v12975_v28  ;;  %v2115_v18 = vld [vmem:[%s19516_s5 + $0x1da8] sm:$0xff] }
 0x368   :  { %10517 = vmatprep.subr.bf16.mxu1 %v12968_v25  ;;  %v1991_v23 = vld [vmem:[%s19516_s5 + $0x19c8] sm:$0xff]  ;;  %v13312_v28 = vcombine.high %v2111_v37, %v2115_v18 }
 0x369   :  { %10561 = vmatpush2.bf16.msra.mxu0 %v13087_v17  ;;  %v1995_v53 = vld [vmem:[%s19516_s5 + $0x19e8] sm:$0xff] }
 0x36a   :  { %10562 = vmatprep.subr.bf16.mxu0 %v13080_v6  ;;  %v2103_v25 = vld [vmem:[%s19516_s5 + $0x1d48] sm:$0xff]  ;;  %v13192_v6 = vcombine.high %v1991_v23, %v1995_v53 }
 0x36b   :  { %10518 = vmatpush2.bf16.msra.mxu1 %v12967_v45  ;;  %v2107_v17 = vld [vmem:[%s19516_s5 + $0x1d68] sm:$0xff] }
 0x36c   :  { %10519 = vmatprep.subr.bf16.mxu1 %v12960_v51  ;;  %v1983_v10 = vld [vmem:[%s19516_s5 + $0x1988] sm:$0xff]  ;;  %v13304_v36 = vcombine.high %v2103_v25, %v2107_v17  ;;  %v13303_v63 = vcombine.low %v2103_v25, %v2107_v17 }
 0x36d   :  { %10563 = vmatpush2.bf16.msra.mxu0 %v13079_v31  ;;  %v1987_v51 = vld [vmem:[%s19516_s5 + $0x19a8] sm:$0xff] }
 0x36e   :  { %10564 = vmatprep.subr.bf16.mxu0 %v13072_v59  ;;  %v2099_v55 = vld [vmem:[%s19516_s5 + $0x1d28] sm:$0xff] }
 0x36f   :  { %10520 = vmatpush2.bf16.msra.mxu1 %v12959_v16  ;;  %v2095_v16 = vld [vmem:[%s19516_s5 + $0x1d08] sm:$0xff] }
 0x370   :  { %10521 = vmatprep.subr.bf16.mxu1 %v12952_v58  ;;  %v1975_v60 = vld [vmem:[%s19516_s5 + $0x1948] sm:$0xff] }
 0x371   :  { %10565 = vmatpush2.bf16.msra.mxu0 %v13071_v62  ;;  %v13184_v62 = vcombine.high %v1983_v10, %v1987_v51  ;;  %v1967_v25 = vld [vmem:[%s19516_s5 + $0x1908] sm:$0xff] }
 0x372   :  { %v10240_v8 = vpop.f32.mrf.mxu1  ;;  %10616 = vmatprep.subr.bf16.mxu0 %v13320_v13  ;;  %v1979_v13 = vld [vmem:[%s19516_s5 + $0x1968] sm:$0xff] }
 0x373   :  { %v10241_v38 = vadd.f32 %v10240_v8, %v16674_v3  ;;  %10522 = vmatpush2.bf16.msra.mxu1 %v12951_v44  ;;  %v13311_v3 = vcombine.low %v2111_v37, %v2115_v18  ;;  %v13296_v18 = vcombine.high %v2095_v16, %v2099_v55  ;;  %v1971_v17 = vld [vmem:[%s19516_s5 + $0x1928] sm:$0xff] }
 0x374   :  { %v10242_v61 = vpop.f32.mrf.mxu1  ;;  %v10281_v42 = vpop.f32.mrf.mxu0  ;;  %10567 = vmatmul.mubr.bf16.vlgmr.msra.gmra.mxu0 %v15694_v0  ;;  %10523 = vmatprep.subr.bf16.mxu1 %v12944_v19 }
 0x375   :  { %v10243_v45 = vadd.f32 %v10242_v61, %v16683_v41  ;;  %v10282_v47 = vadd.f32 %v10281_v42, %v10241_v38  ;;  %10617 = vmatpush1.bf16.msra.mxu0 %v13319_v39  ;;  %10648 = vmatprep.mubr.bf16.mxu0 %v15857_v32  ;;  %v13191_v41 = vcombine.low %v1991_v23, %v1995_v53  ;;  %v2087_v23 = vld [vmem:[%s19516_s5 + $0x1cc8] sm:$0xff] }
 0x376   :  { %v10244_v31 = vpop.f32.mrf.mxu1  ;;  %v10283_v33 = vpop.f32.mrf.mxu0  ;;  %10618 = vmatprep.subr.bf16.mxu0 %v13312_v28  ;;  %v13183_v39 = vcombine.low %v1983_v10, %v1987_v51  ;;  %v2091_v53 = vld [vmem:[%s19516_s5 + $0x1ce8] sm:$0xff]  ;;  %v13176_v28 = vcombine.high %v1975_v60, %v1979_v13  ;;  %v13168_v10 = vcombine.high %v1967_v25, %v1971_v17 }
 0x377   :  { %v10284_v59 = vadd.f32 %v10283_v33, %v10243_v45  ;;  %10524 = vmatpush2.bf16.msra.mxu1 %v12943_v40  ;;  %v13295_v40 = vcombine.low %v2095_v16, %v2099_v55  ;;  %v13288_v42 = vcombine.high %v2087_v23, %v2091_v53  ;;  %v2079_v45 = vld [vmem:[%s19516_s5 + $0x1c88] sm:$0xff]  ;;  %v13287_v51 = vcombine.low %v2087_v23, %v2091_v53 }
 0x378   :  { %v10245_v50 = vpop.f32.mrf.mxu1  ;;  %v10285_v58 = vpop.f32.mrf.mxu0  ;;  %10575 = vmatprep.subr.bf16.mxu1 %v13192_v6  ;;  %v13175_v6 = vcombine.low %v1975_v60, %v1979_v13  ;;  %v1959_v31 = vld [vmem:[%s19516_s5 + $0x18c8] sm:$0xff] }
 0x379   :  { %10619 = vmatpush1.bf16.msra.mxu0 %v13311_v3  ;;  %v1963_v33 = vld [vmem:[%s19516_s5 + $0x18e8] sm:$0xff] }
 0x37a   :  { %v10286_v44 = vpop.f32.mrf.mxu0  ;;  %v10322_v37 = vpop.f32.mrf.mxu1  ;;  %10526 = vmatmul.mubr.bf16.vlgmr.msra.gmra.mxu1 %v15679_v35  ;;  %10620 = vmatprep.subr.bf16.mxu0 %v13304_v36  ;;  %v2075_v16 = vld [vmem:[%s19516_s5 + $0x1c68] sm:$0xff]  ;;  %v13160_v55 = vcombine.high %v1959_v31, %v1963_v33  ;;  %v13159_v60 = vcombine.low %v1959_v31, %v1963_v33 }
 0x37b   :  { %v16896_v19 = vadd.f32 %v10322_v37, %v10282_v47  ;;  %10576 = vmatpush1.bf16.msra.mxu1 %v13191_v41  ;;  %10607 = vmatprep.mubr.bf16.mxu1 %v15840_v4  ;;  %v2083_v47 = vld [vmem:[%s19516_s5 + $0x1ca8] sm:$0xff] }
 0x37c   :  { %v10324_v8 = vpop.f32.mrf.mxu1  ;;  %10577 = vmatprep.subr.bf16.mxu1 %v13184_v62  ;;  %v13280_v36 = vcombine.high %v2079_v45, %v2083_v47  ;;  %v2071_v41 = vld [vmem:[%s19516_s5 + $0x1c48] sm:$0xff]  ;;  %v13279_v50 = vcombine.low %v2079_v45, %v2083_v47 }
 0x37d   :  { %v16905_v38 = vadd.f32 %v10324_v8, %v10284_v59  ;;  %10621 = vmatpush1.bf16.msra.mxu0 %v13303_v63  ;;  %v13167_v59 = vcombine.low %v1967_v25, %v1971_v17  ;;  %v1951_v58 = vld [vmem:[%s19516_s5 + $0x1888] sm:$0xff]  ;;  %v13272_v63 = vcombine.high %v2071_v41, %v2075_v16 }
 0x37e   :  { %v10326_v61 = vpop.f32.mrf.mxu1  ;;  %10622 = vmatprep.subr.bf16.mxu0 %v13296_v18  ;;  %v1955_v62 = vld [vmem:[%s19516_s5 + $0x18a8] sm:$0xff]  ;;  %v13271_v18 = vcombine.low %v2071_v41, %v2075_v16 }
 0x37f   :  { %10578 = vmatpush1.bf16.msra.mxu1 %v13183_v39  ;;  %v2063_v13 = vld [vmem:[%s19516_s5 + $0x1c08] sm:$0xff]  ;;  %v13152_v37 = vcombine.high %v1951_v58, %v1955_v62  ;;  %v13151_v8 = vcombine.low %v1951_v58, %v1955_v62 }
 0x380   :  { %v10327_v3 = vpop.f32.mrf.mxu1  ;;  %10579 = vmatprep.subr.bf16.mxu1 %v13176_v28  ;;  %v2067_v44 = vld [vmem:[%s19516_s5 + $0x1c28] sm:$0xff] }
 0x381   :  { %10623 = vmatpush1.bf16.msra.mxu0 %v13295_v40  ;;  %v1943_v39 = vld [vmem:[%s19516_s5 + $0x1848] sm:$0xff]  ;;  %v13264_v53 = vcombine.high %v2063_v13, %v2067_v44  ;;  %v13263_v17 = vcombine.low %v2063_v13, %v2067_v44 }
 0x382   :  { %10624 = vmatprep.subr.bf16.mxu0 %v13288_v42  ;;  %v1947_v23 = vld [vmem:[%s19516_s5 + $0x1868] sm:$0xff] }
 0x383   :  { %10580 = vmatpush1.bf16.msra.mxu1 %v13175_v6  ;;  %v2183_v28 = vld [vmem:[%s19516_s5 + $0x1fc8] sm:$0xff]  ;;  %v13144_v25 = vcombine.high %v1943_v39, %v1947_v23  ;;  %v13143_v45 = vcombine.low %v1943_v39, %v1947_v23 }
 0x384   :  { %10581 = vmatprep.subr.bf16.mxu1 %v13168_v10  ;;  %v2187_v40 = vld [vmem:[%s19516_s5 + $0x1fe8] sm:$0xff] }
 0x385   :  { %10625 = vmatpush1.bf16.msra.mxu0 %v13287_v51  ;;  %v1935_v61 = vld [vmem:[%s19516_s5 + $0x1808] sm:$0xff]  ;;  %v13384_v6 = vcombine.high %v2183_v28, %v2187_v40  ;;  %v13383_v51 = vcombine.low %v2183_v28, %v2187_v40 }
 0x386   :  { %10626 = vmatprep.subr.bf16.mxu0 %v13280_v36  ;;  %v1939_v42 = vld [vmem:[%s19516_s5 + $0x1828] sm:$0xff] }
 0x387   :  { %10582 = vmatpush1.bf16.msra.mxu1 %v13167_v59  ;;  %v2175_v47 = vld [vmem:[%s19516_s5 + $0x1f88] sm:$0xff]  ;;  %v13136_v10 = vcombine.high %v1935_v61, %v1939_v42  ;;  %v13135_v59 = vcombine.low %v1935_v61, %v1939_v42 }
 0x388   :  { %10583 = vmatprep.subr.bf16.mxu1 %v13160_v55  ;;  %v2179_v3 = vld [vmem:[%s19516_s5 + $0x1fa8] sm:$0xff] }
 0x389   :  { %10627 = vmatpush1.bf16.msra.mxu0 %v13279_v50  ;;  %v2055_v31 = vld [vmem:[%s19516_s5 + $0x1bc8] sm:$0xff]  ;;  %v13376_v36 = vcombine.high %v2175_v47, %v2179_v3  ;;  %v13375_v50 = vcombine.low %v2175_v47, %v2179_v3 }
 0x38a   :  { %10628 = vmatprep.subr.bf16.mxu0 %v13272_v63  ;;  %v2059_v33 = vld [vmem:[%s19516_s5 + $0x1be8] sm:$0xff] }
 0x38b   :  { %10584 = vmatpush1.bf16.msra.mxu1 %v13159_v60  ;;  %v2167_v41 = vld [vmem:[%s19516_s5 + $0x1f48] sm:$0xff]  ;;  %v13256_v55 = vcombine.high %v2055_v31, %v2059_v33  ;;  %v13255_v60 = vcombine.low %v2055_v31, %v2059_v33 }
 0x38c   :  { %10585 = vmatprep.subr.bf16.mxu1 %v13152_v37  ;;  %v2171_v16 = vld [vmem:[%s19516_s5 + $0x1f68] sm:$0xff] }
 0x38d   :  { %10629 = vmatpush1.bf16.msra.mxu0 %v13271_v18  ;;  %v2047_v58 = vld [vmem:[%s19516_s5 + $0x1b88] sm:$0xff]  ;;  %v13368_v63 = vcombine.high %v2167_v41, %v2171_v16  ;;  %v13367_v18 = vcombine.low %v2167_v41, %v2171_v16 }
 0x38e   :  { %10630 = vmatprep.subr.bf16.mxu0 %v13264_v53  ;;  %v2051_v62 = vld [vmem:[%s19516_s5 + $0x1ba8] sm:$0xff] }
 0x38f   :  { %10586 = vmatpush1.bf16.msra.mxu1 %v13151_v8  ;;  %v2159_v13 = vld [vmem:[%s19516_s5 + $0x1f08] sm:$0xff]  ;;  %v13248_v37 = vcombine.high %v2047_v58, %v2051_v62  ;;  %v13247_v8 = vcombine.low %v2047_v58, %v2051_v62 }
 0x390   :  { %10587 = vmatprep.subr.bf16.mxu1 %v13144_v25  ;;  %v2163_v44 = vld [vmem:[%s19516_s5 + $0x1f28] sm:$0xff] }
 0x391   :  { %10631 = vmatpush1.bf16.msra.mxu0 %v13263_v17  ;;  %v2039_v39 = vld [vmem:[%s19516_s5 + $0x1b48] sm:$0xff]  ;;  %v13360_v53 = vcombine.high %v2159_v13, %v2163_v44  ;;  %v13359_v17 = vcombine.low %v2159_v13, %v2163_v44 }
 0x392   :  { %10632 = vmatprep.subr.bf16.mxu0 %v13384_v6  ;;  %v2043_v23 = vld [vmem:[%s19516_s5 + $0x1b68] sm:$0xff] }
 0x393   :  { %10588 = vmatpush1.bf16.msra.mxu1 %v13143_v45  ;;  %v2151_v28 = vld [vmem:[%s19516_s5 + $0x1ec8] sm:$0xff]  ;;  %v13240_v25 = vcombine.high %v2039_v39, %v2043_v23  ;;  %v13239_v45 = vcombine.low %v2039_v39, %v2043_v23 }
 0x394   :  { %10589 = vmatprep.subr.bf16.mxu1 %v13136_v10  ;;  %v2155_v40 = vld [vmem:[%s19516_s5 + $0x1ee8] sm:$0xff] }
 0x395   :  { %10633 = vmatpush2.bf16.msra.mxu0 %v13383_v51  ;;  %v2031_v61 = vld [vmem:[%s19516_s5 + $0x1b08] sm:$0xff]  ;;  %v13352_v6 = vcombine.high %v2151_v28, %v2155_v40  ;;  %v13351_v51 = vcombine.low %v2151_v28, %v2155_v40 }
 0x396   :  { %10634 = vmatprep.subr.bf16.mxu0 %v13376_v36  ;;  %v2035_v42 = vld [vmem:[%s19516_s5 + $0x1b28] sm:$0xff] }
 0x397   :  { %10590 = vmatpush1.bf16.msra.mxu1 %v13135_v59  ;;  %v2143_v47 = vld [vmem:[%s19516_s5 + $0x1e88] sm:$0xff]  ;;  %v13232_v10 = vcombine.high %v2031_v61, %v2035_v42  ;;  %v13231_v59 = vcombine.low %v2031_v61, %v2035_v42 }
 0x398   :  { %10591 = vmatprep.subr.bf16.mxu1 %v13256_v55  ;;  %v2147_v3 = vld [vmem:[%s19516_s5 + $0x1ea8] sm:$0xff] }
 0x399   :  { %10635 = vmatpush2.bf16.msra.mxu0 %v13375_v50  ;;  %v2023_v31 = vld [vmem:[%s19516_s5 + $0x1ac8] sm:$0xff]  ;;  %v13344_v36 = vcombine.high %v2143_v47, %v2147_v3  ;;  %v13343_v50 = vcombine.low %v2143_v47, %v2147_v3 }
 0x39a   :  { %10636 = vmatprep.subr.bf16.mxu0 %v13368_v63  ;;  %v2027_v33 = vld [vmem:[%s19516_s5 + $0x1ae8] sm:$0xff] }
 0x39b   :  { %10592 = vmatpush2.bf16.msra.mxu1 %v13255_v60  ;;  %v2135_v41 = vld [vmem:[%s19516_s5 + $0x1e48] sm:$0xff]  ;;  %v13224_v55 = vcombine.high %v2023_v31, %v2027_v33  ;;  %v13223_v60 = vcombine.low %v2023_v31, %v2027_v33 }
 0x39c   :  { %10593 = vmatprep.subr.bf16.mxu1 %v13248_v37  ;;  %v2139_v16 = vld [vmem:[%s19516_s5 + $0x1e68] sm:$0xff] }
 0x39d   :  { %10637 = vmatpush2.bf16.msra.mxu0 %v13367_v18  ;;  %v2015_v58 = vld [vmem:[%s19516_s5 + $0x1a88] sm:$0xff]  ;;  %v13336_v63 = vcombine.high %v2135_v41, %v2139_v16  ;;  %v13335_v18 = vcombine.low %v2135_v41, %v2139_v16 }
 0x39e   :  { %10638 = vmatprep.subr.bf16.mxu0 %v13360_v53  ;;  %v2019_v62 = vld [vmem:[%s19516_s5 + $0x1aa8] sm:$0xff] }
 0x39f   :  { %10594 = vmatpush2.bf16.msra.mxu1 %v13247_v8  ;;  %v2127_v13 = vld [vmem:[%s19516_s5 + $0x1e08] sm:$0xff]  ;;  %v13216_v37 = vcombine.high %v2015_v58, %v2019_v62  ;;  %v13215_v8 = vcombine.low %v2015_v58, %v2019_v62 }
 0x3a0   :  { %10595 = vmatprep.subr.bf16.mxu1 %v13240_v25  ;;  %v2131_v44 = vld [vmem:[%s19516_s5 + $0x1e28] sm:$0xff] }
 0x3a1   :  { %10639 = vmatpush2.bf16.msra.mxu0 %v13359_v17  ;;  %v2007_v39 = vld [vmem:[%s19516_s5 + $0x1a48] sm:$0xff]  ;;  %v13328_v53 = vcombine.high %v2127_v13, %v2131_v44  ;;  %v13327_v17 = vcombine.low %v2127_v13, %v2131_v44 }
 0x3a2   :  { %10640 = vmatprep.subr.bf16.mxu0 %v13352_v6  ;;  %v2011_v23 = vld [vmem:[%s19516_s5 + $0x1a68] sm:$0xff] }
 0x3a3   :  { %10596 = vmatpush2.bf16.msra.mxu1 %v13239_v45  ;;  %v2375_v28 = vld [vmem:[%s19516_s5 + $0x25c8] sm:$0xff]  ;;  %v13208_v25 = vcombine.high %v2007_v39, %v2011_v23  ;;  %v13207_v45 = vcombine.low %v2007_v39, %v2011_v23 }
 0x3a4   :  { %10597 = vmatprep.subr.bf16.mxu1 %v13232_v10  ;;  %v2379_v40 = vld [vmem:[%s19516_s5 + $0x25e8] sm:$0xff] }
 0x3a5   :  { %10641 = vmatpush2.bf16.msra.mxu0 %v13351_v51  ;;  %v1999_v61 = vld [vmem:[%s19516_s5 + $0x1a08] sm:$0xff]  ;;  %v13576_v6 = vcombine.high %v2375_v28, %v2379_v40  ;;  %v13575_v51 = vcombine.low %v2375_v28, %v2379_v40 }
 0x3a6   :  { %10642 = vmatprep.subr.bf16.mxu0 %v13344_v36  ;;  %v2003_v42 = vld [vmem:[%s19516_s5 + $0x1a28] sm:$0xff] }
 0x3a7   :  { %10598 = vmatpush2.bf16.msra.mxu1 %v13231_v59  ;;  %v2367_v47 = vld [vmem:[%s19516_s5 + $0x2588] sm:$0xff]  ;;  %v13200_v10 = vcombine.high %v1999_v61, %v2003_v42  ;;  %v13199_v59 = vcombine.low %v1999_v61, %v2003_v42 }
 0x3a8   :  { %10599 = vmatprep.subr.bf16.mxu1 %v13224_v55  ;;  %v2371_v3 = vld [vmem:[%s19516_s5 + $0x25a8] sm:$0xff] }
 0x3a9   :  { %10643 = vmatpush2.bf16.msra.mxu0 %v13343_v50  ;;  %v2247_v31 = vld [vmem:[%s19516_s5 + $0x21c8] sm:$0xff]  ;;  %v13568_v36 = vcombine.high %v2367_v47, %v2371_v3  ;;  %v13567_v58 = vcombine.low %v2367_v47, %v2371_v3 }
 0x3aa   :  { %10644 = vmatprep.subr.bf16.mxu0 %v13336_v63  ;;  %v2251_v33 = vld [vmem:[%s19516_s5 + $0x21e8] sm:$0xff] }
 0x3ab   :  { %10600 = vmatpush2.bf16.msra.mxu1 %v13223_v60  ;;  %v2359_v41 = vld [vmem:[%s19516_s5 + $0x2548] sm:$0xff]  ;;  %v13448_v50 = vcombine.high %v2247_v31, %v2251_v33  ;;  %v13447_v44 = vcombine.low %v2247_v31, %v2251_v33 }
 0x3ac   :  { %10601 = vmatprep.subr.bf16.mxu1 %v13216_v37  ;;  %v2363_v16 = vld [vmem:[%s19516_s5 + $0x2568] sm:$0xff] }
 0x3ad   :  { %10645 = vmatpush2.bf16.msra.mxu0 %v13335_v18  ;;  %v2239_v62 = vld [vmem:[%s19516_s5 + $0x2188] sm:$0xff]  ;;  %v13560_v13 = vcombine.high %v2359_v41, %v2363_v16 }
 0x3ae   :  { %10646 = vmatprep.subr.bf16.mxu0 %v13328_v53  ;;  %v2243_v63 = vld [vmem:[%s19516_s5 + $0x21a8] sm:$0xff]  ;;  %v13559_v53 = vcombine.low %v2359_v41, %v2363_v16 }
 0x3af   :  { %10602 = vmatpush2.bf16.msra.mxu1 %v13215_v8  ;;  %v2351_v37 = vld [vmem:[%s19516_s5 + $0x2508] sm:$0xff]  ;;  %v13440_v23 = vcombine.high %v2239_v62, %v2243_v63  ;;  %v13439_v42 = vcombine.low %v2239_v62, %v2243_v63 }
 0x3b0   :  { %10603 = vmatprep.subr.bf16.mxu1 %v13208_v25  ;;  %v2355_v18 = vld [vmem:[%s19516_s5 + $0x2528] sm:$0xff] }
 0x3b1   :  { %10647 = vmatpush2.bf16.msra.mxu0 %v13327_v17  ;;  %v2231_v8 = vld [vmem:[%s19516_s5 + $0x2148] sm:$0xff]  ;;  %v13552_v17 = vcombine.high %v2351_v37, %v2355_v18 }
 0x3b2   :  { %10698 = vmatprep.subr.bf16.mxu0 %v13576_v6  ;;  %v2235_v28 = vld [vmem:[%s19516_s5 + $0x2168] sm:$0xff] }
 0x3b3   :  { %10604 = vmatpush2.bf16.msra.mxu1 %v13207_v45  ;;  %v2343_v6 = vld [vmem:[%s19516_s5 + $0x24c8] sm:$0xff]  ;;  %v13432_v3 = vcombine.high %v2231_v8, %v2235_v28  ;;  %v13431_v41 = vcombine.low %v2231_v8, %v2235_v28 }
 0x3b4   :  { %v10404_v55 = vpop.f32.mrf.mxu0  ;;  %10649 = vmatmul.mubr.bf16.vlgmr.msra.gmra.mxu0 %v16049_v52  ;;  %10605 = vmatprep.subr.bf16.mxu1 %v13200_v10  ;;  %v2347_v45 = vld [vmem:[%s19516_s5 + $0x24e8] sm:$0xff] }
 0x3b5   :  { %10699 = vmatpush1.bf16.msra.mxu0 %v13575_v51  ;;  %10730 = vmatprep.mubr.bf16.mxu0 %v16052_v24  ;;  %v13551_v51 = vcombine.low %v2351_v37, %v2355_v18  ;;  %v2227_v31 = vld [vmem:[%s19516_s5 + $0x2128] sm:$0xff] }
 0x3b6   :  { %v10406_v60 = vpop.f32.mrf.mxu0  ;;  %10700 = vmatprep.subr.bf16.mxu0 %v13568_v36  ;;  %v2339_v16 = vld [vmem:[%s19516_s5 + $0x24a8] sm:$0xff] }
 0x3b7   :  { %10606 = vmatpush2.bf16.msra.mxu1 %v13199_v59  ;;  %v13544_v59 = vcombine.high %v2343_v6, %v2347_v45  ;;  %v2215_v63 = vld [vmem:[%s19516_s5 + $0x20c8] sm:$0xff] }
 0x3b8   :  { %v10408_v39 = vpop.f32.mrf.mxu0  ;;  %10657 = vmatprep.subr.bf16.mxu1 %v13448_v50  ;;  %v2331_v18 = vld [vmem:[%s19516_s5 + $0x2468] sm:$0xff] }
 0x3b9   :  { %10701 = vmatpush1.bf16.msra.mxu0 %v13567_v58  ;;  %v2211_v8 = vld [vmem:[%s19516_s5 + $0x20a8] sm:$0xff] }
 0x3ba   :  { %v10363_v40 = vpop.f32.mrf.mxu1  ;;  %v10409_v25 = vpop.f32.mrf.mxu0  ;;  %10608 = vmatmul.mubr.bf16.vlgmr.msra.gmra.mxu1 %v16036_v34  ;;  %10702 = vmatprep.subr.bf16.mxu0 %v13560_v13  ;;  %v2219_v13 = vld [vmem:[%s19516_s5 + $0x20e8] sm:$0xff] }
 0x3bb   :  { %v10364_v61 = vadd.f32 %v10363_v40, %v14813_v9  ;;  %10658 = vmatpush1.bf16.msra.mxu1 %v13447_v44  ;;  %10689 = vmatprep.mubr.bf16.mxu1 %v16038_v26  ;;  %v2223_v9 = vld [vmem:[%s19516_s5 + $0x2108] sm:$0xff]  ;;  %v13416_v39 = vcombine.high %v2215_v63, %v2219_v13  ;;  %v13415_v40 = vcombine.low %v2215_v63, %v2219_v13 }
 0x3bc   :  { %v10365_v47 = vpop.f32.mrf.mxu1  ;;  %10659 = vmatprep.subr.bf16.mxu1 %v13440_v23  ;;  %v13424_v62 = vcombine.high %v2223_v9, %v2227_v31  ;;  %v13423_v37 = vcombine.low %v2223_v9, %v2227_v31  ;;  %v2319_v25 = vld [vmem:[%s19516_s5 + $0x2408] sm:$0xff] }
 0x3bd   :  { %v10366_v10 = vadd.f32 %v10365_v47, %v14818_v11  ;;  %10703 = vmatpush1.bf16.msra.mxu0 %v13559_v53  ;;  %v17111_v33 = vadd.f32 %v10404_v55, %v10364_v61  ;;  %v2335_v11 = vld [vmem:[%s19516_s5 + $0x2488] sm:$0xff]  ;;  %v13543_v55 = vcombine.low %v2343_v6, %v2347_v45 }
 0x3be   :  { %v10367_v36 = vpop.f32.mrf.mxu1  ;;  %10704 = vmatprep.subr.bf16.mxu0 %v13552_v17  ;;  %v13536_v44 = vcombine.high %v2335_v11, %v2339_v16  ;;  %v13535_v23 = vcombine.low %v2335_v11, %v2339_v16  ;;  %v2207_v53 = vld [vmem:[%s19516_s5 + $0x2088] sm:$0xff] }
 0x3bf   :  { %10660 = vmatpush1.bf16.msra.mxu1 %v13439_v42  ;;  %v17119_v50 = vadd.f32 %v10406_v60, %v10366_v10  ;;  %v2327_v60 = vld [vmem:[%s19516_s5 + $0x2448] sm:$0xff]  ;;  %v13408_v61 = vcombine.high %v2207_v53, %v2211_v8 }
 0x3c0   :  { %v10368_v58 = vpop.f32.mrf.mxu1  ;;  %10661 = vmatprep.subr.bf16.mxu1 %v13432_v3  ;;  %v13528_v28 = vcombine.high %v2327_v60, %v2331_v18  ;;  %v2323_v17 = vld [vmem:[%s19516_s5 + $0x2428] sm:$0xff]  ;;  %v13527_v42 = vcombine.low %v2327_v60, %v2331_v18  ;;  %v13407_v3 = vcombine.low %v2207_v53, %v2211_v8 }
 0x3c1   :  { %10705 = vmatpush1.bf16.msra.mxu0 %v13551_v51  ;;  %v2199_v6 = vld [vmem:[%s19516_s5 + $0x2048] sm:$0xff]  ;;  %v13520_v47 = vcombine.high %v2319_v25, %v2323_v17  ;;  %v13519_v31 = vcombine.low %v2319_v25, %v2323_v17 }
 0x3c2   :  { %10706 = vmatprep.subr.bf16.mxu0 %v13544_v59  ;;  %v2203_v45 = vld [vmem:[%s19516_s5 + $0x2068] sm:$0xff] }
 0x3c3   :  { %10662 = vmatpush1.bf16.msra.mxu1 %v13431_v41  ;;  %v2439_v10 = vld [vmem:[%s19516_s5 + $0x27c8] sm:$0xff]  ;;  %v13400_v9 = vcombine.high %v2199_v6, %v2203_v45  ;;  %v13399_v11 = vcombine.low %v2199_v6, %v2203_v45 }
 0x3c4   :  { %10663 = vmatprep.subr.bf16.mxu1 %v13424_v62  ;;  %v2443_v51 = vld [vmem:[%s19516_s5 + $0x27e8] sm:$0xff] }
 0x3c5   :  { %10707 = vmatpush1.bf16.msra.mxu0 %v13543_v55  ;;  %v2191_v36 = vld [vmem:[%s19516_s5 + $0x2008] sm:$0xff]  ;;  %v13640_v41 = vcombine.high %v2439_v10, %v2443_v51  ;;  %v13639_v55 = vcombine.low %v2439_v10, %v2443_v51 }
 0x3c6   :  { %10708 = vmatprep.subr.bf16.mxu0 %v13536_v44  ;;  %v2195_v59 = vld [vmem:[%s19516_s5 + $0x2028] sm:$0xff] }
 0x3c7   :  { %10664 = vmatpush1.bf16.msra.mxu1 %v13423_v37  ;;  %v2431_v16 = vld [vmem:[%s19516_s5 + $0x2788] sm:$0xff]  ;;  %v13392_v62 = vcombine.high %v2191_v36, %v2195_v59  ;;  %v13391_v37 = vcombine.low %v2191_v36, %v2195_v59 }
 0x3c8   :  { %10665 = vmatprep.subr.bf16.mxu1 %v13416_v39  ;;  %v2435_v58 = vld [vmem:[%s19516_s5 + $0x27a8] sm:$0xff] }
 0x3c9   :  { %10709 = vmatpush1.bf16.msra.mxu0 %v13535_v23  ;;  %v2311_v63 = vld [vmem:[%s19516_s5 + $0x23c8] sm:$0xff]  ;;  %v13632_v44 = vcombine.high %v2431_v16, %v2435_v58  ;;  %v13631_v23 = vcombine.low %v2431_v16, %v2435_v58 }
 0x3ca   :  { %10710 = vmatprep.subr.bf16.mxu0 %v13528_v28  ;;  %v2315_v13 = vld [vmem:[%s19516_s5 + $0x23e8] sm:$0xff] }
 0x3cb   :  { %10666 = vmatpush1.bf16.msra.mxu1 %v13415_v40  ;;  %v2423_v60 = vld [vmem:[%s19516_s5 + $0x2748] sm:$0xff]  ;;  %v13512_v39 = vcombine.high %v2311_v63, %v2315_v13  ;;  %v13511_v40 = vcombine.low %v2311_v63, %v2315_v13 }
 0x3cc   :  { %10667 = vmatprep.subr.bf16.mxu1 %v13408_v61  ;;  %v2427_v18 = vld [vmem:[%s19516_s5 + $0x2768] sm:$0xff] }
 0x3cd   :  { %10711 = vmatpush1.bf16.msra.mxu0 %v13527_v42  ;;  %v2303_v53 = vld [vmem:[%s19516_s5 + $0x2388] sm:$0xff]  ;;  %v13624_v28 = vcombine.high %v2423_v60, %v2427_v18  ;;  %v13623_v42 = vcombine.low %v2423_v60, %v2427_v18 }
 0x3ce   :  { %10712 = vmatprep.subr.bf16.mxu0 %v13520_v47  ;;  %v2307_v8 = vld [vmem:[%s19516_s5 + $0x23a8] sm:$0xff] }
 0x3cf   :  { %10668 = vmatpush1.bf16.msra.mxu1 %v13407_v3  ;;  %v2415_v25 = vld [vmem:[%s19516_s5 + $0x2708] sm:$0xff]  ;;  %v13504_v61 = vcombine.high %v2303_v53, %v2307_v8  ;;  %v13503_v3 = vcombine.low %v2303_v53, %v2307_v8 }
 0x3d0   :  { %10669 = vmatprep.subr.bf16.mxu1 %v13400_v9  ;;  %v2419_v17 = vld [vmem:[%s19516_s5 + $0x2728] sm:$0xff] }
 0x3d1   :  { %10713 = vmatpush1.bf16.msra.mxu0 %v13519_v31  ;;  %v2295_v6 = vld [vmem:[%s19516_s5 + $0x2348] sm:$0xff]  ;;  %v13616_v47 = vcombine.high %v2415_v25, %v2419_v17  ;;  %v13615_v31 = vcombine.low %v2415_v25, %v2419_v17 }
 0x3d2   :  { %10714 = vmatprep.subr.bf16.mxu0 %v13640_v41  ;;  %v2299_v45 = vld [vmem:[%s19516_s5 + $0x2368] sm:$0xff] }
 0x3d3   :  { %10670 = vmatpush1.bf16.msra.mxu1 %v13399_v11  ;;  %v2407_v10 = vld [vmem:[%s19516_s5 + $0x26c8] sm:$0xff]  ;;  %v13496_v9 = vcombine.high %v2295_v6, %v2299_v45  ;;  %v13495_v11 = vcombine.low %v2295_v6, %v2299_v45 }
 0x3d4   :  { %10671 = vmatprep.subr.bf16.mxu1 %v13392_v62  ;;  %v2411_v51 = vld [vmem:[%s19516_s5 + $0x26e8] sm:$0xff] }
 0x3d5   :  { %10715 = vmatpush2.bf16.msra.mxu0 %v13639_v55  ;;  %v2287_v36 = vld [vmem:[%s19516_s5 + $0x2308] sm:$0xff]  ;;  %v13608_v41 = vcombine.high %v2407_v10, %v2411_v51  ;;  %v13607_v55 = vcombine.low %v2407_v10, %v2411_v51  ;;  %v1352_v10 = vld [vmem:[%s19516_s5 + $0x5d0] sm:$0xff] }
 0x3d6   :  { %10716 = vmatprep.subr.bf16.mxu0 %v13632_v44  ;;  %v2291_v59 = vld [vmem:[%s19516_s5 + $0x2328] sm:$0xff]  ;;  %v1356_v51 = vld [vmem:[%s19516_s5 + $0x5f0] sm:$0xff] }
 0x3d7   :  { %10672 = vmatpush1.bf16.msra.mxu1 %v13391_v37  ;;  %v2399_v16 = vld [vmem:[%s19516_s5 + $0x2688] sm:$0xff]  ;;  %v13488_v62 = vcombine.high %v2287_v36, %v2291_v59  ;;  %v13487_v37 = vcombine.low %v2287_v36, %v2291_v59 }
 0x3d8   :  { %10673 = vmatprep.subr.bf16.mxu1 %v13512_v39  ;;  %v2403_v58 = vld [vmem:[%s19516_s5 + $0x26a8] sm:$0xff] }
 0x3d9   :  { %10717 = vmatpush2.bf16.msra.mxu0 %v13631_v23  ;;  %v2279_v63 = vld [vmem:[%s19516_s5 + $0x22c8] sm:$0xff]  ;;  %v13600_v44 = vcombine.high %v2399_v16, %v2403_v58  ;;  %v13599_v23 = vcombine.low %v2399_v16, %v2403_v58  ;;  %v1344_v16 = vld [vmem:[%s19516_s5 + $0x590] sm:$0xff] }
 0x3da   :  { %10718 = vmatprep.subr.bf16.mxu0 %v13624_v28  ;;  %v2283_v13 = vld [vmem:[%s19516_s5 + $0x22e8] sm:$0xff]  ;;  %v1348_v58 = vld [vmem:[%s19516_s5 + $0x5b0] sm:$0xff] }
 0x3db   :  { %10674 = vmatpush2.bf16.msra.mxu1 %v13511_v40  ;;  %v2391_v60 = vld [vmem:[%s19516_s5 + $0x2648] sm:$0xff]  ;;  %v13480_v39 = vcombine.high %v2279_v63, %v2283_v13  ;;  %v13479_v40 = vcombine.low %v2279_v63, %v2283_v13 }
 0x3dc   :  { %10675 = vmatprep.subr.bf16.mxu1 %v13504_v61  ;;  %v2395_v18 = vld [vmem:[%s19516_s5 + $0x2668] sm:$0xff] }
 0x3dd   :  { %10719 = vmatpush2.bf16.msra.mxu0 %v13623_v42  ;;  %v2271_v53 = vld [vmem:[%s19516_s5 + $0x2288] sm:$0xff]  ;;  %v13592_v28 = vcombine.high %v2391_v60, %v2395_v18  ;;  %v13591_v42 = vcombine.low %v2391_v60, %v2395_v18  ;;  %v1336_v60 = vld [vmem:[%s19516_s5 + $0x550] sm:$0xff] }
 0x3de   :  { %10720 = vmatprep.subr.bf16.mxu0 %v13616_v47  ;;  %v2275_v8 = vld [vmem:[%s19516_s5 + $0x22a8] sm:$0xff]  ;;  %v1340_v18 = vld [vmem:[%s19516_s5 + $0x570] sm:$0xff] }
 0x3df   :  { %10676 = vmatpush2.bf16.msra.mxu1 %v13503_v3  ;;  %v2383_v25 = vld [vmem:[%s19516_s5 + $0x2608] sm:$0xff]  ;;  %v13472_v61 = vcombine.high %v2271_v53, %v2275_v8  ;;  %v13471_v3 = vcombine.low %v2271_v53, %v2275_v8  ;;  %v12545_v53 = vcombine.low %v1344_v16, %v1348_v58 }
 0x3e0   :  { %10677 = vmatprep.subr.bf16.mxu1 %v13496_v9  ;;  %v2387_v17 = vld [vmem:[%s19516_s5 + $0x2628] sm:$0xff] }
 0x3e1   :  { %10721 = vmatpush2.bf16.msra.mxu0 %v13615_v31  ;;  %v2263_v6 = vld [vmem:[%s19516_s5 + $0x2248] sm:$0xff]  ;;  %v13584_v47 = vcombine.high %v2383_v25, %v2387_v17  ;;  %v13583_v31 = vcombine.low %v2383_v25, %v2387_v17  ;;  %v12538_v25 = vcombine.high %v1336_v60, %v1340_v18 }
 0x3e2   :  { %10722 = vmatprep.subr.bf16.mxu0 %v13608_v41  ;;  %v2267_v45 = vld [vmem:[%s19516_s5 + $0x2268] sm:$0xff]  ;;  %v12554_v41 = vcombine.high %v1352_v10, %v1356_v51 }
 0x3e3   :  { %10678 = vmatpush2.bf16.msra.mxu1 %v13495_v11  ;;  %v13464_v9 = vcombine.high %v2263_v6, %v2267_v45  ;;  %v2255_v36 = vld [vmem:[%s19516_s5 + $0x2208] sm:$0xff]  ;;  %v13463_v11 = vcombine.low %v2263_v6, %v2267_v45 }
 0x3e4   :  { %10679 = vmatprep.subr.bf16.mxu1 %v13488_v62  ;;  %v2259_v59 = vld [vmem:[%s19516_s5 + $0x2228] sm:$0xff] }
 0x3e5   :  { %10723 = vmatpush2.bf16.msra.mxu0 %v13607_v55  ;;  %v13456_v62 = vcombine.high %v2255_v36, %v2259_v59  ;;  %v12553_v55 = vcombine.low %v1352_v10, %v1356_v51  ;;  %v2455_v63 = vld [vmem:[%s19516_s5 + $0x2848] sm:$0xff]  ;;  %v1228_v10 = vld [vmem:[%s19516_s5 + $0x1f0] sm:$0xff] }
 0x3e6   :  { %10724 = vmatprep.subr.bf16.mxu0 %v13600_v44  ;;  %v2459_v13 = vld [vmem:[%s19516_s5 + $0x2868] sm:$0xff]  ;;  %v12546_v44 = vcombine.high %v1344_v16, %v1348_v58 }
 0x3e7   :  { %10680 = vmatpush2.bf16.msra.mxu1 %v13487_v37  ;;  %v13455_v37 = vcombine.low %v2255_v36, %v2259_v59  ;;  %v2447_v8 = vld [vmem:[%s19516_s5 + $0x2808] sm:$0xff]  ;;  %v13655_v17 = vcombine.low %v2455_v63, %v2459_v13 }
 0x3e8   :  { %10681 = vmatprep.subr.bf16.mxu1 %v13480_v39 }
 0x3e9   :  { %10725 = vmatpush2.bf16.msra.mxu0 %v13599_v23  ;;  %v13656_v23 = vcombine.high %v2455_v63, %v2459_v13  ;;  %v1220_v63 = vld [vmem:[%s19516_s5 + $0x1b0] sm:$0xff] }
 0x3ea   :  { %10726 = vmatprep.subr.bf16.mxu0 %v13592_v28  ;;  %v2451_v28 = vld [vmem:[%s19516_s5 + $0x2828] sm:$0xff] }
 0x3eb   :  { %10682 = vmatpush2.bf16.msra.mxu1 %v13479_v40  ;;  %v13648_v45 = vcombine.high %v2447_v8, %v2451_v28  ;;  %v13647_v59 = vcombine.low %v2447_v8, %v2451_v28  ;;  %v1208_v28 = vld [vmem:[%s19516_s5 + $0x150] sm:$0xff] }
 0x3ec   :  { %10683 = vmatprep.subr.bf16.mxu1 %v13472_v61  ;;  %v1328_v61 = vld [vmem:[%s19516_s5 + $0x510] sm:$0xff] }
 0x3ed   :  { %10727 = vmatpush2.bf16.msra.mxu0 %v13591_v42  ;;  %v1332_v42 = vld [vmem:[%s19516_s5 + $0x530] sm:$0xff] }
 0x3ee   :  { %10728 = vmatprep.subr.bf16.mxu0 %v13584_v47  ;;  %v12537_v47 = vcombine.low %v1336_v60, %v1340_v18  ;;  %v1316_v18 = vld [vmem:[%s19516_s5 + $0x4b0] sm:$0xff] }
 0x3ef   :  { %10684 = vmatpush2.bf16.msra.mxu1 %v13471_v3  ;;  %v1224_v3 = vld [vmem:[%s19516_s5 + $0x1d0] sm:$0xff] }
 0x3f0   :  { %10685 = vmatprep.subr.bf16.mxu1 %v13464_v9  ;;  %v12426_v58 = vcombine.high %v1224_v3, %v1228_v10  ;;  %v12425_v60 = vcombine.low %v1224_v3, %v1228_v10  ;;  %v1204_v3 = vld [vmem:[%s19516_s5 + $0x130] sm:$0xff] }
 0x3f1   :  { %10729 = vmatpush2.bf16.msra.mxu0 %v13583_v31  ;;  %v12530_v31 = vcombine.high %v1328_v61, %v1332_v42 }
 0x3f2   :  { %10821 = vmatprep.subr.bf16.mxu0 %v12554_v41  ;;  %v1320_v41 = vld [vmem:[%s19516_s5 + $0x4d0] sm:$0xff] }
 0x3f3   :  { %10686 = vmatpush2.bf16.msra.mxu1 %v13463_v11  ;;  %v1324_v11 = vld [vmem:[%s19516_s5 + $0x4f0] sm:$0xff] }
 0x3f4   :  { %v10486_v39 = vpop.f32.mrf.mxu0  ;;  %10731 = vmatmul.mubr.bf16.vlgmr.msra.gmra.mxu0 %v16261_v46  ;;  %10687 = vmatprep.subr.bf16.mxu1 %v13456_v62 }
 0x3f5   :  { %10822 = vmatpush1.bf16.msra.mxu0 %v12553_v55  ;;  %10853 = vmatprep.mubr.bf16.mxu0 %v14904_v29  ;;  %v12529_v55 = vcombine.low %v1328_v61, %v1332_v42  ;;  %v1304_v61 = vld [vmem:[%s19516_s5 + $0x450] sm:$0xff] }
 0x3f6   :  { %v10488_v40 = vpop.f32.mrf.mxu0  ;;  %10823 = vmatprep.subr.bf16.mxu0 %v12546_v44  ;;  %v1308_v42 = vld [vmem:[%s19516_s5 + $0x470] sm:$0xff] }
 0x3f7   :  { %10688 = vmatpush2.bf16.msra.mxu1 %v13455_v37  ;;  %v12522_v37 = vcombine.high %v1320_v41, %v1324_v11  ;;  %v12506_v10 = vcombine.high %v1304_v61, %v1308_v42 }
 0x3f8   :  { %v10490_v6 = vpop.f32.mrf.mxu0  ;;  %10751 = vmatprep.subr.bf16.mxu1 %v13656_v23 }
 0x3f9   :  { %10824 = vmatpush1.bf16.msra.mxu0 %v12545_v53 }
 0x3fa   :  { %v10445_v51 = vpop.f32.mrf.mxu1  ;;  %v10491_v9 = vpop.f32.mrf.mxu0  ;;  %10690 = vmatmul.mubr.bf16.vlgmr.msra.gmra.mxu1 %v16250_v5  ;;  %10825 = vmatprep.subr.bf16.mxu0 %v12538_v25  ;;  %v1212_v25 = vld [vmem:[%s19516_s5 + $0x170] sm:$0xff] }
 0x3fb   :  { %v10446_v36 = vadd.f32 %v10445_v51, %v17111_v33  ;;  %10752 = vmatpush1.bf16.msra.mxu1 %v13655_v17  ;;  %10771 = vmatprep.mubr.bf16.mxu1 %v13906_v1  ;;  %v1216_v33 = vld [vmem:[%s19516_s5 + $0x190] sm:$0xff]  ;;  %v12410_v6 = vcombine.high %v1208_v28, %v1212_v25  ;;  %v12409_v51 = vcombine.low %v1208_v28, %v1212_v25 }
 0x3fc   :  { %v10447_v16 = vpop.f32.mrf.mxu1  ;;  %10753 = vmatprep.subr.bf16.mxu1 %v13648_v45  ;;  %v12418_v8 = vcombine.high %v1216_v33, %v1220_v63  ;;  %v1296_v9 = vld [vmem:[%s19516_s5 + $0x410] sm:$0xff] }
 0x3fd   :  { %v10448_v62 = vadd.f32 %v10447_v16, %v17119_v50  ;;  %10826 = vmatpush1.bf16.msra.mxu0 %v12537_v47  ;;  %v17313_v13 = vadd.f32 %v10486_v39, %v10446_v36  ;;  %v1312_v50 = vld [vmem:[%s19516_s5 + $0x490] sm:$0xff]  ;;  %v12521_v39 = vcombine.low %v1320_v41, %v1324_v11 }
 0x3fe   :  { %v10449_v44 = vpop.f32.mrf.mxu1  ;;  %10827 = vmatprep.subr.bf16.mxu0 %v12530_v31  ;;  %v12514_v17 = vcombine.high %v1312_v50, %v1316_v18  ;;  %v12513_v45 = vcombine.low %v1312_v50, %v1316_v18  ;;  %v1200_v47 = vld [vmem:[%s19516_s5 + $0x110] sm:$0xff] }
 0x3ff   :  { %10754 = vmatpush1.bf16.msra.mxu1 %v13647_v59  ;;  %v17321_v23 = vadd.f32 %v10488_v40, %v10448_v62  ;;  %v12417_v40 = vcombine.low %v1216_v33, %v1220_v63  ;;  %v1300_v31 = vld [vmem:[%s19516_s5 + $0x430] sm:$0xff]  ;;  %v12402_v36 = vcombine.high %v1200_v47, %v1204_v3  ;;  %v12505_v59 = vcombine.low %v1304_v61, %v1308_v42 }
 0x400   :  { %v10450_v53 = vpop.f32.mrf.mxu1  ;;  %10780 = vmatprep.subr.bf16.mxu1 %v12426_v58  ;;  %v1192_v41 = vld [vmem:[%s19516_s5 + $0xd0] sm:$0xff]  ;;  %v12498_v16 = vcombine.high %v1296_v9, %v1300_v31  ;;  %v12401_v58 = vcombine.low %v1200_v47, %v1204_v3  ;;  %v12497_v63 = vcombine.low %v1296_v9, %v1300_v31 }
 0x401   :  { %10828 = vmatpush1.bf16.msra.mxu0 %v12529_v55  ;;  %v1196_v11 = vld [vmem:[%s19516_s5 + $0xf0] sm:$0xff] }
 0x402   :  { %13662 = vmatmul.mubr.msk.bf16.vlgmr.msra.gmra.mxu1 %vm9874_vm8, %v16284_v48  ;;  %10829 = vmatprep.subr.bf16.mxu0 %v12522_v37  ;;  %v1416_v62 = vld [vmem:[%s19516_s5 + $0x7d0] sm:$0xff]  ;;  %v12394_v33 = vcombine.high %v1192_v41, %v1196_v11  ;;  %v12393_v50 = vcombine.low %v1192_v41, %v1196_v11 }
 0x403   :  { %10781 = vmatpush1.bf16.msra.mxu1 %v12425_v60  ;;  %10812 = vmatprep.mubr.bf16.mxu1 %v14886_v22  ;;  %v1420_v55 = vld [vmem:[%s19516_s5 + $0x7f0] sm:$0xff] }
 0x404   :  { %10782 = vmatprep.subr.bf16.mxu1 %v12418_v8  ;;  %v1184_v44 = vld [vmem:[%s19516_s5 + $0x90] sm:$0xff]  ;;  %v12618_v60 = vcombine.high %v1416_v62, %v1420_v55 }
 0x405   :  { %10830 = vmatpush1.bf16.msra.mxu0 %v12521_v39  ;;  %v1188_v37 = vld [vmem:[%s19516_s5 + $0xb0] sm:$0xff]  ;;  %v12617_v39 = vcombine.low %v1416_v62, %v1420_v55 }
 0x406   :  { %10831 = vmatprep.subr.bf16.mxu0 %v12514_v17  ;;  %v1408_v18 = vld [vmem:[%s19516_s5 + $0x790] sm:$0xff]  ;;  %v12386_v8 = vcombine.high %v1184_v44, %v1188_v37 }
 0x407   :  { %10783 = vmatpush1.bf16.msra.mxu1 %v12417_v40  ;;  %v1412_v53 = vld [vmem:[%s19516_s5 + $0x7b0] sm:$0xff]  ;;  %v12385_v40 = vcombine.low %v1184_v44, %v1188_v37 }
 0x408   :  { %10784 = vmatprep.subr.bf16.mxu1 %v12410_v6  ;;  %v1176_v28 = vld [vmem:[%s19516_s5 + $0x50] sm:$0xff]  ;;  %v12610_v17 = vcombine.high %v1408_v18, %v1412_v53 }
 0x409   :  { %10832 = vmatpush1.bf16.msra.mxu0 %v12513_v45  ;;  %v1180_v25 = vld [vmem:[%s19516_s5 + $0x70] sm:$0xff]  ;;  %v12609_v45 = vcombine.low %v1408_v18, %v1412_v53 }
 0x40a   :  { %10833 = vmatprep.subr.bf16.mxu0 %v12506_v10  ;;  %v1400_v61 = vld [vmem:[%s19516_s5 + $0x750] sm:$0xff]  ;;  %v12378_v6 = vcombine.high %v1176_v28, %v1180_v25 }
 0x40b   :  { %10785 = vmatpush1.bf16.msra.mxu1 %v12409_v51  ;;  %v1404_v42 = vld [vmem:[%s19516_s5 + $0x770] sm:$0xff]  ;;  %v12377_v51 = vcombine.low %v1176_v28, %v1180_v25 }
 0x40c   :  { %10786 = vmatprep.subr.bf16.mxu1 %v12402_v36  ;;  %v1168_v47 = vld [vmem:[%s19516_s5 + $0x10] sm:$0xff]  ;;  %v12602_v10 = vcombine.high %v1400_v61, %v1404_v42 }
 0x40d   :  { %10834 = vmatpush1.bf16.msra.mxu0 %v12505_v59  ;;  %v1172_v3 = vld [vmem:[%s19516_s5 + $0x30] sm:$0xff]  ;;  %v12601_v59 = vcombine.low %v1400_v61, %v1404_v42 }
 0x40e   :  { %10835 = vmatprep.subr.bf16.mxu0 %v12498_v16  ;;  %v1392_v9 = vld [vmem:[%s19516_s5 + $0x710] sm:$0xff]  ;;  %v12370_v36 = vcombine.high %v1168_v47, %v1172_v3 }
 0x40f   :  { %10787 = vmatpush1.bf16.msra.mxu1 %v12401_v58  ;;  %v1396_v31 = vld [vmem:[%s19516_s5 + $0x730] sm:$0xff]  ;;  %v12369_v58 = vcombine.low %v1168_v47, %v1172_v3 }
 0x410   :  { %10788 = vmatprep.subr.bf16.mxu1 %v12394_v33  ;;  %v1288_v41 = vld [vmem:[%s19516_s5 + $0x3d0] sm:$0xff]  ;;  %v12594_v16 = vcombine.high %v1392_v9, %v1396_v31 }
 0x411   :  { %10836 = vmatpush1.bf16.msra.mxu0 %v12497_v63  ;;  %v1292_v11 = vld [vmem:[%s19516_s5 + $0x3f0] sm:$0xff]  ;;  %v12593_v63 = vcombine.low %v1392_v9, %v1396_v31 }
 0x412   :  { %10837 = vmatprep.subr.bf16.mxu0 %v12618_v60  ;;  %v1384_v62 = vld [vmem:[%s19516_s5 + $0x6d0] sm:$0xff]  ;;  %v12490_v33 = vcombine.high %v1288_v41, %v1292_v11 }
 0x413   :  { %10789 = vmatpush1.bf16.msra.mxu1 %v12393_v50  ;;  %v1388_v55 = vld [vmem:[%s19516_s5 + $0x6f0] sm:$0xff]  ;;  %v12489_v50 = vcombine.low %v1288_v41, %v1292_v11 }
 0x414   :  { %10790 = vmatprep.subr.bf16.mxu1 %v12386_v8  ;;  %v1280_v44 = vld [vmem:[%s19516_s5 + $0x390] sm:$0xff]  ;;  %v12586_v60 = vcombine.high %v1384_v62, %v1388_v55 }
 0x415   :  { %10838 = vmatpush2.bf16.msra.mxu0 %v12617_v39  ;;  %v1284_v37 = vld [vmem:[%s19516_s5 + $0x3b0] sm:$0xff]  ;;  %v12585_v39 = vcombine.low %v1384_v62, %v1388_v55 }
 0x416   :  { %10839 = vmatprep.subr.bf16.mxu0 %v12610_v17  ;;  %v1376_v18 = vld [vmem:[%s19516_s5 + $0x690] sm:$0xff]  ;;  %v12482_v8 = vcombine.high %v1280_v44, %v1284_v37 }
 0x417   :  { %10791 = vmatpush1.bf16.msra.mxu1 %v12385_v40  ;;  %v1380_v53 = vld [vmem:[%s19516_s5 + $0x6b0] sm:$0xff]  ;;  %v12481_v40 = vcombine.low %v1280_v44, %v1284_v37 }
 0x418   :  { %10792 = vmatprep.subr.bf16.mxu1 %v12378_v6  ;;  %v1272_v28 = vld [vmem:[%s19516_s5 + $0x350] sm:$0xff]  ;;  %v12578_v17 = vcombine.high %v1376_v18, %v1380_v53 }
 0x419   :  { %10840 = vmatpush2.bf16.msra.mxu0 %v12609_v45  ;;  %v1276_v25 = vld [vmem:[%s19516_s5 + $0x370] sm:$0xff]  ;;  %v12577_v45 = vcombine.low %v1376_v18, %v1380_v53 }
 0x41a   :  { %10841 = vmatprep.subr.bf16.mxu0 %v12602_v10  ;;  %v1368_v61 = vld [vmem:[%s19516_s5 + $0x650] sm:$0xff]  ;;  %v12474_v6 = vcombine.high %v1272_v28, %v1276_v25 }
 0x41b   :  { %10793 = vmatpush1.bf16.msra.mxu1 %v12377_v51  ;;  %v1372_v42 = vld [vmem:[%s19516_s5 + $0x670] sm:$0xff]  ;;  %v12473_v51 = vcombine.low %v1272_v28, %v1276_v25 }
 0x41c   :  { %10794 = vmatprep.subr.bf16.mxu1 %v12370_v36  ;;  %v1264_v47 = vld [vmem:[%s19516_s5 + $0x310] sm:$0xff]  ;;  %v12570_v10 = vcombine.high %v1368_v61, %v1372_v42 }
 0x41d   :  { %10842 = vmatpush2.bf16.msra.mxu0 %v12601_v59  ;;  %v1268_v3 = vld [vmem:[%s19516_s5 + $0x330] sm:$0xff]  ;;  %v12569_v59 = vcombine.low %v1368_v61, %v1372_v42 }
 0x41e   :  { %10843 = vmatprep.subr.bf16.mxu0 %v12594_v16  ;;  %v1360_v9 = vld [vmem:[%s19516_s5 + $0x610] sm:$0xff]  ;;  %v12466_v36 = vcombine.high %v1264_v47, %v1268_v3 }
 0x41f   :  { %10795 = vmatpush1.bf16.msra.mxu1 %v12369_v58  ;;  %v1364_v31 = vld [vmem:[%s19516_s5 + $0x630] sm:$0xff]  ;;  %v12465_v58 = vcombine.low %v1264_v47, %v1268_v3 }
 0x420   :  { %10796 = vmatprep.subr.bf16.mxu1 %v12490_v33  ;;  %v1256_v41 = vld [vmem:[%s19516_s5 + $0x2d0] sm:$0xff]  ;;  %v12562_v16 = vcombine.high %v1360_v9, %v1364_v31 }
 0x421   :  { %10844 = vmatpush2.bf16.msra.mxu0 %v12593_v63  ;;  %v1260_v11 = vld [vmem:[%s19516_s5 + $0x2f0] sm:$0xff]  ;;  %v12561_v63 = vcombine.low %v1360_v9, %v1364_v31 }
 0x422   :  { %10845 = vmatprep.subr.bf16.mxu0 %v12586_v60  ;;  %v1608_v62 = vld [vmem:[%s19516_s5 + $0xdd0] sm:$0xff]  ;;  %v12458_v33 = vcombine.high %v1256_v41, %v1260_v11 }
 0x423   :  { %10797 = vmatpush2.bf16.msra.mxu1 %v12489_v50  ;;  %v1612_v55 = vld [vmem:[%s19516_s5 + $0xdf0] sm:$0xff]  ;;  %v12457_v50 = vcombine.low %v1256_v41, %v1260_v11 }
 0x424   :  { %10798 = vmatprep.subr.bf16.mxu1 %v12482_v8  ;;  %v1248_v44 = vld [vmem:[%s19516_s5 + $0x290] sm:$0xff]  ;;  %v12810_v60 = vcombine.high %v1608_v62, %v1612_v55 }
 0x425   :  { %10846 = vmatpush2.bf16.msra.mxu0 %v12585_v39  ;;  %v1252_v37 = vld [vmem:[%s19516_s5 + $0x2b0] sm:$0xff]  ;;  %v12809_v39 = vcombine.low %v1608_v62, %v1612_v55 }
 0x426   :  { %10847 = vmatprep.subr.bf16.mxu0 %v12578_v17  ;;  %v1600_v18 = vld [vmem:[%s19516_s5 + $0xd90] sm:$0xff]  ;;  %v12450_v8 = vcombine.high %v1248_v44, %v1252_v37 }
 0x427   :  { %10799 = vmatpush2.bf16.msra.mxu1 %v12481_v40  ;;  %v1604_v53 = vld [vmem:[%s19516_s5 + $0xdb0] sm:$0xff]  ;;  %v12449_v40 = vcombine.low %v1248_v44, %v1252_v37 }
 0x428   :  { %10800 = vmatprep.subr.bf16.mxu1 %v12474_v6  ;;  %v1240_v28 = vld [vmem:[%s19516_s5 + $0x250] sm:$0xff]  ;;  %v12802_v17 = vcombine.high %v1600_v18, %v1604_v53  ;;  %v12801_v47 = vcombine.low %v1600_v18, %v1604_v53 }
 0x429   :  { %10848 = vmatpush2.bf16.msra.mxu0 %v12577_v45  ;;  %v1244_v25 = vld [vmem:[%s19516_s5 + $0x270] sm:$0xff] }
 0x42a   :  { %10849 = vmatprep.subr.bf16.mxu0 %v12570_v10  ;;  %v1592_v61 = vld [vmem:[%s19516_s5 + $0xd50] sm:$0xff]  ;;  %v12442_v45 = vcombine.high %v1240_v28, %v1244_v25  ;;  %v12441_v31 = vcombine.low %v1240_v28, %v1244_v25 }
 0x42b   :  { %10801 = vmatpush2.bf16.msra.mxu1 %v12473_v51  ;;  %v1596_v42 = vld [vmem:[%s19516_s5 + $0xd70] sm:$0xff] }
 0x42c   :  { %10802 = vmatprep.subr.bf16.mxu1 %v12466_v36  ;;  %v1232_v3 = vld [vmem:[%s19516_s5 + $0x210] sm:$0xff]  ;;  %v12794_v9 = vcombine.high %v1592_v61, %v1596_v42 }
 0x42d   :  { %10850 = vmatpush2.bf16.msra.mxu0 %v12569_v59  ;;  %v1236_v10 = vld [vmem:[%s19516_s5 + $0x230] sm:$0xff] }
 0x42e   :  { %10851 = vmatprep.subr.bf16.mxu0 %v12562_v16  ;;  %v1584_v36 = vld [vmem:[%s19516_s5 + $0xd10] sm:$0xff]  ;;  %v12434_v11 = vcombine.high %v1232_v3, %v1236_v10  ;;  %v12793_v16 = vcombine.low %v1592_v61, %v1596_v42  ;;  %v12433_v37 = vcombine.low %v1232_v3, %v1236_v10 }
 0x42f   :  { %10803 = vmatpush2.bf16.msra.mxu1 %v12465_v58  ;;  %v1588_v59 = vld [vmem:[%s19516_s5 + $0xd30] sm:$0xff] }
 0x430   :  { %10804 = vmatprep.subr.bf16.mxu1 %v12458_v33  ;;  %v1480_v58 = vld [vmem:[%s19516_s5 + $0x9d0] sm:$0xff] }
 0x431   :  { %10852 = vmatpush2.bf16.msra.mxu0 %v12561_v63  ;;  %v1484_v62 = vld [vmem:[%s19516_s5 + $0x9f0] sm:$0xff]  ;;  %v12786_v63 = vcombine.high %v1584_v36, %v1588_v59 }
 0x432   :  { %10903 = vmatprep.subr.bf16.mxu0 %v12810_v60  ;;  %v1576_v60 = vld [vmem:[%s19516_s5 + $0xcd0] sm:$0xff]  ;;  %v12682_v53 = vcombine.high %v1480_v58, %v1484_v62  ;;  %v12681_v61 = vcombine.low %v1480_v58, %v1484_v62 }
 0x433   :  { %10805 = vmatpush2.bf16.msra.mxu1 %v12457_v50  ;;  %v1580_v50 = vld [vmem:[%s19516_s5 + $0xcf0] sm:$0xff] }
 0x434   :  { %v10568_v6 = vpop.f32.mrf.mxu0  ;;  %10854 = vmatmul.mubr.bf16.vlgmr.msra.gmra.mxu0 %v14917_v12  ;;  %10806 = vmatprep.subr.bf16.mxu1 %v12450_v8  ;;  %v1476_v28 = vld [vmem:[%s19516_s5 + $0x9b0] sm:$0xff] }
 0x435   :  { %10904 = vmatpush1.bf16.msra.mxu0 %v12809_v39  ;;  %10935 = vmatprep.mubr.bf16.mxu0 %v15270_v14  ;;  %v12785_v39 = vcombine.low %v1584_v36, %v1588_v59  ;;  %v1572_v42 = vld [vmem:[%s19516_s5 + $0xcb0] sm:$0xff] }
 0x436   :  { %v10570_v51 = vpop.f32.mrf.mxu0  ;;  %10905 = vmatprep.subr.bf16.mxu0 %v12802_v17  ;;  %v1464_v10 = vld [vmem:[%s19516_s5 + $0x950] sm:$0xff] }
 0x437   :  { %10807 = vmatpush2.bf16.msra.mxu1 %v12449_v40  ;;  %v12778_v40 = vcombine.high %v1576_v60, %v1580_v50  ;;  %v1560_v36 = vld [vmem:[%s19516_s5 + $0xc50] sm:$0xff] }
 0x438   :  { %v10572_v41 = vpop.f32.mrf.mxu0  ;;  %10808 = vmatprep.subr.bf16.mxu1 %v12442_v45  ;;  %v1564_v59 = vld [vmem:[%s19516_s5 + $0xc70] sm:$0xff] }
 0x439   :  { %10906 = vmatpush1.bf16.msra.mxu0 %v12801_v47  ;;  %v1460_v58 = vld [vmem:[%s19516_s5 + $0x930] sm:$0xff]  ;;  %v12762_v62 = vcombine.high %v1560_v36, %v1564_v59 }
 0x43a   :  { %v10527_v55 = vpop.f32.mrf.mxu1  ;;  %v10573_v33 = vpop.f32.mrf.mxu0  ;;  %10907 = vmatprep.subr.bf16.mxu0 %v12794_v9  ;;  %v1468_v9 = vld [vmem:[%s19516_s5 + $0x970] sm:$0xff] }
 0x43b   :  { %v10528_v44 = vadd.f32 %v10527_v55, %v17313_v13  ;;  %10809 = vmatpush2.bf16.msra.mxu1 %v12441_v31  ;;  %v1472_v13 = vld [vmem:[%s19516_s5 + $0x990] sm:$0xff]  ;;  %v12666_v41 = vcombine.high %v1464_v10, %v1468_v9  ;;  %v12665_v55 = vcombine.low %v1464_v10, %v1468_v9 }
 0x43c   :  { %v10529_v18 = vpop.f32.mrf.mxu1  ;;  %10810 = vmatprep.subr.bf16.mxu1 %v12434_v11  ;;  %v12674_v3 = vcombine.high %v1472_v13, %v1476_v28  ;;  %v1552_v33 = vld [vmem:[%s19516_s5 + $0xc10] sm:$0xff] }
 0x43d   :  { %v10530_v8 = vadd.f32 %v10529_v18, %v17321_v23  ;;  %10908 = vmatpush1.bf16.msra.mxu0 %v12793_v16  ;;  %v17516_v25 = vadd.f32 %v10568_v6, %v10528_v44  ;;  %v1568_v23 = vld [vmem:[%s19516_s5 + $0xc90] sm:$0xff]  ;;  %v12777_v6 = vcombine.low %v1576_v60, %v1580_v50 }
 0x43e   :  { %v10531_v17 = vpop.f32.mrf.mxu1  ;;  %10909 = vmatprep.subr.bf16.mxu0 %v12786_v63  ;;  %v12770_v31 = vcombine.high %v1568_v23, %v1572_v42  ;;  %v12769_v11 = vcombine.low %v1568_v23, %v1572_v42  ;;  %v1456_v16 = vld [vmem:[%s19516_s5 + $0x910] sm:$0xff] }
 0x43f   :  { %10811 = vmatpush2.bf16.msra.mxu1 %v12433_v37  ;;  %v17524_v45 = vadd.f32 %v10570_v51, %v10530_v8  ;;  %v12673_v51 = vcombine.low %v1472_v13, %v1476_v28  ;;  %v1556_v63 = vld [vmem:[%s19516_s5 + $0xc30] sm:$0xff]  ;;  %v12658_v44 = vcombine.high %v1456_v16, %v1460_v58  ;;  %v12761_v37 = vcombine.low %v1560_v36, %v1564_v59 }
 0x440   :  { %v10532_v47 = vpop.f32.mrf.mxu1  ;;  %10862 = vmatprep.subr.bf16.mxu1 %v12682_v53  ;;  %v1448_v60 = vld [vmem:[%s19516_s5 + $0x8d0] sm:$0xff]  ;;  %v12754_v18 = vcombine.high %v1552_v33, %v1556_v63  ;;  %v12657_v53 = vcombine.low %v1456_v16, %v1460_v58  ;;  %v12753_v28 = vcombine.low %v1552_v33, %v1556_v63 }
 0x441   :  { %10910 = vmatpush1.bf16.msra.mxu0 %v12785_v39  ;;  %v1452_v50 = vld [vmem:[%s19516_s5 + $0x8f0] sm:$0xff] }
 0x442   :  { %10813 = vmatmul.mubr.bf16.vlgmr.msra.gmra.mxu1 %v14901_v27  ;;  %10911 = vmatprep.subr.bf16.mxu0 %v12778_v40  ;;  %v1672_v8 = vld [vmem:[%s19516_s5 + $0xfd0] sm:$0xff]  ;;  %v12650_v13 = vcombine.high %v1448_v60, %v1452_v50  ;;  %v12649_v23 = vcombine.low %v1448_v60, %v1452_v50 }
 0x443   :  { %10863 = vmatpush1.bf16.msra.mxu1 %v12681_v61  ;;  %10894 = vmatprep.mubr.bf16.mxu1 %v15254_v54  ;;  %v1676_v39 = vld [vmem:[%s19516_s5 + $0xff0] sm:$0xff] }
 0x444   :  { %10864 = vmatprep.subr.bf16.mxu1 %v12674_v3  ;;  %v1440_v17 = vld [vmem:[%s19516_s5 + $0x890] sm:$0xff]  ;;  %v12874_v61 = vcombine.high %v1672_v8, %v1676_v39 }
 0x445   :  { %10912 = vmatpush1.bf16.msra.mxu0 %v12777_v6  ;;  %v1444_v40 = vld [vmem:[%s19516_s5 + $0x8b0] sm:$0xff]  ;;  %v12873_v6 = vcombine.low %v1672_v8, %v1676_v39 }
 0x446   :  { %10913 = vmatprep.subr.bf16.mxu0 %v12770_v31  ;;  %v1664_v42 = vld [vmem:[%s19516_s5 + $0xf90] sm:$0xff]  ;;  %v12642_v3 = vcombine.high %v1440_v17, %v1444_v40 }
 0x447   :  { %10865 = vmatpush1.bf16.msra.mxu1 %v12673_v51  ;;  %v1668_v47 = vld [vmem:[%s19516_s5 + $0xfb0] sm:$0xff]  ;;  %v12641_v51 = vcombine.low %v1440_v17, %v1444_v40 }
 0x448   :  { %10866 = vmatprep.subr.bf16.mxu1 %v12666_v41  ;;  %v1432_v10 = vld [vmem:[%s19516_s5 + $0x850] sm:$0xff]  ;;  %v12866_v31 = vcombine.high %v1664_v42, %v1668_v47 }
 0x449   :  { %10914 = vmatpush1.bf16.msra.mxu0 %v12769_v11  ;;  %v1436_v9 = vld [vmem:[%s19516_s5 + $0x870] sm:$0xff]  ;;  %v12865_v11 = vcombine.low %v1664_v42, %v1668_v47 }
 0x44a   :  { %10915 = vmatprep.subr.bf16.mxu0 %v12762_v62  ;;  %v1656_v36 = vld [vmem:[%s19516_s5 + $0xf50] sm:$0xff]  ;;  %v12634_v41 = vcombine.high %v1432_v10, %v1436_v9 }
 0x44b   :  { %10867 = vmatpush1.bf16.msra.mxu1 %v12665_v55  ;;  %v1660_v59 = vld [vmem:[%s19516_s5 + $0xf70] sm:$0xff]  ;;  %v12633_v55 = vcombine.low %v1432_v10, %v1436_v9 }
 0x44c   :  { %10868 = vmatprep.subr.bf16.mxu1 %v12658_v44  ;;  %v1424_v16 = vld [vmem:[%s19516_s5 + $0x810] sm:$0xff]  ;;  %v12858_v62 = vcombine.high %v1656_v36, %v1660_v59 }
 0x44d   :  { %10916 = vmatpush1.bf16.msra.mxu0 %v12761_v37  ;;  %v1428_v58 = vld [vmem:[%s19516_s5 + $0x830] sm:$0xff]  ;;  %v12857_v37 = vcombine.low %v1656_v36, %v1660_v59 }
 0x44e   :  { %10917 = vmatprep.subr.bf16.mxu0 %v12754_v18  ;;  %v1648_v33 = vld [vmem:[%s19516_s5 + $0xf10] sm:$0xff]  ;;  %v12626_v44 = vcombine.high %v1424_v16, %v1428_v58 }
 0x44f   :  { %10869 = vmatpush1.bf16.msra.mxu1 %v12657_v53  ;;  %v1652_v63 = vld [vmem:[%s19516_s5 + $0xf30] sm:$0xff]  ;;  %v12625_v53 = vcombine.low %v1424_v16, %v1428_v58 }
 0x450   :  { %10870 = vmatprep.subr.bf16.mxu1 %v12650_v13  ;;  %v1544_v60 = vld [vmem:[%s19516_s5 + $0xbd0] sm:$0xff]  ;;  %v12850_v18 = vcombine.high %v1648_v33, %v1652_v63 }
 0x451   :  { %10918 = vmatpush1.bf16.msra.mxu0 %v12753_v28  ;;  %v1548_v50 = vld [vmem:[%s19516_s5 + $0xbf0] sm:$0xff]  ;;  %v12849_v28 = vcombine.low %v1648_v33, %v1652_v63 }
 0x452   :  { %10919 = vmatprep.subr.bf16.mxu0 %v12874_v61  ;;  %v1640_v8 = vld [vmem:[%s19516_s5 + $0xed0] sm:$0xff]  ;;  %v12746_v13 = vcombine.high %v1544_v60, %v1548_v50 }
 0x453   :  { %10871 = vmatpush1.bf16.msra.mxu1 %v12649_v23  ;;  %v1644_v39 = vld [vmem:[%s19516_s5 + $0xef0] sm:$0xff]  ;;  %v12745_v23 = vcombine.low %v1544_v60, %v1548_v50 }
 0x454   :  { %10872 = vmatprep.subr.bf16.mxu1 %v12642_v3  ;;  %v1536_v17 = vld [vmem:[%s19516_s5 + $0xb90] sm:$0xff]  ;;  %v12842_v61 = vcombine.high %v1640_v8, %v1644_v39 }
 0x455   :  { %10920 = vmatpush2.bf16.msra.mxu0 %v12873_v6  ;;  %v1540_v40 = vld [vmem:[%s19516_s5 + $0xbb0] sm:$0xff]  ;;  %v12841_v6 = vcombine.low %v1640_v8, %v1644_v39 }
 0x456   :  { %10921 = vmatprep.subr.bf16.mxu0 %v12866_v31  ;;  %v1632_v42 = vld [vmem:[%s19516_s5 + $0xe90] sm:$0xff]  ;;  %v12738_v3 = vcombine.high %v1536_v17, %v1540_v40 }
 0x457   :  { %10873 = vmatpush1.bf16.msra.mxu1 %v12641_v51  ;;  %v1636_v47 = vld [vmem:[%s19516_s5 + $0xeb0] sm:$0xff]  ;;  %v12737_v51 = vcombine.low %v1536_v17, %v1540_v40 }
 0x458   :  { %10874 = vmatprep.subr.bf16.mxu1 %v12634_v41  ;;  %v1528_v10 = vld [vmem:[%s19516_s5 + $0xb50] sm:$0xff]  ;;  %v12834_v31 = vcombine.high %v1632_v42, %v1636_v47 }
 0x459   :  { %10922 = vmatpush2.bf16.msra.mxu0 %v12865_v11  ;;  %v1532_v9 = vld [vmem:[%s19516_s5 + $0xb70] sm:$0xff]  ;;  %v12833_v11 = vcombine.low %v1632_v42, %v1636_v47 }
 0x45a   :  { %10923 = vmatprep.subr.bf16.mxu0 %v12858_v62  ;;  %v1624_v36 = vld [vmem:[%s19516_s5 + $0xe50] sm:$0xff]  ;;  %v12730_v41 = vcombine.high %v1528_v10, %v1532_v9 }
 0x45b   :  { %10875 = vmatpush1.bf16.msra.mxu1 %v12633_v55  ;;  %v1628_v59 = vld [vmem:[%s19516_s5 + $0xe70] sm:$0xff]  ;;  %v12729_v55 = vcombine.low %v1528_v10, %v1532_v9 }
 0x45c   :  { %10876 = vmatprep.subr.bf16.mxu1 %v12626_v44  ;;  %v1520_v16 = vld [vmem:[%s19516_s5 + $0xb10] sm:$0xff]  ;;  %v12826_v62 = vcombine.high %v1624_v36, %v1628_v59 }
 0x45d   :  { %10924 = vmatpush2.bf16.msra.mxu0 %v12857_v37  ;;  %v1524_v58 = vld [vmem:[%s19516_s5 + $0xb30] sm:$0xff]  ;;  %v12825_v37 = vcombine.low %v1624_v36, %v1628_v59 }
 0x45e   :  { %10925 = vmatprep.subr.bf16.mxu0 %v12850_v18  ;;  %v1616_v33 = vld [vmem:[%s19516_s5 + $0xe10] sm:$0xff]  ;;  %v12722_v44 = vcombine.high %v1520_v16, %v1524_v58 }
 0x45f   :  { %10877 = vmatpush1.bf16.msra.mxu1 %v12625_v53  ;;  %v1620_v63 = vld [vmem:[%s19516_s5 + $0xe30] sm:$0xff]  ;;  %v12721_v53 = vcombine.low %v1520_v16, %v1524_v58 }
 0x460   :  { %10878 = vmatprep.subr.bf16.mxu1 %v12746_v13  ;;  %v1512_v60 = vld [vmem:[%s19516_s5 + $0xad0] sm:$0xff]  ;;  %v12818_v18 = vcombine.high %v1616_v33, %v1620_v63 }
 0x461   :  { %10926 = vmatpush2.bf16.msra.mxu0 %v12849_v28  ;;  %v1516_v50 = vld [vmem:[%s19516_s5 + $0xaf0] sm:$0xff]  ;;  %v12817_v28 = vcombine.low %v1616_v33, %v1620_v63 }
 0x462   :  { %10927 = vmatprep.subr.bf16.mxu0 %v12842_v61  ;;  %v1864_v8 = vld [vmem:[%s19516_s5 + $0x15d0] sm:$0xff]  ;;  %v12714_v13 = vcombine.high %v1512_v60, %v1516_v50 }
 0x463   :  { %10879 = vmatpush2.bf16.msra.mxu1 %v12745_v23  ;;  %v1868_v39 = vld [vmem:[%s19516_s5 + $0x15f0] sm:$0xff]  ;;  %v12713_v23 = vcombine.low %v1512_v60, %v1516_v50 }
 0x464   :  { %10880 = vmatprep.subr.bf16.mxu1 %v12738_v3  ;;  %v1504_v17 = vld [vmem:[%s19516_s5 + $0xa90] sm:$0xff]  ;;  %v13066_v61 = vcombine.high %v1864_v8, %v1868_v39 }
 0x465   :  { %10928 = vmatpush2.bf16.msra.mxu0 %v12841_v6  ;;  %v1508_v40 = vld [vmem:[%s19516_s5 + $0xab0] sm:$0xff]  ;;  %v13065_v6 = vcombine.low %v1864_v8, %v1868_v39 }
 0x466   :  { %10929 = vmatprep.subr.bf16.mxu0 %v12834_v31  ;;  %v1856_v42 = vld [vmem:[%s19516_s5 + $0x1590] sm:$0xff]  ;;  %v12706_v3 = vcombine.high %v1504_v17, %v1508_v40 }
 0x467   :  { %10881 = vmatpush2.bf16.msra.mxu1 %v12737_v51  ;;  %v1860_v47 = vld [vmem:[%s19516_s5 + $0x15b0] sm:$0xff]  ;;  %v12705_v51 = vcombine.low %v1504_v17, %v1508_v40 }
 0x468   :  { %10882 = vmatprep.subr.bf16.mxu1 %v12730_v41  ;;  %v1496_v10 = vld [vmem:[%s19516_s5 + $0xa50] sm:$0xff]  ;;  %v13058_v31 = vcombine.high %v1856_v42, %v1860_v47  ;;  %v13057_v16 = vcombine.low %v1856_v42, %v1860_v47 }
 0x469   :  { %10930 = vmatpush2.bf16.msra.mxu0 %v12833_v11  ;;  %v1500_v9 = vld [vmem:[%s19516_s5 + $0xa70] sm:$0xff] }
 0x46a   :  { %10931 = vmatprep.subr.bf16.mxu0 %v12826_v62  ;;  %v1848_v36 = vld [vmem:[%s19516_s5 + $0x1550] sm:$0xff]  ;;  %v12698_v11 = vcombine.high %v1496_v10, %v1500_v9  ;;  %v12697_v63 = vcombine.low %v1496_v10, %v1500_v9 }
 0x46b   :  { %10883 = vmatpush2.bf16.msra.mxu1 %v12729_v55  ;;  %v1852_v59 = vld [vmem:[%s19516_s5 + $0x1570] sm:$0xff] }
 0x46c   :  { %10884 = vmatprep.subr.bf16.mxu1 %v12722_v44  ;;  %v1488_v58 = vld [vmem:[%s19516_s5 + $0xa10] sm:$0xff]  ;;  %v13050_v33 = vcombine.high %v1848_v36, %v1852_v59 }
 0x46d   :  { %10932 = vmatpush2.bf16.msra.mxu0 %v12825_v37  ;;  %v1492_v62 = vld [vmem:[%s19516_s5 + $0xa30] sm:$0xff] }
 0x46e   :  { %10933 = vmatprep.subr.bf16.mxu0 %v12818_v18  ;;  %v1840_v44 = vld [vmem:[%s19516_s5 + $0x1510] sm:$0xff]  ;;  %v12690_v50 = vcombine.high %v1488_v58, %v1492_v62  ;;  %v13049_v18 = vcombine.low %v1848_v36, %v1852_v59  ;;  %v12689_v40 = vcombine.low %v1488_v58, %v1492_v62 }
 0x46f   :  { %10885 = vmatpush2.bf16.msra.mxu1 %v12721_v53  ;;  %v1844_v37 = vld [vmem:[%s19516_s5 + $0x1530] sm:$0xff] }
 0x470   :  { %10886 = vmatprep.subr.bf16.mxu1 %v12714_v13  ;;  %v1736_v53 = vld [vmem:[%s19516_s5 + $0x11d0] sm:$0xff] }
 0x471   :  { %10934 = vmatpush2.bf16.msra.mxu0 %v12817_v28  ;;  %v1740_v8 = vld [vmem:[%s19516_s5 + $0x11f0] sm:$0xff]  ;;  %v13042_v28 = vcombine.high %v1840_v44, %v1844_v37 }
 0x472   :  { %10985 = vmatprep.subr.bf16.mxu0 %v13066_v61  ;;  %v1832_v61 = vld [vmem:[%s19516_s5 + $0x14d0] sm:$0xff]  ;;  %v12938_v47 = vcombine.high %v1736_v53, %v1740_v8  ;;  %v12937_v36 = vcombine.low %v1736_v53, %v1740_v8 }
 0x473   :  { %10887 = vmatpush2.bf16.msra.mxu1 %v12713_v23  ;;  %v1836_v23 = vld [vmem:[%s19516_s5 + $0x14f0] sm:$0xff] }
 0x474   :  { %v10650_v41 = vpop.f32.mrf.mxu0  ;;  %10936 = vmatmul.mubr.bf16.vlgmr.msra.gmra.mxu0 %v15425_v15  ;;  %10888 = vmatprep.subr.bf16.mxu1 %v12706_v3  ;;  %v1732_v10 = vld [vmem:[%s19516_s5 + $0x11b0] sm:$0xff] }
 0x475   :  { %10986 = vmatpush1.bf16.msra.mxu0 %v13065_v6  ;;  %11017 = vmatprep.mubr.bf16.mxu0 %v15682_v57  ;;  %v13041_v6 = vcombine.low %v1840_v44, %v1844_v37  ;;  %v1828_v59 = vld [vmem:[%s19516_s5 + $0x14b0] sm:$0xff] }
 0x476   :  { %v10652_v55 = vpop.f32.mrf.mxu0  ;;  %10987 = vmatprep.subr.bf16.mxu0 %v13058_v31  ;;  %v1720_v62 = vld [vmem:[%s19516_s5 + $0x1150] sm:$0xff] }
 0x477   :  { %10889 = vmatpush2.bf16.msra.mxu1 %v12705_v51  ;;  %v13034_v51 = vcombine.high %v1832_v61, %v1836_v23  ;;  %v1816_v44 = vld [vmem:[%s19516_s5 + $0x1450] sm:$0xff] }
 0x478   :  { %v10654_v60 = vpop.f32.mrf.mxu0  ;;  %10890 = vmatprep.subr.bf16.mxu1 %v12698_v11  ;;  %v1820_v37 = vld [vmem:[%s19516_s5 + $0x1470] sm:$0xff] }
 0x479   :  { %10988 = vmatpush1.bf16.msra.mxu0 %v13057_v16  ;;  %v1716_v53 = vld [vmem:[%s19516_s5 + $0x1130] sm:$0xff]  ;;  %v13018_v8 = vcombine.high %v1816_v44, %v1820_v37 }
 0x47a   :  { %v10609_v39 = vpop.f32.mrf.mxu1  ;;  %v10655_v13 = vpop.f32.mrf.mxu0  ;;  %10989 = vmatprep.subr.bf16.mxu0 %v13050_v33  ;;  %v1724_v33 = vld [vmem:[%s19516_s5 + $0x1170] sm:$0xff] }
 0x47b   :  { %v10610_v17 = vadd.f32 %v10609_v39, %v17516_v25  ;;  %10891 = vmatpush2.bf16.msra.mxu1 %v12697_v63  ;;  %v1728_v25 = vld [vmem:[%s19516_s5 + $0x1190] sm:$0xff]  ;;  %v12922_v60 = vcombine.high %v1720_v62, %v1724_v33  ;;  %v12921_v39 = vcombine.low %v1720_v62, %v1724_v33 }
 0x47c   :  { %v10611_v42 = vpop.f32.mrf.mxu1  ;;  %10892 = vmatprep.subr.bf16.mxu1 %v12690_v50  ;;  %v12930_v58 = vcombine.high %v1728_v25, %v1732_v10  ;;  %v1808_v13 = vld [vmem:[%s19516_s5 + $0x1410] sm:$0xff] }
 0x47d   :  { %v10612_v3 = vadd.f32 %v10611_v42, %v17524_v45  ;;  %10990 = vmatpush1.bf16.msra.mxu0 %v13049_v18  ;;  %v17718_v9 = vadd.f32 %v10650_v41, %v10610_v17  ;;  %v1824_v45 = vld [vmem:[%s19516_s5 + $0x1490] sm:$0xff]  ;;  %v13033_v41 = vcombine.low %v1832_v61, %v1836_v23 }
 0x47e   :  { %v10613_v31 = vpop.f32.mrf.mxu1  ;;  %10991 = vmatprep.subr.bf16.mxu0 %v13042_v28  ;;  %v13026_v63 = vcombine.high %v1824_v45, %v1828_v59  ;;  %v13025_v50 = vcombine.low %v1824_v45, %v1828_v59  ;;  %v1712_v18 = vld [vmem:[%s19516_s5 + $0x1110] sm:$0xff] }
 0x47f   :  { %10893 = vmatpush2.bf16.msra.mxu1 %v12689_v40  ;;  %v17726_v11 = vadd.f32 %v10652_v55, %v10612_v3  ;;  %v12929_v55 = vcombine.low %v1728_v25, %v1732_v10  ;;  %v1812_v28 = vld [vmem:[%s19516_s5 + $0x1430] sm:$0xff]  ;;  %v12914_v17 = vcombine.high %v1712_v18, %v1716_v53  ;;  %v13017_v40 = vcombine.low %v1816_v44, %v1820_v37 }
 0x480   :  { %v10614_v16 = vpop.f32.mrf.mxu1  ;;  %10944 = vmatprep.subr.bf16.mxu1 %v12938_v47  ;;  %v1704_v61 = vld [vmem:[%s19516_s5 + $0x10d0] sm:$0xff]  ;;  %v13010_v42 = vcombine.high %v1808_v13, %v1812_v28  ;;  %v12913_v47 = vcombine.low %v1712_v18, %v1716_v53  ;;  %v13009_v10 = vcombine.low %v1808_v13, %v1812_v28 }
 0x481   :  { %10992 = vmatpush1.bf16.msra.mxu0 %v13041_v6  ;;  %v1708_v23 = vld [vmem:[%s19516_s5 + $0x10f0] sm:$0xff] }
 0x482   :  { %10895 = vmatmul.mubr.bf16.vlgmr.msra.gmra.mxu1 %v15414_v7  ;;  %10993 = vmatprep.subr.bf16.mxu0 %v13034_v51  ;;  %v1928_v3 = vld [vmem:[%s19516_s5 + $0x17d0] sm:$0xff]  ;;  %v12906_v25 = vcombine.high %v1704_v61, %v1708_v23  ;;  %v12905_v45 = vcombine.low %v1704_v61, %v1708_v23 }
 0x483   :  { %10945 = vmatpush1.bf16.msra.mxu1 %v12937_v36  ;;  %10976 = vmatprep.mubr.bf16.mxu1 %v15669_v21  ;;  %v1932_v6 = vld [vmem:[%s19516_s5 + $0x17f0] sm:$0xff] }
 0x484   :  { %10946 = vmatprep.subr.bf16.mxu1 %v12930_v58  ;;  %v1696_v31 = vld [vmem:[%s19516_s5 + $0x1090] sm:$0xff]  ;;  %v13130_v36 = vcombine.high %v1928_v3, %v1932_v6 }
 0x485   :  { %10994 = vmatpush1.bf16.msra.mxu0 %v13033_v41  ;;  %v1700_v51 = vld [vmem:[%s19516_s5 + $0x10b0] sm:$0xff]  ;;  %v13129_v41 = vcombine.low %v1928_v3, %v1932_v6 }
 0x486   :  { %10995 = vmatprep.subr.bf16.mxu0 %v13026_v63  ;;  %v1920_v59 = vld [vmem:[%s19516_s5 + $0x1790] sm:$0xff]  ;;  %v12898_v58 = vcombine.high %v1696_v31, %v1700_v51 }
 0x487   :  { %10947 = vmatpush1.bf16.msra.mxu1 %v12929_v55  ;;  %v1924_v16 = vld [vmem:[%s19516_s5 + $0x17b0] sm:$0xff]  ;;  %v12897_v55 = vcombine.low %v1696_v31, %v1700_v51 }
 0x488   :  { %10948 = vmatprep.subr.bf16.mxu1 %v12922_v60  ;;  %v1688_v62 = vld [vmem:[%s19516_s5 + $0x1050] sm:$0xff]  ;;  %v13122_v63 = vcombine.high %v1920_v59, %v1924_v16 }
 0x489   :  { %10996 = vmatpush1.bf16.msra.mxu0 %v13025_v50  ;;  %v1692_v33 = vld [vmem:[%s19516_s5 + $0x1070] sm:$0xff]  ;;  %v13121_v50 = vcombine.low %v1920_v59, %v1924_v16 }
 0x48a   :  { %10997 = vmatprep.subr.bf16.mxu0 %v13018_v8  ;;  %v1912_v44 = vld [vmem:[%s19516_s5 + $0x1750] sm:$0xff]  ;;  %v12890_v60 = vcombine.high %v1688_v62, %v1692_v33 }
 0x48b   :  { %10949 = vmatpush1.bf16.msra.mxu1 %v12921_v39  ;;  %v1916_v37 = vld [vmem:[%s19516_s5 + $0x1770] sm:$0xff]  ;;  %v12889_v39 = vcombine.low %v1688_v62, %v1692_v33 }
 0x48c   :  { %10950 = vmatprep.subr.bf16.mxu1 %v12914_v17  ;;  %v1680_v18 = vld [vmem:[%s19516_s5 + $0x1010] sm:$0xff]  ;;  %v13114_v8 = vcombine.high %v1912_v44, %v1916_v37 }
 0x48d   :  { %10998 = vmatpush1.bf16.msra.mxu0 %v13017_v40  ;;  %v1684_v53 = vld [vmem:[%s19516_s5 + $0x1030] sm:$0xff]  ;;  %v13113_v40 = vcombine.low %v1912_v44, %v1916_v37 }
 0x48e   :  { %10999 = vmatprep.subr.bf16.mxu0 %v13010_v42  ;;  %v1904_v13 = vld [vmem:[%s19516_s5 + $0x1710] sm:$0xff]  ;;  %v12882_v17 = vcombine.high %v1680_v18, %v1684_v53 }
 0x48f   :  { %10951 = vmatpush1.bf16.msra.mxu1 %v12913_v47  ;;  %v1908_v28 = vld [vmem:[%s19516_s5 + $0x1730] sm:$0xff]  ;;  %v12881_v47 = vcombine.low %v1680_v18, %v1684_v53 }
 0x490   :  { %10952 = vmatprep.subr.bf16.mxu1 %v12906_v25  ;;  %v1800_v61 = vld [vmem:[%s19516_s5 + $0x13d0] sm:$0xff]  ;;  %v13106_v42 = vcombine.high %v1904_v13, %v1908_v28 }
 0x491   :  { %11000 = vmatpush1.bf16.msra.mxu0 %v13009_v10  ;;  %v1804_v23 = vld [vmem:[%s19516_s5 + $0x13f0] sm:$0xff]  ;;  %v13105_v10 = vcombine.low %v1904_v13, %v1908_v28 }
 0x492   :  { %11001 = vmatprep.subr.bf16.mxu0 %v13130_v36  ;;  %v1896_v3 = vld [vmem:[%s19516_s5 + $0x16d0] sm:$0xff]  ;;  %v13002_v25 = vcombine.high %v1800_v61, %v1804_v23 }
 0x493   :  { %10953 = vmatpush1.bf16.msra.mxu1 %v12905_v45  ;;  %v1900_v6 = vld [vmem:[%s19516_s5 + $0x16f0] sm:$0xff]  ;;  %v13001_v45 = vcombine.low %v1800_v61, %v1804_v23 }
 0x494   :  { %10954 = vmatprep.subr.bf16.mxu1 %v12898_v58  ;;  %v1792_v31 = vld [vmem:[%s19516_s5 + $0x1390] sm:$0xff]  ;;  %v13098_v36 = vcombine.high %v1896_v3, %v1900_v6 }
 0x495   :  { %11002 = vmatpush2.bf16.msra.mxu0 %v13129_v41  ;;  %v1796_v51 = vld [vmem:[%s19516_s5 + $0x13b0] sm:$0xff]  ;;  %v13097_v41 = vcombine.low %v1896_v3, %v1900_v6 }
 0x496   :  { %11003 = vmatprep.subr.bf16.mxu0 %v13122_v63  ;;  %v1888_v59 = vld [vmem:[%s19516_s5 + $0x1690] sm:$0xff]  ;;  %v12994_v58 = vcombine.high %v1792_v31, %v1796_v51 }
 0x497   :  { %10955 = vmatpush1.bf16.msra.mxu1 %v12897_v55  ;;  %v1892_v16 = vld [vmem:[%s19516_s5 + $0x16b0] sm:$0xff]  ;;  %v12993_v55 = vcombine.low %v1792_v31, %v1796_v51 }
 0x498   :  { %10956 = vmatprep.subr.bf16.mxu1 %v12890_v60  ;;  %v1784_v62 = vld [vmem:[%s19516_s5 + $0x1350] sm:$0xff]  ;;  %v13090_v63 = vcombine.high %v1888_v59, %v1892_v16 }
 0x499   :  { %11004 = vmatpush2.bf16.msra.mxu0 %v13121_v50  ;;  %v1788_v33 = vld [vmem:[%s19516_s5 + $0x1370] sm:$0xff]  ;;  %v13089_v50 = vcombine.low %v1888_v59, %v1892_v16 }
 0x49a   :  { %11005 = vmatprep.subr.bf16.mxu0 %v13114_v8  ;;  %v1880_v44 = vld [vmem:[%s19516_s5 + $0x1650] sm:$0xff]  ;;  %v12986_v60 = vcombine.high %v1784_v62, %v1788_v33 }
 0x49b   :  { %10957 = vmatpush1.bf16.msra.mxu1 %v12889_v39  ;;  %v1884_v37 = vld [vmem:[%s19516_s5 + $0x1670] sm:$0xff]  ;;  %v12985_v39 = vcombine.low %v1784_v62, %v1788_v33 }
 0x49c   :  { %10958 = vmatprep.subr.bf16.mxu1 %v12882_v17  ;;  %v1776_v18 = vld [vmem:[%s19516_s5 + $0x1310] sm:$0xff]  ;;  %v13082_v8 = vcombine.high %v1880_v44, %v1884_v37 }
 0x49d   :  { %11006 = vmatpush2.bf16.msra.mxu0 %v13113_v40  ;;  %v1780_v53 = vld [vmem:[%s19516_s5 + $0x1330] sm:$0xff]  ;;  %v13081_v40 = vcombine.low %v1880_v44, %v1884_v37 }
 0x49e   :  { %11007 = vmatprep.subr.bf16.mxu0 %v13106_v42  ;;  %v1872_v13 = vld [vmem:[%s19516_s5 + $0x1610] sm:$0xff]  ;;  %v12978_v17 = vcombine.high %v1776_v18, %v1780_v53 }
 0x49f   :  { %10959 = vmatpush1.bf16.msra.mxu1 %v12881_v47  ;;  %v1876_v28 = vld [vmem:[%s19516_s5 + $0x1630] sm:$0xff]  ;;  %v12977_v47 = vcombine.low %v1776_v18, %v1780_v53 }
 0x4a0   :  { %10960 = vmatprep.subr.bf16.mxu1 %v13002_v25  ;;  %v1768_v61 = vld [vmem:[%s19516_s5 + $0x12d0] sm:$0xff]  ;;  %v13074_v42 = vcombine.high %v1872_v13, %v1876_v28 }
 0x4a1   :  { %11008 = vmatpush2.bf16.msra.mxu0 %v13105_v10  ;;  %v1772_v23 = vld [vmem:[%s19516_s5 + $0x12f0] sm:$0xff]  ;;  %v13073_v10 = vcombine.low %v1872_v13, %v1876_v28 }
 0x4a2   :  { %11009 = vmatprep.subr.bf16.mxu0 %v13098_v36  ;;  %v2120_v3 = vld [vmem:[%s19516_s5 + $0x1dd0] sm:$0xff]  ;;  %v12970_v25 = vcombine.high %v1768_v61, %v1772_v23 }
 0x4a3   :  { %10961 = vmatpush2.bf16.msra.mxu1 %v13001_v45  ;;  %v2124_v6 = vld [vmem:[%s19516_s5 + $0x1df0] sm:$0xff]  ;;  %v12969_v45 = vcombine.low %v1768_v61, %v1772_v23 }
 0x4a4   :  { %10962 = vmatprep.subr.bf16.mxu1 %v12994_v58  ;;  %v1760_v31 = vld [vmem:[%s19516_s5 + $0x1290] sm:$0xff]  ;;  %v13322_v36 = vcombine.high %v2120_v3, %v2124_v6 }
 0x4a5   :  { %11010 = vmatpush2.bf16.msra.mxu0 %v13097_v41  ;;  %v1764_v51 = vld [vmem:[%s19516_s5 + $0x12b0] sm:$0xff]  ;;  %v13321_v41 = vcombine.low %v2120_v3, %v2124_v6 }
 0x4a6   :  { %11011 = vmatprep.subr.bf16.mxu0 %v13090_v63  ;;  %v2112_v59 = vld [vmem:[%s19516_s5 + $0x1d90] sm:$0xff]  ;;  %v12962_v58 = vcombine.high %v1760_v31, %v1764_v51 }
 0x4a7   :  { %10963 = vmatpush2.bf16.msra.mxu1 %v12993_v55  ;;  %v2116_v16 = vld [vmem:[%s19516_s5 + $0x1db0] sm:$0xff]  ;;  %v12961_v55 = vcombine.low %v1760_v31, %v1764_v51 }
 0x4a8   :  { %10964 = vmatprep.subr.bf16.mxu1 %v12986_v60  ;;  %v1752_v62 = vld [vmem:[%s19516_s5 + $0x1250] sm:$0xff]  ;;  %v13314_v63 = vcombine.high %v2112_v59, %v2116_v16  ;;  %v13313_v18 = vcombine.low %v2112_v59, %v2116_v16 }
 0x4a9   :  { %11012 = vmatpush2.bf16.msra.mxu0 %v13089_v50  ;;  %v1756_v33 = vld [vmem:[%s19516_s5 + $0x1270] sm:$0xff] }
 0x4aa   :  { %11013 = vmatprep.subr.bf16.mxu0 %v13082_v8  ;;  %v2104_v44 = vld [vmem:[%s19516_s5 + $0x1d50] sm:$0xff]  ;;  %v12954_v50 = vcombine.high %v1752_v62, %v1756_v33  ;;  %v12953_v28 = vcombine.low %v1752_v62, %v1756_v33 }
 0x4ab   :  { %10965 = vmatpush2.bf16.msra.mxu1 %v12985_v39  ;;  %v2108_v37 = vld [vmem:[%s19516_s5 + $0x1d70] sm:$0xff] }
 0x4ac   :  { %10966 = vmatprep.subr.bf16.mxu1 %v12978_v17  ;;  %v1744_v53 = vld [vmem:[%s19516_s5 + $0x1210] sm:$0xff]  ;;  %v13306_v13 = vcombine.high %v2104_v44, %v2108_v37 }
 0x4ad   :  { %11014 = vmatpush2.bf16.msra.mxu0 %v13081_v40  ;;  %v1748_v8 = vld [vmem:[%s19516_s5 + $0x1230] sm:$0xff] }
 0x4ae   :  { %11015 = vmatprep.subr.bf16.mxu0 %v13074_v42  ;;  %v2096_v17 = vld [vmem:[%s19516_s5 + $0x1d10] sm:$0xff]  ;;  %v12946_v23 = vcombine.high %v1744_v53, %v1748_v8  ;;  %v13305_v42 = vcombine.low %v2104_v44, %v2108_v37  ;;  %v12945_v51 = vcombine.low %v1744_v53, %v1748_v8 }
 0x4af   :  { %10967 = vmatpush2.bf16.msra.mxu1 %v12977_v47  ;;  %v2100_v40 = vld [vmem:[%s19516_s5 + $0x1d30] sm:$0xff] }
 0x4b0   :  { %10968 = vmatprep.subr.bf16.mxu1 %v12970_v25  ;;  %v1992_v47 = vld [vmem:[%s19516_s5 + $0x19d0] sm:$0xff] }
 0x4b1   :  { %11016 = vmatpush2.bf16.msra.mxu0 %v13073_v10  ;;  %v1996_v3 = vld [vmem:[%s19516_s5 + $0x19f0] sm:$0xff]  ;;  %v13298_v10 = vcombine.high %v2096_v17, %v2100_v40 }
 0x4b2   :  { %11067 = vmatprep.subr.bf16.mxu0 %v13322_v36  ;;  %v2088_v36 = vld [vmem:[%s19516_s5 + $0x1cd0] sm:$0xff]  ;;  %v13194_v16 = vcombine.high %v1992_v47, %v1996_v3  ;;  %v13193_v44 = vcombine.low %v1992_v47, %v1996_v3 }
 0x4b3   :  { %10969 = vmatpush2.bf16.msra.mxu1 %v12969_v45  ;;  %v2092_v45 = vld [vmem:[%s19516_s5 + $0x1cf0] sm:$0xff] }
 0x4b4   :  { %v10732_v60 = vpop.f32.mrf.mxu0  ;;  %11018 = vmatmul.mubr.bf16.vlgmr.msra.gmra.mxu0 %v15694_v0  ;;  %10970 = vmatprep.subr.bf16.mxu1 %v12962_v58  ;;  %v1988_v33 = vld [vmem:[%s19516_s5 + $0x19b0] sm:$0xff]  ;;  %v13289_v53 = vcombine.low %v2088_v36, %v2092_v45 }
 0x4b5   :  { %11068 = vmatpush1.bf16.msra.mxu0 %v13321_v41  ;;  %11099 = vmatprep.mubr.bf16.mxu0 %v15857_v32  ;;  %v13297_v41 = vcombine.low %v2096_v17, %v2100_v40  ;;  %v1976_v8 = vld [vmem:[%s19516_s5 + $0x1950] sm:$0xff] }
 0x4b6   :  { %v10734_v39 = vpop.f32.mrf.mxu0  ;;  %11069 = vmatprep.subr.bf16.mxu0 %v13314_v63 }
 0x4b7   :  { %10971 = vmatpush2.bf16.msra.mxu1 %v12961_v55  ;;  %v13290_v55 = vcombine.high %v2088_v36, %v2092_v45  ;;  %v2064_v45 = vld [vmem:[%s19516_s5 + $0x1c10] sm:$0xff] }
 0x4b8   :  { %v10736_v61 = vpop.f32.mrf.mxu0  ;;  %10972 = vmatprep.subr.bf16.mxu1 %v12954_v50 }
 0x4b9   :  { %11070 = vmatpush1.bf16.msra.mxu0 %v13313_v18  ;;  %v2072_v61 = vld [vmem:[%s19516_s5 + $0x1c50] sm:$0xff] }
 0x4ba   :  { %v10691_v6 = vpop.f32.mrf.mxu1  ;;  %v10737_v25 = vpop.f32.mrf.mxu0  ;;  %11071 = vmatprep.subr.bf16.mxu0 %v13306_v13 }
 0x4bb   :  { %v10692_v31 = vadd.f32 %v10691_v6, %v17718_v9  ;;  %10973 = vmatpush2.bf16.msra.mxu1 %v12953_v28  ;;  %v1984_v9 = vld [vmem:[%s19516_s5 + $0x1990] sm:$0xff] }
 0x4bc   :  { %v10693_v59 = vpop.f32.mrf.mxu1  ;;  %10974 = vmatprep.subr.bf16.mxu1 %v12946_v23  ;;  %v13186_v18 = vcombine.high %v1984_v9, %v1988_v33  ;;  %v13185_v40 = vcombine.low %v1984_v9, %v1988_v33  ;;  %v2076_v23 = vld [vmem:[%s19516_s5 + $0x1c70] sm:$0xff] }
 0x4bd   :  { %v10694_v58 = vadd.f32 %v10693_v59, %v17726_v11  ;;  %11072 = vmatpush1.bf16.msra.mxu0 %v13305_v42  ;;  %v10733_v62 = vadd.f32 %v10732_v60, %v10692_v31  ;;  %v2080_v11 = vld [vmem:[%s19516_s5 + $0x1c90] sm:$0xff] }
 0x4be   :  { %v10695_v63 = vpop.f32.mrf.mxu1  ;;  %11073 = vmatprep.subr.bf16.mxu0 %v13298_v10  ;;  %v2084_v60 = vld [vmem:[%s19516_s5 + $0x1cb0] sm:$0xff] }
 0x4bf   :  { %10975 = vmatpush2.bf16.msra.mxu1 %v12945_v51  ;;  %v10735_v37 = vadd.f32 %v10734_v39, %v10694_v58  ;;  %v1980_v39 = vld [vmem:[%s19516_s5 + $0x1970] sm:$0xff]  ;;  %v13282_v28 = vcombine.high %v2080_v11, %v2084_v60  ;;  %v13281_v6 = vcombine.low %v2080_v11, %v2084_v60  ;;  %v13274_v51 = vcombine.high %v2072_v61, %v2076_v23 }
 0x4c0   :  { %v10696_v50 = vpop.f32.mrf.mxu1  ;;  %11026 = vmatprep.subr.bf16.mxu1 %v13194_v16  ;;  %v13178_v47 = vcombine.high %v1976_v8, %v1980_v39  ;;  %v1968_v25 = vld [vmem:[%s19516_s5 + $0x1910] sm:$0xff]  ;;  %v13177_v36 = vcombine.low %v1976_v8, %v1980_v39 }
 0x4c1   :  { %11074 = vmatpush1.bf16.msra.mxu0 %v13297_v41  ;;  %v1972_v10 = vld [vmem:[%s19516_s5 + $0x1930] sm:$0xff]  ;;  %v13273_v41 = vcombine.low %v2072_v61, %v2076_v23 }
 0x4c2   :  { %v10773_v13 = vpop.f32.mrf.mxu1  ;;  %10977 = vmatmul.mubr.bf16.vlgmr.msra.gmra.mxu1 %v15679_v35  ;;  %11075 = vmatprep.subr.bf16.mxu0 %v13290_v55  ;;  %v2068_v59 = vld [vmem:[%s19516_s5 + $0x1c30] sm:$0xff]  ;;  %v13170_v58 = vcombine.high %v1968_v25, %v1972_v10  ;;  %v13169_v63 = vcombine.low %v1968_v25, %v1972_v10 }
 0x4c3   :  { %v17933_v17 = vadd.f32 %v10773_v13, %v10733_v62  ;;  %11027 = vmatpush1.bf16.msra.mxu1 %v13193_v44  ;;  %11058 = vmatprep.mubr.bf16.mxu1 %v15840_v4  ;;  %v1960_v62 = vld [vmem:[%s19516_s5 + $0x18d0] sm:$0xff]  ;;  %v13266_v33 = vcombine.high %v2064_v45, %v2068_v59  ;;  %v13265_v11 = vcombine.low %v2064_v45, %v2068_v59 }
 0x4c4   :  { %v10775_v42 = vpop.f32.mrf.mxu1  ;;  %11028 = vmatprep.subr.bf16.mxu1 %v13186_v18  ;;  %v1964_v9 = vld [vmem:[%s19516_s5 + $0x18f0] sm:$0xff] }
 0x4c5   :  { %v17942_v3 = vadd.f32 %v10775_v42, %v10735_v37  ;;  %11076 = vmatpush1.bf16.msra.mxu0 %v13289_v53  ;;  %v2184_v55 = vld [vmem:[%s19516_s5 + $0x1fd0] sm:$0xff]  ;;  %v13162_v37 = vcombine.high %v1960_v62, %v1964_v9  ;;  %v13161_v53 = vcombine.low %v1960_v62, %v1964_v9 }
 0x4c6   :  { %v10777_v31 = vpop.f32.mrf.mxu1  ;;  %11077 = vmatprep.subr.bf16.mxu0 %v13282_v28  ;;  %v2188_v44 = vld [vmem:[%s19516_s5 + $0x1ff0] sm:$0xff] }
 0x4c7   :  { %11029 = vmatpush1.bf16.msra.mxu1 %v13185_v40  ;;  %v1952_v60 = vld [vmem:[%s19516_s5 + $0x1890] sm:$0xff]  ;;  %v13386_v18 = vcombine.high %v2184_v55, %v2188_v44  ;;  %v13385_v28 = vcombine.low %v2184_v55, %v2188_v44 }
 0x4c8   :  { %v10778_v16 = vpop.f32.mrf.mxu1  ;;  %11030 = vmatprep.subr.bf16.mxu1 %v13178_v47  ;;  %v1956_v50 = vld [vmem:[%s19516_s5 + $0x18b0] sm:$0xff] }
 0x4c9   :  { %11078 = vmatpush1.bf16.msra.mxu0 %v13281_v6  ;;  %v2176_v8 = vld [vmem:[%s19516_s5 + $0x1f90] sm:$0xff]  ;;  %v13154_v13 = vcombine.high %v1952_v60, %v1956_v50  ;;  %v13153_v42 = vcombine.low %v1952_v60, %v1956_v50 }
 0x4ca   :  { %11079 = vmatprep.subr.bf16.mxu0 %v13274_v51  ;;  %v2180_v39 = vld [vmem:[%s19516_s5 + $0x1fb0] sm:$0xff] }
 0x4cb   :  { %11031 = vmatpush1.bf16.msra.mxu1 %v13177_v36  ;;  %v1944_v40 = vld [vmem:[%s19516_s5 + $0x1850] sm:$0xff]  ;;  %v13378_v23 = vcombine.high %v2176_v8, %v2180_v39  ;;  %v13377_v10 = vcombine.low %v2176_v8, %v2180_v39 }
 0x4cc   :  { %11032 = vmatprep.subr.bf16.mxu1 %v13170_v58  ;;  %v1948_v61 = vld [vmem:[%s19516_s5 + $0x1870] sm:$0xff] }
 0x4cd   :  { %11080 = vmatpush1.bf16.msra.mxu0 %v13273_v41  ;;  %v2168_v47 = vld [vmem:[%s19516_s5 + $0x1f50] sm:$0xff]  ;;  %v13146_v25 = vcombine.high %v1944_v40, %v1948_v61  ;;  %v13145_v45 = vcombine.low %v1944_v40, %v1948_v61 }
 0x4ce   :  { %11081 = vmatprep.subr.bf16.mxu0 %v13266_v33  ;;  %v2172_v6 = vld [vmem:[%s19516_s5 + $0x1f70] sm:$0xff] }
 0x4cf   :  { %11033 = vmatpush1.bf16.msra.mxu1 %v13169_v63  ;;  %v1936_v31 = vld [vmem:[%s19516_s5 + $0x1810] sm:$0xff]  ;;  %v13370_v36 = vcombine.high %v2168_v47, %v2172_v6  ;;  %v13369_v41 = vcombine.low %v2168_v47, %v2172_v6 }
 0x4d0   :  { %11034 = vmatprep.subr.bf16.mxu1 %v13162_v37  ;;  %v1940_v51 = vld [vmem:[%s19516_s5 + $0x1830] sm:$0xff] }
 0x4d1   :  { %11082 = vmatpush1.bf16.msra.mxu0 %v13265_v11  ;;  %v2160_v59 = vld [vmem:[%s19516_s5 + $0x1f10] sm:$0xff]  ;;  %v13138_v58 = vcombine.high %v1936_v31, %v1940_v51  ;;  %v13137_v63 = vcombine.low %v1936_v31, %v1940_v51 }
 0x4d2   :  { %11083 = vmatprep.subr.bf16.mxu0 %v13386_v18  ;;  %v2164_v16 = vld [vmem:[%s19516_s5 + $0x1f30] sm:$0xff] }
 0x4d3   :  { %11035 = vmatpush1.bf16.msra.mxu1 %v13161_v53  ;;  %v2056_v62 = vld [vmem:[%s19516_s5 + $0x1bd0] sm:$0xff]  ;;  %v13362_v33 = vcombine.high %v2160_v59, %v2164_v16  ;;  %v13361_v11 = vcombine.low %v2160_v59, %v2164_v16 }
 0x4d4   :  { %11036 = vmatprep.subr.bf16.mxu1 %v13154_v13  ;;  %v2060_v9 = vld [vmem:[%s19516_s5 + $0x1bf0] sm:$0xff] }
 0x4d5   :  { %11084 = vmatpush2.bf16.msra.mxu0 %v13385_v28  ;;  %v2152_v55 = vld [vmem:[%s19516_s5 + $0x1ed0] sm:$0xff]  ;;  %v13258_v37 = vcombine.high %v2056_v62, %v2060_v9  ;;  %v13257_v53 = vcombine.low %v2056_v62, %v2060_v9 }
 0x4d6   :  { %11085 = vmatprep.subr.bf16.mxu0 %v13378_v23  ;;  %v2156_v44 = vld [vmem:[%s19516_s5 + $0x1ef0] sm:$0xff] }
 0x4d7   :  { %11037 = vmatpush1.bf16.msra.mxu1 %v13153_v42  ;;  %v2048_v60 = vld [vmem:[%s19516_s5 + $0x1b90] sm:$0xff]  ;;  %v13354_v18 = vcombine.high %v2152_v55, %v2156_v44  ;;  %v13353_v28 = vcombine.low %v2152_v55, %v2156_v44 }
 0x4d8   :  { %11038 = vmatprep.subr.bf16.mxu1 %v13146_v25  ;;  %v2052_v50 = vld [vmem:[%s19516_s5 + $0x1bb0] sm:$0xff] }
 0x4d9   :  { %11086 = vmatpush2.bf16.msra.mxu0 %v13377_v10  ;;  %v2144_v8 = vld [vmem:[%s19516_s5 + $0x1e90] sm:$0xff]  ;;  %v13250_v13 = vcombine.high %v2048_v60, %v2052_v50  ;;  %v13249_v42 = vcombine.low %v2048_v60, %v2052_v50 }
 0x4da   :  { %11087 = vmatprep.subr.bf16.mxu0 %v13370_v36  ;;  %v2148_v39 = vld [vmem:[%s19516_s5 + $0x1eb0] sm:$0xff] }
 0x4db   :  { %11039 = vmatpush1.bf16.msra.mxu1 %v13145_v45  ;;  %v2040_v40 = vld [vmem:[%s19516_s5 + $0x1b50] sm:$0xff]  ;;  %v13346_v23 = vcombine.high %v2144_v8, %v2148_v39  ;;  %v13345_v10 = vcombine.low %v2144_v8, %v2148_v39 }
 0x4dc   :  { %11040 = vmatprep.subr.bf16.mxu1 %v13138_v58  ;;  %v2044_v61 = vld [vmem:[%s19516_s5 + $0x1b70] sm:$0xff] }
 0x4dd   :  { %11088 = vmatpush2.bf16.msra.mxu0 %v13369_v41  ;;  %v2136_v47 = vld [vmem:[%s19516_s5 + $0x1e50] sm:$0xff]  ;;  %v13242_v25 = vcombine.high %v2040_v40, %v2044_v61  ;;  %v13241_v45 = vcombine.low %v2040_v40, %v2044_v61 }
 0x4de   :  { %11089 = vmatprep.subr.bf16.mxu0 %v13362_v33  ;;  %v2140_v6 = vld [vmem:[%s19516_s5 + $0x1e70] sm:$0xff] }
 0x4df   :  { %11041 = vmatpush1.bf16.msra.mxu1 %v13137_v63  ;;  %v2032_v31 = vld [vmem:[%s19516_s5 + $0x1b10] sm:$0xff]  ;;  %v13338_v36 = vcombine.high %v2136_v47, %v2140_v6  ;;  %v13337_v41 = vcombine.low %v2136_v47, %v2140_v6 }
 0x4e0   :  { %11042 = vmatprep.subr.bf16.mxu1 %v13258_v37  ;;  %v2036_v51 = vld [vmem:[%s19516_s5 + $0x1b30] sm:$0xff] }
 0x4e1   :  { %11090 = vmatpush2.bf16.msra.mxu0 %v13361_v11  ;;  %v2128_v59 = vld [vmem:[%s19516_s5 + $0x1e10] sm:$0xff]  ;;  %v13234_v58 = vcombine.high %v2032_v31, %v2036_v51  ;;  %v13233_v63 = vcombine.low %v2032_v31, %v2036_v51 }
 0x4e2   :  { %11091 = vmatprep.subr.bf16.mxu0 %v13354_v18  ;;  %v2132_v16 = vld [vmem:[%s19516_s5 + $0x1e30] sm:$0xff] }
 0x4e3   :  { %11043 = vmatpush2.bf16.msra.mxu1 %v13257_v53  ;;  %v2024_v62 = vld [vmem:[%s19516_s5 + $0x1ad0] sm:$0xff]  ;;  %v13330_v33 = vcombine.high %v2128_v59, %v2132_v16  ;;  %v13329_v11 = vcombine.low %v2128_v59, %v2132_v16 }
 0x4e4   :  { %11044 = vmatprep.subr.bf16.mxu1 %v13250_v13  ;;  %v2028_v9 = vld [vmem:[%s19516_s5 + $0x1af0] sm:$0xff] }
 0x4e5   :  { %11092 = vmatpush2.bf16.msra.mxu0 %v13353_v28  ;;  %v2376_v55 = vld [vmem:[%s19516_s5 + $0x25d0] sm:$0xff]  ;;  %v13226_v37 = vcombine.high %v2024_v62, %v2028_v9  ;;  %v13225_v53 = vcombine.low %v2024_v62, %v2028_v9 }
 0x4e6   :  { %11093 = vmatprep.subr.bf16.mxu0 %v13346_v23  ;;  %v2380_v44 = vld [vmem:[%s19516_s5 + $0x25f0] sm:$0xff] }
 0x4e7   :  { %11045 = vmatpush2.bf16.msra.mxu1 %v13249_v42  ;;  %v2016_v60 = vld [vmem:[%s19516_s5 + $0x1a90] sm:$0xff]  ;;  %v13578_v18 = vcombine.high %v2376_v55, %v2380_v44  ;;  %v13577_v28 = vcombine.low %v2376_v55, %v2380_v44 }
 0x4e8   :  { %11046 = vmatprep.subr.bf16.mxu1 %v13242_v25  ;;  %v2020_v50 = vld [vmem:[%s19516_s5 + $0x1ab0] sm:$0xff] }
 0x4e9   :  { %11094 = vmatpush2.bf16.msra.mxu0 %v13345_v10  ;;  %v2368_v8 = vld [vmem:[%s19516_s5 + $0x2590] sm:$0xff]  ;;  %v13218_v13 = vcombine.high %v2016_v60, %v2020_v50  ;;  %v13217_v42 = vcombine.low %v2016_v60, %v2020_v50 }
 0x4ea   :  { %11095 = vmatprep.subr.bf16.mxu0 %v13338_v36  ;;  %v2372_v39 = vld [vmem:[%s19516_s5 + $0x25b0] sm:$0xff] }
 0x4eb   :  { %11047 = vmatpush2.bf16.msra.mxu1 %v13241_v45  ;;  %v2008_v40 = vld [vmem:[%s19516_s5 + $0x1a50] sm:$0xff]  ;;  %v13570_v23 = vcombine.high %v2368_v8, %v2372_v39  ;;  %v13569_v31 = vcombine.low %v2368_v8, %v2372_v39 }
 0x4ec   :  { %11048 = vmatprep.subr.bf16.mxu1 %v13234_v58  ;;  %v2012_v61 = vld [vmem:[%s19516_s5 + $0x1a70] sm:$0xff] }
 0x4ed   :  { %11096 = vmatpush2.bf16.msra.mxu0 %v13337_v41  ;;  %v2360_v47 = vld [vmem:[%s19516_s5 + $0x2550] sm:$0xff]  ;;  %v13210_v10 = vcombine.high %v2008_v40, %v2012_v61  ;;  %v13209_v16 = vcombine.low %v2008_v40, %v2012_v61 }
 0x4ee   :  { %11097 = vmatprep.subr.bf16.mxu0 %v13330_v33  ;;  %v2364_v6 = vld [vmem:[%s19516_s5 + $0x2570] sm:$0xff] }
 0x4ef   :  { %11049 = vmatpush2.bf16.msra.mxu1 %v13233_v63  ;;  %v2000_v51 = vld [vmem:[%s19516_s5 + $0x1a10] sm:$0xff]  ;;  %v13562_v59 = vcombine.high %v2360_v47, %v2364_v6  ;;  %v13561_v33 = vcombine.low %v2360_v47, %v2364_v6 }
 0x4f0   :  { %11050 = vmatprep.subr.bf16.mxu1 %v13226_v37  ;;  %v2004_v36 = vld [vmem:[%s19516_s5 + $0x1a30] sm:$0xff] }
 0x4f1   :  { %11098 = vmatpush2.bf16.msra.mxu0 %v13329_v11  ;;  %v2352_v58 = vld [vmem:[%s19516_s5 + $0x2510] sm:$0xff]  ;;  %v13202_v9 = vcombine.high %v2000_v51, %v2004_v36  ;;  %v13201_v11 = vcombine.low %v2000_v51, %v2004_v36 }
 0x4f2   :  { %11149 = vmatprep.subr.bf16.mxu0 %v13578_v18  ;;  %v2356_v41 = vld [vmem:[%s19516_s5 + $0x2530] sm:$0xff] }
 0x4f3   :  { %11051 = vmatpush2.bf16.msra.mxu1 %v13225_v53  ;;  %v2248_v63 = vld [vmem:[%s19516_s5 + $0x21d0] sm:$0xff]  ;;  %v13554_v37 = vcombine.high %v2352_v58, %v2356_v41  ;;  %v13553_v53 = vcombine.low %v2352_v58, %v2356_v41 }
 0x4f4   :  { %v18088_v25 = vpop.f32.mrf.mxu0  ;;  %11100 = vmatmul.mubr.bf16.vlgmr.msra.gmra.mxu0 %v16049_v52  ;;  %11052 = vmatprep.subr.bf16.mxu1 %v13218_v13  ;;  %v2252_v55 = vld [vmem:[%s19516_s5 + $0x21f0] sm:$0xff] }
 0x4f5   :  { %11150 = vmatpush1.bf16.msra.mxu0 %v13577_v28  ;;  %11181 = vmatprep.mubr.bf16.mxu0 %v16052_v24  ;;  %v2344_v60 = vld [vmem:[%s19516_s5 + $0x24d0] sm:$0xff]  ;;  %v13450_v18 = vcombine.high %v2248_v63, %v2252_v55  ;;  %v13449_v28 = vcombine.low %v2248_v63, %v2252_v55 }
 0x4f6   :  { %v18098_v45 = vpop.f32.mrf.mxu0  ;;  %11151 = vmatprep.subr.bf16.mxu0 %v13570_v23  ;;  %v2348_v50 = vld [vmem:[%s19516_s5 + $0x24f0] sm:$0xff] }
 0x4f7   :  { %11053 = vmatpush2.bf16.msra.mxu1 %v13217_v42  ;;  %v2240_v8 = vld [vmem:[%s19516_s5 + $0x2190] sm:$0xff]  ;;  %v13546_v13 = vcombine.high %v2344_v60, %v2348_v50  ;;  %v13545_v42 = vcombine.low %v2344_v60, %v2348_v50 }
 0x4f8   :  { %v10859_v62 = vpop.f32.mrf.mxu0  ;;  %11054 = vmatprep.subr.bf16.mxu1 %v13210_v10  ;;  %v2244_v39 = vld [vmem:[%s19516_s5 + $0x21b0] sm:$0xff] }
 0x4f9   :  { %11152 = vmatpush1.bf16.msra.mxu0 %v13569_v31  ;;  %v2336_v40 = vld [vmem:[%s19516_s5 + $0x2490] sm:$0xff]  ;;  %v13442_v23 = vcombine.high %v2240_v8, %v2244_v39  ;;  %v13441_v36 = vcombine.low %v2240_v8, %v2244_v39 }
 0x4fa   :  { %v10860_v44 = vpop.f32.mrf.mxu0  ;;  %11153 = vmatprep.subr.bf16.mxu0 %v13562_v59  ;;  %v2340_v61 = vld [vmem:[%s19516_s5 + $0x24b0] sm:$0xff] }
 0x4fb   :  { %11055 = vmatpush2.bf16.msra.mxu1 %v13209_v16  ;;  %v2232_v47 = vld [vmem:[%s19516_s5 + $0x2150] sm:$0xff]  ;;  %v13538_v31 = vcombine.high %v2336_v40, %v2340_v61 }
 0x4fc   :  { %11056 = vmatprep.subr.bf16.mxu1 %v13202_v9  ;;  %v2236_v6 = vld [vmem:[%s19516_s5 + $0x2170] sm:$0xff]  ;;  %v13537_v9 = vcombine.low %v2336_v40, %v2340_v61 }
 0x4fd   :  { %11154 = vmatpush1.bf16.msra.mxu0 %v13561_v33  ;;  %v2328_v59 = vld [vmem:[%s19516_s5 + $0x2450] sm:$0xff]  ;;  %v13434_v41 = vcombine.high %v2232_v47, %v2236_v6 }
 0x4fe   :  { %11155 = vmatprep.subr.bf16.mxu0 %v13554_v37  ;;  %v2332_v16 = vld [vmem:[%s19516_s5 + $0x2470] sm:$0xff]  ;;  %v13433_v37 = vcombine.low %v2232_v47, %v2236_v6 }
 0x4ff   :  { %11057 = vmatpush2.bf16.msra.mxu1 %v13201_v11  ;;  %v2228_v33 = vld [vmem:[%s19516_s5 + $0x2130] sm:$0xff]  ;;  %v13530_v44 = vcombine.high %v2328_v59, %v2332_v16 }
 0x500   :  { %11108 = vmatprep.subr.bf16.mxu1 %v13450_v18  ;;  %v2324_v11 = vld [vmem:[%s19516_s5 + $0x2430] sm:$0xff]  ;;  %v13529_v18 = vcombine.low %v2328_v59, %v2332_v16 }
 0x501   :  { %11156 = vmatpush1.bf16.msra.mxu0 %v13553_v53  ;;  %v2216_v53 = vld [vmem:[%s19516_s5 + $0x20d0] sm:$0xff] }
 0x502   :  { %v10814_v10 = vpop.f32.mrf.mxu1  ;;  %11059 = vmatmul.mubr.bf16.vlgmr.msra.gmra.mxu1 %v16036_v34  ;;  %11157 = vmatprep.subr.bf16.mxu0 %v13546_v13  ;;  %v2220_v8 = vld [vmem:[%s19516_s5 + $0x20f0] sm:$0xff] }
 0x503   :  { %v10815_v51 = vadd.f32 %v10814_v10, %v15005_v2  ;;  %11109 = vmatpush1.bf16.msra.mxu1 %v13449_v28  ;;  %11140 = vmatprep.mubr.bf16.mxu1 %v16038_v26  ;;  %v2224_v2 = vld [vmem:[%s19516_s5 + $0x2110] sm:$0xff]  ;;  %v13418_v40 = vcombine.high %v2216_v53, %v2220_v8  ;;  %v13417_v6 = vcombine.low %v2216_v53, %v2220_v8 }
 0x504   :  { %v10816_v58 = vpop.f32.mrf.mxu1  ;;  %11110 = vmatprep.subr.bf16.mxu1 %v13442_v23  ;;  %v13425_v13 = vcombine.low %v2224_v2, %v2228_v33  ;;  %v2444_v28 = vld [vmem:[%s19516_s5 + $0x27f0] sm:$0xff] }
 0x505   :  { %v10817_v62 = vadd.f32 %v10816_v58, %v15028_v20  ;;  %11158 = vmatpush1.bf16.msra.mxu0 %v13545_v42  ;;  %v18153_v63 = vadd.f32 %v18088_v25, %v10815_v51  ;;  %v2320_v20 = vld [vmem:[%s19516_s5 + $0x2410] sm:$0xff]  ;;  %v13426_v25 = vcombine.high %v2224_v2, %v2228_v33 }
 0x506   :  { %v10818_v55 = vpop.f32.mrf.mxu1  ;;  %11159 = vmatprep.subr.bf16.mxu0 %v13538_v31  ;;  %v13522_v39 = vcombine.high %v2320_v20, %v2324_v11  ;;  %v13521_v61 = vcombine.low %v2320_v20, %v2324_v11  ;;  %v2208_v23 = vld [vmem:[%s19516_s5 + $0x2090] sm:$0xff] }
 0x507   :  { %11111 = vmatpush1.bf16.msra.mxu1 %v13441_v36  ;;  %v18162_v60 = vadd.f32 %v18098_v45, %v10817_v62  ;;  %v2440_v45 = vld [vmem:[%s19516_s5 + $0x27d0] sm:$0xff] }
 0x508   :  { %v10819_v50 = vpop.f32.mrf.mxu1  ;;  %11112 = vmatprep.subr.bf16.mxu1 %v13434_v41  ;;  %v2212_v42 = vld [vmem:[%s19516_s5 + $0x20b0] sm:$0xff]  ;;  %v13642_v47 = vcombine.high %v2440_v45, %v2444_v28  ;;  %v13641_v36 = vcombine.low %v2440_v45, %v2444_v28 }
 0x509   :  { %11160 = vmatpush1.bf16.msra.mxu0 %v13537_v9  ;;  %v2432_v10 = vld [vmem:[%s19516_s5 + $0x2790] sm:$0xff]  ;;  %v13410_v51 = vcombine.high %v2208_v23, %v2212_v42  ;;  %v13409_v41 = vcombine.low %v2208_v23, %v2212_v42 }
 0x50a   :  { %11161 = vmatprep.subr.bf16.mxu0 %v13530_v44  ;;  %v2436_v31 = vld [vmem:[%s19516_s5 + $0x27b0] sm:$0xff] }
 0x50b   :  { %11113 = vmatpush1.bf16.msra.mxu1 %v13433_v37  ;;  %v2200_v59 = vld [vmem:[%s19516_s5 + $0x2050] sm:$0xff]  ;;  %v13634_v58 = vcombine.high %v2432_v10, %v2436_v31  ;;  %v13633_v33 = vcombine.low %v2432_v10, %v2436_v31 }
 0x50c   :  { %11114 = vmatprep.subr.bf16.mxu1 %v13426_v25  ;;  %v2204_v16 = vld [vmem:[%s19516_s5 + $0x2070] sm:$0xff] }
 0x50d   :  { %11162 = vmatpush1.bf16.msra.mxu0 %v13529_v18  ;;  %v2424_v62 = vld [vmem:[%s19516_s5 + $0x2750] sm:$0xff]  ;;  %v13402_v2 = vcombine.high %v2200_v59, %v2204_v16  ;;  %v13401_v20 = vcombine.low %v2200_v59, %v2204_v16 }
 0x50e   :  { %11163 = vmatprep.subr.bf16.mxu0 %v13522_v39  ;;  %v2428_v9 = vld [vmem:[%s19516_s5 + $0x2770] sm:$0xff] }
 0x50f   :  { %11115 = vmatpush1.bf16.msra.mxu1 %v13425_v13  ;;  %v2192_v55 = vld [vmem:[%s19516_s5 + $0x2010] sm:$0xff]  ;;  %v13626_v37 = vcombine.high %v2424_v62, %v2428_v9  ;;  %v13625_v18 = vcombine.low %v2424_v62, %v2428_v9 }
 0x510   :  { %11116 = vmatprep.subr.bf16.mxu1 %v13418_v40  ;;  %v2196_v44 = vld [vmem:[%s19516_s5 + $0x2030] sm:$0xff] }
 0x511   :  { %11164 = vmatpush1.bf16.msra.mxu0 %v13521_v61  ;;  %v2416_v11 = vld [vmem:[%s19516_s5 + $0x2710] sm:$0xff]  ;;  %v13394_v25 = vcombine.high %v2192_v55, %v2196_v44  ;;  %v13393_v13 = vcombine.low %v2192_v55, %v2196_v44 }
 0x512   :  { %11165 = vmatprep.subr.bf16.mxu0 %v13642_v47  ;;  %v2420_v50 = vld [vmem:[%s19516_s5 + $0x2730] sm:$0xff] }
 0x513   :  { %11117 = vmatpush1.bf16.msra.mxu1 %v13417_v6  ;;  %v2312_v53 = vld [vmem:[%s19516_s5 + $0x23d0] sm:$0xff]  ;;  %v13618_v39 = vcombine.high %v2416_v11, %v2420_v50  ;;  %v13617_v61 = vcombine.low %v2416_v11, %v2420_v50 }
 0x514   :  { %11118 = vmatprep.subr.bf16.mxu1 %v13410_v51  ;;  %v2316_v8 = vld [vmem:[%s19516_s5 + $0x23f0] sm:$0xff] }
 0x515   :  { %11166 = vmatpush2.bf16.msra.mxu0 %v13641_v36  ;;  %v2408_v45 = vld [vmem:[%s19516_s5 + $0x26d0] sm:$0xff]  ;;  %v13514_v40 = vcombine.high %v2312_v53, %v2316_v8  ;;  %v13513_v6 = vcombine.low %v2312_v53, %v2316_v8 }
 0x516   :  { %11167 = vmatprep.subr.bf16.mxu0 %v13634_v58  ;;  %v2412_v28 = vld [vmem:[%s19516_s5 + $0x26f0] sm:$0xff] }
 0x517   :  { %11119 = vmatpush1.bf16.msra.mxu1 %v13409_v41  ;;  %v2304_v23 = vld [vmem:[%s19516_s5 + $0x2390] sm:$0xff]  ;;  %v13610_v47 = vcombine.high %v2408_v45, %v2412_v28  ;;  %v13609_v36 = vcombine.low %v2408_v45, %v2412_v28  ;;  %v1353_v45 = vld [vmem:[%s19516_s5 + $0x5d8] sm:$0xff] }
 0x518   :  { %11120 = vmatprep.subr.bf16.mxu1 %v13402_v2  ;;  %v2308_v42 = vld [vmem:[%s19516_s5 + $0x23b0] sm:$0xff]  ;;  %v1357_v28 = vld [vmem:[%s19516_s5 + $0x5f8] sm:$0xff] }
 0x519   :  { %11168 = vmatpush2.bf16.msra.mxu0 %v13633_v33  ;;  %v2400_v10 = vld [vmem:[%s19516_s5 + $0x2690] sm:$0xff]  ;;  %v13506_v51 = vcombine.high %v2304_v23, %v2308_v42  ;;  %v13505_v41 = vcombine.low %v2304_v23, %v2308_v42 }
 0x51a   :  { %11169 = vmatprep.subr.bf16.mxu0 %v13626_v37  ;;  %v2404_v31 = vld [vmem:[%s19516_s5 + $0x26b0] sm:$0xff] }
 0x51b   :  { %11121 = vmatpush1.bf16.msra.mxu1 %v13401_v20  ;;  %v2296_v59 = vld [vmem:[%s19516_s5 + $0x2350] sm:$0xff]  ;;  %v13602_v58 = vcombine.high %v2400_v10, %v2404_v31  ;;  %v13601_v33 = vcombine.low %v2400_v10, %v2404_v31  ;;  %v1345_v10 = vld [vmem:[%s19516_s5 + $0x598] sm:$0xff] }
 0x51c   :  { %11122 = vmatprep.subr.bf16.mxu1 %v13394_v25  ;;  %v2300_v16 = vld [vmem:[%s19516_s5 + $0x2370] sm:$0xff]  ;;  %v1349_v31 = vld [vmem:[%s19516_s5 + $0x5b8] sm:$0xff] }
 0x51d   :  { %11170 = vmatpush2.bf16.msra.mxu0 %v13625_v18  ;;  %v2392_v62 = vld [vmem:[%s19516_s5 + $0x2650] sm:$0xff]  ;;  %v13498_v2 = vcombine.high %v2296_v59, %v2300_v16  ;;  %v13497_v20 = vcombine.low %v2296_v59, %v2300_v16 }
 0x51e   :  { %11171 = vmatprep.subr.bf16.mxu0 %v13618_v39  ;;  %v2396_v9 = vld [vmem:[%s19516_s5 + $0x2670] sm:$0xff] }
 0x51f   :  { %11123 = vmatpush1.bf16.msra.mxu1 %v13393_v13  ;;  %v2288_v55 = vld [vmem:[%s19516_s5 + $0x2310] sm:$0xff]  ;;  %v13594_v37 = vcombine.high %v2392_v62, %v2396_v9  ;;  %v13593_v18 = vcombine.low %v2392_v62, %v2396_v9  ;;  %v1337_v62 = vld [vmem:[%s19516_s5 + $0x558] sm:$0xff] }
 0x520   :  { %11124 = vmatprep.subr.bf16.mxu1 %v13514_v40  ;;  %v2292_v44 = vld [vmem:[%s19516_s5 + $0x2330] sm:$0xff]  ;;  %v1341_v9 = vld [vmem:[%s19516_s5 + $0x578] sm:$0xff] }
 0x521   :  { %11172 = vmatpush2.bf16.msra.mxu0 %v13617_v61  ;;  %v2384_v11 = vld [vmem:[%s19516_s5 + $0x2610] sm:$0xff]  ;;  %v13490_v25 = vcombine.high %v2288_v55, %v2292_v44  ;;  %v13489_v13 = vcombine.low %v2288_v55, %v2292_v44  ;;  %v12547_v55 = vcombine.low %v1345_v10, %v1349_v31 }
 0x522   :  { %11173 = vmatprep.subr.bf16.mxu0 %v13610_v47  ;;  %v2388_v50 = vld [vmem:[%s19516_s5 + $0x2630] sm:$0xff]  ;;  %v12556_v47 = vcombine.high %v1353_v45, %v1357_v28 }
 0x523   :  { %11125 = vmatpush2.bf16.msra.mxu1 %v13513_v6  ;;  %v2280_v53 = vld [vmem:[%s19516_s5 + $0x22d0] sm:$0xff]  ;;  %v13586_v39 = vcombine.high %v2384_v11, %v2388_v50  ;;  %v13585_v61 = vcombine.low %v2384_v11, %v2388_v50  ;;  %v12540_v11 = vcombine.high %v1337_v62, %v1341_v9 }
 0x524   :  { %11126 = vmatprep.subr.bf16.mxu1 %v13506_v51  ;;  %v2284_v8 = vld [vmem:[%s19516_s5 + $0x22f0] sm:$0xff] }
 0x525   :  { %11174 = vmatpush2.bf16.msra.mxu0 %v13609_v36  ;;  %v13482_v40 = vcombine.high %v2280_v53, %v2284_v8  ;;  %v2272_v23 = vld [vmem:[%s19516_s5 + $0x2290] sm:$0xff]  ;;  %v13481_v6 = vcombine.low %v2280_v53, %v2284_v8  ;;  %v12555_v36 = vcombine.low %v1353_v45, %v1357_v28  ;;  %v12539_v8 = vcombine.low %v1337_v62, %v1341_v9  ;;  %v1229_v62 = vld [vmem:[%s19516_s5 + $0x1f8] sm:$0xff] }
 0x526   :  { %11175 = vmatprep.subr.bf16.mxu0 %v13602_v58  ;;  %v2276_v42 = vld [vmem:[%s19516_s5 + $0x22b0] sm:$0xff]  ;;  %v12548_v58 = vcombine.high %v1345_v10, %v1349_v31 }
 0x527   :  { %11127 = vmatpush2.bf16.msra.mxu1 %v13505_v41  ;;  %v13474_v51 = vcombine.high %v2272_v23, %v2276_v42  ;;  %v2264_v59 = vld [vmem:[%s19516_s5 + $0x2250] sm:$0xff]  ;;  %v13473_v41 = vcombine.low %v2272_v23, %v2276_v42  ;;  %v1325_v23 = vld [vmem:[%s19516_s5 + $0x4f8] sm:$0xff] }
 0x528   :  { %11128 = vmatprep.subr.bf16.mxu1 %v13498_v2  ;;  %v2268_v16 = vld [vmem:[%s19516_s5 + $0x2270] sm:$0xff] }
 0x529   :  { %11176 = vmatpush2.bf16.msra.mxu0 %v13601_v33  ;;  %v13466_v33 = vcombine.high %v2264_v59, %v2268_v16  ;;  %v2256_v44 = vld [vmem:[%s19516_s5 + $0x2210] sm:$0xff]  ;;  %v13465_v50 = vcombine.low %v2264_v59, %v2268_v16  ;;  %v1317_v59 = vld [vmem:[%s19516_s5 + $0x4b8] sm:$0xff] }
 0x52a   :  { %11177 = vmatprep.subr.bf16.mxu0 %v13594_v37  ;;  %v2260_v37 = vld [vmem:[%s19516_s5 + $0x2230] sm:$0xff] }
 0x52b   :  { %11129 = vmatpush2.bf16.msra.mxu1 %v13497_v20  ;;  %v13458_v53 = vcombine.high %v2256_v44, %v2260_v37  ;;  %v2452_v10 = vld [vmem:[%s19516_s5 + $0x2830] sm:$0xff] }
 0x52c   :  { %11130 = vmatprep.subr.bf16.mxu1 %v13490_v25  ;;  %v1329_v25 = vld [vmem:[%s19516_s5 + $0x518] sm:$0xff] }
 0x52d   :  { %11178 = vmatpush2.bf16.msra.mxu0 %v13593_v18 }
 0x52e   :  { %11179 = vmatprep.subr.bf16.mxu0 %v13586_v39  ;;  %v2456_v39 = vld [vmem:[%s19516_s5 + $0x2850] sm:$0xff] }
 0x52f   :  { %11131 = vmatpush2.bf16.msra.mxu1 %v13489_v13  ;;  %v2460_v13 = vld [vmem:[%s19516_s5 + $0x2870] sm:$0xff] }
 0x530   :  { %11132 = vmatprep.subr.bf16.mxu1 %v13482_v40  ;;  %v13457_v40 = vcombine.low %v2256_v44, %v2260_v37  ;;  %v13658_v42 = vcombine.high %v2456_v39, %v2460_v13  ;;  %v1305_v37 = vld [vmem:[%s19516_s5 + $0x458] sm:$0xff] }
 0x531   :  { %11180 = vmatpush2.bf16.msra.mxu0 %v13585_v61  ;;  %v1321_v61 = vld [vmem:[%s19516_s5 + $0x4d8] sm:$0xff] }
 0x532   :  { %11272 = vmatprep.subr.bf16.mxu0 %v12556_v47  ;;  %v12524_v31 = vcombine.high %v1321_v61, %v1325_v23 }
 0x533   :  { %11133 = vmatpush2.bf16.msra.mxu1 %v13481_v6  ;;  %v2448_v6 = vld [vmem:[%s19516_s5 + $0x2810] sm:$0xff] }
 0x534   :  { %v18296_v2 = vpop.f32.mrf.mxu0  ;;  %11182 = vmatmul.mubr.bf16.vlgmr.msra.gmra.mxu0 %v16261_v46  ;;  %11134 = vmatprep.subr.bf16.mxu1 %v13474_v51  ;;  %v13657_v51 = vcombine.low %v2456_v39, %v2460_v13  ;;  %v13650_v16 = vcombine.high %v2448_v6, %v2452_v10  ;;  %v13649_v44 = vcombine.low %v2448_v6, %v2452_v10  ;;  %v1417_v10 = vld [vmem:[%s19516_s5 + $0x7d8] sm:$0xff] }
 0x535   :  { %11273 = vmatpush1.bf16.msra.mxu0 %v12555_v36  ;;  %11304 = vmatprep.mubr.bf16.mxu0 %v14904_v29  ;;  %v1333_v29 = vld [vmem:[%s19516_s5 + $0x538] sm:$0xff] }
 0x536   :  { %v18306_v20 = vpop.f32.mrf.mxu0  ;;  %11274 = vmatprep.subr.bf16.mxu0 %v12548_v58  ;;  %v12532_v28 = vcombine.high %v1329_v25, %v1333_v29  ;;  %v12531_v47 = vcombine.low %v1329_v25, %v1333_v29  ;;  %v1313_v36 = vld [vmem:[%s19516_s5 + $0x498] sm:$0xff]  ;;  %v12523_v58 = vcombine.low %v1321_v61, %v1325_v23 }
 0x537   :  { %11135 = vmatpush2.bf16.msra.mxu1 %v13473_v41  ;;  %v1225_v41 = vld [vmem:[%s19516_s5 + $0x1d8] sm:$0xff] }
 0x538   :  { %v10941_v18 = vpop.f32.mrf.mxu0  ;;  %11136 = vmatprep.subr.bf16.mxu1 %v13466_v33  ;;  %v12516_v33 = vcombine.high %v1313_v36, %v1317_v59  ;;  %v12428_v25 = vcombine.high %v1225_v41, %v1229_v62 }
 0x539   :  { %11275 = vmatpush1.bf16.msra.mxu0 %v12547_v55  ;;  %v12515_v18 = vcombine.low %v1313_v36, %v1317_v59  ;;  %v1201_v59 = vld [vmem:[%s19516_s5 + $0x118] sm:$0xff] }
 0x53a   :  { %v10942_v45 = vpop.f32.mrf.mxu0  ;;  %11276 = vmatprep.subr.bf16.mxu0 %v12540_v11  ;;  %v1309_v11 = vld [vmem:[%s19516_s5 + $0x478] sm:$0xff] }
 0x53b   :  { %11137 = vmatpush2.bf16.msra.mxu1 %v13465_v50  ;;  %v12508_v13 = vcombine.high %v1305_v37, %v1309_v11  ;;  %v12427_v45 = vcombine.low %v1225_v41, %v1229_v62  ;;  %v12507_v23 = vcombine.low %v1305_v37, %v1309_v11  ;;  %v1409_v41 = vld [vmem:[%s19516_s5 + $0x798] sm:$0xff] }
 0x53c   :  { %11138 = vmatprep.subr.bf16.mxu1 %v13458_v53  ;;  %v1221_v53 = vld [vmem:[%s19516_s5 + $0x1b8] sm:$0xff] }
 0x53d   :  { %11277 = vmatpush1.bf16.msra.mxu0 %v12539_v8  ;;  %v1413_v62 = vld [vmem:[%s19516_s5 + $0x7b8] sm:$0xff] }
 0x53e   :  { %11278 = vmatprep.subr.bf16.mxu0 %v12532_v28  ;;  %v1301_v28 = vld [vmem:[%s19516_s5 + $0x438] sm:$0xff]  ;;  %v12612_v37 = vcombine.high %v1409_v41, %v1413_v62 }
 0x53f   :  { %11139 = vmatpush2.bf16.msra.mxu1 %v13457_v40 }
 0x540   :  { %11202 = vmatprep.subr.bf16.mxu1 %v13658_v42  ;;  %v1209_v42 = vld [vmem:[%s19516_s5 + $0x158] sm:$0xff] }
 0x541   :  { %11279 = vmatpush1.bf16.msra.mxu0 %v12531_v47  ;;  %v1213_v47 = vld [vmem:[%s19516_s5 + $0x178] sm:$0xff] }
 0x542   :  { %v10896_v9 = vpop.f32.mrf.mxu1  ;;  %11141 = vmatmul.mubr.bf16.vlgmr.msra.gmra.mxu1 %v16250_v5  ;;  %11280 = vmatprep.subr.bf16.mxu0 %v12524_v31  ;;  %v1421_v31 = vld [vmem:[%s19516_s5 + $0x7f8] sm:$0xff] }
 0x543   :  { %v10897_v55 = vadd.f32 %v10896_v9, %v18153_v63  ;;  %11203 = vmatpush1.bf16.msra.mxu1 %v13657_v51  ;;  %11222 = vmatprep.mubr.bf16.mxu1 %v13906_v1  ;;  %v1217_v63 = vld [vmem:[%s19516_s5 + $0x198] sm:$0xff]  ;;  %v12412_v51 = vcombine.high %v1209_v42, %v1213_v47 }
 0x544   :  { %v10898_v50 = vpop.f32.mrf.mxu1  ;;  %11204 = vmatprep.subr.bf16.mxu1 %v13650_v16  ;;  %v12620_v16 = vcombine.high %v1417_v10, %v1421_v31 }
 0x545   :  { %v10899_v29 = vadd.f32 %v10898_v50, %v18162_v60  ;;  %11281 = vmatpush1.bf16.msra.mxu0 %v12523_v58  ;;  %v18361_v8 = vadd.f32 %v18296_v2, %v10897_v55  ;;  %v1297_v60 = vld [vmem:[%s19516_s5 + $0x418] sm:$0xff]  ;;  %v12420_v2 = vcombine.high %v1217_v63, %v1221_v53  ;;  %v12411_v58 = vcombine.low %v1209_v42, %v1213_v47 }
 0x546   :  { %v10900_v39 = vpop.f32.mrf.mxu1  ;;  %11282 = vmatprep.subr.bf16.mxu0 %v12516_v33  ;;  %v12500_v6 = vcombine.high %v1297_v60, %v1301_v28  ;;  %v12499_v36 = vcombine.low %v1297_v60, %v1301_v28  ;;  %v12619_v33 = vcombine.low %v1417_v10, %v1421_v31  ;;  %v1193_v55 = vld [vmem:[%s19516_s5 + $0xd8] sm:$0xff] }
 0x547   :  { %11205 = vmatpush1.bf16.msra.mxu1 %v13649_v44  ;;  %v18370_v40 = vadd.f32 %v18306_v20, %v10899_v29  ;;  %v12419_v20 = vcombine.low %v1217_v63, %v1221_v53  ;;  %v1197_v44 = vld [vmem:[%s19516_s5 + $0xf8] sm:$0xff] }
 0x548   :  { %v10901_v61 = vpop.f32.mrf.mxu1  ;;  %11231 = vmatprep.subr.bf16.mxu1 %v12428_v25  ;;  %v1401_v50 = vld [vmem:[%s19516_s5 + $0x758] sm:$0xff]  ;;  %v12396_v29 = vcombine.high %v1193_v55, %v1197_v44 }
 0x549   :  { %11283 = vmatpush1.bf16.msra.mxu0 %v12515_v18  ;;  %v1405_v25 = vld [vmem:[%s19516_s5 + $0x778] sm:$0xff]  ;;  %v12611_v18 = vcombine.low %v1409_v41, %v1413_v62 }
 0x54a   :  { %13663 = vmatmul.mubr.msk.bf16.vlgmr.msra.gmra.mxu1 %vm9874_vm8, %v16284_v48  ;;  %11284 = vmatprep.subr.bf16.mxu0 %v12508_v13  ;;  %v1185_v63 = vld [vmem:[%s19516_s5 + $0x98] sm:$0xff]  ;;  %v12604_v39 = vcombine.high %v1401_v50, %v1405_v25  ;;  %v12395_v13 = vcombine.low %v1193_v55, %v1197_v44  ;;  %v12603_v61 = vcombine.low %v1401_v50, %v1405_v25 }
 0x54b   :  { %11232 = vmatpush1.bf16.msra.mxu1 %v12427_v45  ;;  %11263 = vmatprep.mubr.bf16.mxu1 %v14886_v22  ;;  %v1205_v22 = vld [vmem:[%s19516_s5 + $0x138] sm:$0xff] }
 0x54c   :  { %11233 = vmatprep.subr.bf16.mxu1 %v12420_v2  ;;  %v12404_v9 = vcombine.high %v1201_v59, %v1205_v22  ;;  %v12403_v11 = vcombine.low %v1201_v59, %v1205_v22  ;;  %v1189_v53 = vld [vmem:[%s19516_s5 + $0xb8] sm:$0xff] }
 0x54d   :  { %11285 = vmatpush1.bf16.msra.mxu0 %v12507_v23  ;;  %v1393_v45 = vld [vmem:[%s19516_s5 + $0x718] sm:$0xff]  ;;  %v12388_v28 = vcombine.high %v1185_v63, %v1189_v53  ;;  %v12387_v47 = vcombine.low %v1185_v63, %v1189_v53 }
 0x54e   :  { %11286 = vmatprep.subr.bf16.mxu0 %v12500_v6  ;;  %v1397_v60 = vld [vmem:[%s19516_s5 + $0x738] sm:$0xff] }
 0x54f   :  { %11234 = vmatpush1.bf16.msra.mxu1 %v12419_v20  ;;  %v1177_v2 = vld [vmem:[%s19516_s5 + $0x58] sm:$0xff]  ;;  %v12596_v42 = vcombine.high %v1393_v45, %v1397_v60  ;;  %v12595_v31 = vcombine.low %v1393_v45, %v1397_v60 }
 0x550   :  { %11235 = vmatprep.subr.bf16.mxu1 %v12412_v51  ;;  %v1181_v23 = vld [vmem:[%s19516_s5 + $0x78] sm:$0xff] }
 0x551   :  { %11287 = vmatpush1.bf16.msra.mxu0 %v12499_v36  ;;  %v1385_v6 = vld [vmem:[%s19516_s5 + $0x6d8] sm:$0xff]  ;;  %v12380_v10 = vcombine.high %v1177_v2, %v1181_v23  ;;  %v12379_v22 = vcombine.low %v1177_v2, %v1181_v23 }
 0x552   :  { %11288 = vmatprep.subr.bf16.mxu0 %v12620_v16  ;;  %v1389_v20 = vld [vmem:[%s19516_s5 + $0x6f8] sm:$0xff] }
 0x553   :  { %11236 = vmatpush1.bf16.msra.mxu1 %v12411_v58  ;;  %v1169_v51 = vld [vmem:[%s19516_s5 + $0x18] sm:$0xff]  ;;  %v12588_v59 = vcombine.high %v1385_v6, %v1389_v20  ;;  %v12587_v62 = vcombine.low %v1385_v6, %v1389_v20 }
 0x554   :  { %11237 = vmatprep.subr.bf16.mxu1 %v12404_v9  ;;  %v1173_v36 = vld [vmem:[%s19516_s5 + $0x38] sm:$0xff] }
 0x555   :  { %11289 = vmatpush2.bf16.msra.mxu0 %v12619_v33  ;;  %v1377_v16 = vld [vmem:[%s19516_s5 + $0x698] sm:$0xff]  ;;  %v12372_v41 = vcombine.high %v1169_v51, %v1173_v36  ;;  %v12371_v44 = vcombine.low %v1169_v51, %v1173_v36 }
 0x556   :  { %11290 = vmatprep.subr.bf16.mxu0 %v12612_v37  ;;  %v1381_v58 = vld [vmem:[%s19516_s5 + $0x6b8] sm:$0xff] }
 0x557   :  { %11238 = vmatpush1.bf16.msra.mxu1 %v12403_v11  ;;  %v1289_v9 = vld [vmem:[%s19516_s5 + $0x3d8] sm:$0xff]  ;;  %v12580_v55 = vcombine.high %v1377_v16, %v1381_v58  ;;  %v12579_v25 = vcombine.low %v1377_v16, %v1381_v58 }
 0x558   :  { %11239 = vmatprep.subr.bf16.mxu1 %v12396_v29  ;;  %v1293_v33 = vld [vmem:[%s19516_s5 + $0x3f8] sm:$0xff] }
 0x559   :  { %11291 = vmatpush2.bf16.msra.mxu0 %v12611_v18  ;;  %v1369_v37 = vld [vmem:[%s19516_s5 + $0x658] sm:$0xff]  ;;  %v12492_v50 = vcombine.high %v1289_v9, %v1293_v33  ;;  %v12491_v53 = vcombine.low %v1289_v9, %v1293_v33 }
 0x55a   :  { %11292 = vmatprep.subr.bf16.mxu0 %v12604_v39  ;;  %v1373_v11 = vld [vmem:[%s19516_s5 + $0x678] sm:$0xff] }
 0x55b   :  { %11240 = vmatpush1.bf16.msra.mxu1 %v12395_v13  ;;  %v1281_v29 = vld [vmem:[%s19516_s5 + $0x398] sm:$0xff]  ;;  %v12572_v63 = vcombine.high %v1369_v37, %v1373_v11  ;;  %v12571_v60 = vcombine.low %v1369_v37, %v1373_v11 }
 0x55c   :  { %11241 = vmatprep.subr.bf16.mxu1 %v12388_v28  ;;  %v1285_v18 = vld [vmem:[%s19516_s5 + $0x3b8] sm:$0xff] }
 0x55d   :  { %11293 = vmatpush2.bf16.msra.mxu0 %v12603_v61  ;;  %v1361_v39 = vld [vmem:[%s19516_s5 + $0x618] sm:$0xff]  ;;  %v12484_v45 = vcombine.high %v1281_v29, %v1285_v18  ;;  %v12483_v23 = vcombine.low %v1281_v29, %v1285_v18 }
 0x55e   :  { %11294 = vmatprep.subr.bf16.mxu0 %v12596_v42  ;;  %v1365_v13 = vld [vmem:[%s19516_s5 + $0x638] sm:$0xff] }
 0x55f   :  { %11242 = vmatpush1.bf16.msra.mxu1 %v12387_v47  ;;  %v1273_v28 = vld [vmem:[%s19516_s5 + $0x358] sm:$0xff]  ;;  %v12564_v2 = vcombine.high %v1361_v39, %v1365_v13  ;;  %v12563_v20 = vcombine.low %v1361_v39, %v1365_v13 }
 0x560   :  { %11243 = vmatprep.subr.bf16.mxu1 %v12380_v10  ;;  %v1277_v61 = vld [vmem:[%s19516_s5 + $0x378] sm:$0xff] }
 0x561   :  { %11295 = vmatpush2.bf16.msra.mxu0 %v12595_v31  ;;  %v1609_v42 = vld [vmem:[%s19516_s5 + $0xdd8] sm:$0xff]  ;;  %v12476_v6 = vcombine.high %v1273_v28, %v1277_v61  ;;  %v12475_v36 = vcombine.low %v1273_v28, %v1277_v61 }
 0x562   :  { %11296 = vmatprep.subr.bf16.mxu0 %v12588_v59  ;;  %v1613_v47 = vld [vmem:[%s19516_s5 + $0xdf8] sm:$0xff] }
 0x563   :  { %11244 = vmatpush1.bf16.msra.mxu1 %v12379_v22  ;;  %v1265_v10 = vld [vmem:[%s19516_s5 + $0x318] sm:$0xff]  ;;  %v12812_v51 = vcombine.high %v1609_v42, %v1613_v47  ;;  %v12811_v58 = vcombine.low %v1609_v42, %v1613_v47 }
 0x564   :  { %11245 = vmatprep.subr.bf16.mxu1 %v12372_v41  ;;  %v1269_v31 = vld [vmem:[%s19516_s5 + $0x338] sm:$0xff] }
 0x565   :  { %11297 = vmatpush2.bf16.msra.mxu0 %v12587_v62  ;;  %v1601_v59 = vld [vmem:[%s19516_s5 + $0xd98] sm:$0xff]  ;;  %v12468_v16 = vcombine.high %v1265_v10, %v1269_v31  ;;  %v12467_v33 = vcombine.low %v1265_v10, %v1269_v31 }
 0x566   :  { %11298 = vmatprep.subr.bf16.mxu0 %v12580_v55  ;;  %v1605_v22 = vld [vmem:[%s19516_s5 + $0xdb8] sm:$0xff] }
 0x567   :  { %11246 = vmatpush1.bf16.msra.mxu1 %v12371_v44  ;;  %v1257_v41 = vld [vmem:[%s19516_s5 + $0x2d8] sm:$0xff]  ;;  %v12804_v9 = vcombine.high %v1601_v59, %v1605_v22 }
 0x568   :  { %11247 = vmatprep.subr.bf16.mxu1 %v12492_v50  ;;  %v1261_v62 = vld [vmem:[%s19516_s5 + $0x2f8] sm:$0xff]  ;;  %v12803_v50 = vcombine.low %v1601_v59, %v1605_v22 }
 0x569   :  { %11299 = vmatpush2.bf16.msra.mxu0 %v12579_v25  ;;  %v1593_v55 = vld [vmem:[%s19516_s5 + $0xd58] sm:$0xff]  ;;  %v12460_v11 = vcombine.high %v1257_v41, %v1261_v62 }
 0x56a   :  { %11300 = vmatprep.subr.bf16.mxu0 %v12572_v63  ;;  %v1597_v44 = vld [vmem:[%s19516_s5 + $0xd78] sm:$0xff] }
 0x56b   :  { %11248 = vmatpush2.bf16.msra.mxu1 %v12491_v53  ;;  %v1249_v25 = vld [vmem:[%s19516_s5 + $0x298] sm:$0xff]  ;;  %v12796_v63 = vcombine.high %v1593_v55, %v1597_v44 }
 0x56c   :  { %11249 = vmatprep.subr.bf16.mxu1 %v12484_v45  ;;  %v1253_v29 = vld [vmem:[%s19516_s5 + $0x2b8] sm:$0xff]  ;;  %v12795_v45 = vcombine.low %v1593_v55, %v1597_v44 }
 0x56d   :  { %11301 = vmatpush2.bf16.msra.mxu0 %v12571_v60  ;;  %v1585_v53 = vld [vmem:[%s19516_s5 + $0xd18] sm:$0xff]  ;;  %v12452_v13 = vcombine.high %v1249_v25, %v1253_v29 }
 0x56e   :  { %11302 = vmatprep.subr.bf16.mxu0 %v12564_v2  ;;  %v1241_v60 = vld [vmem:[%s19516_s5 + $0x258] sm:$0xff] }
 0x56f   :  { %11250 = vmatpush2.bf16.msra.mxu1 %v12483_v23  ;;  %v1245_v28 = vld [vmem:[%s19516_s5 + $0x278] sm:$0xff]  ;;  %v12451_v23 = vcombine.low %v1249_v25, %v1253_v29 }
 0x570   :  { %11251 = vmatprep.subr.bf16.mxu1 %v12476_v6  ;;  %v1577_v42 = vld [vmem:[%s19516_s5 + $0xcd8] sm:$0xff]  ;;  %v12444_v6 = vcombine.high %v1241_v60, %v1245_v28 }
 0x571   :  { %11303 = vmatpush2.bf16.msra.mxu0 %v12563_v20  ;;  %v1581_v47 = vld [vmem:[%s19516_s5 + $0xcf8] sm:$0xff] }
 0x572   :  { %11354 = vmatprep.subr.bf16.mxu0 %v12812_v51  ;;  %v1233_v10 = vld [vmem:[%s19516_s5 + $0x218] sm:$0xff]  ;;  %v12780_v51 = vcombine.high %v1577_v42, %v1581_v47 }
 0x573   :  { %11252 = vmatpush2.bf16.msra.mxu1 %v12475_v36  ;;  %v1237_v31 = vld [vmem:[%s19516_s5 + $0x238] sm:$0xff]  ;;  %v12443_v36 = vcombine.low %v1241_v60, %v1245_v28 }
 0x574   :  { %v18507_v37 = vpop.f32.mrf.mxu0  ;;  %11305 = vmatmul.mubr.bf16.vlgmr.msra.gmra.mxu0 %v14917_v12  ;;  %11253 = vmatprep.subr.bf16.mxu1 %v12468_v16  ;;  %v12459_v12 = vcombine.low %v1257_v41, %v1261_v62  ;;  %v1569_v59 = vld [vmem:[%s19516_s5 + $0xc98] sm:$0xff]  ;;  %v12436_v16 = vcombine.high %v1233_v10, %v1237_v31  ;;  %v12435_v44 = vcombine.low %v1233_v10, %v1237_v31 }
 0x575   :  { %11355 = vmatpush1.bf16.msra.mxu0 %v12811_v58  ;;  %11386 = vmatprep.mubr.bf16.mxu0 %v15270_v14  ;;  %v1589_v14 = vld [vmem:[%s19516_s5 + $0xd38] sm:$0xff]  ;;  %v12779_v58 = vcombine.low %v1577_v42, %v1581_v47 }
 0x576   :  { %v18517_v18 = vpop.f32.mrf.mxu0  ;;  %11356 = vmatprep.subr.bf16.mxu0 %v12804_v9  ;;  %v12788_v2 = vcombine.high %v1585_v53, %v1589_v14  ;;  %v12787_v20 = vcombine.low %v1585_v53, %v1589_v14  ;;  %v1573_v22 = vld [vmem:[%s19516_s5 + $0xcb8] sm:$0xff] }
 0x577   :  { %11254 = vmatpush2.bf16.msra.mxu1 %v12467_v33  ;;  %v1481_v41 = vld [vmem:[%s19516_s5 + $0x9d8] sm:$0xff]  ;;  %v12772_v33 = vcombine.high %v1569_v59, %v1573_v22 }
 0x578   :  { %v11023_v39 = vpop.f32.mrf.mxu0  ;;  %11255 = vmatprep.subr.bf16.mxu1 %v12460_v11  ;;  %v1485_v62 = vld [vmem:[%s19516_s5 + $0x9f8] sm:$0xff] }
 0x579   :  { %11357 = vmatpush1.bf16.msra.mxu0 %v12803_v50  ;;  %v1561_v11 = vld [vmem:[%s19516_s5 + $0xc58] sm:$0xff]  ;;  %v12684_v29 = vcombine.high %v1481_v41, %v1485_v62 }
 0x57a   :  { %v11024_v61 = vpop.f32.mrf.mxu0  ;;  %11358 = vmatprep.subr.bf16.mxu0 %v12796_v63  ;;  %v1565_v50 = vld [vmem:[%s19516_s5 + $0xc78] sm:$0xff] }
 0x57b   :  { %11256 = vmatpush2.bf16.msra.mxu1 %v12459_v12  ;;  %v12771_v12 = vcombine.low %v1569_v59, %v1573_v22  ;;  %v1477_v53 = vld [vmem:[%s19516_s5 + $0x9b8] sm:$0xff] }
 0x57c   :  { %11257 = vmatprep.subr.bf16.mxu1 %v12452_v13  ;;  %v12764_v13 = vcombine.high %v1561_v11, %v1565_v50  ;;  %v1557_v60 = vld [vmem:[%s19516_s5 + $0xc38] sm:$0xff] }
 0x57d   :  { %11359 = vmatpush1.bf16.msra.mxu0 %v12795_v45  ;;  %v12683_v45 = vcombine.low %v1481_v41, %v1485_v62  ;;  %v1469_v42 = vld [vmem:[%s19516_s5 + $0x978] sm:$0xff] }
 0x57e   :  { %11360 = vmatprep.subr.bf16.mxu0 %v12788_v2  ;;  %v12763_v2 = vcombine.low %v1561_v11, %v1565_v50  ;;  %v1665_v59 = vld [vmem:[%s19516_s5 + $0xf98] sm:$0xff] }
 0x57f   :  { %11258 = vmatpush2.bf16.msra.mxu1 %v12451_v23  ;;  %v1465_v23 = vld [vmem:[%s19516_s5 + $0x958] sm:$0xff] }
 0x580   :  { %11259 = vmatprep.subr.bf16.mxu1 %v12444_v6  ;;  %v1673_v6 = vld [vmem:[%s19516_s5 + $0xfd8] sm:$0xff]  ;;  %v12668_v10 = vcombine.high %v1465_v23, %v1469_v42 }
 0x581   :  { %11361 = vmatpush1.bf16.msra.mxu0 %v12787_v20  ;;  %v1677_v20 = vld [vmem:[%s19516_s5 + $0xff8] sm:$0xff] }
 0x582   :  { %v10978_v9 = vpop.f32.mrf.mxu1  ;;  %11362 = vmatprep.subr.bf16.mxu0 %v12780_v51  ;;  %v12876_v51 = vcombine.high %v1673_v6, %v1677_v20  ;;  %v1669_v22 = vld [vmem:[%s19516_s5 + $0xfb8] sm:$0xff] }
 0x583   :  { %v10979_v55 = vadd.f32 %v10978_v9, %v18361_v8  ;;  %11260 = vmatpush2.bf16.msra.mxu1 %v12443_v36  ;;  %v1473_v8 = vld [vmem:[%s19516_s5 + $0x998] sm:$0xff]  ;;  %v12667_v36 = vcombine.low %v1465_v23, %v1469_v42  ;;  %v12868_v9 = vcombine.high %v1665_v59, %v1669_v22  ;;  %v12867_v50 = vcombine.low %v1665_v59, %v1669_v22 }
 0x584   :  { %v10980_v25 = vpop.f32.mrf.mxu1  ;;  %11261 = vmatprep.subr.bf16.mxu1 %v12436_v16  ;;  %v1449_v41 = vld [vmem:[%s19516_s5 + $0x8d8] sm:$0xff] }
 0x585   :  { %v10981_v63 = vadd.f32 %v10980_v25, %v18370_v40  ;;  %11363 = vmatpush1.bf16.msra.mxu0 %v12779_v58  ;;  %v18570_v14 = vadd.f32 %v18507_v37, %v10979_v55  ;;  %v1553_v40 = vld [vmem:[%s19516_s5 + $0xc18] sm:$0xff]  ;;  %v12676_v37 = vcombine.high %v1473_v8, %v1477_v53  ;;  %v12875_v58 = vcombine.low %v1673_v6, %v1677_v20 }
 0x586   :  { %v10982_v39 = vpop.f32.mrf.mxu1  ;;  %11364 = vmatprep.subr.bf16.mxu0 %v12772_v33  ;;  %v12756_v47 = vcombine.high %v1553_v40, %v1557_v60  ;;  %v12755_v31 = vcombine.low %v1553_v40, %v1557_v60  ;;  %v1453_v62 = vld [vmem:[%s19516_s5 + $0x8f8] sm:$0xff] }
 0x587   :  { %11262 = vmatpush2.bf16.msra.mxu1 %v12435_v44  ;;  %v18579_v28 = vadd.f32 %v18517_v18, %v10981_v63  ;;  %v12675_v18 = vcombine.low %v1473_v8, %v1477_v53  ;;  %v1657_v55 = vld [vmem:[%s19516_s5 + $0xf58] sm:$0xff]  ;;  %v12652_v11 = vcombine.high %v1449_v41, %v1453_v62 }
 0x588   :  { %v10983_v61 = vpop.f32.mrf.mxu1  ;;  %11313 = vmatprep.subr.bf16.mxu1 %v12684_v29  ;;  %v1661_v44 = vld [vmem:[%s19516_s5 + $0xf78] sm:$0xff] }
 0x589   :  { %11365 = vmatpush1.bf16.msra.mxu0 %v12771_v12  ;;  %v1441_v25 = vld [vmem:[%s19516_s5 + $0x898] sm:$0xff]  ;;  %v12860_v63 = vcombine.high %v1657_v55, %v1661_v44  ;;  %v12651_v12 = vcombine.low %v1449_v41, %v1453_v62 }
 0x58a   :  { %11264 = vmatmul.mubr.bf16.vlgmr.msra.gmra.mxu1 %v14901_v27  ;;  %11366 = vmatprep.subr.bf16.mxu0 %v12764_v13  ;;  %v1457_v27 = vld [vmem:[%s19516_s5 + $0x918] sm:$0xff]  ;;  %v12859_v13 = vcombine.low %v1657_v55, %v1661_v44 }
 0x58b   :  { %11314 = vmatpush1.bf16.msra.mxu1 %v12683_v45  ;;  %11345 = vmatprep.mubr.bf16.mxu1 %v15254_v54  ;;  %v1461_v54 = vld [vmem:[%s19516_s5 + $0x938] sm:$0xff] }
 0x58c   :  { %11315 = vmatprep.subr.bf16.mxu1 %v12676_v37  ;;  %v12660_v16 = vcombine.high %v1457_v27, %v1461_v54  ;;  %v12659_v33 = vcombine.low %v1457_v27, %v1461_v54  ;;  %v1445_v29 = vld [vmem:[%s19516_s5 + $0x8b8] sm:$0xff] }
 0x58d   :  { %11367 = vmatpush1.bf16.msra.mxu0 %v12763_v2  ;;  %v1649_v8 = vld [vmem:[%s19516_s5 + $0xf18] sm:$0xff]  ;;  %v12644_v39 = vcombine.high %v1441_v25, %v1445_v29  ;;  %v12643_v61 = vcombine.low %v1441_v25, %v1445_v29 }
 0x58e   :  { %11368 = vmatprep.subr.bf16.mxu0 %v12756_v47  ;;  %v1653_v53 = vld [vmem:[%s19516_s5 + $0xf38] sm:$0xff] }
 0x58f   :  { %11316 = vmatpush1.bf16.msra.mxu1 %v12675_v18  ;;  %v1433_v45 = vld [vmem:[%s19516_s5 + $0x858] sm:$0xff]  ;;  %v12852_v60 = vcombine.high %v1649_v8, %v1653_v53  ;;  %v12851_v42 = vcombine.low %v1649_v8, %v1653_v53 }
 0x590   :  { %11317 = vmatprep.subr.bf16.mxu1 %v12668_v10  ;;  %v1437_v40 = vld [vmem:[%s19516_s5 + $0x878] sm:$0xff] }
 0x591   :  { %11369 = vmatpush1.bf16.msra.mxu0 %v12755_v31  ;;  %v1641_v37 = vld [vmem:[%s19516_s5 + $0xed8] sm:$0xff]  ;;  %v12636_v23 = vcombine.high %v1433_v45, %v1437_v40  ;;  %v12635_v20 = vcombine.low %v1433_v45, %v1437_v40 }
 0x592   :  { %11370 = vmatprep.subr.bf16.mxu0 %v12876_v51  ;;  %v1645_v2 = vld [vmem:[%s19516_s5 + $0xef8] sm:$0xff] }
 0x593   :  { %11318 = vmatpush1.bf16.msra.mxu1 %v12667_v36  ;;  %v1425_v47 = vld [vmem:[%s19516_s5 + $0x818] sm:$0xff]  ;;  %v12844_v6 = vcombine.high %v1641_v37, %v1645_v2  ;;  %v12843_v54 = vcombine.low %v1641_v37, %v1645_v2 }
 0x594   :  { %11319 = vmatprep.subr.bf16.mxu1 %v12660_v16  ;;  %v1429_v18 = vld [vmem:[%s19516_s5 + $0x838] sm:$0xff] }
 0x595   :  { %11371 = vmatpush2.bf16.msra.mxu0 %v12875_v58  ;;  %v1633_v10 = vld [vmem:[%s19516_s5 + $0xe98] sm:$0xff]  ;;  %v12628_v27 = vcombine.high %v1425_v47, %v1429_v18  ;;  %v12627_v22 = vcombine.low %v1425_v47, %v1429_v18 }
 0x596   :  { %11372 = vmatprep.subr.bf16.mxu0 %v12868_v9  ;;  %v1637_v31 = vld [vmem:[%s19516_s5 + $0xeb8] sm:$0xff] }
 0x597   :  { %11320 = vmatpush1.bf16.msra.mxu1 %v12659_v33  ;;  %v1545_v51 = vld [vmem:[%s19516_s5 + $0xbd8] sm:$0xff]  ;;  %v12836_v59 = vcombine.high %v1633_v10, %v1637_v31  ;;  %v12835_v62 = vcombine.low %v1633_v10, %v1637_v31 }
 0x598   :  { %11321 = vmatprep.subr.bf16.mxu1 %v12652_v11  ;;  %v1549_v36 = vld [vmem:[%s19516_s5 + $0xbf8] sm:$0xff] }
 0x599   :  { %11373 = vmatpush2.bf16.msra.mxu0 %v12867_v50  ;;  %v1625_v16 = vld [vmem:[%s19516_s5 + $0xe58] sm:$0xff]  ;;  %v12748_v41 = vcombine.high %v1545_v51, %v1549_v36  ;;  %v12747_v44 = vcombine.low %v1545_v51, %v1549_v36 }
 0x59a   :  { %11374 = vmatprep.subr.bf16.mxu0 %v12860_v63  ;;  %v1629_v58 = vld [vmem:[%s19516_s5 + $0xe78] sm:$0xff] }
 0x59b   :  { %11322 = vmatpush1.bf16.msra.mxu1 %v12651_v12  ;;  %v1537_v9 = vld [vmem:[%s19516_s5 + $0xb98] sm:$0xff]  ;;  %v12828_v55 = vcombine.high %v1625_v16, %v1629_v58  ;;  %v12827_v29 = vcombine.low %v1625_v16, %v1629_v58 }
 0x59c   :  { %11323 = vmatprep.subr.bf16.mxu1 %v12644_v39  ;;  %v1541_v33 = vld [vmem:[%s19516_s5 + $0xbb8] sm:$0xff] }
 0x59d   :  { %11375 = vmatpush2.bf16.msra.mxu0 %v12859_v13  ;;  %v1617_v11 = vld [vmem:[%s19516_s5 + $0xe18] sm:$0xff]  ;;  %v12740_v25 = vcombine.high %v1537_v9, %v1541_v33  ;;  %v12739_v53 = vcombine.low %v1537_v9, %v1541_v33 }
 0x59e   :  { %11376 = vmatprep.subr.bf16.mxu0 %v12852_v60  ;;  %v1621_v50 = vld [vmem:[%s19516_s5 + $0xe38] sm:$0xff] }
 0x59f   :  { %11324 = vmatpush1.bf16.msra.mxu1 %v12643_v61  ;;  %v1529_v63 = vld [vmem:[%s19516_s5 + $0xb58] sm:$0xff]  ;;  %v12820_v8 = vcombine.high %v1617_v11, %v1621_v50  ;;  %v12819_v40 = vcombine.low %v1617_v11, %v1621_v50 }
 0x5a0   :  { %11325 = vmatprep.subr.bf16.mxu1 %v12636_v23  ;;  %v1533_v12 = vld [vmem:[%s19516_s5 + $0xb78] sm:$0xff] }
 0x5a1   :  { %11377 = vmatpush2.bf16.msra.mxu0 %v12851_v42  ;;  %v1865_v39 = vld [vmem:[%s19516_s5 + $0x15d8] sm:$0xff]  ;;  %v12732_v45 = vcombine.high %v1529_v63, %v1533_v12  ;;  %v12731_v2 = vcombine.low %v1529_v63, %v1533_v12 }
 0x5a2   :  { %11378 = vmatprep.subr.bf16.mxu0 %v12844_v6  ;;  %v1869_v13 = vld [vmem:[%s19516_s5 + $0x15f8] sm:$0xff] }
 0x5a3   :  { %11326 = vmatpush1.bf16.msra.mxu1 %v12635_v20  ;;  %v1521_v60 = vld [vmem:[%s19516_s5 + $0xb18] sm:$0xff]  ;;  %v13068_v37 = vcombine.high %v1865_v39, %v1869_v13  ;;  %v13067_v18 = vcombine.low %v1865_v39, %v1869_v13 }
 0x5a4   :  { %11327 = vmatprep.subr.bf16.mxu1 %v12628_v27  ;;  %v1525_v61 = vld [vmem:[%s19516_s5 + $0xb38] sm:$0xff] }
 0x5a5   :  { %11379 = vmatpush2.bf16.msra.mxu0 %v12843_v54  ;;  %v1857_v23 = vld [vmem:[%s19516_s5 + $0x1598] sm:$0xff]  ;;  %v12724_v47 = vcombine.high %v1521_v60, %v1525_v61  ;;  %v12723_v31 = vcombine.low %v1521_v60, %v1525_v61 }
 0x5a6   :  { %11380 = vmatprep.subr.bf16.mxu0 %v12836_v59  ;;  %v1861_v42 = vld [vmem:[%s19516_s5 + $0x15b8] sm:$0xff] }
 0x5a7   :  { %11328 = vmatpush1.bf16.msra.mxu1 %v12627_v22  ;;  %v1513_v6 = vld [vmem:[%s19516_s5 + $0xad8] sm:$0xff]  ;;  %v13060_v10 = vcombine.high %v1857_v23, %v1861_v42  ;;  %v13059_v59 = vcombine.low %v1857_v23, %v1861_v42 }
 0x5a8   :  { %11329 = vmatprep.subr.bf16.mxu1 %v12748_v41  ;;  %v1517_v20 = vld [vmem:[%s19516_s5 + $0xaf8] sm:$0xff] }
 0x5a9   :  { %11381 = vmatpush2.bf16.msra.mxu0 %v12835_v62  ;;  %v1849_v27 = vld [vmem:[%s19516_s5 + $0x1558] sm:$0xff]  ;;  %v12716_v36 = vcombine.high %v1513_v6, %v1517_v20 }
 0x5aa   :  { %11382 = vmatprep.subr.bf16.mxu0 %v12828_v55  ;;  %v1853_v54 = vld [vmem:[%s19516_s5 + $0x1578] sm:$0xff] }
 0x5ab   :  { %11330 = vmatpush2.bf16.msra.mxu1 %v12747_v44  ;;  %v1505_v22 = vld [vmem:[%s19516_s5 + $0xa98] sm:$0xff]  ;;  %v13052_v41 = vcombine.high %v1849_v27, %v1853_v54  ;;  %v13051_v55 = vcombine.low %v1849_v27, %v1853_v54 }
 0x5ac   :  { %11331 = vmatprep.subr.bf16.mxu1 %v12740_v25  ;;  %v1509_v16 = vld [vmem:[%s19516_s5 + $0xab8] sm:$0xff] }
 0x5ad   :  { %11383 = vmatpush2.bf16.msra.mxu0 %v12827_v29  ;;  %v1841_v62 = vld [vmem:[%s19516_s5 + $0x1518] sm:$0xff]  ;;  %v12708_v33 = vcombine.high %v1505_v22, %v1509_v16  ;;  %v12707_v29 = vcombine.low %v1505_v22, %v1509_v16 }
 0x5ae   :  { %11384 = vmatprep.subr.bf16.mxu0 %v12820_v8  ;;  %v1497_v44 = vld [vmem:[%s19516_s5 + $0xa58] sm:$0xff] }
 0x5af   :  { %11332 = vmatpush2.bf16.msra.mxu1 %v12739_v53  ;;  %v1501_v11 = vld [vmem:[%s19516_s5 + $0xa78] sm:$0xff] }
 0x5b0   :  { %11333 = vmatprep.subr.bf16.mxu1 %v12732_v45  ;;  %v1833_v63 = vld [vmem:[%s19516_s5 + $0x14d8] sm:$0xff]  ;;  %v12700_v8 = vcombine.high %v1497_v44, %v1501_v11 }
 0x5b1   :  { %11385 = vmatpush2.bf16.msra.mxu0 %v12819_v40  ;;  %v1837_v12 = vld [vmem:[%s19516_s5 + $0x14f8] sm:$0xff]  ;;  %v12699_v40 = vcombine.low %v1497_v44, %v1501_v11 }
 0x5b2   :  { %11436 = vmatprep.subr.bf16.mxu0 %v13068_v37  ;;  %v1489_v39 = vld [vmem:[%s19516_s5 + $0xa18] sm:$0xff]  ;;  %v13036_v45 = vcombine.high %v1833_v63, %v1837_v12 }
 0x5b3   :  { %11334 = vmatpush2.bf16.msra.mxu1 %v12731_v2  ;;  %v1493_v13 = vld [vmem:[%s19516_s5 + $0xa38] sm:$0xff]  ;;  %v13035_v2 = vcombine.low %v1833_v63, %v1837_v12 }
 0x5b4   :  { %v18715_v51 = vpop.f32.mrf.mxu0  ;;  %11387 = vmatmul.mubr.bf16.vlgmr.msra.gmra.mxu0 %v15425_v15  ;;  %11335 = vmatprep.subr.bf16.mxu1 %v12724_v47  ;;  %v12715_v15 = vcombine.low %v1513_v6, %v1517_v20  ;;  %v1825_v60 = vld [vmem:[%s19516_s5 + $0x1498] sm:$0xff]  ;;  %v12692_v37 = vcombine.high %v1489_v39, %v1493_v13  ;;  %v12691_v20 = vcombine.low %v1489_v39, %v1493_v13 }
 0x5b5   :  { %11437 = vmatpush1.bf16.msra.mxu0 %v13067_v18  ;;  %11468 = vmatprep.mubr.bf16.mxu0 %v15682_v57  ;;  %v1845_v57 = vld [vmem:[%s19516_s5 + $0x1538] sm:$0xff] }
 0x5b6   :  { %v18725_v58 = vpop.f32.mrf.mxu0  ;;  %11438 = vmatprep.subr.bf16.mxu0 %v13060_v10  ;;  %v13044_v25 = vcombine.high %v1841_v62, %v1845_v57  ;;  %v13043_v53 = vcombine.low %v1841_v62, %v1845_v57  ;;  %v1829_v61 = vld [vmem:[%s19516_s5 + $0x14b8] sm:$0xff] }
 0x5b7   :  { %11336 = vmatpush2.bf16.msra.mxu1 %v12723_v31  ;;  %v1737_v23 = vld [vmem:[%s19516_s5 + $0x11d8] sm:$0xff]  ;;  %v13028_v18 = vcombine.high %v1825_v60, %v1829_v61 }
 0x5b8   :  { %v11105_v9 = vpop.f32.mrf.mxu0  ;;  %11337 = vmatprep.subr.bf16.mxu1 %v12716_v36  ;;  %v1741_v42 = vld [vmem:[%s19516_s5 + $0x11f8] sm:$0xff] }
 0x5b9   :  { %11439 = vmatpush1.bf16.msra.mxu0 %v13059_v59  ;;  %v1817_v10 = vld [vmem:[%s19516_s5 + $0x1458] sm:$0xff]  ;;  %v12940_v54 = vcombine.high %v1737_v23, %v1741_v42  ;;  %v13027_v59 = vcombine.low %v1825_v60, %v1829_v61  ;;  %v12939_v62 = vcombine.low %v1737_v23, %v1741_v42 }
 0x5ba   :  { %v11106_v50 = vpop.f32.mrf.mxu0  ;;  %11440 = vmatprep.subr.bf16.mxu0 %v13052_v41  ;;  %v1821_v31 = vld [vmem:[%s19516_s5 + $0x1478] sm:$0xff] }
 0x5bb   :  { %11338 = vmatpush2.bf16.msra.mxu1 %v12715_v15  ;;  %v1733_v22 = vld [vmem:[%s19516_s5 + $0x11b8] sm:$0xff]  ;;  %v13020_v15 = vcombine.high %v1817_v10, %v1821_v31 }
 0x5bc   :  { %11339 = vmatprep.subr.bf16.mxu1 %v12708_v33  ;;  %v1813_v57 = vld [vmem:[%s19516_s5 + $0x1438] sm:$0xff] }
 0x5bd   :  { %11441 = vmatpush1.bf16.msra.mxu0 %v13051_v55  ;;  %v13019_v55 = vcombine.low %v1817_v10, %v1821_v31  ;;  %v1721_v44 = vld [vmem:[%s19516_s5 + $0x1158] sm:$0xff] }
 0x5be   :  { %11442 = vmatprep.subr.bf16.mxu0 %v13044_v25  ;;  %v1725_v11 = vld [vmem:[%s19516_s5 + $0x1178] sm:$0xff] }
 0x5bf   :  { %11340 = vmatpush2.bf16.msra.mxu1 %v12707_v29  ;;  %v1929_v25 = vld [vmem:[%s19516_s5 + $0x17d8] sm:$0xff]  ;;  %v12924_v63 = vcombine.high %v1721_v44, %v1725_v11 }
 0x5c0   :  { %11341 = vmatprep.subr.bf16.mxu1 %v12700_v8  ;;  %v1933_v29 = vld [vmem:[%s19516_s5 + $0x17f8] sm:$0xff] }
 0x5c1   :  { %11443 = vmatpush1.bf16.msra.mxu0 %v13043_v53  ;;  %v13132_v8 = vcombine.high %v1929_v25, %v1933_v29  ;;  %v12923_v53 = vcombine.low %v1721_v44, %v1725_v11  ;;  %v1921_v39 = vld [vmem:[%s19516_s5 + $0x1798] sm:$0xff] }
 0x5c2   :  { %v11060_v47 = vpop.f32.mrf.mxu1  ;;  %11444 = vmatprep.subr.bf16.mxu0 %v13036_v45  ;;  %v1925_v13 = vld [vmem:[%s19516_s5 + $0x17b8] sm:$0xff] }
 0x5c3   :  { %v11061_v6 = vadd.f32 %v11060_v47, %v18570_v14  ;;  %11342 = vmatpush2.bf16.msra.mxu1 %v12699_v40  ;;  %v1729_v14 = vld [vmem:[%s19516_s5 + $0x1198] sm:$0xff]  ;;  %v13131_v40 = vcombine.low %v1929_v25, %v1933_v29 }
 0x5c4   :  { %v11062_v27 = vpop.f32.mrf.mxu1  ;;  %11343 = vmatprep.subr.bf16.mxu1 %v12692_v37  ;;  %v1705_v60 = vld [vmem:[%s19516_s5 + $0x10d8] sm:$0xff]  ;;  %v13124_v37 = vcombine.high %v1921_v39, %v1925_v13 }
 0x5c5   :  { %v11063_v36 = vadd.f32 %v11062_v27, %v18579_v28  ;;  %11445 = vmatpush1.bf16.msra.mxu0 %v13035_v2  ;;  %v18778_v16 = vadd.f32 %v18715_v51, %v11061_v6  ;;  %v1809_v28 = vld [vmem:[%s19516_s5 + $0x1418] sm:$0xff]  ;;  %v12932_v51 = vcombine.high %v1729_v14, %v1733_v22 }
 0x5c6   :  { %v11064_v41 = vpop.f32.mrf.mxu1  ;;  %11446 = vmatprep.subr.bf16.mxu0 %v13028_v18  ;;  %v13012_v50 = vcombine.high %v1809_v28, %v1813_v57  ;;  %v13011_v12 = vcombine.low %v1809_v28, %v1813_v57  ;;  %v1709_v61 = vld [vmem:[%s19516_s5 + $0x10f8] sm:$0xff]  ;;  %v13123_v18 = vcombine.low %v1921_v39, %v1925_v13 }
 0x5c7   :  { %11344 = vmatpush2.bf16.msra.mxu1 %v12691_v20  ;;  %v18787_v9 = vadd.f32 %v18725_v58, %v11063_v36  ;;  %v12931_v58 = vcombine.low %v1729_v14, %v1733_v22  ;;  %v1913_v23 = vld [vmem:[%s19516_s5 + $0x1758] sm:$0xff]  ;;  %v12908_v47 = vcombine.high %v1705_v60, %v1709_v61  ;;  %v12907_v31 = vcombine.low %v1705_v60, %v1709_v61 }
 0x5c8   :  { %v11065_v33 = vpop.f32.mrf.mxu1  ;;  %11395 = vmatprep.subr.bf16.mxu1 %v12940_v54  ;;  %v1917_v42 = vld [vmem:[%s19516_s5 + $0x1778] sm:$0xff] }
 0x5c9   :  { %11447 = vmatpush1.bf16.msra.mxu0 %v13027_v59  ;;  %v1697_v6 = vld [vmem:[%s19516_s5 + $0x1098] sm:$0xff]  ;;  %v13116_v10 = vcombine.high %v1913_v23, %v1917_v42  ;;  %v13115_v59 = vcombine.low %v1913_v23, %v1917_v42 }
 0x5ca   :  { %11346 = vmatmul.mubr.bf16.vlgmr.msra.gmra.mxu1 %v15414_v7  ;;  %11448 = vmatprep.subr.bf16.mxu0 %v13020_v15  ;;  %v1713_v7 = vld [vmem:[%s19516_s5 + $0x1118] sm:$0xff] }
 0x5cb   :  { %11396 = vmatpush1.bf16.msra.mxu1 %v12939_v62  ;;  %11427 = vmatprep.mubr.bf16.mxu1 %v15669_v21  ;;  %v1717_v21 = vld [vmem:[%s19516_s5 + $0x1138] sm:$0xff] }
 0x5cc   :  { %11397 = vmatprep.subr.bf16.mxu1 %v12932_v51  ;;  %v12916_v45 = vcombine.high %v1713_v7, %v1717_v21  ;;  %v12915_v2 = vcombine.low %v1713_v7, %v1717_v21  ;;  %v1701_v20 = vld [vmem:[%s19516_s5 + $0x10b8] sm:$0xff]  ;;  %v11686_v7 = vsub.s32 0, %v14596_v43 }
 0x5cd   :  { %11449 = vmatpush1.bf16.msra.mxu0 %v13019_v55  ;;  %v1905_v27 = vld [vmem:[%s19516_s5 + $0x1718] sm:$0xff]  ;;  %v12900_v36 = vcombine.high %v1697_v6, %v1701_v20  ;;  %v12899_v15 = vcombine.low %v1697_v6, %v1701_v20 }
 0x5ce   :  { %11450 = vmatprep.subr.bf16.mxu0 %v13012_v50  ;;  %v1909_v54 = vld [vmem:[%s19516_s5 + $0x1738] sm:$0xff] }
 0x5cf   :  { %11398 = vmatpush1.bf16.msra.mxu1 %v12931_v58  ;;  %v1689_v14 = vld [vmem:[%s19516_s5 + $0x1058] sm:$0xff]  ;;  %v13108_v41 = vcombine.high %v1905_v27, %v1909_v54  ;;  %v13107_v33 = vcombine.low %v1905_v27, %v1909_v54 }
 0x5d0   :  { %11399 = vmatprep.subr.bf16.mxu1 %v12924_v63  ;;  %v1693_v22 = vld [vmem:[%s19516_s5 + $0x1078] sm:$0xff] }
 0x5d1   :  { %11451 = vmatpush1.bf16.msra.mxu0 %v13011_v12  ;;  %v1897_v62 = vld [vmem:[%s19516_s5 + $0x16d8] sm:$0xff]  ;;  %v12892_v57 = vcombine.high %v1689_v14, %v1693_v22  ;;  %v12891_v11 = vcombine.low %v1689_v14, %v1693_v22  ;;  %v11690_v14 = vsub.s32 1, %v14596_v43 }
 0x5d2   :  { %11452 = vmatprep.subr.bf16.mxu0 %v13132_v8  ;;  %v1901_v28 = vld [vmem:[%s19516_s5 + $0x16f8] sm:$0xff]  ;;  %v18873_v8 = vld [vmem:[%s19517_s7] sm:$0xff] }
 0x5d3   :  { %11400 = vmatpush1.bf16.msra.mxu1 %v12923_v53  ;;  %v1681_v51 = vld [vmem:[%s19516_s5 + $0x1018] sm:$0xff]  ;;  %v13100_v44 = vcombine.high %v1897_v62, %v1901_v28  ;;  %v13099_v29 = vcombine.low %v1897_v62, %v1901_v28  ;;  %v11694_v53 = vsub.s32 2, %v14596_v43 }
 0x5d4   :  { %11401 = vmatprep.subr.bf16.mxu1 %v12916_v45  ;;  %v1685_v55 = vld [vmem:[%s19516_s5 + $0x1038] sm:$0xff] }
 0x5d5   :  { %11453 = vmatpush2.bf16.msra.mxu0 %v13131_v40  ;;  %v1889_v50 = vld [vmem:[%s19516_s5 + $0x1698] sm:$0xff]  ;;  %v12884_v25 = vcombine.high %v1681_v51, %v1685_v55  ;;  %v12883_v39 = vcombine.low %v1681_v51, %v1685_v55  ;;  %v11695_v42 = vrot.slane %v18873_v8, %v11694_v53 }
 0x5d6   :  { %11454 = vmatprep.subr.bf16.mxu0 %v13124_v37  ;;  %v1893_v58 = vld [vmem:[%s19516_s5 + $0x16b8] sm:$0xff] }
 0x5d7   :  { %11402 = vmatpush1.bf16.msra.mxu1 %v12915_v2  ;;  %v1801_v63 = vld [vmem:[%s19516_s5 + $0x13d8] sm:$0xff]  ;;  %v13092_v21 = vcombine.high %v1889_v50, %v1893_v58  ;;  %v13091_v60 = vcombine.low %v1889_v50, %v1893_v58  ;;  %v11687_v2 = vrot.slane %v18873_v8, %v11686_v7  ;;  %v11726_v22 = vadd.f32 %v11695_v42, %v17933_v17 }
 0x5d8   :  { %11403 = vmatprep.subr.bf16.mxu1 %v12908_v47  ;;  %v1805_v12 = vld [vmem:[%s19516_s5 + $0x13f8] sm:$0xff]  ;;  %v11698_v47 = vsub.s32 3, %v14596_v43 }
 0x5d9   :  { %11455 = vmatpush2.bf16.msra.mxu0 %v13123_v18  ;;  %v1881_v13 = vld [vmem:[%s19516_s5 + $0x1658] sm:$0xff]  ;;  %v13004_v40 = vcombine.high %v1801_v63, %v1805_v12  ;;  %v13003_v18 = vcombine.low %v1801_v63, %v1805_v12 }
 0x5da   :  { %11456 = vmatprep.subr.bf16.mxu0 %v13116_v10  ;;  %v1885_v45 = vld [vmem:[%s19516_s5 + $0x1678] sm:$0xff] }
 0x5db   :  { %11404 = vmatpush1.bf16.msra.mxu1 %v12907_v31  ;;  %v1793_v61 = vld [vmem:[%s19516_s5 + $0x1398] sm:$0xff]  ;;  %v13084_v23 = vcombine.high %v1881_v13, %v1885_v45  ;;  %v13083_v31 = vcombine.low %v1881_v13, %v1885_v45 }
 0x5dc   :  { %11405 = vmatprep.subr.bf16.mxu1 %v12900_v36  ;;  %v1797_v37 = vld [vmem:[%s19516_s5 + $0x13b8] sm:$0xff]  ;;  %v11724_v36 = vadd.f32 %v11687_v2, %v16896_v19 }
 0x5dd   :  { %11457 = vmatpush2.bf16.msra.mxu0 %v13115_v59  ;;  %v1873_v6 = vld [vmem:[%s19516_s5 + $0x1618] sm:$0xff]  ;;  %v12996_v10 = vcombine.high %v1793_v61, %v1797_v37 }
 0x5de   :  { %11458 = vmatprep.subr.bf16.mxu0 %v13108_v41  ;;  %v1877_v20 = vld [vmem:[%s19516_s5 + $0x1638] sm:$0xff]  ;;  %v11699_v41 = vrot.slane %v18873_v8, %v11698_v47  ;;  %v13665_v51 = vmul.f32 -1.442695, %v11724_v36 }
 0x5df   :  { %11406 = vmatpush1.bf16.msra.mxu1 %v12899_v15  ;;  %v1785_v27 = vld [vmem:[%s19516_s5 + $0x1358] sm:$0xff]  ;;  %v13076_v59 = vcombine.high %v1873_v6, %v1877_v20  ;;  %v12995_v15 = vcombine.low %v1793_v61, %v1797_v37 }
 0x5e0   :  { %11407 = vmatprep.subr.bf16.mxu1 %v12892_v57  ;;  %v1789_v54 = vld [vmem:[%s19516_s5 + $0x1378] sm:$0xff]  ;;  %v13075_v57 = vcombine.low %v1873_v6, %v1877_v20  ;;  %v11727_v50 = vadd.f32 %v11699_v41, %v17942_v3  ;;  %13873 = vpow2.f32 %v13665_v51 }
 0x5e1   :  { %11459 = vmatpush2.bf16.msra.mxu0 %v13107_v33  ;;  %v2121_v62 = vld [vmem:[%s19516_s5 + $0x1dd8] sm:$0xff]  ;;  %v12988_v19 = vcombine.high %v1785_v27, %v1789_v54  ;;  %v12987_v58 = vcombine.low %v1785_v27, %v1789_v54 }
 0x5e2   :  { %11460 = vmatprep.subr.bf16.mxu0 %v13100_v44  ;;  %v2125_v28 = vld [vmem:[%s19516_s5 + $0x1df8] sm:$0xff]  ;;  %v11691_v44 = vrot.slane %v18873_v8, %v11690_v14 }
 0x5e3   :  { %11408 = vmatpush1.bf16.msra.mxu1 %v12891_v11  ;;  %v1777_v17 = vld [vmem:[%s19516_s5 + $0x1318] sm:$0xff]  ;;  %v13324_v55 = vcombine.high %v2121_v62, %v2125_v28  ;;  %v13667_v11 = vmul.f32 -1.442695, %v11726_v22  ;;  %v13323_v12 = vcombine.low %v2121_v62, %v2125_v28 }
 0x5e4   :  { %11409 = vmatprep.subr.bf16.mxu1 %v12884_v25  ;;  %v1781_v33 = vld [vmem:[%s19516_s5 + $0x1338] sm:$0xff]  ;;  %v11725_v53 = vadd.f32 %v11691_v44, %v16905_v38 }
 0x5e5   :  { %11461 = vmatpush2.bf16.msra.mxu0 %v13099_v29  ;;  %v2113_v25 = vld [vmem:[%s19516_s5 + $0x1d98] sm:$0xff]  ;;  %v12980_v63 = vcombine.high %v1777_v17, %v1781_v33  ;;  %13875 = vpow2.f32 %v13667_v11  ;;  %v12979_v13 = vcombine.low %v1777_v17, %v1781_v33 }
 0x5e6   :  { %11462 = vmatprep.subr.bf16.mxu0 %v13092_v21  ;;  %v2117_v29 = vld [vmem:[%s19516_s5 + $0x1db8] sm:$0xff]  ;;  %v13666_v47 = vmul.f32 -1.442695, %v11725_v53 }
 0x5e7   :  { %11410 = vmatpush1.bf16.msra.mxu1 %v12883_v39  ;;  %v1769_v7 = vld [vmem:[%s19516_s5 + $0x12d8] sm:$0xff]  ;;  %v13316_v21 = vcombine.high %v2113_v25, %v2117_v29  ;;  %v13668_v39 = vmul.f32 -1.442695, %v11727_v50  ;;  %v13315_v37 = vcombine.low %v2113_v25, %v2117_v29 }
 0x5e8   :  { %11411 = vmatprep.subr.bf16.mxu1 %v13004_v40  ;;  %v1773_v3 = vld [vmem:[%s19516_s5 + $0x12f8] sm:$0xff] }
 0x5e9   :  { %11463 = vmatpush2.bf16.msra.mxu0 %v13091_v60  ;;  %v2105_v45 = vld [vmem:[%s19516_s5 + $0x1d58] sm:$0xff]  ;;  %v12972_v61 = vcombine.high %v1769_v7, %v1773_v3  ;;  %13877 = vpow2.f32 %v13668_v39 }
 0x5ea   :  { %11464 = vmatprep.subr.bf16.mxu0 %v13084_v23  ;;  %v2109_v40 = vld [vmem:[%s19516_s5 + $0x1d78] sm:$0xff]  ;;  %13879 = vpow2.f32 %v13666_v47 }
 0x5eb   :  { %11412 = vmatpush2.bf16.msra.mxu1 %v13003_v18  ;;  %v1761_v38 = vld [vmem:[%s19516_s5 + $0x1298] sm:$0xff]  ;;  %v13308_v42 = vcombine.high %v2105_v45, %v2109_v40 }
 0x5ec   :  { %11413 = vmatprep.subr.bf16.mxu1 %v12996_v10  ;;  %v1765_v2 = vld [vmem:[%s19516_s5 + $0x12b8] sm:$0xff] }
 0x5ed   :  { %11465 = vmatpush2.bf16.msra.mxu0 %v13083_v31  ;;  %v2097_v18 = vld [vmem:[%s19516_s5 + $0x1d18] sm:$0xff]  ;;  %v12964_v20 = vcombine.high %v1761_v38, %v1765_v2  ;;  %v13307_v31 = vcombine.low %v2105_v45, %v2109_v40  ;;  %v12963_v22 = vcombine.low %v1761_v38, %v1765_v2  ;;  %v13874_v33 = vpop.eup %13873  ;;  %v11702_v2 = vsub.s32 4, %v14596_v43 }
 0x5ee   :  { %11466 = vmatprep.subr.bf16.mxu0 %v13076_v59  ;;  %v1753_v10 = vld [vmem:[%s19516_s5 + $0x1258] sm:$0xff] }
 0x5ef   :  { %11414 = vmatpush2.bf16.msra.mxu1 %v12995_v15  ;;  %v1757_v27 = vld [vmem:[%s19516_s5 + $0x1278] sm:$0xff] }
 0x5f0   :  { %11415 = vmatprep.subr.bf16.mxu1 %v12988_v19  ;;  %v2089_v59 = vld [vmem:[%s19516_s5 + $0x1cd8] sm:$0xff]  ;;  %v12956_v15 = vcombine.high %v1753_v10, %v1757_v27  ;;  %v12955_v51 = vcombine.low %v1753_v10, %v1757_v27 }
 0x5f1   :  { %11467 = vmatpush2.bf16.msra.mxu0 %v13075_v57  ;;  %v2093_v14 = vld [vmem:[%s19516_s5 + $0x1cf8] sm:$0xff] }
 0x5f2   :  { %11518 = vmatprep.subr.bf16.mxu0 %v13324_v55  ;;  %v1745_v41 = vld [vmem:[%s19516_s5 + $0x1218] sm:$0xff]  ;;  %v13292_v17 = vcombine.high %v2089_v59, %v2093_v14  ;;  %v13876_v11 = vpop.eup %13875 }
 0x5f3   :  { %11416 = vmatpush2.bf16.msra.mxu1 %v12987_v58  ;;  %v1749_v62 = vld [vmem:[%s19516_s5 + $0x1238] sm:$0xff]  ;;  %v13291_v58 = vcombine.low %v2089_v59, %v2093_v14 }
 0x5f4   :  { %v18940_v60 = vpop.f32.mrf.mxu0  ;;  %11469 = vmatmul.mubr.bf16.vlgmr.msra.gmra.mxu0 %v15694_v0  ;;  %11417 = vmatprep.subr.bf16.mxu1 %v12980_v63  ;;  %v12971_v0 = vcombine.low %v1769_v7, %v1773_v3  ;;  %v2081_v19 = vld [vmem:[%s19516_s5 + $0x1c98] sm:$0xff]  ;;  %v12948_v50 = vcombine.high %v1745_v41, %v1749_v62  ;;  %v11738_v7 = vadd.f32 1.0, %v13874_v33  ;;  %v11750_v3 = vadd.f32 1.0, %v13876_v11 }
 0x5f5   :  { %11519 = vmatpush1.bf16.msra.mxu0 %v13323_v12  ;;  %11550 = vmatprep.mubr.bf16.mxu0 %v15857_v32  ;;  %v2101_v32 = vld [vmem:[%s19516_s5 + $0x1d38] sm:$0xff]  ;;  %v12947_v53 = vcombine.low %v1745_v41, %v1749_v62 }
 0x5f6   :  { %v18950_v23 = vpop.f32.mrf.mxu0  ;;  %11520 = vmatprep.subr.bf16.mxu0 %v13316_v21  ;;  %v13300_v36 = vcombine.high %v2097_v18, %v2101_v32  ;;  %v13299_v28 = vcombine.low %v2097_v18, %v2101_v32  ;;  %v2085_v57 = vld [vmem:[%s19516_s5 + $0x1cb8] sm:$0xff]  ;;  %v13878_v45 = vpop.eup %13877  ;;  %13881 = vrcp.f32 %v11738_v7 }
 0x5f7   :  { %11418 = vmatpush2.bf16.msra.mxu1 %v12979_v13  ;;  %v1993_v55 = vld [vmem:[%s19516_s5 + $0x19d8] sm:$0xff]  ;;  %v13284_v12 = vcombine.high %v2081_v19, %v2085_v57  ;;  %v11751_v32 = vadd.f32 1.0, %v13878_v45  ;;  %13883 = vrcp.f32 %v11750_v3 }
 0x5f8   :  { %v11187_v6 = vpop.f32.mrf.mxu0  ;;  %11419 = vmatprep.subr.bf16.mxu1 %v12972_v61  ;;  %v1997_v44 = vld [vmem:[%s19516_s5 + $0x19f8] sm:$0xff] }
 0x5f9   :  { %11521 = vmatpush1.bf16.msra.mxu0 %v13315_v37  ;;  %v2073_v25 = vld [vmem:[%s19516_s5 + $0x1c58] sm:$0xff]  ;;  %v13196_v61 = vcombine.high %v1993_v55, %v1997_v44  ;;  %v13283_v37 = vcombine.low %v2081_v19, %v2085_v57  ;;  %13885 = vrcp.f32 %v11751_v32 }
 0x5fa   :  { %v11188_v54 = vpop.f32.mrf.mxu0  ;;  %11522 = vmatprep.subr.bf16.mxu0 %v13308_v42  ;;  %v2077_v29 = vld [vmem:[%s19516_s5 + $0x1c78] sm:$0xff] }
 0x5fb   :  { %11420 = vmatpush2.bf16.msra.mxu1 %v12971_v0  ;;  %v1985_v39 = vld [vmem:[%s19516_s5 + $0x1998] sm:$0xff]  ;;  %v13276_v18 = vcombine.high %v2073_v25, %v2077_v29  ;;  %v13275_v59 = vcombine.low %v2073_v25, %v2077_v29 }
 0x5fc   :  { %11421 = vmatprep.subr.bf16.mxu1 %v12964_v20  ;;  %v1989_v13 = vld [vmem:[%s19516_s5 + $0x19b8] sm:$0xff] }
 0x5fd   :  { %11523 = vmatpush1.bf16.msra.mxu0 %v13307_v31  ;;  %v2065_v42 = vld [vmem:[%s19516_s5 + $0x1c18] sm:$0xff]  ;;  %v13880_v31 = vpop.eup %13879  ;;  %v13188_v54 = vcombine.high %v1985_v39, %v1989_v13  ;;  %v13187_v62 = vcombine.low %v1985_v39, %v1989_v13 }
 0x5fe   :  { %11524 = vmatprep.subr.bf16.mxu0 %v13300_v36  ;;  %v2069_v47 = vld [vmem:[%s19516_s5 + $0x1c38] sm:$0xff]  ;;  %v11703_v36 = vrot.slane %v18873_v8, %v11702_v2 }
 0x5ff   :  { %11422 = vmatpush2.bf16.msra.mxu1 %v12963_v22  ;;  %v1977_v20 = vld [vmem:[%s19516_s5 + $0x1958] sm:$0xff]  ;;  %v11739_v22 = vadd.f32 1.0, %v13880_v31 }
 0x600   :  { %11423 = vmatprep.subr.bf16.mxu1 %v12956_v15  ;;  %v1981_v10 = vld [vmem:[%s19516_s5 + $0x1978] sm:$0xff] }
 0x601   :  { %11525 = vmatpush1.bf16.msra.mxu0 %v13299_v28  ;;  %v2185_v28 = vld [vmem:[%s19516_s5 + $0x1fd8] sm:$0xff]  ;;  %v13180_v57 = vcombine.high %v1977_v20, %v1981_v10  ;;  %v13179_v25 = vcombine.low %v1977_v20, %v1981_v10 }
 0x602   :  { %v11142_v63 = vpop.f32.mrf.mxu1  ;;  %11526 = vmatprep.subr.bf16.mxu0 %v13292_v17  ;;  %v2189_v19 = vld [vmem:[%s19516_s5 + $0x1ff8] sm:$0xff] }
 0x603   :  { %v11143_v21 = vadd.f32 %v11142_v63, %v18778_v16  ;;  %11424 = vmatpush2.bf16.msra.mxu1 %v12955_v51  ;;  %v1973_v51 = vld [vmem:[%s19516_s5 + $0x1938] sm:$0xff]  ;;  %v13387_v3 = vcombine.low %v2185_v28, %v2189_v19 }
 0x604   :  { %v11144_v40 = vpop.f32.mrf.mxu1  ;;  %11425 = vmatprep.subr.bf16.mxu1 %v12948_v50  ;;  %v2177_v11 = vld [vmem:[%s19516_s5 + $0x1f98] sm:$0xff] }
 0x605   :  { %v11145_v38 = vadd.f32 %v11144_v40, %v18787_v9  ;;  %11527 = vmatpush1.bf16.msra.mxu0 %v13291_v58  ;;  %v11184_v16 = vadd.f32 %v18940_v60, %v11143_v21  ;;  %v13195_v9 = vcombine.low %v1993_v55, %v1997_v44  ;;  %v11706_v60 = vsub.s32 5, %v14596_v43  ;;  %v2181_v50 = vld [vmem:[%s19516_s5 + $0x1fb8] sm:$0xff] }
 0x606   :  { %v11146_v0 = vpop.f32.mrf.mxu1  ;;  %11528 = vmatprep.subr.bf16.mxu0 %v13284_v12  ;;  %v13388_v44 = vcombine.high %v2185_v28, %v2189_v19  ;;  %v1961_v12 = vld [vmem:[%s19516_s5 + $0x18d8] sm:$0xff]  ;;  %v13380_v39 = vcombine.high %v2177_v11, %v2181_v50  ;;  %v13379_v40 = vcombine.low %v2177_v11, %v2181_v50 }
 0x607   :  { %11426 = vmatpush2.bf16.msra.mxu1 %v12947_v53  ;;  %v11186_v6 = vadd.f32 %v18950_v23, %v11145_v38  ;;  %v13268_v23 = vcombine.high %v2065_v42, %v2069_v47  ;;  %v11707_v15 = vrot.slane %v18873_v8, %v11706_v60  ;;  %v1969_v8 = vld [vmem:[%s19516_s5 + $0x1918] sm:$0xff]  ;;  %v13671_v0 = vld.sshfl [vmem:[%s19519_s2] sm:$0x33 pattern:$0x76325410] }
 0x608   :  { %v11147_v27 = vpop.f32.mrf.mxu1  ;;  %11477 = vmatprep.subr.bf16.mxu1 %v13196_v61  ;;  %v13172_v63 = vcombine.high %v1969_v8, %v1973_v51  ;;  %v1965_v7 = vld [vmem:[%s19516_s5 + $0x18f8] sm:$0xff]  ;;  %v13171_v13 = vcombine.low %v1969_v8, %v1973_v51 }
 0x609   :  { %11529 = vmatpush1.bf16.msra.mxu0 %v13283_v37  ;;  %v2169_v21 = vld [vmem:[%s19516_s5 + $0x1f58] sm:$0xff]  ;;  %v13164_v45 = vcombine.high %v1961_v12, %v1965_v7 }
 0x60a   :  { %v11224_v14 = vpop.f32.mrf.mxu1  ;;  %11428 = vmatmul.mubr.bf16.vlgmr.msra.gmra.mxu1 %v15679_v35  ;;  %11530 = vmatprep.subr.bf16.mxu0 %v13276_v18  ;;  %v2173_v53 = vld [vmem:[%s19516_s5 + $0x1f78] sm:$0xff]  ;;  %v13882_v18 = vpop.eup %13881 }
 0x60b   :  { %v11225_v41 = vadd.f32 %v11224_v14, %v11184_v16  ;;  %11478 = vmatpush1.bf16.msra.mxu1 %v13195_v9  ;;  %11509 = vmatprep.mubr.bf16.mxu1 %v15840_v4  ;;  %v13267_v4 = vcombine.low %v2065_v42, %v2069_v47  ;;  %v1953_v61 = vld [vmem:[%s19516_s5 + $0x1898] sm:$0xff]  ;;  %v13372_v37 = vcombine.high %v2169_v21, %v2173_v53  ;;  %v13884_v60 = vpop.eup %13883 }
 0x60c   :  { %v11226_v35 = vpop.f32.mrf.mxu1  ;;  %11479 = vmatprep.subr.bf16.mxu1 %v13188_v54  ;;  %v1957_v38 = vld [vmem:[%s19516_s5 + $0x18b8] sm:$0xff]  ;;  %v13163_v16 = vcombine.low %v1961_v12, %v1965_v7  ;;  %v13371_v32 = vcombine.low %v2169_v21, %v2173_v53  ;;  %v13886_v10 = vpop.eup %13885 }
 0x60d   :  { %v11728_v17 = vadd.f32 %v11703_v36, %v11225_v41  ;;  %v11227_v33 = vadd.f32 %v11226_v35, %v11186_v6  ;;  %11531 = vmatpush1.bf16.msra.mxu0 %v13275_v59  ;;  %v2161_v2 = vld [vmem:[%s19516_s5 + $0x1f18] sm:$0xff]  ;;  %v13156_v47 = vcombine.high %v1953_v61, %v1957_v38  ;;  %v13155_v31 = vcombine.low %v1953_v61, %v1957_v38 }
 0x60e   :  { %v11228_v55 = vpop.f32.mrf.mxu1  ;;  %11532 = vmatprep.subr.bf16.mxu0 %v13268_v23  ;;  %v2165_v42 = vld [vmem:[%s19516_s5 + $0x1f38] sm:$0xff]  ;;  %v11779_v36 = vcombine.high %v13671_v0, %v13671_v0 }
 0x60f   :  { %13887 = vtanh.f32 %v11728_v17  ;;  %v11729_v58 = vadd.f32 %v11707_v15, %v11227_v33  ;;  %11480 = vmatpush1.bf16.msra.mxu1 %v13187_v62  ;;  %v1945_v9 = vld [vmem:[%s19516_s5 + $0x1858] sm:$0xff]  ;;  %v13364_v20 = vcombine.high %v2161_v2, %v2165_v42  ;;  %v11782_v62 = vmul.f32 %v13884_v60, %v13671_v0 }
 0x610   :  { %13889 = vrcp.f32 %v11739_v22  ;;  %v11229_v29 = vpop.f32.mrf.mxu1  ;;  %11481 = vmatprep.subr.bf16.mxu1 %v13180_v57  ;;  %v1949_v6 = vld [vmem:[%s19516_s5 + $0x1878] sm:$0xff]  ;;  %v13363_v22 = vcombine.low %v2161_v2, %v2165_v42 }
 0x611   :  { %13891 = vtanh.f32 %v11729_v58  ;;  %11533 = vmatpush1.bf16.msra.mxu0 %v13267_v4  ;;  %v2153_v27 = vld [vmem:[%s19516_s5 + $0x1ed8] sm:$0xff]  ;;  %v13148_v14 = vcombine.high %v1945_v9, %v1949_v6  ;;  %v13147_v57 = vcombine.low %v1945_v9, %v1949_v6  ;;  %v11783_v4 = vmul.f32 %v13886_v10, %v11779_v36 }
 0x612   :  { %11534 = vmatprep.subr.bf16.mxu0 %v13388_v44  ;;  %v2157_v54 = vld [vmem:[%s19516_s5 + $0x1ef8] sm:$0xff] }
 0x613   :  { %11482 = vmatpush1.bf16.msra.mxu1 %v13179_v25  ;;  %v1937_v41 = vld [vmem:[%s19516_s5 + $0x1818] sm:$0xff]  ;;  %v13356_v35 = vcombine.high %v2153_v27, %v2157_v54  ;;  %v13355_v44 = vcombine.low %v2153_v27, %v2157_v54 }
 0x614   :  { %11483 = vmatprep.subr.bf16.mxu1 %v13172_v63  ;;  %v1941_v15 = vld [vmem:[%s19516_s5 + $0x1838] sm:$0xff] }
 0x615   :  { %11535 = vmatpush2.bf16.msra.mxu0 %v13387_v3  ;;  %v2145_v17 = vld [vmem:[%s19516_s5 + $0x1e98] sm:$0xff]  ;;  %v13140_v55 = vcombine.high %v1937_v41, %v1941_v15  ;;  %v13139_v29 = vcombine.low %v1937_v41, %v1941_v15 }
 0x616   :  { %11536 = vmatprep.subr.bf16.mxu0 %v13380_v39  ;;  %v2149_v33 = vld [vmem:[%s19516_s5 + $0x1eb8] sm:$0xff] }
 0x617   :  { %11484 = vmatpush1.bf16.msra.mxu1 %v13171_v13  ;;  %v2057_v11 = vld [vmem:[%s19516_s5 + $0x1bd8] sm:$0xff]  ;;  %v13348_v25 = vcombine.high %v2145_v17, %v2149_v33  ;;  %v13347_v21 = vcombine.low %v2145_v17, %v2149_v33 }
 0x618   :  { %11485 = vmatprep.subr.bf16.mxu1 %v13164_v45  ;;  %v2061_v50 = vld [vmem:[%s19516_s5 + $0x1bf8] sm:$0xff] }
 0x619   :  { %11537 = vmatpush2.bf16.msra.mxu0 %v13379_v40  ;;  %v2137_v63 = vld [vmem:[%s19516_s5 + $0x1e58] sm:$0xff]  ;;  %v13260_v3 = vcombine.high %v2057_v11, %v2061_v50  ;;  %v13259_v45 = vcombine.low %v2057_v11, %v2061_v50 }
 0x61a   :  { %11538 = vmatprep.subr.bf16.mxu0 %v13372_v37  ;;  %v2141_v12 = vld [vmem:[%s19516_s5 + $0x1e78] sm:$0xff] }
 0x61b   :  { %11486 = vmatpush1.bf16.msra.mxu1 %v13163_v16  ;;  %v2049_v53 = vld [vmem:[%s19516_s5 + $0x1b98] sm:$0xff]  ;;  %v13340_v13 = vcombine.high %v2137_v63, %v2141_v12  ;;  %v13339_v37 = vcombine.low %v2137_v63, %v2141_v12 }
 0x61c   :  { %v13888_v59 = vpop.eup %13887  ;;  %11487 = vmatprep.subr.bf16.mxu1 %v13156_v47  ;;  %v2053_v39 = vld [vmem:[%s19516_s5 + $0x1bb8] sm:$0xff] }
 0x61d   :  { %v13890_v23 = vpop.eup %13889  ;;  %11539 = vmatpush2.bf16.msra.mxu0 %v13371_v32  ;;  %v11784_v28 = vmul.f32 %v13888_v59, %v13882_v18  ;;  %v2129_v40 = vld [vmem:[%s19516_s5 + $0x1e18] sm:$0xff]  ;;  %v13252_v38 = vcombine.high %v2049_v53, %v2053_v39  ;;  %v13251_v47 = vcombine.low %v2049_v53, %v2053_v39 }
 0x61e   :  { %v13892_v19 = vpop.eup %13891  ;;  %11540 = vmatprep.subr.bf16.mxu0 %v13364_v20  ;;  %v2133_v61 = vld [vmem:[%s19516_s5 + $0x1e38] sm:$0xff] }
 0x61f   :  { %11488 = vmatpush1.bf16.msra.mxu1 %v13155_v31  ;;  %v11785_v8 = vmul.f32 %v13892_v19, %v13890_v23  ;;  %v19091_v51 = vadd.f32 %v11784_v28, %v11782_v62  ;;  %v2041_v16 = vld [vmem:[%s19516_s5 + $0x1b58] sm:$0xff]  ;;  %v13332_v42 = vcombine.high %v2129_v40, %v2133_v61  ;;  %v13331_v9 = vcombine.low %v2129_v40, %v2133_v61 }
 0x620   :  { %11489 = vmatprep.subr.bf16.mxu1 %v13148_v14  ;;  %v2045_v2 = vld [vmem:[%s19516_s5 + $0x1b78] sm:$0xff] }
 0x621   :  { %11541 = vmatpush2.bf16.msra.mxu0 %v13363_v22  ;;  %v19099_v58 = vadd.f32 %v11785_v8, %v11783_v4  ;;  %v2377_v0 = vld [vmem:[%s19516_s5 + $0x25d8] sm:$0xff]  ;;  %v13244_v32 = vcombine.high %v2041_v16, %v2045_v2  ;;  %v13243_v10 = vcombine.low %v2041_v16, %v2045_v2 }
 0x622   :  { %11542 = vmatprep.subr.bf16.mxu0 %v13356_v35  ;;  %v2381_v18 = vld [vmem:[%s19516_s5 + $0x25f8] sm:$0xff] }
 0x623   :  { %11490 = vmatpush1.bf16.msra.mxu1 %v13147_v57  ;;  %v12144_v7 = vcombine.low %v19091_v51, %v19099_v58  ;;  %v2033_v6 = vld [vmem:[%s19516_s5 + $0x1b18] sm:$0xff]  ;;  %v13580_v20 = vcombine.high %v2377_v0, %v2381_v18  ;;  %v13579_v36 = vcombine.low %v2377_v0, %v2381_v18 }
 0x624   :  { %11491 = vmatprep.subr.bf16.mxu1 %v13140_v55  ;;  %v2037_v60 = vld [vmem:[%s19516_s5 + $0x1b38] sm:$0xff] }
 0x625   :  { %11543 = vmatpush2.bf16.msra.mxu0 %v13355_v44  ;;  %v2369_v31 = vld [vmem:[%s19516_s5 + $0x2598] sm:$0xff]  ;;  %v13236_v54 = vcombine.high %v2033_v6, %v2037_v60  ;;  %v13235_v22 = vcombine.low %v2033_v6, %v2037_v60 }
 0x626   :  { %11544 = vmatprep.subr.bf16.mxu0 %v13348_v25  ;;  %v2373_v27 = vld [vmem:[%s19516_s5 + $0x25b8] sm:$0xff] }
 0x627   :  { %11492 = vmatpush1.bf16.msra.mxu1 %v13139_v29  ;;  %v2025_v59 = vld [vmem:[%s19516_s5 + $0x1ad8] sm:$0xff]  ;;  %v13572_v23 = vcombine.high %v2369_v31, %v2373_v27  ;;  %v13571_v19 = vcombine.low %v2369_v31, %v2373_v27 }
 0x628   :  { %11493 = vmatprep.subr.bf16.mxu1 %v13260_v3  ;;  %v2029_v14 = vld [vmem:[%s19516_s5 + $0x1af8] sm:$0xff] }
 0x629   :  { %11545 = vmatpush2.bf16.msra.mxu0 %v13347_v21  ;;  %v2361_v41 = vld [vmem:[%s19516_s5 + $0x2558] sm:$0xff]  ;;  %v13228_v28 = vcombine.high %v2025_v59, %v2029_v14 }
 0x62a   :  { %11546 = vmatprep.subr.bf16.mxu0 %v13340_v13  ;;  %v2365_v15 = vld [vmem:[%s19516_s5 + $0x2578] sm:$0xff] }
 0x62b   :  { %11494 = vmatpush2.bf16.msra.mxu1 %v13259_v45  ;;  %v2017_v35 = vld [vmem:[%s19516_s5 + $0x1a98] sm:$0xff]  ;;  %v13564_v33 = vcombine.high %v2361_v41, %v2365_v15  ;;  %v13563_v44 = vcombine.low %v2361_v41, %v2365_v15 }
 0x62c   :  { %11495 = vmatprep.subr.bf16.mxu1 %v13252_v38  ;;  %v2021_v57 = vld [vmem:[%s19516_s5 + $0x1ab8] sm:$0xff] }
 0x62d   :  { %11547 = vmatpush2.bf16.msra.mxu0 %v13339_v37  ;;  %v2353_v4 = vld [vmem:[%s19516_s5 + $0x2518] sm:$0xff]  ;;  %v13220_v55 = vcombine.high %v2017_v35, %v2021_v57  ;;  %v13219_v63 = vcombine.low %v2017_v35, %v2021_v57 }
 0x62e   :  { %11548 = vmatprep.subr.bf16.mxu0 %v13332_v42  ;;  %v2009_v11 = vld [vmem:[%s19516_s5 + $0x1a58] sm:$0xff] }
 0x62f   :  { %11496 = vmatpush2.bf16.msra.mxu1 %v13251_v47  ;;  %v2013_v50 = vld [vmem:[%s19516_s5 + $0x1a78] sm:$0xff] }
 0x630   :  { %11497 = vmatprep.subr.bf16.mxu1 %v13244_v32  ;;  %v2345_v12 = vld [vmem:[%s19516_s5 + $0x24d8] sm:$0xff]  ;;  %v13212_v21 = vcombine.high %v2009_v11, %v2013_v50  ;;  %v13211_v40 = vcombine.low %v2009_v11, %v2013_v50 }
 0x631   :  { %11549 = vmatpush2.bf16.msra.mxu0 %v13331_v9  ;;  %v2349_v3 = vld [vmem:[%s19516_s5 + $0x24f8] sm:$0xff] }
 0x632   :  { %11600 = vmatprep.subr.bf16.mxu0 %v13580_v20  ;;  %v2001_v39 = vld [vmem:[%s19516_s5 + $0x1a18] sm:$0xff]  ;;  %v13548_v45 = vcombine.high %v2345_v12, %v2349_v3  ;;  %v13547_v16 = vcombine.low %v2345_v12, %v2349_v3 }
 0x633   :  { %11498 = vmatpush2.bf16.msra.mxu1 %v13243_v10  ;;  %v2005_v13 = vld [vmem:[%s19516_s5 + $0x1a38] sm:$0xff] }
 0x634   :  { %v19157_v62 = vpop.f32.mrf.mxu0  ;;  %11551 = vmatmul.mubr.bf16.vlgmr.msra.gmra.mxu0 %v16049_v52  ;;  %11499 = vmatprep.subr.bf16.mxu1 %v13236_v54  ;;  %v13227_v52 = vcombine.low %v2025_v59, %v2029_v14  ;;  %v2337_v61 = vld [vmem:[%s19516_s5 + $0x2498] sm:$0xff]  ;;  %v13204_v37 = vcombine.high %v2001_v39, %v2005_v13  ;;  %v13203_v0 = vcombine.low %v2001_v39, %v2005_v13 }
 0x635   :  { %11601 = vmatpush1.bf16.msra.mxu0 %v13579_v36  ;;  %11632 = vmatprep.mubr.bf16.mxu0 %v16052_v24  ;;  %v2357_v24 = vld [vmem:[%s19516_s5 + $0x2538] sm:$0xff] }
 0x636   :  { %v19167_v17 = vpop.f32.mrf.mxu0  ;;  %11602 = vmatprep.subr.bf16.mxu0 %v13572_v23  ;;  %v13556_v29 = vcombine.high %v2353_v4, %v2357_v24  ;;  %v13555_v53 = vcombine.low %v2353_v4, %v2357_v24  ;;  %v2341_v38 = vld [vmem:[%s19516_s5 + $0x24b8] sm:$0xff] }
 0x637   :  { %11500 = vmatpush2.bf16.msra.mxu1 %v13235_v22  ;;  %v2249_v2 = vld [vmem:[%s19516_s5 + $0x21d8] sm:$0xff]  ;;  %v13540_v47 = vcombine.high %v2337_v61, %v2341_v38  ;;  %v13539_v6 = vcombine.low %v2337_v61, %v2341_v38 }
 0x638   :  { %v11310_v8 = vpop.f32.mrf.mxu0  ;;  %11501 = vmatprep.subr.bf16.mxu1 %v13228_v28  ;;  %v2253_v42 = vld [vmem:[%s19516_s5 + $0x21f8] sm:$0xff] }
 0x639   :  { %11603 = vmatpush1.bf16.msra.mxu0 %v13571_v19  ;;  %v2329_v18 = vld [vmem:[%s19516_s5 + $0x2458] sm:$0xff]  ;;  %v13452_v9 = vcombine.high %v2249_v2, %v2253_v42  ;;  %v13451_v31 = vcombine.low %v2249_v2, %v2253_v42 }
 0x63a   :  { %v11311_v25 = vpop.f32.mrf.mxu0  ;;  %11604 = vmatprep.subr.bf16.mxu0 %v13564_v33  ;;  %v2333_v32 = vld [vmem:[%s19516_s5 + $0x2478] sm:$0xff] }
 0x63b   :  { %11502 = vmatpush2.bf16.msra.mxu1 %v13227_v52  ;;  %v2241_v60 = vld [vmem:[%s19516_s5 + $0x2198] sm:$0xff]  ;;  %v13532_v10 = vcombine.high %v2329_v18, %v2333_v32  ;;  %v13531_v59 = vcombine.low %v2329_v18, %v2333_v32 }
 0x63c   :  { %11503 = vmatprep.subr.bf16.mxu1 %v13220_v55  ;;  %v2245_v20 = vld [vmem:[%s19516_s5 + $0x21b8] sm:$0xff] }
 0x63d   :  { %11605 = vmatpush1.bf16.msra.mxu0 %v13563_v44  ;;  %v2321_v27 = vld [vmem:[%s19516_s5 + $0x2418] sm:$0xff]  ;;  %v13444_v36 = vcombine.high %v2241_v60, %v2245_v20  ;;  %v13443_v28 = vcombine.low %v2241_v60, %v2245_v20 }
 0x63e   :  { %11606 = vmatprep.subr.bf16.mxu0 %v13556_v29  ;;  %v2325_v54 = vld [vmem:[%s19516_s5 + $0x2438] sm:$0xff] }
 0x63f   :  { %11504 = vmatpush2.bf16.msra.mxu1 %v13219_v63  ;;  %v2233_v14 = vld [vmem:[%s19516_s5 + $0x2158] sm:$0xff]  ;;  %v13524_v41 = vcombine.high %v2321_v27, %v2325_v54  ;;  %v13523_v52 = vcombine.low %v2321_v27, %v2325_v54 }
 0x640   :  { %11505 = vmatprep.subr.bf16.mxu1 %v13212_v21  ;;  %v2237_v23 = vld [vmem:[%s19516_s5 + $0x2178] sm:$0xff] }
 0x641   :  { %11607 = vmatpush1.bf16.msra.mxu0 %v13555_v53  ;;  %v2441_v19 = vld [vmem:[%s19516_s5 + $0x27d8] sm:$0xff]  ;;  %v13436_v33 = vcombine.high %v2233_v14, %v2237_v23  ;;  %v13435_v55 = vcombine.low %v2233_v14, %v2237_v23 }
 0x642   :  { %11608 = vmatprep.subr.bf16.mxu0 %v13548_v45  ;;  %v2445_v35 = vld [vmem:[%s19516_s5 + $0x27f8] sm:$0xff] }
 0x643   :  { %11506 = vmatpush2.bf16.msra.mxu1 %v13211_v40  ;;  %v13644_v8 = vcombine.high %v2441_v19, %v2445_v35  ;;  %v2437_v44 = vld [vmem:[%s19516_s5 + $0x27b8] sm:$0xff]  ;;  %v13643_v25 = vcombine.low %v2441_v19, %v2445_v35 }
 0x644   :  { %11507 = vmatprep.subr.bf16.mxu1 %v13204_v37  ;;  %v2217_v29 = vld [vmem:[%s19516_s5 + $0x20d8] sm:$0xff] }
 0x645   :  { %11609 = vmatpush1.bf16.msra.mxu0 %v13547_v16  ;;  %v2221_v63 = vld [vmem:[%s19516_s5 + $0x20f8] sm:$0xff] }
 0x646   :  { %11610 = vmatprep.subr.bf16.mxu0 %v13540_v47  ;;  %v2429_v21 = vld [vmem:[%s19516_s5 + $0x2778] sm:$0xff]  ;;  %v13420_v53 = vcombine.high %v2217_v29, %v2221_v63  ;;  %v13419_v61 = vcombine.low %v2217_v29, %v2221_v63 }
 0x647   :  { %11508 = vmatpush2.bf16.msra.mxu1 %v13203_v0  ;;  %v2209_v13 = vld [vmem:[%s19516_s5 + $0x2098] sm:$0xff] }
 0x648   :  { %11559 = vmatprep.subr.bf16.mxu1 %v13452_v9  ;;  %v2213_v45 = vld [vmem:[%s19516_s5 + $0x20b8] sm:$0xff] }
 0x649   :  { %11611 = vmatpush1.bf16.msra.mxu0 %v13539_v6  ;;  %v2417_v38 = vld [vmem:[%s19516_s5 + $0x2718] sm:$0xff]  ;;  %v13412_v16 = vcombine.high %v2209_v13, %v2213_v45  ;;  %v13411_v18 = vcombine.low %v2209_v13, %v2213_v45  ;;  %v13843_v45 = vld [vmem:[%s19518_s8 + $0xf0] sm:$0xff]  }
 0x64a   :  { %v11265_v22 = vpop.f32.mrf.mxu1  ;;  %11510 = vmatmul.mubr.bf16.vlgmr.msra.gmra.mxu1 %v16036_v34  ;;  %11612 = vmatprep.subr.bf16.mxu0 %v13532_v10  ;;  %v2421_v37 = vld [vmem:[%s19516_s5 + $0x2738] sm:$0xff] }
 0x64b   :  { %v11266_v15 = vadd.f32 %v11265_v22, %v15320_v30  ;;  %11560 = vmatpush1.bf16.msra.mxu1 %v13451_v31  ;;  %11591 = vmatprep.mubr.bf16.mxu1 %v16038_v26  ;;  %v2225_v30 = vld [vmem:[%s19516_s5 + $0x2118] sm:$0xff]  ;;  %v13620_v0 = vcombine.high %v2417_v38, %v2421_v37  ;;  %v13619_v60 = vcombine.low %v2417_v38, %v2421_v37 }
 0x64c   :  { %v11267_v57 = vpop.f32.mrf.mxu1  ;;  %11561 = vmatprep.subr.bf16.mxu1 %v13444_v36  ;;  %v2229_v26 = vld [vmem:[%s19516_s5 + $0x2138] sm:$0xff] }
 0x64d   :  { %v11268_v34 = vadd.f32 %v11267_v57, %v15332_v49  ;;  %11613 = vmatpush1.bf16.msra.mxu0 %v13531_v59  ;;  %v19246_v4 = vadd.f32 %v19157_v62, %v11266_v15  ;;  %v2433_v49 = vld [vmem:[%s19516_s5 + $0x2798] sm:$0xff]  ;;  %v13428_v62 = vcombine.high %v2225_v30, %v2229_v26  ;;  %v13427_v3 = vcombine.low %v2225_v30, %v2229_v26 }
 0x64e   :  { %v11269_v24 = vpop.f32.mrf.mxu1  ;;  %11614 = vmatprep.subr.bf16.mxu0 %v13524_v41  ;;  %v13636_v12 = vcombine.high %v2433_v49, %v2437_v44  ;;  %v13635_v39 = vcombine.low %v2433_v49, %v2437_v44  ;;  %v2201_v42 = vld [vmem:[%s19516_s5 + $0x2058] sm:$0xff] }
 0x64f   :  { %11562 = vmatpush1.bf16.msra.mxu1 %v13443_v28  ;;  %v19255_v11 = vadd.f32 %v19167_v17, %v11268_v34  ;;  %v2425_v17 = vld [vmem:[%s19516_s5 + $0x2758] sm:$0xff] }
 0x650   :  { %v11270_v50 = vpop.f32.mrf.mxu1  ;;  %11563 = vmatprep.subr.bf16.mxu1 %v13436_v33  ;;  %v13628_v40 = vcombine.high %v2425_v17, %v2429_v21  ;;  %v13627_v2 = vcombine.low %v2425_v17, %v2429_v21  ;;  %v2205_v47 = vld [vmem:[%s19516_s5 + $0x2078] sm:$0xff] }
 0x651   :  { %11615 = vmatpush1.bf16.msra.mxu0 %v13523_v52  ;;  %v2409_v32 = vld [vmem:[%s19516_s5 + $0x26d8] sm:$0xff]  ;;  %v13404_v6 = vcombine.high %v2201_v42, %v2205_v47  ;;  %v13403_v27 = vcombine.low %v2201_v42, %v2205_v47 }
 0x652   :  { %11616 = vmatprep.subr.bf16.mxu0 %v13644_v8  ;;  %v2413_v9 = vld [vmem:[%s19516_s5 + $0x26f8] sm:$0xff] }
 0x653   :  { %11564 = vmatpush1.bf16.msra.mxu1 %v13435_v55  ;;  %v2193_v20 = vld [vmem:[%s19516_s5 + $0x2018] sm:$0xff]  ;;  %v13612_v31 = vcombine.high %v2409_v32, %v2413_v9  ;;  %v13611_v14 = vcombine.low %v2409_v32, %v2413_v9  ;;  %v13846_v9 = vld [vmem:[%s19518_s8 + $0xa8] sm:$0xff]  }
 0x654   :  { %11565 = vmatprep.subr.bf16.mxu1 %v13428_v62  ;;  %v2197_v10 = vld [vmem:[%s19516_s5 + $0x2038] sm:$0xff] }
 0x655   :  { %11617 = vmatpush2.bf16.msra.mxu0 %v13643_v25  ;;  %v2401_v54 = vld [vmem:[%s19516_s5 + $0x2698] sm:$0xff]  ;;  %v13396_v59 = vcombine.high %v2193_v20, %v2197_v10  ;;  %v13395_v15 = vcombine.low %v2193_v20, %v2197_v10  ;;  %v13847_v10 = vld [vmem:[%s19518_s8 + $0xe0] sm:$0xff]  }
 0x656   :  { %11618 = vmatprep.subr.bf16.mxu0 %v13636_v12  ;;  %v2405_v36 = vld [vmem:[%s19516_s5 + $0x26b8] sm:$0xff] }
 0x657   :  { %11566 = vmatpush1.bf16.msra.mxu1 %v13427_v3  ;;  %v2313_v23 = vld [vmem:[%s19516_s5 + $0x23d8] sm:$0xff]  ;;  %v13604_v41 = vcombine.high %v2401_v54, %v2405_v36  ;;  %v13603_v57 = vcombine.low %v2401_v54, %v2405_v36  ;;  %v13848_v54 = vld [vmem:[%s19518_s8 + $0xa0] sm:$0xff]  }
 0x658   :  { %11567 = vmatprep.subr.bf16.mxu1 %v13420_v53  ;;  %v2317_v22 = vld [vmem:[%s19516_s5 + $0x23f8] sm:$0xff] }
 0x659   :  { %11619 = vmatpush2.bf16.msra.mxu0 %v13635_v39  ;;  %v2393_v28 = vld [vmem:[%s19516_s5 + $0x2658] sm:$0xff]  ;;  %v13516_v35 = vcombine.high %v2313_v23, %v2317_v22  ;;  %v13515_v30 = vcombine.low %v2313_v23, %v2317_v22 }
 0x65a   :  { %11620 = vmatprep.subr.bf16.mxu0 %v13628_v40  ;;  %v2397_v19 = vld [vmem:[%s19516_s5 + $0x2678] sm:$0xff]  ;;  %v11795_v40 = vpack.c.bf16 %v19099_v58, %v19099_v58 }
 0x65b   :  { %11568 = vmatpush1.bf16.msra.mxu1 %v13419_v61  ;;  %v2305_v33 = vld [vmem:[%s19516_s5 + $0x2398] sm:$0xff]  ;;  %v13596_v52 = vcombine.high %v2393_v28, %v2397_v19  ;;  %v13595_v55 = vcombine.low %v2393_v28, %v2397_v19  ;;  %v13851_v19 = vld [vmem:[%s19518_s8 + $0xd0] sm:$0xff]  }
 0x65c   :  { %11569 = vmatprep.subr.bf16.mxu1 %v13412_v16  ;;  %v2309_v34 = vld [vmem:[%s19516_s5 + $0x23b8] sm:$0xff]  ;;  %v13844_v16 = vld [vmem:[%s19518_s8 + $0xb0] sm:$0xff]  }
 0x65d   :  { %11621 = vmatpush2.bf16.msra.mxu0 %v13627_v2  ;;  %v2385_v26 = vld [vmem:[%s19516_s5 + $0x2618] sm:$0xff]  ;;  %v13508_v8 = vcombine.high %v2305_v33, %v2309_v34  ;;  %v13507_v62 = vcombine.low %v2305_v33, %v2309_v34  ;;  %v13852_v33 = vld [vmem:[%s19518_s8 + $0x90] sm:$0xff]  }
 0x65e   :  { %11622 = vmatprep.subr.bf16.mxu0 %v13620_v0  ;;  %v2389_v24 = vld [vmem:[%s19516_s5 + $0x2638] sm:$0xff] }
 0x65f   :  { %11570 = vmatpush1.bf16.msra.mxu1 %v13411_v18  ;;  %v2297_v49 = vld [vmem:[%s19516_s5 + $0x2358] sm:$0xff]  ;;  %v13588_v50 = vcombine.high %v2385_v26, %v2389_v24  ;;  %v13587_v29 = vcombine.low %v2385_v26, %v2389_v24 }
 0x660   :  { %11571 = vmatprep.subr.bf16.mxu1 %v13404_v6  ;;  %v2301_v44 = vld [vmem:[%s19516_s5 + $0x2378] sm:$0xff] }
 0x661   :  { %11623 = vmatpush2.bf16.msra.mxu0 %v13619_v60  ;;  %v13500_v25 = vcombine.high %v2297_v49, %v2301_v44  ;;  %v2289_v63 = vld [vmem:[%s19516_s5 + $0x2318] sm:$0xff]  ;;  %v13499_v17 = vcombine.low %v2297_v49, %v2301_v44  ;;  %v13855_v49 = vld [vmem:[%s19518_s8 + $0xc0] sm:$0xff]  }
 0x662   :  { %11624 = vmatprep.subr.bf16.mxu0 %v13612_v31  ;;  %v2293_v12 = vld [vmem:[%s19516_s5 + $0x2338] sm:$0xff] }
 0x663   :  { %11572 = vmatpush1.bf16.msra.mxu1 %v13403_v27  ;;  %v13841_v3 = vld [vmem:[%s19518_s8 + $0xf8] sm:$0xff]   ;;  %v13492_v21 = vcombine.high %v2289_v63, %v2293_v12  ;;  %v13491_v61 = vcombine.low %v2289_v63, %v2293_v12 }
 0x664   :  { %11573 = vmatprep.subr.bf16.mxu1 %v13396_v59  ;;  %v13842_v53 = vld [vmem:[%s19518_s8 + $0xb8] sm:$0xff]  }
 0x665   :  { %11625 = vmatpush2.bf16.msra.mxu0 %v13611_v14  ;;  %v2281_v39 = vld [vmem:[%s19516_s5 + $0x22d8] sm:$0xff] }
 0x666   :  { %11626 = vmatprep.subr.bf16.mxu0 %v13604_v41  ;;  %v2285_v13 = vld [vmem:[%s19516_s5 + $0x22f8] sm:$0xff] }
 0x667   :  { %11574 = vmatpush1.bf16.msra.mxu1 %v13395_v15  ;;  %v13484_v37 = vcombine.high %v2281_v39, %v2285_v13  ;;  %v2273_v2 = vld [vmem:[%s19516_s5 + $0x2298] sm:$0xff]  ;;  %v13483_v0 = vcombine.low %v2281_v39, %v2285_v13 }
 0x668   :  { %11575 = vmatprep.subr.bf16.mxu1 %v13516_v35  ;;  %v2277_v42 = vld [vmem:[%s19516_s5 + $0x22b8] sm:$0xff] }
 0x669   :  { %11627 = vmatpush2.bf16.msra.mxu0 %v13603_v57  ;;  %v13476_v32 = vcombine.high %v2273_v2, %v2277_v42  ;;  %v2265_v6 = vld [vmem:[%s19516_s5 + $0x2258] sm:$0xff]  ;;  %v13475_v31 = vcombine.low %v2273_v2, %v2277_v42  ;;  %v13859_v2 = vld [vmem:[%s19518_s8 + $0x70] sm:$0xff]  }
 0x66a   :  { %11628 = vmatprep.subr.bf16.mxu0 %v13596_v52  ;;  %v2269_v60 = vld [vmem:[%s19516_s5 + $0x2278] sm:$0xff]  ;;  %v13860_v42 = vld [vmem:[%s19518_s8 + $0x30] sm:$0xff]  }
 0x66b   :  { %11576 = vmatpush2.bf16.msra.mxu1 %v13515_v30  ;;  %v13468_v27 = vcombine.high %v2265_v6, %v2269_v60  ;;  %v2257_v36 = vld [vmem:[%s19516_s5 + $0x2218] sm:$0xff]  ;;  %v13467_v23 = vcombine.low %v2265_v6, %v2269_v60  ;;  %v13853_v30 = vld [vmem:[%s19518_s8 + $0xc8] sm:$0xff]   ;;  %v13867_v6 = vld [vmem:[%s19518_s8 + $0x50] sm:$0xff]  }
 0x66c   :  { %11577 = vmatprep.subr.bf16.mxu1 %v13508_v8  ;;  %v2261_v59 = vld [vmem:[%s19516_s5 + $0x2238] sm:$0xff]  ;;  %v13854_v8 = vld [vmem:[%s19518_s8 + $0x88] sm:$0xff]   ;;  %v13868_v60 = vld [vmem:[%s19518_s8 + $0x10] sm:$0xff]  }
 0x66d   :  { %11629 = vmatpush2.bf16.msra.mxu0 %v13595_v55  ;;  %v13849_v14 = vld [vmem:[%s19518_s8 + $0xd8] sm:$0xff]   ;;  %v13460_v22 = vcombine.high %v2257_v36, %v2261_v59  ;;  %v13459_v35 = vcombine.low %v2257_v36, %v2261_v59  ;;  %v13871_v36 = vld [vmem:[%s19518_s8 + $0x40] sm:$0xff]  }
 0x66e   :  { %11630 = vmatprep.subr.bf16.mxu0 %v13588_v50  ;;  %v13850_v41 = vld [vmem:[%s19518_s8 + $0x98] sm:$0xff]  }
 0x66f   :  { %11578 = vmatpush2.bf16.msra.mxu1 %v13507_v62  ;;  %v2457_v15 = vld [vmem:[%s19516_s5 + $0x2858] sm:$0xff] }
 0x670   :  { %11579 = vmatprep.subr.bf16.mxu1 %v13500_v25  ;;  %v2461_v28 = vld [vmem:[%s19516_s5 + $0x2878] sm:$0xff] }
 0x671   :  { %11631 = vmatpush2.bf16.msra.mxu0 %v13587_v29  ;;  %v13660_v57 = vcombine.high %v2457_v15, %v2461_v28  ;;  %v2449_v34 = vld [vmem:[%s19516_s5 + $0x2818] sm:$0xff]  ;;  %v13659_v26 = vcombine.low %v2457_v15, %v2461_v28 }
 0x672   :  { %13727 = vmatprep.subr.bf16.mxu0 %v13841_v3  ;;  %v2453_v52 = vld [vmem:[%s19516_s5 + $0x2838] sm:$0xff] }
 0x673   :  { %11580 = vmatpush2.bf16.msra.mxu1 %v13499_v17  ;;  %v13652_v24 = vcombine.high %v2449_v34, %v2453_v52  ;;  %v13651_v50 = vcombine.low %v2449_v34, %v2453_v52 }
 0x674   :  { %v19358_v38 = vpop.f32.mrf.mxu0  ;;  %11633 = vmatmul.mubr.bf16.vlgmr.msra.gmra.mxu0 %v16261_v46  ;;  %11581 = vmatprep.subr.bf16.mxu1 %v13492_v21  ;;  %v13845_v46 = vld [vmem:[%s19518_s8 + $0xe8] sm:$0xff]  }
 0x675   :  { %13728 = vmatpush3.bf16.msra.mxu0 %v13842_v53  ;;  %12131 = vmatprep.mubr.bf16.mxu0 %v11795_v40 }
 0x676   :  { %v19370_v47 = vpop.f32.mrf.mxu0  ;;  %13729 = vmatprep.subr.bf16.mxu0 %v13843_v45 }
 0x677   :  { %11582 = vmatpush2.bf16.msra.mxu1 %v13491_v61 }
 0x678   :  { %v11392_v18 = vpop.f32.mrf.mxu0  ;;  %11583 = vmatprep.subr.bf16.mxu1 %v13484_v37 }
 0x679   :  { %13730 = vmatpush3.bf16.msra.mxu0 %v13844_v16  ;;  %v13858_v16 = vld [vmem:[%s19518_s8 + $0x38] sm:$0xff]   ;;  %v13864_v18 = vld [vmem:[%s19518_s8 + $0x20] sm:$0xff]  }
 0x67a   :  { %v11393_v20 = vpop.f32.mrf.mxu0  ;;  %13731 = vmatprep.subr.bf16.mxu0 %v13845_v46  ;;  %v13862_v46 = vld [vmem:[%s19518_s8 + $0x28] sm:$0xff]  }
 0x67b   :  { %11584 = vmatpush2.bf16.msra.mxu1 %v13483_v0  ;;  %v13863_v0 = vld [vmem:[%s19518_s8 + $0x60] sm:$0xff]  }
 0x67c   :  { %11585 = vmatprep.subr.bf16.mxu1 %v13476_v32  ;;  %v13865_v32 = vld [vmem:[%s19518_s8 + $0x58] sm:$0xff]  }
 0x67d   :  { %13732 = vmatpush3.bf16.msra.mxu0 %v13846_v9  ;;  %v13866_v9 = vld [vmem:[%s19518_s8 + $0x18] sm:$0xff]  }
 0x67e   :  { %13733 = vmatprep.subr.bf16.mxu0 %v13847_v10  ;;  %v13869_v10 = vld [vmem:[%s19518_s8 + $0x48] sm:$0xff]  }
 0x67f   :  { %11586 = vmatpush2.bf16.msra.mxu1 %v13475_v31 }
 0x680   :  { %11587 = vmatprep.subr.bf16.mxu1 %v13468_v27  ;;  %v13870_v27 = vld [vmem:[%s19518_s8 + $0x8] sm:$0xff]  }
 0x681   :  { %13734 = vmatpush3.bf16.msra.mxu0 %v13848_v54 }
 0x682   :  { %13735 = vmatprep.subr.bf16.mxu0 %v13849_v14  ;;  %v13872_v14 = vld [vmem:[%s19518_s8] sm:$0xff]  }
 0x683   :  { %11588 = vmatpush2.bf16.msra.mxu1 %v13467_v23 }
 0x684   :  { %11589 = vmatprep.subr.bf16.mxu1 %v13460_v22 }
 0x685   :  { %13736 = vmatpush3.bf16.msra.mxu0 %v13850_v41 }
 0x686   :  { %13737 = vmatprep.subr.bf16.mxu0 %v13851_v19 }
 0x687   :  { %11590 = vmatpush2.bf16.msra.mxu1 %v13459_v35 }
 0x688   :  { %11653 = vmatprep.subr.bf16.mxu1 %v13660_v57 }
 0x689   :  { %13738 = vmatpush3.bf16.msra.mxu0 %v13852_v33 }
 0x68a   :  { %v11347_v55 = vpop.f32.mrf.mxu1  ;;  %11592 = vmatmul.mubr.bf16.vlgmr.msra.gmra.mxu1 %v16250_v5  ;;  %13739 = vmatprep.subr.bf16.mxu0 %v13853_v30  ;;  %v13856_v5 = vld [vmem:[%s19518_s8 + $0x80] sm:$0xff]  }
 0x68b   :  { %v11348_v44 = vadd.f32 %v11347_v55, %v19246_v4  ;;  %11654 = vmatpush1.bf16.msra.mxu1 %v13659_v26  ;;  %11673 = vmatprep.mubr.bf16.mxu1 %v13906_v1  ;;  %v11794_v1 = vpack.c.bf16 %v19091_v51, %v19091_v51  ;;  %v11710_v55 = vsub.s32 6, %v14596_v43 }
 0x68c   :  { %v11349_v62 = vpop.f32.mrf.mxu1  ;;  %11655 = vmatprep.subr.bf16.mxu1 %v13652_v24 }
 0x68d   :  { %v11350_v25 = vadd.f32 %v11349_v62, %v19255_v11  ;;  %13740 = vmatpush3.bf16.msra.mxu0 %v13854_v8  ;;  %v11389_v29 = vadd.f32 %v19358_v38, %v11348_v44 }
 0x68e   :  { %v11351_v63 = vpop.f32.mrf.mxu1  ;;  %13741 = vmatprep.subr.bf16.mxu0 %v13855_v49 }
 0x68f   :  { %11656 = vmatpush1.bf16.msra.mxu1 %v13651_v50  ;;  %v11391_v4 = vadd.f32 %v19370_v47, %v11350_v25  ;;  %v13861_v47 = vld [vmem:[%s19518_s8 + $0x68] sm:$0xff]   ;;  %v11714_v50 = vsub.s32 7, %v14596_v43 }
 0x690   :  { %v11352_v12 = vpop.f32.mrf.mxu1 }
 0x691   :  { %13742 = vmatpush3.bf16.msra.mxu0 %v13856_v5  ;;  %v13905_v5 = vld [vmem:[%s19517_s7] sm:$0xff] }
 0x692   :  { %13664 = vmatmul.mubr.msk.bf16.vlgmr.msra.gmra.mxu1 %vm9874_vm8, %v16284_v48  ;;  %v13857_v48 = vld [vmem:[%s19518_s8 + $0x78] sm:$0xff]  }
 0x693   :  { %13705 = vmatprep.subr.bf16.mxu1 %v13857_v48 }
 0x694   :  { %12132 = vmatmul.mubr.bf16.vlgmr.msra.gmra.mxu0 %v11794_v1  ;;  %13706 = vmatpush3.bf16.msra.mxu1 %v13858_v16  ;;  %v11715_v1 = vrot.slane %v13905_v5, %v11714_v50 }
 0x695   :  { %13707 = vmatprep.subr.bf16.mxu1 %v13859_v2 }
 0x698   :  { %13708 = vmatpush3.bf16.msra.mxu1 %v13860_v42 }
 0x699   :  { %13709 = vmatprep.subr.bf16.mxu1 %v13861_v47 }
 0x69c   :  { %13710 = vmatpush3.bf16.msra.mxu1 %v13862_v46 }
 0x69d   :  { %13711 = vmatprep.subr.bf16.mxu1 %v13863_v0 }
 0x6a0   :  { %13712 = vmatpush3.bf16.msra.mxu1 %v13864_v18 }
 0x6a1   :  { %13713 = vmatprep.subr.bf16.mxu1 %v13865_v32 }
 0x6a4   :  { %13714 = vmatpush3.bf16.msra.mxu1 %v13866_v9 }
 0x6a5   :  { %13715 = vmatprep.subr.bf16.mxu1 %v13867_v6 }
 0x6a8   :  { %13716 = vmatpush3.bf16.msra.mxu1 %v13868_v60 }
 0x6a9   :  { %13717 = vmatprep.subr.bf16.mxu1 %v13869_v10 }
 0x6ac   :  { %13718 = vmatpush3.bf16.msra.mxu1 %v13870_v27 }
 0x6ad   :  { %13719 = vmatprep.subr.bf16.mxu1 %v13871_v36  ;;  %v13672_v36 = vld [vmem:[%s19521_s9] ss:$0 sm:$0xff] }
 0x6b0   :  { %13720 = vmatpush3.bf16.msra.mxu1 %v13872_v14 }
 0x6b4   :  { %v11470_v11 = vpop.f32.mrf.mxu0 }
 0x6b6   :  { %v11472_v3 = vpop.f32.mrf.mxu0 }
 0x6b8   :  { %v11474_v17 = vpop.f32.mrf.mxu0 }
 0x6ba   :  { %v11475_v21 = vpop.f32.mrf.mxu0 }
 0x6ca   :  { %v11429_v53 = vpop.f32.mrf.mxu1 }
 0x6cb   :  { %v11430_v39 = vadd.f32 %v11429_v53, %v11389_v29  ;;  %v11711_v29 = vrot.slane %v13905_v5, %v11710_v55 }
 0x6cc   :  { %v11431_v13 = vpop.f32.mrf.mxu1 }
 0x6cd   :  { %v11432_v45 = vadd.f32 %v11431_v13, %v11391_v4  ;;  %v11471_v40 = vadd.f32 %v11470_v11, %v11430_v39 }
 0x6ce   :  { %v11433_v61 = vpop.f32.mrf.mxu1 }
 0x6cf   :  { %v11473_v38 = vadd.f32 %v11472_v3, %v11432_v45 }
 0x6d0   :  { %v11434_v37 = vpop.f32.mrf.mxu1 }
 0x6f4   :  { %v11552_v20 = vpop.f32.mrf.mxu0 }
 0x6f6   :  { %v11554_v31 = vpop.f32.mrf.mxu0 }
 0x6f8   :  { %v11556_v54 = vpop.f32.mrf.mxu0 }
 0x6fa   :  { %v11557_v59 = vpop.f32.mrf.mxu0 }
 0x70a   :  { %v11511_v23 = vpop.f32.mrf.mxu1 }
 0x70b   :  { %v11512_v22 = vadd.f32 %v11511_v23, %v11471_v40 }
 0x70c   :  { %v11513_v41 = vpop.f32.mrf.mxu1 }
 0x70d   :  { %v11514_v15 = vadd.f32 %v11513_v41, %v11473_v38  ;;  %v11553_v28 = vadd.f32 %v11552_v20, %v11512_v22 }
 0x70e   :  { %v11515_v19 = vpop.f32.mrf.mxu1 }
 0x70f   :  { %v11555_v35 = vadd.f32 %v11554_v31, %v11514_v15  ;;  %v12158_v31 = vrot.slane %v12144_v7, %v14611_v56 }
 0x710   :  { %v11516_v57 = vpop.f32.mrf.mxu1 }
 0x734   :  { %v11634_v33 = vpop.f32.mrf.mxu0 }
 0x736   :  { %v11636_v34 = vpop.f32.mrf.mxu0 }
 0x738   :  { %v11638_v52 = vpop.f32.mrf.mxu0 }
 0x73a   :  { %v11639_v30 = vpop.f32.mrf.mxu0 }
 0x74a   :  { %v11593_v26 = vpop.f32.mrf.mxu1 }
 0x74b   :  { %v11594_v8 = vadd.f32 %v11593_v26, %v11553_v28 }
 0x74c   :  { %v11595_v24 = vpop.f32.mrf.mxu1 }
 0x74d   :  { %v11596_v44 = vadd.f32 %v11595_v24, %v11555_v35  ;;  %v11635_v25 = vadd.f32 %v11634_v33, %v11594_v8 }
 0x74e   :  { %v11597_v49 = vpop.f32.mrf.mxu1 }
 0x74f   :  { %v11637_v12 = vadd.f32 %v11636_v34, %v11596_v44 }
 0x750   :  { %v11598_v62 = vpop.f32.mrf.mxu1 }
 0x752   :  { %v11675_v63 = vpop.f32.mrf.mxu1 }
 0x753   :  { %v11676_v4 = vadd.f32 %v11675_v63, %v11635_v25 }
 0x754   :  { %v11677_v11 = vpop.f32.mrf.mxu1  ;;  %v13743_v3 = vpop.f32.mrf.mxu0 }
 0x755   :  { %v11730_v17 = vadd.f32 %v11711_v29, %v11676_v4  ;;  %v11678_v21 = vadd.f32 %v11677_v11, %v11637_v12 }
 0x756   :  { %v11679_v53 = vpop.f32.mrf.mxu1  ;;  %v13744_v39 = vpop.f32.mrf.mxu0 }
 0x757   :  { %v13669_v13 = vmul.f32 -1.442695, %v11730_v17  ;;  %v11731_v45 = vadd.f32 %v11715_v1, %v11678_v21  ;;  %v13745_v43 = vadd.f32 %v13744_v39, %v13743_v3 }
 0x758   :  { %v11680_v40 = vpop.f32.mrf.mxu1  ;;  %v13746_v61 = vpop.f32.mrf.mxu0 }
 0x759   :  { %13893 = vpow2.f32 %v13669_v13  ;;  %v13670_v38 = vmul.f32 -1.442695, %v11731_v45 }
 0x75a   :  { %v13747_v37 = vpop.f32.mrf.mxu0 }
 0x75b   :  { %13895 = vpow2.f32 %v13670_v38 }
 0x75c   :  { %13897 = vtanh.f32 %v19091_v51 }
 0x766   :  { %v13894_v48 = vpop.eup %13893 }
 0x767   :  { %v11764_v16 = vadd.f32 1.0, %v13894_v48 }
 0x768   :  { %v13896_v2 = vpop.eup %13895 }
 0x769   :  { %13899 = vrcp.f32 %v11764_v16  ;;  %v11765_v42 = vadd.f32 1.0, %v13896_v2  ;;  %v13898_v47 = vpop.eup %13897 }
 0x76a   :  { %13901 = vtanh.f32 %v19099_v58 }
 0x76b   :  { %13903 = vrcp.f32 %v11765_v42 }
 0x776   :  { %v13900_v46 = vpop.eup %13899 }
 0x777   :  { %v13902_v0 = vpop.eup %13901  ;;  %v11790_v18 = vmul.f32 %v13900_v46, %v13898_v47 }
 0x778   :  { %v13904_v32 = vpop.eup %13903 }
 0x779   :  { %v11791_v9 = vmul.f32 %v13904_v32, %v13902_v0  ;;  %v11792_v20 = vpack.c.bf16 %v11790_v18, %v11790_v18 }
 0x77b   :  { %v11793_v6 = vpack.c.bf16 %v11791_v9, %v11791_v9  ;;  %v12143_v60 = vcombine.low %v11790_v18, %v11791_v9 }
 0x77d   :  { %12091 = vmatprep.mubr.bf16.mxu1 %v11793_v6  ;;  %v12151_v10 = vrot.slane %v12143_v60, %v14611_v56 }
 0x77e   :  { %12092 = vmatmul.mubr.bf16.vlgmr.msra.gmra.mxu1 %v11792_v20 }
 0x77f   :  { %v12159_v27 = vcombine.low %v12151_v10, %v12158_v31 }
 0x781   :  { %12161 = vst [vmem:[%s19520_s10] sm:$0xff] %v12159_v27 }
 0x83e   :  { %v13721_v54 = vpop.f32.mrf.mxu1 }
 0x840   :  { %v13722_v59 = vpop.f32.mrf.mxu1 }
 0x841   :  { %v13723_v14 = vadd.f32 %v13722_v59, %v13721_v54 }
 0x842   :  { %v13724_v23 = vpop.f32.mrf.mxu1 }
 0x843   :  { %v12094_v22 = vadd.f32 %v13723_v14, %v13672_v36 }
 0x844   :  { %v13725_v41 = vpop.f32.mrf.mxu1 }
 0x845   :  { %v12134_v15 = vadd.f32 %v13745_v43, %v12094_v22 }
 0x847   :  { %12162 = vst [vmem:[%s19520_s10 + $0x8] sm:$0x3] %v12134_v15 }

</bundles_post_ra>
